<compile_context>
chip_gen: v6e
topology: v6e:2x2x1
jax: 0.10.0
libtpu: 0.0.40
codegen_flags: <defaults>
</compile_context>

<pallas_src>
import math
import functools

import numpy as np
import jax
import jax.numpy as jnp
from jax import lax
from jax.experimental import pallas as pl
from jax.experimental.pallas import tpu as pltpu


# ----------------------------- in-kernel math helpers ---------------------------


def _layernorm(z, gamma, beta, eps=1e-5):
    mu = jnp.mean(z, axis=-1, keepdims=True)
    var = jnp.mean((z - mu) ** 2, axis=-1, keepdims=True)
    return (z - mu) * lax.rsqrt(var + eps) * gamma + beta


def _erf(z):
    # Abramowitz & Stegun 7.1.26, |err| < 1.5e-7.  VPU mul/add + one EUP exp per element.
    a1, a2, a3, a4, a5 = 0.254829592, -0.284496736, 1.421413741, -1.453152027, 1.061405429
    p = 0.3275911
    sgn = jnp.where(z >= 0.0, jnp.float32(1.0), jnp.float32(-1.0))
    za = jnp.abs(z)
    t = 1.0 / (1.0 + p * za)
    poly = ((((a5 * t + a4) * t + a3) * t + a2) * t + a1) * t
    return sgn * (1.0 - poly * jnp.exp(-za * za))


def _gelu_exact(x):
    # matches nn.GELU() (erf form) to ~1e-7
    return 0.5 * x * (1.0 + _erf(x * 0.7071067811865476))


def _dot(a, b, compute_dtype):
    # weights `b` are already stored in compute_dtype; f32 accumulation on the MXU.
    return jnp.dot(a.astype(compute_dtype), b, preferred_element_type=jnp.float32)


def _mha(xq, xkv, *, ai, bias, is_self, wqkv_ref, bqkv_ref, wo_ref, bo_ref,
         n_heads, d_k, d_v, compute_dtype, approx_recip):
    """Multi-head attention on flattened row slabs.

    Per-group attention (per (b,ts_d) or per (b,seg)) is emulated with the additive
    `bias` (0 same group, -1e30 otherwise).  1/sqrt(d_k) is pre-folded into wq/bq.
    """
    Hdk = n_heads * d_k
    Hdv = n_heads * d_v
    wqkv = wqkv_ref[ai]            # [d_model, 2*Hdk + Hdv]  (compute_dtype)
    bqkv = bqkv_ref[ai]            # [1, 2*Hdk + Hdv]        (f32)

    if is_self:
        qkv = _dot(xq, wqkv, compute_dtype) + bqkv          # one fused projection matmul
        q, k, v = qkv[:, :Hdk], qkv[:, Hdk:2 * Hdk], qkv[:, 2 * Hdk:]
    else:
        q = _dot(xq, wqkv[:, :Hdk], compute_dtype) + bqkv[:, :Hdk]
        kv = _dot(xkv, wqkv[:, Hdk:], compute_dtype) + bqkv[:, Hdk:]
        k, v = kv[:, :Hdk], kv[:, Hdk:]

    q = q.astype(compute_dtype)
    k = k.astype(compute_dtype)
    v = v.astype(compute_dtype)
    # head split via lane slices + stack (avoids lane-splitting reshapes)
    qh = jnp.stack([q[:, h * d_k:(h + 1) * d_k] for h in range(n_heads)], axis=0)
    kh = jnp.stack([k[:, h * d_k:(h + 1) * d_k] for h in range(n_heads)], axis=0)
    vh = jnp.stack([v[:, h * d_v:(h + 1) * d_v] for h in range(n_heads)], axis=0)

    s = jnp.einsum('hqd,hkd->hqk', qh, kh, preferred_element_type=jnp.float32)
    s = s + bias[None]                                       # f32 bias on f32 scores
    m = jnp.max(s, axis=-1, keepdims=True)
    e = jnp.exp(s - m)
    a = e * pl.reciprocal(jnp.sum(e, axis=-1, keepdims=True), approx=approx_recip)

    ctx = jnp.einsum('hqk,hkd->hqd', a.astype(compute_dtype), vh,
                     preferred_element_type=jnp.float32)     # [H, Rq, d_v]
    ctx = jnp.concatenate([ctx[h] for h in range(n_heads)], axis=-1)   # [Rq, H*d_v]
    return _dot(ctx, wo_ref[ai], compute_dtype) + bo_ref[ai]           # single K=H*d_v out-proj


def _post_block(x, attn_out, *, bi, w1_ref, b1_ref, w2_ref, b2_ref,
                ln_g_ref, ln_b_ref, compute_dtype):
    """y = LN2( LN1(x + attn) + MLP(LN1(x + attn)) )."""
    h = _layernorm(x + attn_out, ln_g_ref[2 * bi], ln_b_ref[2 * bi])
    m = _dot(h, w1_ref[bi], compute_dtype) + b1_ref[bi]
    m = _gelu_exact(m)
    m = _dot(m, w2_ref[bi], compute_dtype) + b2_ref[bi]
    return _layernorm(h + m, ln_g_ref[2 * bi + 1], ln_b_ref[2 * bi + 1])


# ------------------------------- fused kernel ----------------------------------


def _tsa_kernel(x_ref, wqkv_ref, bqkv_ref, wo_ref, bo_ref,
                w1_ref, b1_ref, w2_ref, b2_ref, ln_g_ref, ln_b_ref,
                router_ref, bt_ref, bs_ref, br_ref, out_ref, *,
                n_heads, d_k, d_v, compute_dtype, approx_recip):
    x = x_ref[...]                 # [block_b*ts_d*seg, d_model], row = bi*R + t*seg + s

    mha = functools.partial(_mha, wqkv_ref=wqkv_ref, bqkv_ref=bqkv_ref,
                            wo_ref=wo_ref, bo_ref=bo_ref,
                            n_heads=n_heads, d_k=d_k, d_v=d_v,
                            compute_dtype=compute_dtype, approx_recip=approx_recip)
    post = functools.partial(_post_block, w1_ref=w1_ref, b1_ref=b1_ref,
                             w2_ref=w2_ref, b2_ref=b2_ref,
                             ln_g_ref=ln_g_ref, ln_b_ref=ln_b_ref,
                             compute_dtype=compute_dtype)

    # ---- stage 1: attention across seg_num, per (batch, ts_d) group ------------
    time_enc = mha(x, x, ai=0, bias=bt_ref[...], is_self=True)
    dim_in = post(x, time_enc, bi=0)

    # ---- stage 2: router attention across ts_d, per (batch, seg) group ---------
    dim_buffer = mha(router_ref[...], dim_in, ai=1, bias=bs_ref[...], is_self=False)
    dim_receive = mha(dim_in, dim_buffer, ai=2, bias=br_ref[...], is_self=False)
    dim_enc = post(dim_in, dim_receive, bi=1)

    out_ref[...] = dim_enc.astype(out_ref.dtype)     # row bi*R + t*seg + s -> x layout


# ------------------------------- host-side helpers ------------------------------


def _pick_block_b(batch):
    if batch <= 1:
        return 1
    best = 1
    for cand in range(1, batch // 2 + 1):   # keep >= 2 grid steps (both v7x TCs busy)
        if batch % cand == 0:
            best = cand
    return best


def _build_masks(block_b, ts_d, seg, factor):
    R, Rr = ts_d * seg, seg * factor
    neg = np.float32(-1e30)
    rx = np.arange(block_b * R)
    rr = np.arange(block_b * Rr)
    g_time = rx // seg                               # (batch_elem, ts_d) group of x rows
    g_xseg = (rx // R) * seg + (rx % seg)            # (batch_elem, seg)  group of x rows
    g_rseg = rr // factor                            # (batch_elem, seg)  group of router rows

    def bias(gq, gk):
        return jnp.asarray(np.where(gq[:, None] == gk[None, :], np.float32(0.0), neg),
                           dtype=jnp.float32)

    return bias(g_time, g_time), bias(g_rseg, g_xseg), bias(g_xseg, g_rseg)


# ------------------------------- wrapper ----------------------------------------


def two_stage_attention(x, params, n_heads, *, block_b=None,
                        compute_dtype=jnp.bfloat16, approx_recip=True):
    """x: [batch, ts_d, seg_num, d_model] -> same shape.

    compute_dtype: matmul-operand dtype (bf16 default; f32 stats/bias/LN always).
    block_b: batch elements per grid step (default keeps >= 2 steps; on v5e use batch).
    """
    b, ts_d, seg, d_model = x.shape
    factor = params["router"].shape[1]
    d_k = params["time_attention"]["wq"].shape[1] // n_heads
    d_v = params["time_attention"]["wv"].shape[1] // n_heads
    R, Rr = ts_d * seg, seg * factor

    if block_b is None:
        block_b = _pick_block_b(b)
    assert b % block_b == 0, (b, block_b)
    assert (block_b * R) % 8 == 0 or block_b == b, "row block must be sublane-aligned"
    grid = (b // block_b,)

    # ---- one-time host-side weight packing (free reshapes / tiny concats) ------
    scale = 1.0 / math.sqrt(d_k)

    def pack_attn(a):
        wqkv = jnp.concatenate([a["wq"] * scale, a["wk"], a["wv"]], axis=1)
        bqkv = jnp.concatenate([a["bq"] * scale, a["bk"], a["bv"]], axis=1)
        return wqkv, bqkv, a["wo"], a["bo"]

    packs = [pack_attn(params[k]) for k in ("time_attention", "dim_sender", "dim_receiver")]
    attn_wqkv = jnp.stack([p[0] for p in packs]).astype(compute_dtype)   # [3, d_model, 3*H*dk]
    attn_bqkv = jnp.stack([p[1] for p in packs]).astype(jnp.float32)     # [3, 1, 3*H*dk]
    attn_wo = jnp.stack([p[2] for p in packs]).astype(compute_dtype)     # [3, H*dv, d_model]
    attn_bo = jnp.stack([p[3] for p in packs]).astype(jnp.float32)       # [3, 1, d_model]

    blocks = (params["block1"], params["block2"])
    mlp_w1 = jnp.stack([blk["w1"] for blk in blocks]).astype(compute_dtype)  # [2, d_model, d_ff]
    mlp_b1 = jnp.stack([blk["b1"] for blk in blocks]).astype(jnp.float32)
    mlp_w2 = jnp.stack([blk["w2"] for blk in blocks]).astype(compute_dtype)  # [2, d_ff, d_model]
    mlp_b2 = jnp.stack([blk["b2"] for blk in blocks]).astype(jnp.float32)
    ln_g = jnp.stack([blocks[0]["g1"], blocks[0]["g2"],
                      blocks[1]["g1"], blocks[1]["g2"]]).astype(jnp.float32)  # [4, 1, d_model]
    ln_b = jnp.stack([blocks[0]["be1"], blocks[0]["be2"],
                      blocks[1]["be1"], blocks[1]["be2"]]).astype(jnp.float32)

    router = jnp.tile(params["router"].reshape(Rr, d_model),
                      (block_b, 1)).astype(jnp.float32)                      # [block_b*Rr, d_model]

    bt, bs, br = _build_masks(block_b, ts_d, seg, factor)

    x_flat = x.reshape(b * R, d_model)          # contiguous: free

    consts = (attn_wqkv, attn_bqkv, attn_wo, attn_bo, mlp_w1, mlp_b1, mlp_w2, mlp_b2,
              ln_g, ln_b, router, bt, bs, br)
    const_specs = [pl.BlockSpec(a.shape, lambda i, _n=a.ndim: (0,) * _n) for a in consts]

    kern = functools.partial(_tsa_kernel, n_heads=n_heads, d_k=d_k, d_v=d_v,
                             compute_dtype=compute_dtype, approx_recip=approx_recip)

    out = pl.pallas_call(
        kern,
        out_shape=jax.ShapeDtypeStruct((b * R, d_model), jnp.float32),
        grid=grid,
        in_specs=[pl.BlockSpec((block_b * R, d_model), lambda i: (i, 0))] + const_specs,
        out_specs=pl.BlockSpec((block_b * R, d_model), lambda i: (i, 0)),
        compiler_params=pltpu.CompilerParams(dimension_semantics=("parallel",)),
    )(x_flat, *consts)

    return out.reshape(b, ts_d, seg, d_model)


# ------------------------------- params -----------------------------------------


def _init_linear(key, fan_in, fan_out):
    kw, kb = jax.random.split(key)
    w = jax.random.normal(kw, (fan_in, fan_out), jnp.float32) * 0.02
    b = jax.random.normal(kb, (1, fan_out), jnp.float32) * 0.02
    return w, b


def _init_attention(key, d_model, n_heads):
    d_k = d_model // n_heads
    d_v = d_model // n_heads
    ks = jax.random.split(key, 4)
    wq, bq = _init_linear(ks[0], d_model, d_k * n_heads)
    wk, bk = _init_linear(ks[1], d_model, d_k * n_heads)
    wv, bv = _init_linear(ks[2], d_model, d_v * n_heads)
    wo, bo = _init_linear(ks[3], d_v * n_heads, d_model)
    return dict(wq=wq, bq=bq, wk=wk, bk=bk, wv=wv, bv=bv, wo=wo, bo=bo)


def _init_block(key, d_model, d_ff):
    k1, k2 = jax.random.split(key)
    w1, b1 = _init_linear(k1, d_model, d_ff)
    w2, b2 = _init_linear(k2, d_ff, d_model)
    ones = jnp.ones((1, d_model), jnp.float32)
    zeros = jnp.zeros((1, d_model), jnp.float32)
    return dict(g1=ones, be1=zeros, w1=w1, b1=b1, w2=w2, b2=b2, g2=ones, be2=zeros)


def init_params(key, seg_num, factor, d_model, n_heads, d_ff):
    ks = jax.random.split(key, 6)
    return {
        "time_attention": _init_attention(ks[0], d_model, n_heads),
        "dim_sender": _init_attention(ks[1], d_model, n_heads),
        "dim_receiver": _init_attention(ks[2], d_model, n_heads),
        "router": jax.random.normal(ks[3], (seg_num, factor, d_model), jnp.float32),
        "block1": _init_block(ks[4], d_model, d_ff),
        "block2": _init_block(ks[5], d_model, d_ff),
    }


# -------------------------------- main -------------------------------------------


if __name__ == "__main__":
    batch, ts_d, seg_num, d_model = 4, 4, 8, 32
    n_heads, factor = 4, 2
    d_ff = 4 * d_model

    key = jax.random.PRNGKey(0)
    kx, kp = jax.random.split(key)
    x = jax.random.normal(kx, (batch, ts_d, seg_num, d_model), jnp.float32)
    params = init_params(kp, seg_num, factor, d_model, n_heads, d_ff)

    out = two_stage_attention(x, params, n_heads=n_heads)   # block_b=2 -> grid=(2,)
    out = jax.block_until_ready(out)
    assert out.shape == (batch, ts_d, seg_num, d_model), out.shape
    assert bool(jnp.all(jnp.isfinite(out)))
    print("KERNEL_OK")
</pallas_src>

<mosaic_0001>
module attributes {stable_mosaic.version = 11 : i64} {
  func.func @_tsa_kernel(%arg0: i32, %arg1: memref<64x32xf32, #tpu.memory_space<vmem>>, %arg2: memref<3x32x96xbf16, #tpu.memory_space<vmem>>, %arg3: memref<3x1x96xf32, #tpu.memory_space<vmem>>, %arg4: memref<3x32x32xbf16, #tpu.memory_space<vmem>>, %arg5: memref<3x1x32xf32, #tpu.memory_space<vmem>>, %arg6: memref<2x32x128xbf16, #tpu.memory_space<vmem>>, %arg7: memref<2x1x128xf32, #tpu.memory_space<vmem>>, %arg8: memref<2x128x32xbf16, #tpu.memory_space<vmem>>, %arg9: memref<2x1x32xf32, #tpu.memory_space<vmem>>, %arg10: memref<4x1x32xf32, #tpu.memory_space<vmem>>, %arg11: memref<4x1x32xf32, #tpu.memory_space<vmem>>, %arg12: memref<32x32xf32, #tpu.memory_space<vmem>>, %arg13: memref<64x64xf32, #tpu.memory_space<vmem>>, %arg14: memref<32x64xf32, #tpu.memory_space<vmem>>, %arg15: memref<64x32xf32, #tpu.memory_space<vmem>>, %arg16: memref<64x32xf32, #tpu.memory_space<vmem>>) attributes {dimension_semantics = [#tpu.dimension_semantics<parallel>], iteration_bounds = array<i64: 2>, scalar_prefetch = 0 : i64, scratch_operands = 0 : i64, tpu.core_type = #tpu.core_type<tc>, window_params = [{transform_indices = @transform_0, window_bounds = array<i64: 64, 32>}, {pipeline_mode = #tpu.pipeline_mode<synchronous>, transform_indices = @transform_1, window_bounds = array<i64: 3, 32, 96>}, {pipeline_mode = #tpu.pipeline_mode<synchronous>, transform_indices = @transform_2, window_bounds = array<i64: 3, 1, 96>}, {pipeline_mode = #tpu.pipeline_mode<synchronous>, transform_indices = @transform_3, window_bounds = array<i64: 3, 32, 32>}, {pipeline_mode = #tpu.pipeline_mode<synchronous>, transform_indices = @transform_4, window_bounds = array<i64: 3, 1, 32>}, {pipeline_mode = #tpu.pipeline_mode<synchronous>, transform_indices = @transform_5, window_bounds = array<i64: 2, 32, 128>}, {pipeline_mode = #tpu.pipeline_mode<synchronous>, transform_indices = @transform_6, window_bounds = array<i64: 2, 1, 128>}, {pipeline_mode = #tpu.pipeline_mode<synchronous>, transform_indices = @transform_7, window_bounds = array<i64: 2, 128, 32>}, {pipeline_mode = #tpu.pipeline_mode<synchronous>, transform_indices = @transform_8, window_bounds = array<i64: 2, 1, 32>}, {pipeline_mode = #tpu.pipeline_mode<synchronous>, transform_indices = @transform_9, window_bounds = array<i64: 4, 1, 32>}, {pipeline_mode = #tpu.pipeline_mode<synchronous>, transform_indices = @transform_10, window_bounds = array<i64: 4, 1, 32>}, {pipeline_mode = #tpu.pipeline_mode<synchronous>, transform_indices = @transform_11, window_bounds = array<i64: 32, 32>}, {pipeline_mode = #tpu.pipeline_mode<synchronous>, transform_indices = @transform_12, window_bounds = array<i64: 64, 64>}, {pipeline_mode = #tpu.pipeline_mode<synchronous>, transform_indices = @transform_13, window_bounds = array<i64: 32, 64>}, {pipeline_mode = #tpu.pipeline_mode<synchronous>, transform_indices = @transform_14, window_bounds = array<i64: 64, 32>}, {transform_indices = @transform_15, window_bounds = array<i64: 64, 32>}]} {
    %c0 = arith.constant 0 : index
    %c0_0 = arith.constant 0 : index
    %0 = vector.load %arg1[%c0, %c0_0] : memref<64x32xf32, #tpu.memory_space<vmem>>, vector<64x32xf32>
    %c0_1 = arith.constant 0 : index
    %c0_2 = arith.constant 0 : index
    %1 = vector.load %arg13[%c0_1, %c0_2] : memref<64x64xf32, #tpu.memory_space<vmem>>, vector<64x64xf32>
    %c0_3 = arith.constant 0 : index
    %c0_4 = arith.constant 0 : index
    %c0_5 = arith.constant 0 : index
    %2 = vector.load %arg2[%c0_3, %c0_4, %c0_5] : memref<3x32x96xbf16, #tpu.memory_space<vmem>>, vector<1x32x96xbf16>
    %3 = vector.shape_cast %2 : vector<1x32x96xbf16> to vector<32x96xbf16>
    %c0_6 = arith.constant 0 : index
    %c0_7 = arith.constant 0 : index
    %c0_8 = arith.constant 0 : index
    %4 = vector.load %arg3[%c0_6, %c0_7, %c0_8] : memref<3x1x96xf32, #tpu.memory_space<vmem>>, vector<1x1x96xf32>
    %5 = vector.shape_cast %4 : vector<1x1x96xf32> to vector<1x96xf32>
    %6 = arith.truncf %0 : vector<64x32xf32> to vector<64x32xbf16>
    %cst = arith.constant dense<0.000000e+00> : vector<64x96xf32>
    %7 = tpu.matmul %6, %3, %cst {dimension_numbers = #tpu.dot_dimension_numbers<[1], [0], [0], [1], [0, 0, 1, 1], [], []>} : vector<64x32xbf16>, vector<32x96xbf16>, vector<64x96xf32> -> vector<64x96xf32>
    %8 = vector.broadcast %5 : vector<1x96xf32> to vector<64x96xf32>
    %9 = arith.addf %7, %8 : vector<64x96xf32>
    %10 = vector.extract_strided_slice %9 {offsets = [0, 0], sizes = [64, 32], strides = [1, 1]} : vector<64x96xf32> to vector<64x32xf32>
    %11 = vector.extract_strided_slice %9 {offsets = [0, 32], sizes = [64, 32], strides = [1, 1]} : vector<64x96xf32> to vector<64x32xf32>
    %12 = vector.extract_strided_slice %9 {offsets = [0, 64], sizes = [64, 32], strides = [1, 1]} : vector<64x96xf32> to vector<64x32xf32>
    %13 = arith.truncf %10 : vector<64x32xf32> to vector<64x32xbf16>
    %14 = arith.truncf %11 : vector<64x32xf32> to vector<64x32xbf16>
    %15 = arith.truncf %12 : vector<64x32xf32> to vector<64x32xbf16>
    %16 = vector.extract_strided_slice %13 {offsets = [0, 0], sizes = [64, 8], strides = [1, 1]} : vector<64x32xbf16> to vector<64x8xbf16>
    %17 = vector.extract_strided_slice %13 {offsets = [0, 8], sizes = [64, 8], strides = [1, 1]} : vector<64x32xbf16> to vector<64x8xbf16>
    %18 = vector.extract_strided_slice %13 {offsets = [0, 16], sizes = [64, 8], strides = [1, 1]} : vector<64x32xbf16> to vector<64x8xbf16>
    %19 = vector.extract_strided_slice %13 {offsets = [0, 24], sizes = [64, 8], strides = [1, 1]} : vector<64x32xbf16> to vector<64x8xbf16>
    %20 = vector.shape_cast %16 : vector<64x8xbf16> to vector<1x64x8xbf16>
    %21 = vector.shape_cast %17 : vector<64x8xbf16> to vector<1x64x8xbf16>
    %22 = vector.shape_cast %18 : vector<64x8xbf16> to vector<1x64x8xbf16>
    %23 = vector.shape_cast %19 : vector<64x8xbf16> to vector<1x64x8xbf16>
    %24 = tpu.concatenate %20, %21, %22, %23 in 0 : vector<1x64x8xbf16>, vector<1x64x8xbf16>, vector<1x64x8xbf16>, vector<1x64x8xbf16> -> vector<4x64x8xbf16>
    %25 = vector.extract_strided_slice %14 {offsets = [0, 0], sizes = [64, 8], strides = [1, 1]} : vector<64x32xbf16> to vector<64x8xbf16>
    %26 = vector.extract_strided_slice %14 {offsets = [0, 8], sizes = [64, 8], strides = [1, 1]} : vector<64x32xbf16> to vector<64x8xbf16>
    %27 = vector.extract_strided_slice %14 {offsets = [0, 16], sizes = [64, 8], strides = [1, 1]} : vector<64x32xbf16> to vector<64x8xbf16>
    %28 = vector.extract_strided_slice %14 {offsets = [0, 24], sizes = [64, 8], strides = [1, 1]} : vector<64x32xbf16> to vector<64x8xbf16>
    %29 = vector.shape_cast %25 : vector<64x8xbf16> to vector<1x64x8xbf16>
    %30 = vector.shape_cast %26 : vector<64x8xbf16> to vector<1x64x8xbf16>
    %31 = vector.shape_cast %27 : vector<64x8xbf16> to vector<1x64x8xbf16>
    %32 = vector.shape_cast %28 : vector<64x8xbf16> to vector<1x64x8xbf16>
    %33 = tpu.concatenate %29, %30, %31, %32 in 0 : vector<1x64x8xbf16>, vector<1x64x8xbf16>, vector<1x64x8xbf16>, vector<1x64x8xbf16> -> vector<4x64x8xbf16>
    %34 = vector.extract_strided_slice %15 {offsets = [0, 0], sizes = [64, 8], strides = [1, 1]} : vector<64x32xbf16> to vector<64x8xbf16>
    %35 = vector.extract_strided_slice %15 {offsets = [0, 8], sizes = [64, 8], strides = [1, 1]} : vector<64x32xbf16> to vector<64x8xbf16>
    %36 = vector.extract_strided_slice %15 {offsets = [0, 16], sizes = [64, 8], strides = [1, 1]} : vector<64x32xbf16> to vector<64x8xbf16>
    %37 = vector.extract_strided_slice %15 {offsets = [0, 24], sizes = [64, 8], strides = [1, 1]} : vector<64x32xbf16> to vector<64x8xbf16>
    %38 = vector.shape_cast %34 : vector<64x8xbf16> to vector<1x64x8xbf16>
    %39 = vector.shape_cast %35 : vector<64x8xbf16> to vector<1x64x8xbf16>
    %40 = vector.shape_cast %36 : vector<64x8xbf16> to vector<1x64x8xbf16>
    %41 = vector.shape_cast %37 : vector<64x8xbf16> to vector<1x64x8xbf16>
    %42 = tpu.concatenate %38, %39, %40, %41 in 0 : vector<1x64x8xbf16>, vector<1x64x8xbf16>, vector<1x64x8xbf16>, vector<1x64x8xbf16> -> vector<4x64x8xbf16>
    "tpu.trace_start"() <{level = 10 : i32, message = "hqd,hkd->hqk"}> : () -> ()
    %cst_9 = arith.constant dense<0.000000e+00> : vector<4x64x64xf32>
    %43 = tpu.matmul %24, %33, %cst_9 {dimension_numbers = #tpu.dot_dimension_numbers<[2], [2], [1], [1], [0, 0, 0, 1, 1, 1], [0], [0]>} : vector<4x64x8xbf16>, vector<4x64x8xbf16>, vector<4x64x64xf32> -> vector<4x64x64xf32>
    "tpu.trace_stop"() : () -> ()
    %44 = vector.shape_cast %1 : vector<64x64xf32> to vector<1x64x64xf32>
    %45 = vector.broadcast %44 : vector<1x64x64xf32> to vector<4x64x64xf32>
    %46 = arith.addf %43, %45 : vector<4x64x64xf32>
    %cst_10 = arith.constant dense<0xFF800000> : vector<4x64xf32>
    %47 = vector.multi_reduction <maximumf>, %46, %cst_10 [2] : vector<4x64x64xf32> to vector<4x64xf32>
    %48 = vector.shape_cast %47 : vector<4x64xf32> to vector<4x64x1xf32>
    %49 = vector.broadcast %48 : vector<4x64x1xf32> to vector<4x64x64xf32>
    %50 = arith.subf %46, %49 : vector<4x64x64xf32>
    %51 = math.exp %50 : vector<4x64x64xf32>
    %cst_11 = arith.constant dense<0.000000e+00> : vector<4x64xf32>
    %52 = vector.multi_reduction <add>, %51, %cst_11 [2] : vector<4x64x64xf32> to vector<4x64xf32>
    %53 = vector.shape_cast %52 : vector<4x64xf32> to vector<4x64x1xf32>
    %54 = tpu.reciprocal %53 {approx = true} : vector<4x64x1xf32> -> vector<4x64x1xf32>
    %55 = vector.broadcast %54 : vector<4x64x1xf32> to vector<4x64x64xf32>
    %56 = arith.mulf %51, %55 : vector<4x64x64xf32>
    %57 = arith.truncf %56 : vector<4x64x64xf32> to vector<4x64x64xbf16>
    "tpu.trace_start"() <{level = 10 : i32, message = "hqk,hkd->hqd"}> : () -> ()
    %cst_12 = arith.constant dense<0.000000e+00> : vector<4x64x8xf32>
    %58 = tpu.matmul %57, %42, %cst_12 {dimension_numbers = #tpu.dot_dimension_numbers<[2], [1], [1], [2], [0, 0, 0, 1, 1, 2], [0], [0]>} : vector<4x64x64xbf16>, vector<4x64x8xbf16>, vector<4x64x8xf32> -> vector<4x64x8xf32>
    "tpu.trace_stop"() : () -> ()
    %59 = vector.extract_strided_slice %58 {offsets = [0, 0, 0], sizes = [1, 64, 8], strides = [1, 1, 1]} : vector<4x64x8xf32> to vector<1x64x8xf32>
    %60 = vector.shape_cast %59 : vector<1x64x8xf32> to vector<64x8xf32>
    %61 = vector.extract_strided_slice %58 {offsets = [1, 0, 0], sizes = [1, 64, 8], strides = [1, 1, 1]} : vector<4x64x8xf32> to vector<1x64x8xf32>
    %62 = vector.shape_cast %61 : vector<1x64x8xf32> to vector<64x8xf32>
    %63 = vector.extract_strided_slice %58 {offsets = [2, 0, 0], sizes = [1, 64, 8], strides = [1, 1, 1]} : vector<4x64x8xf32> to vector<1x64x8xf32>
    %64 = vector.shape_cast %63 : vector<1x64x8xf32> to vector<64x8xf32>
    %65 = vector.extract_strided_slice %58 {offsets = [3, 0, 0], sizes = [1, 64, 8], strides = [1, 1, 1]} : vector<4x64x8xf32> to vector<1x64x8xf32>
    %66 = vector.shape_cast %65 : vector<1x64x8xf32> to vector<64x8xf32>
    %67 = tpu.concatenate %60, %62, %64, %66 in 1 : vector<64x8xf32>, vector<64x8xf32>, vector<64x8xf32>, vector<64x8xf32> -> vector<64x32xf32>
    %c0_13 = arith.constant 0 : index
    %c0_14 = arith.constant 0 : index
    %c0_15 = arith.constant 0 : index
    %68 = vector.load %arg4[%c0_13, %c0_14, %c0_15] : memref<3x32x32xbf16, #tpu.memory_space<vmem>>, vector<1x32x32xbf16>
    %69 = vector.shape_cast %68 : vector<1x32x32xbf16> to vector<32x32xbf16>
    %70 = arith.truncf %67 : vector<64x32xf32> to vector<64x32xbf16>
    %cst_16 = arith.constant dense<0.000000e+00> : vector<64x32xf32>
    %71 = tpu.matmul %70, %69, %cst_16 {dimension_numbers = #tpu.dot_dimension_numbers<[1], [0], [0], [1], [0, 0, 1, 1], [], []>} : vector<64x32xbf16>, vector<32x32xbf16>, vector<64x32xf32> -> vector<64x32xf32>
    %c0_17 = arith.constant 0 : index
    %c0_18 = arith.constant 0 : index
    %c0_19 = arith.constant 0 : index
    %72 = vector.load %arg5[%c0_17, %c0_18, %c0_19] : memref<3x1x32xf32, #tpu.memory_space<vmem>>, vector<1x1x32xf32>
    %73 = vector.shape_cast %72 : vector<1x1x32xf32> to vector<1x32xf32>
    %74 = vector.broadcast %73 : vector<1x32xf32> to vector<64x32xf32>
    %75 = arith.addf %71, %74 : vector<64x32xf32>
    %76 = arith.addf %0, %75 : vector<64x32xf32>
    %c0_20 = arith.constant 0 : index
    %c0_21 = arith.constant 0 : index
    %c0_22 = arith.constant 0 : index
    %77 = vector.load %arg10[%c0_20, %c0_21, %c0_22] : memref<4x1x32xf32, #tpu.memory_space<vmem>>, vector<1x1x32xf32>
    %78 = vector.shape_cast %77 : vector<1x1x32xf32> to vector<1x32xf32>
    %c0_23 = arith.constant 0 : index
    %c0_24 = arith.constant 0 : index
    %c0_25 = arith.constant 0 : index
    %79 = vector.load %arg11[%c0_23, %c0_24, %c0_25] : memref<4x1x32xf32, #tpu.memory_space<vmem>>, vector<1x1x32xf32>
    %80 = vector.shape_cast %79 : vector<1x1x32xf32> to vector<1x32xf32>
    %cst_26 = arith.constant dense<0.000000e+00> : vector<64xf32>
    %81 = vector.multi_reduction <add>, %76, %cst_26 [1] : vector<64x32xf32> to vector<64xf32>
    %82 = vector.shape_cast %81 : vector<64xf32> to vector<64x1xf32>
    %cst_27 = arith.constant 3.200000e+01 : f32
    %83 = vector.broadcast %cst_27 : f32 to vector<64x1xf32>
    %84 = arith.divf %82, %83 : vector<64x1xf32>
    %85 = vector.broadcast %84 : vector<64x1xf32> to vector<64x32xf32>
    %86 = arith.subf %76, %85 : vector<64x32xf32>
    %87 = arith.mulf %86, %86 : vector<64x32xf32>
    %cst_28 = arith.constant dense<0.000000e+00> : vector<64xf32>
    %88 = vector.multi_reduction <add>, %87, %cst_28 [1] : vector<64x32xf32> to vector<64xf32>
    %89 = vector.shape_cast %88 : vector<64xf32> to vector<64x1xf32>
    %cst_29 = arith.constant 3.200000e+01 : f32
    %90 = vector.broadcast %cst_29 : f32 to vector<64x1xf32>
    %91 = arith.divf %89, %90 : vector<64x1xf32>
    %92 = vector.broadcast %84 : vector<64x1xf32> to vector<64x32xf32>
    %93 = arith.subf %76, %92 : vector<64x32xf32>
    %cst_30 = arith.constant 9.99999974E-6 : f32
    %94 = vector.broadcast %cst_30 : f32 to vector<64x1xf32>
    %95 = arith.addf %91, %94 : vector<64x1xf32>
    %96 = math.rsqrt %95 : vector<64x1xf32>
    %97 = vector.broadcast %96 : vector<64x1xf32> to vector<64x32xf32>
    %98 = arith.mulf %93, %97 : vector<64x32xf32>
    %99 = vector.broadcast %78 : vector<1x32xf32> to vector<64x32xf32>
    %100 = arith.mulf %98, %99 : vector<64x32xf32>
    %101 = vector.broadcast %80 : vector<1x32xf32> to vector<64x32xf32>
    %102 = arith.addf %100, %101 : vector<64x32xf32>
    %c0_31 = arith.constant 0 : index
    %c0_32 = arith.constant 0 : index
    %c0_33 = arith.constant 0 : index
    %103 = vector.load %arg6[%c0_31, %c0_32, %c0_33] : memref<2x32x128xbf16, #tpu.memory_space<vmem>>, vector<1x32x128xbf16>
    %104 = vector.shape_cast %103 : vector<1x32x128xbf16> to vector<32x128xbf16>
    %105 = arith.truncf %102 : vector<64x32xf32> to vector<64x32xbf16>
    %cst_34 = arith.constant dense<0.000000e+00> : vector<64x128xf32>
    %106 = tpu.matmul %105, %104, %cst_34 {dimension_numbers = #tpu.dot_dimension_numbers<[1], [0], [0], [1], [0, 0, 1, 1], [], []>} : vector<64x32xbf16>, vector<32x128xbf16>, vector<64x128xf32> -> vector<64x128xf32>
    %c0_35 = arith.constant 0 : index
    %c0_36 = arith.constant 0 : index
    %c0_37 = arith.constant 0 : index
    %107 = vector.load %arg7[%c0_35, %c0_36, %c0_37] : memref<2x1x128xf32, #tpu.memory_space<vmem>>, vector<1x1x128xf32>
    %108 = vector.shape_cast %107 : vector<1x1x128xf32> to vector<1x128xf32>
    %109 = vector.broadcast %108 : vector<1x128xf32> to vector<64x128xf32>
    %110 = arith.addf %106, %109 : vector<64x128xf32>
    %cst_38 = arith.constant 5.000000e-01 : f32
    %111 = vector.broadcast %cst_38 : f32 to vector<64x128xf32>
    %112 = arith.mulf %111, %110 : vector<64x128xf32>
    %cst_39 = arith.constant 0.707106769 : f32
    %113 = vector.broadcast %cst_39 : f32 to vector<64x128xf32>
    %114 = arith.mulf %110, %113 : vector<64x128xf32>
    %cst_40 = arith.constant 0.000000e+00 : f32
    %115 = vector.broadcast %cst_40 : f32 to vector<64x128xf32>
    %116 = arith.cmpf oge, %114, %115 : vector<64x128xf32>
    %cst_41 = arith.constant 1.000000e+00 : f32
    %cst_42 = arith.constant -1.000000e+00 : f32
    %117 = vector.broadcast %cst_41 : f32 to vector<64x128xf32>
    %118 = vector.broadcast %cst_42 : f32 to vector<64x128xf32>
    %119 = arith.select %116, %117, %118 : vector<64x128xi1>, vector<64x128xf32>
    %120 = math.absf %114 : vector<64x128xf32>
    %cst_43 = arith.constant 0.327591091 : f32
    %121 = vector.broadcast %cst_43 : f32 to vector<64x128xf32>
    %122 = arith.mulf %121, %120 : vector<64x128xf32>
    %cst_44 = arith.constant 1.000000e+00 : f32
    %123 = vector.broadcast %cst_44 : f32 to vector<64x128xf32>
    %124 = arith.addf %123, %122 : vector<64x128xf32>
    %cst_45 = arith.constant 1.000000e+00 : f32
    %125 = vector.broadcast %cst_45 : f32 to vector<64x128xf32>
    %126 = arith.divf %125, %124 : vector<64x128xf32>
    %cst_46 = arith.constant 1.06140542 : f32
    %127 = vector.broadcast %cst_46 : f32 to vector<64x128xf32>
    %128 = arith.mulf %127, %126 : vector<64x128xf32>
    %cst_47 = arith.constant -1.45315206 : f32
    %129 = vector.broadcast %cst_47 : f32 to vector<64x128xf32>
    %130 = arith.addf %128, %129 : vector<64x128xf32>
    %131 = arith.mulf %130, %126 : vector<64x128xf32>
    %cst_48 = arith.constant 1.42141378 : f32
    %132 = vector.broadcast %cst_48 : f32 to vector<64x128xf32>
    %133 = arith.addf %131, %132 : vector<64x128xf32>
    %134 = arith.mulf %133, %126 : vector<64x128xf32>
    %cst_49 = arith.constant -0.284496725 : f32
    %135 = vector.broadcast %cst_49 : f32 to vector<64x128xf32>
    %136 = arith.addf %134, %135 : vector<64x128xf32>
    %137 = arith.mulf %136, %126 : vector<64x128xf32>
    %cst_50 = arith.constant 0.254829586 : f32
    %138 = vector.broadcast %cst_50 : f32 to vector<64x128xf32>
    %139 = arith.addf %137, %138 : vector<64x128xf32>
    %140 = arith.mulf %139, %126 : vector<64x128xf32>
    %cst_51 = arith.constant 0.000000e+00 : f32
    %141 = vector.broadcast %cst_51 : f32 to vector<64x128xf32>
    %142 = arith.subf %141, %120 : vector<64x128xf32>
    %143 = arith.mulf %142, %120 : vector<64x128xf32>
    %144 = math.exp %143 : vector<64x128xf32>
    %145 = arith.mulf %140, %144 : vector<64x128xf32>
    %cst_52 = arith.constant 1.000000e+00 : f32
    %146 = vector.broadcast %cst_52 : f32 to vector<64x128xf32>
    %147 = arith.subf %146, %145 : vector<64x128xf32>
    %148 = arith.mulf %119, %147 : vector<64x128xf32>
    %cst_53 = arith.constant 1.000000e+00 : f32
    %149 = vector.broadcast %cst_53 : f32 to vector<64x128xf32>
    %150 = arith.addf %149, %148 : vector<64x128xf32>
    %151 = arith.mulf %112, %150 : vector<64x128xf32>
    %c0_54 = arith.constant 0 : index
    %c0_55 = arith.constant 0 : index
    %c0_56 = arith.constant 0 : index
    %152 = vector.load %arg8[%c0_54, %c0_55, %c0_56] : memref<2x128x32xbf16, #tpu.memory_space<vmem>>, vector<1x128x32xbf16>
    %153 = vector.shape_cast %152 : vector<1x128x32xbf16> to vector<128x32xbf16>
    %154 = arith.truncf %151 : vector<64x128xf32> to vector<64x128xbf16>
    %cst_57 = arith.constant dense<0.000000e+00> : vector<64x32xf32>
    %155 = tpu.matmul %154, %153, %cst_57 {dimension_numbers = #tpu.dot_dimension_numbers<[1], [0], [0], [1], [0, 0, 1, 1], [], []>} : vector<64x128xbf16>, vector<128x32xbf16>, vector<64x32xf32> -> vector<64x32xf32>
    %c0_58 = arith.constant 0 : index
    %c0_59 = arith.constant 0 : index
    %c0_60 = arith.constant 0 : index
    %156 = vector.load %arg9[%c0_58, %c0_59, %c0_60] : memref<2x1x32xf32, #tpu.memory_space<vmem>>, vector<1x1x32xf32>
    %157 = vector.shape_cast %156 : vector<1x1x32xf32> to vector<1x32xf32>
    %158 = vector.broadcast %157 : vector<1x32xf32> to vector<64x32xf32>
    %159 = arith.addf %155, %158 : vector<64x32xf32>
    %160 = arith.addf %102, %159 : vector<64x32xf32>
    %c1 = arith.constant 1 : index
    %c0_61 = arith.constant 0 : index
    %c0_62 = arith.constant 0 : index
    %161 = vector.load %arg10[%c1, %c0_61, %c0_62] : memref<4x1x32xf32, #tpu.memory_space<vmem>>, vector<1x1x32xf32>
    %162 = vector.shape_cast %161 : vector<1x1x32xf32> to vector<1x32xf32>
    %c1_63 = arith.constant 1 : index
    %c0_64 = arith.constant 0 : index
    %c0_65 = arith.constant 0 : index
    %163 = vector.load %arg11[%c1_63, %c0_64, %c0_65] : memref<4x1x32xf32, #tpu.memory_space<vmem>>, vector<1x1x32xf32>
    %164 = vector.shape_cast %163 : vector<1x1x32xf32> to vector<1x32xf32>
    %cst_66 = arith.constant dense<0.000000e+00> : vector<64xf32>
    %165 = vector.multi_reduction <add>, %160, %cst_66 [1] : vector<64x32xf32> to vector<64xf32>
    %166 = vector.shape_cast %165 : vector<64xf32> to vector<64x1xf32>
    %cst_67 = arith.constant 3.200000e+01 : f32
    %167 = vector.broadcast %cst_67 : f32 to vector<64x1xf32>
    %168 = arith.divf %166, %167 : vector<64x1xf32>
    %169 = vector.broadcast %168 : vector<64x1xf32> to vector<64x32xf32>
    %170 = arith.subf %160, %169 : vector<64x32xf32>
    %171 = arith.mulf %170, %170 : vector<64x32xf32>
    %cst_68 = arith.constant dense<0.000000e+00> : vector<64xf32>
    %172 = vector.multi_reduction <add>, %171, %cst_68 [1] : vector<64x32xf32> to vector<64xf32>
    %173 = vector.shape_cast %172 : vector<64xf32> to vector<64x1xf32>
    %cst_69 = arith.constant 3.200000e+01 : f32
    %174 = vector.broadcast %cst_69 : f32 to vector<64x1xf32>
    %175 = arith.divf %173, %174 : vector<64x1xf32>
    %176 = vector.broadcast %168 : vector<64x1xf32> to vector<64x32xf32>
    %177 = arith.subf %160, %176 : vector<64x32xf32>
    %cst_70 = arith.constant 9.99999974E-6 : f32
    %178 = vector.broadcast %cst_70 : f32 to vector<64x1xf32>
    %179 = arith.addf %175, %178 : vector<64x1xf32>
    %180 = math.rsqrt %179 : vector<64x1xf32>
    %181 = vector.broadcast %180 : vector<64x1xf32> to vector<64x32xf32>
    %182 = arith.mulf %177, %181 : vector<64x32xf32>
    %183 = vector.broadcast %162 : vector<1x32xf32> to vector<64x32xf32>
    %184 = arith.mulf %182, %183 : vector<64x32xf32>
    %185 = vector.broadcast %164 : vector<1x32xf32> to vector<64x32xf32>
    %186 = arith.addf %184, %185 : vector<64x32xf32>
    %c0_71 = arith.constant 0 : index
    %c0_72 = arith.constant 0 : index
    %187 = vector.load %arg12[%c0_71, %c0_72] : memref<32x32xf32, #tpu.memory_space<vmem>>, vector<32x32xf32>
    %c0_73 = arith.constant 0 : index
    %c0_74 = arith.constant 0 : index
    %188 = vector.load %arg14[%c0_73, %c0_74] : memref<32x64xf32, #tpu.memory_space<vmem>>, vector<32x64xf32>
    %c1_75 = arith.constant 1 : index
    %c0_76 = arith.constant 0 : index
    %c0_77 = arith.constant 0 : index
    %189 = vector.load %arg2[%c1_75, %c0_76, %c0_77] : memref<3x32x96xbf16, #tpu.memory_space<vmem>>, vector<1x32x96xbf16>
    %190 = vector.shape_cast %189 : vector<1x32x96xbf16> to vector<32x96xbf16>
    %c1_78 = arith.constant 1 : index
    %c0_79 = arith.constant 0 : index
    %c0_80 = arith.constant 0 : index
    %191 = vector.load %arg3[%c1_78, %c0_79, %c0_80] : memref<3x1x96xf32, #tpu.memory_space<vmem>>, vector<1x1x96xf32>
    %192 = vector.shape_cast %191 : vector<1x1x96xf32> to vector<1x96xf32>
    %193 = vector.extract_strided_slice %190 {offsets = [0, 0], sizes = [32, 32], strides = [1, 1]} : vector<32x96xbf16> to vector<32x32xbf16>
    %194 = arith.truncf %187 : vector<32x32xf32> to vector<32x32xbf16>
    %cst_81 = arith.constant dense<0.000000e+00> : vector<32x32xf32>
    %195 = tpu.matmul %194, %193, %cst_81 {dimension_numbers = #tpu.dot_dimension_numbers<[1], [0], [0], [1], [0, 0, 1, 1], [], []>} : vector<32x32xbf16>, vector<32x32xbf16>, vector<32x32xf32> -> vector<32x32xf32>
    %196 = vector.extract_strided_slice %192 {offsets = [0, 0], sizes = [1, 32], strides = [1, 1]} : vector<1x96xf32> to vector<1x32xf32>
    %197 = vector.broadcast %196 : vector<1x32xf32> to vector<32x32xf32>
    %198 = arith.addf %195, %197 : vector<32x32xf32>
    %199 = vector.extract_strided_slice %190 {offsets = [0, 32], sizes = [32, 64], strides = [1, 1]} : vector<32x96xbf16> to vector<32x64xbf16>
    %200 = arith.truncf %186 : vector<64x32xf32> to vector<64x32xbf16>
    %cst_82 = arith.constant dense<0.000000e+00> : vector<64x64xf32>
    %201 = tpu.matmul %200, %199, %cst_82 {dimension_numbers = #tpu.dot_dimension_numbers<[1], [0], [0], [1], [0, 0, 1, 1], [], []>} : vector<64x32xbf16>, vector<32x64xbf16>, vector<64x64xf32> -> vector<64x64xf32>
    %202 = vector.extract_strided_slice %192 {offsets = [0, 32], sizes = [1, 64], strides = [1, 1]} : vector<1x96xf32> to vector<1x64xf32>
    %203 = vector.broadcast %202 : vector<1x64xf32> to vector<64x64xf32>
    %204 = arith.addf %201, %203 : vector<64x64xf32>
    %205 = vector.extract_strided_slice %204 {offsets = [0, 0], sizes = [64, 32], strides = [1, 1]} : vector<64x64xf32> to vector<64x32xf32>
    %206 = vector.extract_strided_slice %204 {offsets = [0, 32], sizes = [64, 32], strides = [1, 1]} : vector<64x64xf32> to vector<64x32xf32>
    %207 = arith.truncf %198 : vector<32x32xf32> to vector<32x32xbf16>
    %208 = arith.truncf %205 : vector<64x32xf32> to vector<64x32xbf16>
    %209 = arith.truncf %206 : vector<64x32xf32> to vector<64x32xbf16>
    %210 = vector.extract_strided_slice %207 {offsets = [0, 0], sizes = [32, 8], strides = [1, 1]} : vector<32x32xbf16> to vector<32x8xbf16>
    %211 = vector.extract_strided_slice %207 {offsets = [0, 8], sizes = [32, 8], strides = [1, 1]} : vector<32x32xbf16> to vector<32x8xbf16>
    %212 = vector.extract_strided_slice %207 {offsets = [0, 16], sizes = [32, 8], strides = [1, 1]} : vector<32x32xbf16> to vector<32x8xbf16>
    %213 = vector.extract_strided_slice %207 {offsets = [0, 24], sizes = [32, 8], strides = [1, 1]} : vector<32x32xbf16> to vector<32x8xbf16>
    %214 = vector.shape_cast %210 : vector<32x8xbf16> to vector<1x32x8xbf16>
    %215 = vector.shape_cast %211 : vector<32x8xbf16> to vector<1x32x8xbf16>
    %216 = vector.shape_cast %212 : vector<32x8xbf16> to vector<1x32x8xbf16>
    %217 = vector.shape_cast %213 : vector<32x8xbf16> to vector<1x32x8xbf16>
    %218 = tpu.concatenate %214, %215, %216, %217 in 0 : vector<1x32x8xbf16>, vector<1x32x8xbf16>, vector<1x32x8xbf16>, vector<1x32x8xbf16> -> vector<4x32x8xbf16>
    %219 = vector.extract_strided_slice %208 {offsets = [0, 0], sizes = [64, 8], strides = [1, 1]} : vector<64x32xbf16> to vector<64x8xbf16>
    %220 = vector.extract_strided_slice %208 {offsets = [0, 8], sizes = [64, 8], strides = [1, 1]} : vector<64x32xbf16> to vector<64x8xbf16>
    %221 = vector.extract_strided_slice %208 {offsets = [0, 16], sizes = [64, 8], strides = [1, 1]} : vector<64x32xbf16> to vector<64x8xbf16>
    %222 = vector.extract_strided_slice %208 {offsets = [0, 24], sizes = [64, 8], strides = [1, 1]} : vector<64x32xbf16> to vector<64x8xbf16>
    %223 = vector.shape_cast %219 : vector<64x8xbf16> to vector<1x64x8xbf16>
    %224 = vector.shape_cast %220 : vector<64x8xbf16> to vector<1x64x8xbf16>
    %225 = vector.shape_cast %221 : vector<64x8xbf16> to vector<1x64x8xbf16>
    %226 = vector.shape_cast %222 : vector<64x8xbf16> to vector<1x64x8xbf16>
    %227 = tpu.concatenate %223, %224, %225, %226 in 0 : vector<1x64x8xbf16>, vector<1x64x8xbf16>, vector<1x64x8xbf16>, vector<1x64x8xbf16> -> vector<4x64x8xbf16>
    %228 = vector.extract_strided_slice %209 {offsets = [0, 0], sizes = [64, 8], strides = [1, 1]} : vector<64x32xbf16> to vector<64x8xbf16>
    %229 = vector.extract_strided_slice %209 {offsets = [0, 8], sizes = [64, 8], strides = [1, 1]} : vector<64x32xbf16> to vector<64x8xbf16>
    %230 = vector.extract_strided_slice %209 {offsets = [0, 16], sizes = [64, 8], strides = [1, 1]} : vector<64x32xbf16> to vector<64x8xbf16>
    %231 = vector.extract_strided_slice %209 {offsets = [0, 24], sizes = [64, 8], strides = [1, 1]} : vector<64x32xbf16> to vector<64x8xbf16>
    %232 = vector.shape_cast %228 : vector<64x8xbf16> to vector<1x64x8xbf16>
    %233 = vector.shape_cast %229 : vector<64x8xbf16> to vector<1x64x8xbf16>
    %234 = vector.shape_cast %230 : vector<64x8xbf16> to vector<1x64x8xbf16>
    %235 = vector.shape_cast %231 : vector<64x8xbf16> to vector<1x64x8xbf16>
    %236 = tpu.concatenate %232, %233, %234, %235 in 0 : vector<1x64x8xbf16>, vector<1x64x8xbf16>, vector<1x64x8xbf16>, vector<1x64x8xbf16> -> vector<4x64x8xbf16>
    "tpu.trace_start"() <{level = 10 : i32, message = "hqd,hkd->hqk"}> : () -> ()
    %cst_83 = arith.constant dense<0.000000e+00> : vector<4x32x64xf32>
    %237 = tpu.matmul %218, %227, %cst_83 {dimension_numbers = #tpu.dot_dimension_numbers<[2], [2], [1], [1], [0, 0, 0, 1, 1, 1], [0], [0]>} : vector<4x32x8xbf16>, vector<4x64x8xbf16>, vector<4x32x64xf32> -> vector<4x32x64xf32>
    "tpu.trace_stop"() : () -> ()
    %238 = vector.shape_cast %188 : vector<32x64xf32> to vector<1x32x64xf32>
    %239 = vector.broadcast %238 : vector<1x32x64xf32> to vector<4x32x64xf32>
    %240 = arith.addf %237, %239 : vector<4x32x64xf32>
    %cst_84 = arith.constant dense<0xFF800000> : vector<4x32xf32>
    %241 = vector.multi_reduction <maximumf>, %240, %cst_84 [2] : vector<4x32x64xf32> to vector<4x32xf32>
    %242 = vector.shape_cast %241 : vector<4x32xf32> to vector<4x32x1xf32>
    %243 = vector.broadcast %242 : vector<4x32x1xf32> to vector<4x32x64xf32>
    %244 = arith.subf %240, %243 : vector<4x32x64xf32>
    %245 = math.exp %244 : vector<4x32x64xf32>
    %cst_85 = arith.constant dense<0.000000e+00> : vector<4x32xf32>
    %246 = vector.multi_reduction <add>, %245, %cst_85 [2] : vector<4x32x64xf32> to vector<4x32xf32>
    %247 = vector.shape_cast %246 : vector<4x32xf32> to vector<4x32x1xf32>
    %248 = tpu.reciprocal %247 {approx = true} : vector<4x32x1xf32> -> vector<4x32x1xf32>
    %249 = vector.broadcast %248 : vector<4x32x1xf32> to vector<4x32x64xf32>
    %250 = arith.mulf %245, %249 : vector<4x32x64xf32>
    %251 = arith.truncf %250 : vector<4x32x64xf32> to vector<4x32x64xbf16>
    "tpu.trace_start"() <{level = 10 : i32, message = "hqk,hkd->hqd"}> : () -> ()
    %cst_86 = arith.constant dense<0.000000e+00> : vector<4x32x8xf32>
    %252 = tpu.matmul %251, %236, %cst_86 {dimension_numbers = #tpu.dot_dimension_numbers<[2], [1], [1], [2], [0, 0, 0, 1, 1, 2], [0], [0]>} : vector<4x32x64xbf16>, vector<4x64x8xbf16>, vector<4x32x8xf32> -> vector<4x32x8xf32>
    "tpu.trace_stop"() : () -> ()
    %253 = vector.extract_strided_slice %252 {offsets = [0, 0, 0], sizes = [1, 32, 8], strides = [1, 1, 1]} : vector<4x32x8xf32> to vector<1x32x8xf32>
    %254 = vector.shape_cast %253 : vector<1x32x8xf32> to vector<32x8xf32>
    %255 = vector.extract_strided_slice %252 {offsets = [1, 0, 0], sizes = [1, 32, 8], strides = [1, 1, 1]} : vector<4x32x8xf32> to vector<1x32x8xf32>
    %256 = vector.shape_cast %255 : vector<1x32x8xf32> to vector<32x8xf32>
    %257 = vector.extract_strided_slice %252 {offsets = [2, 0, 0], sizes = [1, 32, 8], strides = [1, 1, 1]} : vector<4x32x8xf32> to vector<1x32x8xf32>
    %258 = vector.shape_cast %257 : vector<1x32x8xf32> to vector<32x8xf32>
    %259 = vector.extract_strided_slice %252 {offsets = [3, 0, 0], sizes = [1, 32, 8], strides = [1, 1, 1]} : vector<4x32x8xf32> to vector<1x32x8xf32>
    %260 = vector.shape_cast %259 : vector<1x32x8xf32> to vector<32x8xf32>
    %261 = tpu.concatenate %254, %256, %258, %260 in 1 : vector<32x8xf32>, vector<32x8xf32>, vector<32x8xf32>, vector<32x8xf32> -> vector<32x32xf32>
    %c1_87 = arith.constant 1 : index
    %c0_88 = arith.constant 0 : index
    %c0_89 = arith.constant 0 : index
    %262 = vector.load %arg4[%c1_87, %c0_88, %c0_89] : memref<3x32x32xbf16, #tpu.memory_space<vmem>>, vector<1x32x32xbf16>
    %263 = vector.shape_cast %262 : vector<1x32x32xbf16> to vector<32x32xbf16>
    %264 = arith.truncf %261 : vector<32x32xf32> to vector<32x32xbf16>
    %cst_90 = arith.constant dense<0.000000e+00> : vector<32x32xf32>
    %265 = tpu.matmul %264, %263, %cst_90 {dimension_numbers = #tpu.dot_dimension_numbers<[1], [0], [0], [1], [0, 0, 1, 1], [], []>} : vector<32x32xbf16>, vector<32x32xbf16>, vector<32x32xf32> -> vector<32x32xf32>
    %c1_91 = arith.constant 1 : index
    %c0_92 = arith.constant 0 : index
    %c0_93 = arith.constant 0 : index
    %266 = vector.load %arg5[%c1_91, %c0_92, %c0_93] : memref<3x1x32xf32, #tpu.memory_space<vmem>>, vector<1x1x32xf32>
    %267 = vector.shape_cast %266 : vector<1x1x32xf32> to vector<1x32xf32>
    %268 = vector.broadcast %267 : vector<1x32xf32> to vector<32x32xf32>
    %269 = arith.addf %265, %268 : vector<32x32xf32>
    %c0_94 = arith.constant 0 : index
    %c0_95 = arith.constant 0 : index
    %270 = vector.load %arg15[%c0_94, %c0_95] : memref<64x32xf32, #tpu.memory_space<vmem>>, vector<64x32xf32>
    %c2 = arith.constant 2 : index
    %c0_96 = arith.constant 0 : index
    %c0_97 = arith.constant 0 : index
    %271 = vector.load %arg2[%c2, %c0_96, %c0_97] : memref<3x32x96xbf16, #tpu.memory_space<vmem>>, vector<1x32x96xbf16>
    %272 = vector.shape_cast %271 : vector<1x32x96xbf16> to vector<32x96xbf16>
    %c2_98 = arith.constant 2 : index
    %c0_99 = arith.constant 0 : index
    %c0_100 = arith.constant 0 : index
    %273 = vector.load %arg3[%c2_98, %c0_99, %c0_100] : memref<3x1x96xf32, #tpu.memory_space<vmem>>, vector<1x1x96xf32>
    %274 = vector.shape_cast %273 : vector<1x1x96xf32> to vector<1x96xf32>
    %275 = vector.extract_strided_slice %272 {offsets = [0, 0], sizes = [32, 32], strides = [1, 1]} : vector<32x96xbf16> to vector<32x32xbf16>
    %276 = arith.truncf %186 : vector<64x32xf32> to vector<64x32xbf16>
    %cst_101 = arith.constant dense<0.000000e+00> : vector<64x32xf32>
    %277 = tpu.matmul %276, %275, %cst_101 {dimension_numbers = #tpu.dot_dimension_numbers<[1], [0], [0], [1], [0, 0, 1, 1], [], []>} : vector<64x32xbf16>, vector<32x32xbf16>, vector<64x32xf32> -> vector<64x32xf32>
    %278 = vector.extract_strided_slice %274 {offsets = [0, 0], sizes = [1, 32], strides = [1, 1]} : vector<1x96xf32> to vector<1x32xf32>
    %279 = vector.broadcast %278 : vector<1x32xf32> to vector<64x32xf32>
    %280 = arith.addf %277, %279 : vector<64x32xf32>
    %281 = vector.extract_strided_slice %272 {offsets = [0, 32], sizes = [32, 64], strides = [1, 1]} : vector<32x96xbf16> to vector<32x64xbf16>
    %282 = arith.truncf %269 : vector<32x32xf32> to vector<32x32xbf16>
    %cst_102 = arith.constant dense<0.000000e+00> : vector<32x64xf32>
    %283 = tpu.matmul %282, %281, %cst_102 {dimension_numbers = #tpu.dot_dimension_numbers<[1], [0], [0], [1], [0, 0, 1, 1], [], []>} : vector<32x32xbf16>, vector<32x64xbf16>, vector<32x64xf32> -> vector<32x64xf32>
    %284 = vector.extract_strided_slice %274 {offsets = [0, 32], sizes = [1, 64], strides = [1, 1]} : vector<1x96xf32> to vector<1x64xf32>
    %285 = vector.broadcast %284 : vector<1x64xf32> to vector<32x64xf32>
    %286 = arith.addf %283, %285 : vector<32x64xf32>
    %287 = vector.extract_strided_slice %286 {offsets = [0, 0], sizes = [32, 32], strides = [1, 1]} : vector<32x64xf32> to vector<32x32xf32>
    %288 = vector.extract_strided_slice %286 {offsets = [0, 32], sizes = [32, 32], strides = [1, 1]} : vector<32x64xf32> to vector<32x32xf32>
    %289 = arith.truncf %280 : vector<64x32xf32> to vector<64x32xbf16>
    %290 = arith.truncf %287 : vector<32x32xf32> to vector<32x32xbf16>
    %291 = arith.truncf %288 : vector<32x32xf32> to vector<32x32xbf16>
    %292 = vector.extract_strided_slice %289 {offsets = [0, 0], sizes = [64, 8], strides = [1, 1]} : vector<64x32xbf16> to vector<64x8xbf16>
    %293 = vector.extract_strided_slice %289 {offsets = [0, 8], sizes = [64, 8], strides = [1, 1]} : vector<64x32xbf16> to vector<64x8xbf16>
    %294 = vector.extract_strided_slice %289 {offsets = [0, 16], sizes = [64, 8], strides = [1, 1]} : vector<64x32xbf16> to vector<64x8xbf16>
    %295 = vector.extract_strided_slice %289 {offsets = [0, 24], sizes = [64, 8], strides = [1, 1]} : vector<64x32xbf16> to vector<64x8xbf16>
    %296 = vector.shape_cast %292 : vector<64x8xbf16> to vector<1x64x8xbf16>
    %297 = vector.shape_cast %293 : vector<64x8xbf16> to vector<1x64x8xbf16>
    %298 = vector.shape_cast %294 : vector<64x8xbf16> to vector<1x64x8xbf16>
    %299 = vector.shape_cast %295 : vector<64x8xbf16> to vector<1x64x8xbf16>
    %300 = tpu.concatenate %296, %297, %298, %299 in 0 : vector<1x64x8xbf16>, vector<1x64x8xbf16>, vector<1x64x8xbf16>, vector<1x64x8xbf16> -> vector<4x64x8xbf16>
    %301 = vector.extract_strided_slice %290 {offsets = [0, 0], sizes = [32, 8], strides = [1, 1]} : vector<32x32xbf16> to vector<32x8xbf16>
    %302 = vector.extract_strided_slice %290 {offsets = [0, 8], sizes = [32, 8], strides = [1, 1]} : vector<32x32xbf16> to vector<32x8xbf16>
    %303 = vector.extract_strided_slice %290 {offsets = [0, 16], sizes = [32, 8], strides = [1, 1]} : vector<32x32xbf16> to vector<32x8xbf16>
    %304 = vector.extract_strided_slice %290 {offsets = [0, 24], sizes = [32, 8], strides = [1, 1]} : vector<32x32xbf16> to vector<32x8xbf16>
    %305 = vector.shape_cast %301 : vector<32x8xbf16> to vector<1x32x8xbf16>
    %306 = vector.shape_cast %302 : vector<32x8xbf16> to vector<1x32x8xbf16>
    %307 = vector.shape_cast %303 : vector<32x8xbf16> to vector<1x32x8xbf16>
    %308 = vector.shape_cast %304 : vector<32x8xbf16> to vector<1x32x8xbf16>
    %309 = tpu.concatenate %305, %306, %307, %308 in 0 : vector<1x32x8xbf16>, vector<1x32x8xbf16>, vector<1x32x8xbf16>, vector<1x32x8xbf16> -> vector<4x32x8xbf16>
    %310 = vector.extract_strided_slice %291 {offsets = [0, 0], sizes = [32, 8], strides = [1, 1]} : vector<32x32xbf16> to vector<32x8xbf16>
    %311 = vector.extract_strided_slice %291 {offsets = [0, 8], sizes = [32, 8], strides = [1, 1]} : vector<32x32xbf16> to vector<32x8xbf16>
    %312 = vector.extract_strided_slice %291 {offsets = [0, 16], sizes = [32, 8], strides = [1, 1]} : vector<32x32xbf16> to vector<32x8xbf16>
    %313 = vector.extract_strided_slice %291 {offsets = [0, 24], sizes = [32, 8], strides = [1, 1]} : vector<32x32xbf16> to vector<32x8xbf16>
    %314 = vector.shape_cast %310 : vector<32x8xbf16> to vector<1x32x8xbf16>
    %315 = vector.shape_cast %311 : vector<32x8xbf16> to vector<1x32x8xbf16>
    %316 = vector.shape_cast %312 : vector<32x8xbf16> to vector<1x32x8xbf16>
    %317 = vector.shape_cast %313 : vector<32x8xbf16> to vector<1x32x8xbf16>
    %318 = tpu.concatenate %314, %315, %316, %317 in 0 : vector<1x32x8xbf16>, vector<1x32x8xbf16>, vector<1x32x8xbf16>, vector<1x32x8xbf16> -> vector<4x32x8xbf16>
    "tpu.trace_start"() <{level = 10 : i32, message = "hqd,hkd->hqk"}> : () -> ()
    %cst_103 = arith.constant dense<0.000000e+00> : vector<4x64x32xf32>
    %319 = tpu.matmul %300, %309, %cst_103 {dimension_numbers = #tpu.dot_dimension_numbers<[2], [2], [1], [1], [0, 0, 0, 1, 1, 1], [0], [0]>} : vector<4x64x8xbf16>, vector<4x32x8xbf16>, vector<4x64x32xf32> -> vector<4x64x32xf32>
    "tpu.trace_stop"() : () -> ()
    %320 = vector.shape_cast %270 : vector<64x32xf32> to vector<1x64x32xf32>
    %321 = vector.broadcast %320 : vector<1x64x32xf32> to vector<4x64x32xf32>
    %322 = arith.addf %319, %321 : vector<4x64x32xf32>
    %cst_104 = arith.constant dense<0xFF800000> : vector<4x64xf32>
    %323 = vector.multi_reduction <maximumf>, %322, %cst_104 [2] : vector<4x64x32xf32> to vector<4x64xf32>
    %324 = vector.shape_cast %323 : vector<4x64xf32> to vector<4x64x1xf32>
    %325 = vector.broadcast %324 : vector<4x64x1xf32> to vector<4x64x32xf32>
    %326 = arith.subf %322, %325 : vector<4x64x32xf32>
    %327 = math.exp %326 : vector<4x64x32xf32>
    %cst_105 = arith.constant dense<0.000000e+00> : vector<4x64xf32>
    %328 = vector.multi_reduction <add>, %327, %cst_105 [2] : vector<4x64x32xf32> to vector<4x64xf32>
    %329 = vector.shape_cast %328 : vector<4x64xf32> to vector<4x64x1xf32>
    %330 = tpu.reciprocal %329 {approx = true} : vector<4x64x1xf32> -> vector<4x64x1xf32>
    %331 = vector.broadcast %330 : vector<4x64x1xf32> to vector<4x64x32xf32>
    %332 = arith.mulf %327, %331 : vector<4x64x32xf32>
    %333 = arith.truncf %332 : vector<4x64x32xf32> to vector<4x64x32xbf16>
    "tpu.trace_start"() <{level = 10 : i32, message = "hqk,hkd->hqd"}> : () -> ()
    %cst_106 = arith.constant dense<0.000000e+00> : vector<4x64x8xf32>
    %334 = tpu.matmul %333, %318, %cst_106 {dimension_numbers = #tpu.dot_dimension_numbers<[2], [1], [1], [2], [0, 0, 0, 1, 1, 2], [0], [0]>} : vector<4x64x32xbf16>, vector<4x32x8xbf16>, vector<4x64x8xf32> -> vector<4x64x8xf32>
    "tpu.trace_stop"() : () -> ()
    %335 = vector.extract_strided_slice %334 {offsets = [0, 0, 0], sizes = [1, 64, 8], strides = [1, 1, 1]} : vector<4x64x8xf32> to vector<1x64x8xf32>
    %336 = vector.shape_cast %335 : vector<1x64x8xf32> to vector<64x8xf32>
    %337 = vector.extract_strided_slice %334 {offsets = [1, 0, 0], sizes = [1, 64, 8], strides = [1, 1, 1]} : vector<4x64x8xf32> to vector<1x64x8xf32>
    %338 = vector.shape_cast %337 : vector<1x64x8xf32> to vector<64x8xf32>
    %339 = vector.extract_strided_slice %334 {offsets = [2, 0, 0], sizes = [1, 64, 8], strides = [1, 1, 1]} : vector<4x64x8xf32> to vector<1x64x8xf32>
    %340 = vector.shape_cast %339 : vector<1x64x8xf32> to vector<64x8xf32>
    %341 = vector.extract_strided_slice %334 {offsets = [3, 0, 0], sizes = [1, 64, 8], strides = [1, 1, 1]} : vector<4x64x8xf32> to vector<1x64x8xf32>
    %342 = vector.shape_cast %341 : vector<1x64x8xf32> to vector<64x8xf32>
    %343 = tpu.concatenate %336, %338, %340, %342 in 1 : vector<64x8xf32>, vector<64x8xf32>, vector<64x8xf32>, vector<64x8xf32> -> vector<64x32xf32>
    %c2_107 = arith.constant 2 : index
    %c0_108 = arith.constant 0 : index
    %c0_109 = arith.constant 0 : index
    %344 = vector.load %arg4[%c2_107, %c0_108, %c0_109] : memref<3x32x32xbf16, #tpu.memory_space<vmem>>, vector<1x32x32xbf16>
    %345 = vector.shape_cast %344 : vector<1x32x32xbf16> to vector<32x32xbf16>
    %346 = arith.truncf %343 : vector<64x32xf32> to vector<64x32xbf16>
    %cst_110 = arith.constant dense<0.000000e+00> : vector<64x32xf32>
    %347 = tpu.matmul %346, %345, %cst_110 {dimension_numbers = #tpu.dot_dimension_numbers<[1], [0], [0], [1], [0, 0, 1, 1], [], []>} : vector<64x32xbf16>, vector<32x32xbf16>, vector<64x32xf32> -> vector<64x32xf32>
    %c2_111 = arith.constant 2 : index
    %c0_112 = arith.constant 0 : index
    %c0_113 = arith.constant 0 : index
    %348 = vector.load %arg5[%c2_111, %c0_112, %c0_113] : memref<3x1x32xf32, #tpu.memory_space<vmem>>, vector<1x1x32xf32>
    %349 = vector.shape_cast %348 : vector<1x1x32xf32> to vector<1x32xf32>
    %350 = vector.broadcast %349 : vector<1x32xf32> to vector<64x32xf32>
    %351 = arith.addf %347, %350 : vector<64x32xf32>
    %352 = arith.addf %186, %351 : vector<64x32xf32>
    %c2_114 = arith.constant 2 : index
    %c0_115 = arith.constant 0 : index
    %c0_116 = arith.constant 0 : index
    %353 = vector.load %arg10[%c2_114, %c0_115, %c0_116] : memref<4x1x32xf32, #tpu.memory_space<vmem>>, vector<1x1x32xf32>
    %354 = vector.shape_cast %353 : vector<1x1x32xf32> to vector<1x32xf32>
    %c2_117 = arith.constant 2 : index
    %c0_118 = arith.constant 0 : index
    %c0_119 = arith.constant 0 : index
    %355 = vector.load %arg11[%c2_117, %c0_118, %c0_119] : memref<4x1x32xf32, #tpu.memory_space<vmem>>, vector<1x1x32xf32>
    %356 = vector.shape_cast %355 : vector<1x1x32xf32> to vector<1x32xf32>
    %cst_120 = arith.constant dense<0.000000e+00> : vector<64xf32>
    %357 = vector.multi_reduction <add>, %352, %cst_120 [1] : vector<64x32xf32> to vector<64xf32>
    %358 = vector.shape_cast %357 : vector<64xf32> to vector<64x1xf32>
    %cst_121 = arith.constant 3.200000e+01 : f32
    %359 = vector.broadcast %cst_121 : f32 to vector<64x1xf32>
    %360 = arith.divf %358, %359 : vector<64x1xf32>
    %361 = vector.broadcast %360 : vector<64x1xf32> to vector<64x32xf32>
    %362 = arith.subf %352, %361 : vector<64x32xf32>
    %363 = arith.mulf %362, %362 : vector<64x32xf32>
    %cst_122 = arith.constant dense<0.000000e+00> : vector<64xf32>
    %364 = vector.multi_reduction <add>, %363, %cst_122 [1] : vector<64x32xf32> to vector<64xf32>
    %365 = vector.shape_cast %364 : vector<64xf32> to vector<64x1xf32>
    %cst_123 = arith.constant 3.200000e+01 : f32
    %366 = vector.broadcast %cst_123 : f32 to vector<64x1xf32>
    %367 = arith.divf %365, %366 : vector<64x1xf32>
    %368 = vector.broadcast %360 : vector<64x1xf32> to vector<64x32xf32>
    %369 = arith.subf %352, %368 : vector<64x32xf32>
    %cst_124 = arith.constant 9.99999974E-6 : f32
    %370 = vector.broadcast %cst_124 : f32 to vector<64x1xf32>
    %371 = arith.addf %367, %370 : vector<64x1xf32>
    %372 = math.rsqrt %371 : vector<64x1xf32>
    %373 = vector.broadcast %372 : vector<64x1xf32> to vector<64x32xf32>
    %374 = arith.mulf %369, %373 : vector<64x32xf32>
    %375 = vector.broadcast %354 : vector<1x32xf32> to vector<64x32xf32>
    %376 = arith.mulf %374, %375 : vector<64x32xf32>
    %377 = vector.broadcast %356 : vector<1x32xf32> to vector<64x32xf32>
    %378 = arith.addf %376, %377 : vector<64x32xf32>
    %c1_125 = arith.constant 1 : index
    %c0_126 = arith.constant 0 : index
    %c0_127 = arith.constant 0 : index
    %379 = vector.load %arg6[%c1_125, %c0_126, %c0_127] : memref<2x32x128xbf16, #tpu.memory_space<vmem>>, vector<1x32x128xbf16>
    %380 = vector.shape_cast %379 : vector<1x32x128xbf16> to vector<32x128xbf16>
    %381 = arith.truncf %378 : vector<64x32xf32> to vector<64x32xbf16>
    %cst_128 = arith.constant dense<0.000000e+00> : vector<64x128xf32>
    %382 = tpu.matmul %381, %380, %cst_128 {dimension_numbers = #tpu.dot_dimension_numbers<[1], [0], [0], [1], [0, 0, 1, 1], [], []>} : vector<64x32xbf16>, vector<32x128xbf16>, vector<64x128xf32> -> vector<64x128xf32>
    %c1_129 = arith.constant 1 : index
    %c0_130 = arith.constant 0 : index
    %c0_131 = arith.constant 0 : index
    %383 = vector.load %arg7[%c1_129, %c0_130, %c0_131] : memref<2x1x128xf32, #tpu.memory_space<vmem>>, vector<1x1x128xf32>
    %384 = vector.shape_cast %383 : vector<1x1x128xf32> to vector<1x128xf32>
    %385 = vector.broadcast %384 : vector<1x128xf32> to vector<64x128xf32>
    %386 = arith.addf %382, %385 : vector<64x128xf32>
    %cst_132 = arith.constant 5.000000e-01 : f32
    %387 = vector.broadcast %cst_132 : f32 to vector<64x128xf32>
    %388 = arith.mulf %387, %386 : vector<64x128xf32>
    %cst_133 = arith.constant 0.707106769 : f32
    %389 = vector.broadcast %cst_133 : f32 to vector<64x128xf32>
    %390 = arith.mulf %386, %389 : vector<64x128xf32>
    %cst_134 = arith.constant 0.000000e+00 : f32
    %391 = vector.broadcast %cst_134 : f32 to vector<64x128xf32>
    %392 = arith.cmpf oge, %390, %391 : vector<64x128xf32>
    %cst_135 = arith.constant 1.000000e+00 : f32
    %cst_136 = arith.constant -1.000000e+00 : f32
    %393 = vector.broadcast %cst_135 : f32 to vector<64x128xf32>
    %394 = vector.broadcast %cst_136 : f32 to vector<64x128xf32>
    %395 = arith.select %392, %393, %394 : vector<64x128xi1>, vector<64x128xf32>
    %396 = math.absf %390 : vector<64x128xf32>
    %cst_137 = arith.constant 0.327591091 : f32
    %397 = vector.broadcast %cst_137 : f32 to vector<64x128xf32>
    %398 = arith.mulf %397, %396 : vector<64x128xf32>
    %cst_138 = arith.constant 1.000000e+00 : f32
    %399 = vector.broadcast %cst_138 : f32 to vector<64x128xf32>
    %400 = arith.addf %399, %398 : vector<64x128xf32>
    %cst_139 = arith.constant 1.000000e+00 : f32
    %401 = vector.broadcast %cst_139 : f32 to vector<64x128xf32>
    %402 = arith.divf %401, %400 : vector<64x128xf32>
    %cst_140 = arith.constant 1.06140542 : f32
    %403 = vector.broadcast %cst_140 : f32 to vector<64x128xf32>
    %404 = arith.mulf %403, %402 : vector<64x128xf32>
    %cst_141 = arith.constant -1.45315206 : f32
    %405 = vector.broadcast %cst_141 : f32 to vector<64x128xf32>
    %406 = arith.addf %404, %405 : vector<64x128xf32>
    %407 = arith.mulf %406, %402 : vector<64x128xf32>
    %cst_142 = arith.constant 1.42141378 : f32
    %408 = vector.broadcast %cst_142 : f32 to vector<64x128xf32>
    %409 = arith.addf %407, %408 : vector<64x128xf32>
    %410 = arith.mulf %409, %402 : vector<64x128xf32>
    %cst_143 = arith.constant -0.284496725 : f32
    %411 = vector.broadcast %cst_143 : f32 to vector<64x128xf32>
    %412 = arith.addf %410, %411 : vector<64x128xf32>
    %413 = arith.mulf %412, %402 : vector<64x128xf32>
    %cst_144 = arith.constant 0.254829586 : f32
    %414 = vector.broadcast %cst_144 : f32 to vector<64x128xf32>
    %415 = arith.addf %413, %414 : vector<64x128xf32>
    %416 = arith.mulf %415, %402 : vector<64x128xf32>
    %cst_145 = arith.constant 0.000000e+00 : f32
    %417 = vector.broadcast %cst_145 : f32 to vector<64x128xf32>
    %418 = arith.subf %417, %396 : vector<64x128xf32>
    %419 = arith.mulf %418, %396 : vector<64x128xf32>
    %420 = math.exp %419 : vector<64x128xf32>
    %421 = arith.mulf %416, %420 : vector<64x128xf32>
    %cst_146 = arith.constant 1.000000e+00 : f32
    %422 = vector.broadcast %cst_146 : f32 to vector<64x128xf32>
    %423 = arith.subf %422, %421 : vector<64x128xf32>
    %424 = arith.mulf %395, %423 : vector<64x128xf32>
    %cst_147 = arith.constant 1.000000e+00 : f32
    %425 = vector.broadcast %cst_147 : f32 to vector<64x128xf32>
    %426 = arith.addf %425, %424 : vector<64x128xf32>
    %427 = arith.mulf %388, %426 : vector<64x128xf32>
    %c1_148 = arith.constant 1 : index
    %c0_149 = arith.constant 0 : index
    %c0_150 = arith.constant 0 : index
    %428 = vector.load %arg8[%c1_148, %c0_149, %c0_150] : memref<2x128x32xbf16, #tpu.memory_space<vmem>>, vector<1x128x32xbf16>
    %429 = vector.shape_cast %428 : vector<1x128x32xbf16> to vector<128x32xbf16>
    %430 = arith.truncf %427 : vector<64x128xf32> to vector<64x128xbf16>
    %cst_151 = arith.constant dense<0.000000e+00> : vector<64x32xf32>
    %431 = tpu.matmul %430, %429, %cst_151 {dimension_numbers = #tpu.dot_dimension_numbers<[1], [0], [0], [1], [0, 0, 1, 1], [], []>} : vector<64x128xbf16>, vector<128x32xbf16>, vector<64x32xf32> -> vector<64x32xf32>
    %c1_152 = arith.constant 1 : index
    %c0_153 = arith.constant 0 : index
    %c0_154 = arith.constant 0 : index
    %432 = vector.load %arg9[%c1_152, %c0_153, %c0_154] : memref<2x1x32xf32, #tpu.memory_space<vmem>>, vector<1x1x32xf32>
    %433 = vector.shape_cast %432 : vector<1x1x32xf32> to vector<1x32xf32>
    %434 = vector.broadcast %433 : vector<1x32xf32> to vector<64x32xf32>
    %435 = arith.addf %431, %434 : vector<64x32xf32>
    %436 = arith.addf %378, %435 : vector<64x32xf32>
    %c3 = arith.constant 3 : index
    %c0_155 = arith.constant 0 : index
    %c0_156 = arith.constant 0 : index
    %437 = vector.load %arg10[%c3, %c0_155, %c0_156] : memref<4x1x32xf32, #tpu.memory_space<vmem>>, vector<1x1x32xf32>
    %438 = vector.shape_cast %437 : vector<1x1x32xf32> to vector<1x32xf32>
    %c3_157 = arith.constant 3 : index
    %c0_158 = arith.constant 0 : index
    %c0_159 = arith.constant 0 : index
    %439 = vector.load %arg11[%c3_157, %c0_158, %c0_159] : memref<4x1x32xf32, #tpu.memory_space<vmem>>, vector<1x1x32xf32>
    %440 = vector.shape_cast %439 : vector<1x1x32xf32> to vector<1x32xf32>
    %cst_160 = arith.constant dense<0.000000e+00> : vector<64xf32>
    %441 = vector.multi_reduction <add>, %436, %cst_160 [1] : vector<64x32xf32> to vector<64xf32>
    %442 = vector.shape_cast %441 : vector<64xf32> to vector<64x1xf32>
    %cst_161 = arith.constant 3.200000e+01 : f32
    %443 = vector.broadcast %cst_161 : f32 to vector<64x1xf32>
    %444 = arith.divf %442, %443 : vector<64x1xf32>
    %445 = vector.broadcast %444 : vector<64x1xf32> to vector<64x32xf32>
    %446 = arith.subf %436, %445 : vector<64x32xf32>
    %447 = arith.mulf %446, %446 : vector<64x32xf32>
    %cst_162 = arith.constant dense<0.000000e+00> : vector<64xf32>
    %448 = vector.multi_reduction <add>, %447, %cst_162 [1] : vector<64x32xf32> to vector<64xf32>
    %449 = vector.shape_cast %448 : vector<64xf32> to vector<64x1xf32>
    %cst_163 = arith.constant 3.200000e+01 : f32
    %450 = vector.broadcast %cst_163 : f32 to vector<64x1xf32>
    %451 = arith.divf %449, %450 : vector<64x1xf32>
    %452 = vector.broadcast %444 : vector<64x1xf32> to vector<64x32xf32>
    %453 = arith.subf %436, %452 : vector<64x32xf32>
    %cst_164 = arith.constant 9.99999974E-6 : f32
    %454 = vector.broadcast %cst_164 : f32 to vector<64x1xf32>
    %455 = arith.addf %451, %454 : vector<64x1xf32>
    %456 = math.rsqrt %455 : vector<64x1xf32>
    %457 = vector.broadcast %456 : vector<64x1xf32> to vector<64x32xf32>
    %458 = arith.mulf %453, %457 : vector<64x32xf32>
    %459 = vector.broadcast %438 : vector<1x32xf32> to vector<64x32xf32>
    %460 = arith.mulf %458, %459 : vector<64x32xf32>
    %461 = vector.broadcast %440 : vector<1x32xf32> to vector<64x32xf32>
    %462 = arith.addf %460, %461 : vector<64x32xf32>
    %c0_165 = arith.constant 0 : index
    %c0_166 = arith.constant 0 : index
    %463 = vector.load %arg16[%c0_165, %c0_166] : memref<64x32xf32, #tpu.memory_space<vmem>>, vector<64x32xf32>
    tpu.vector_store %arg16[%c0_165, %c0_166], %462 {strides = array<i32>} : memref<64x32xf32, #tpu.memory_space<vmem>>, vector<64x32xf32>,
    return
  }
  func.func @transform_0(%arg0: i32) -> (i32, i32) {
    %c0_i32 = arith.constant 0 : i32
    %c0_i32_0 = arith.constant 0 : i32
    return %arg0, %c0_i32 : i32, i32
  }
  func.func @transform_1(%arg0: i32) -> (i32, i32, i32) {
    %c0_i32 = arith.constant 0 : i32
    %c0_i32_0 = arith.constant 0 : i32
    %c0_i32_1 = arith.constant 0 : i32
    %c0_i32_2 = arith.constant 0 : i32
    return %c0_i32, %c0_i32_0, %c0_i32_1 : i32, i32, i32
  }
  func.func @transform_2(%arg0: i32) -> (i32, i32, i32) {
    %c0_i32 = arith.constant 0 : i32
    %c0_i32_0 = arith.constant 0 : i32
    %c0_i32_1 = arith.constant 0 : i32
    %c0_i32_2 = arith.constant 0 : i32
    return %c0_i32, %c0_i32_0, %c0_i32_1 : i32, i32, i32
  }
  func.func @transform_3(%arg0: i32) -> (i32, i32, i32) {
    %c0_i32 = arith.constant 0 : i32
    %c0_i32_0 = arith.constant 0 : i32
    %c0_i32_1 = arith.constant 0 : i32
    %c0_i32_2 = arith.constant 0 : i32
    return %c0_i32, %c0_i32_0, %c0_i32_1 : i32, i32, i32
  }
  func.func @transform_4(%arg0: i32) -> (i32, i32, i32) {
    %c0_i32 = arith.constant 0 : i32
    %c0_i32_0 = arith.constant 0 : i32
    %c0_i32_1 = arith.constant 0 : i32
    %c0_i32_2 = arith.constant 0 : i32
    return %c0_i32, %c0_i32_0, %c0_i32_1 : i32, i32, i32
  }
  func.func @transform_5(%arg0: i32) -> (i32, i32, i32) {
    %c0_i32 = arith.constant 0 : i32
    %c0_i32_0 = arith.constant 0 : i32
    %c0_i32_1 = arith.constant 0 : i32
    %c0_i32_2 = arith.constant 0 : i32
    return %c0_i32, %c0_i32_0, %c0_i32_1 : i32, i32, i32
  }
  func.func @transform_6(%arg0: i32) -> (i32, i32, i32) {
    %c0_i32 = arith.constant 0 : i32
    %c0_i32_0 = arith.constant 0 : i32
    %c0_i32_1 = arith.constant 0 : i32
    %c0_i32_2 = arith.constant 0 : i32
    return %c0_i32, %c0_i32_0, %c0_i32_1 : i32, i32, i32
  }
  func.func @transform_7(%arg0: i32) -> (i32, i32, i32) {
    %c0_i32 = arith.constant 0 : i32
    %c0_i32_0 = arith.constant 0 : i32
    %c0_i32_1 = arith.constant 0 : i32
    %c0_i32_2 = arith.constant 0 : i32
    return %c0_i32, %c0_i32_0, %c0_i32_1 : i32, i32, i32
  }
  func.func @transform_8(%arg0: i32) -> (i32, i32, i32) {
    %c0_i32 = arith.constant 0 : i32
    %c0_i32_0 = arith.constant 0 : i32
    %c0_i32_1 = arith.constant 0 : i32
    %c0_i32_2 = arith.constant 0 : i32
    return %c0_i32, %c0_i32_0, %c0_i32_1 : i32, i32, i32
  }
  func.func @transform_9(%arg0: i32) -> (i32, i32, i32) {
    %c0_i32 = arith.constant 0 : i32
    %c0_i32_0 = arith.constant 0 : i32
    %c0_i32_1 = arith.constant 0 : i32
    %c0_i32_2 = arith.constant 0 : i32
    return %c0_i32, %c0_i32_0, %c0_i32_1 : i32, i32, i32
  }
  func.func @transform_10(%arg0: i32) -> (i32, i32, i32) {
    %c0_i32 = arith.constant 0 : i32
    %c0_i32_0 = arith.constant 0 : i32
    %c0_i32_1 = arith.constant 0 : i32
    %c0_i32_2 = arith.constant 0 : i32
    return %c0_i32, %c0_i32_0, %c0_i32_1 : i32, i32, i32
  }
  func.func @transform_11(%arg0: i32) -> (i32, i32) {
    %c0_i32 = arith.constant 0 : i32
    %c0_i32_0 = arith.constant 0 : i32
    %c0_i32_1 = arith.constant 0 : i32
    return %c0_i32, %c0_i32_0 : i32, i32
  }
  func.func @transform_12(%arg0: i32) -> (i32, i32) {
    %c0_i32 = arith.constant 0 : i32
    %c0_i32_0 = arith.constant 0 : i32
    %c0_i32_1 = arith.constant 0 : i32
    return %c0_i32, %c0_i32_0 : i32, i32
  }
  func.func @transform_13(%arg0: i32) -> (i32, i32) {
    %c0_i32 = arith.constant 0 : i32
    %c0_i32_0 = arith.constant 0 : i32
    %c0_i32_1 = arith.constant 0 : i32
    return %c0_i32, %c0_i32_0 : i32, i32
  }
  func.func @transform_14(%arg0: i32) -> (i32, i32) {
    %c0_i32 = arith.constant 0 : i32
    %c0_i32_0 = arith.constant 0 : i32
    %c0_i32_1 = arith.constant 0 : i32
    return %c0_i32, %c0_i32_0 : i32, i32
  }
  func.func @transform_15(%arg0: i32) -> (i32, i32) {
    %c0_i32 = arith.constant 0 : i32
    %c0_i32_0 = arith.constant 0 : i32
    return %arg0, %c0_i32 : i32, i32
  }
}

</mosaic_0001>

<bundles_post_ra>
// kernel: tpu_custom_call.1
= control target key start
LH: loop header
LB: loop body
LE: loop exit
PB: predicated region body
PF: predicated region fallthrough
CT: control target
= control target key end

     0   :  { %s7844_s18 = smov 0   ;;  %s10366_s0 = inlined_call_operand.vmem [shape: f32[128,32], index: 0, kind: input, shape index: {}]   ;;  %s10367_s1 = inlined_call_operand.vmem [shape: bf16[3,32,96], index: 1, kind: input, shape index: {}]   ;;  %s10368_s2 = inlined_call_operand.vmem [shape: f32[3,1,96], index: 2, kind: input, shape index: {}]   ;;  %s10369_s3 = inlined_call_operand.vmem [shape: bf16[3,32,32], index: 3, kind: input, shape index: {}]   ;;  %s10370_s4 = inlined_call_operand.vmem [shape: f32[3,1,32], index: 4, kind: input, shape index: {}]   ;;  %s10371_s5 = inlined_call_operand.vmem [shape: bf16[2,32,128], index: 5, kind: input, shape index: {}]   ;;  %s10372_s6 = inlined_call_operand.vmem [shape: f32[2,1,128], index: 6, kind: input, shape index: {}]   ;;  %s10373_s7 = inlined_call_operand.vmem [shape: bf16[2,128,32], index: 7, kind: input, shape index: {}]   ;;  %s10374_s8 = inlined_call_operand.vmem [shape: f32[2,1,32], index: 8, kind: input, shape index: {}]   ;;  %s10375_s9 = inlined_call_operand.vmem [shape: f32[4,1,32], index: 9, kind: input, shape index: {}]   ;;  %s10376_s10 = inlined_call_operand.vmem [shape: f32[4,1,32], index: 10, kind: input, shape index: {}]   ;;  %s10377_s11 = inlined_call_operand.vmem [shape: f32[32,32], index: 11, kind: input, shape index: {}]   ;;  %s10378_s12 = inlined_call_operand.vmem [shape: f32[64,64], index: 12, kind: input, shape index: {}]   ;;  %s10379_s13 = inlined_call_operand.vmem [shape: f32[32,64], index: 13, kind: input, shape index: {}]   ;;  %s10380_s14 = inlined_call_operand.vmem [shape: f32[64,32], index: 14, kind: input, shape index: {}]   ;;  %s10381_s15 = inlined_call_operand.vmem [shape: f32[128,32], index: 15, kind: output, shape index: {}]  }
   0x1 LB: > { %s6115_s19 = sadd.s32 4294967295, %s7753_s18   ;;  %p6119_p0 = scmp.ge.s32.totalorder %s7753_s18, 1  ;;  %s7753_s18 = sphi %s7844_s18, %s25_s18  }
   0x2   : > { %p438_p1 = scmp.lt.s32.totalorder %s7753_s18, 3 }
   0x4   : > { %p439_p2 = pnand %p6119_p0, %p438_p1 }
   0x5   : > { %s6120_s22 = sshll.u32 (!%p439_p2), %s6115_s19, 3  ;;  %s7755_s16 = smov (!%p439_p2), 120  }
   0x6   : > { %442 = sbr.rel (%p439_p2) target bundleno = 6688 (0x1a20), region = 80  ;;  %p487_p3 = scmp.lt.s32.totalorder (!%p439_p2), %s6120_s22, 15 }
   0x7   : > { %s7756_s17 = smov (!%p439_p2), 104   ;;  %s7757_s19 = smov (!%p439_p2), 112  }
   0x8   : > { %s7758_s20 = smov (!%p439_p2), 96   ;;  %s7759_s21 = smov (!%p439_p2), 64  }
   0x9   : > { %s10385_s23 = smov (!%p439_p2), 16   ;;  %s10383_s27 = smov (!%p439_p2), 24  }
   0xa   : > { %s10388_s30 = smov (!%p439_p2), 24  }
   0xb   : > { %v7259_v0 = vld [vmem:[%s10367_s1 + $0x8] sm:$0xff]   ;;  %v7260_v1 = vld [vmem:[%s10367_s1] sm:$0xff]   ;;  %s10391_s22 = smov (!%p487_p3, %s6120_s22), 15  ;;  %vm542_vm0 = vcmask 261120   ;;  %vm660_vm1 = vcmask 64512   ;;  %vm1041_vm2 = vcmask 523264  }
   0xc   : > { %6576 = vmatprep.subr.bf16.mxu0 %v7259_v0  ;;  %s10382_s25 = sshll.u32 %s10391_s22, 3  ;;  %v6124_v15 = vld [vmem:[%s10368_s2] ss:$0 sm:$0xff]  ;;  %vm1870_vm3 = vcmask 130048   ;;  %vm1879_vm4 = vcmask 195584   ;;  %s10389_s29 = sshll.u32 %s10391_s22, 3 }
   0xd   : > { %6577 = vmatpush3.bf16.msra.mxu0 %v7259_v0  ;;  %s7866_s28 = scalar_lea.vmem %s10366_s0, %s10382_s25  ;;  %s10387_s25 = smov 16  }
   0xe   : > { %6578 = vmatprep.subr.bf16.mxu0 %v7260_v1  ;;  %v499_v2 = vld [vmem:[%s7866_s28] sm:$0xff]  ;;  %v500_v3 = vld [vmem:[%s7866_s28 + $0x8] sm:$0xff]  ;;  %v501_v4 = vld [vmem:[%s7866_s28 + $0x10] sm:$0xff]  ;;  %s10338_s24 = scalar_lea.vmem %s10381_s15, %s10389_s29 }
   0xf   : > { %v520_v5 = vpack.c.bf16 %v500_v3, %v499_v2  ;;  %v502_v6 = vld [vmem:[%s7866_s28 + $0x18] sm:$0xff]  ;;  %v503_v7 = vld [vmem:[%s7866_s28 + $0x20] sm:$0xff]  ;;  %v504_v8 = vld [vmem:[%s7866_s28 + $0x28] sm:$0xff] }
  0x10   : > { %v521_v9 = vpack.c.bf16 %v502_v6, %v501_v4  ;;  %v522_v10 = vpack.c.bf16 %v504_v8, %v503_v7  ;;  %v505_v11 = vld [vmem:[%s7866_s28 + $0x30] sm:$0xff]  ;;  %v506_v12 = vld [vmem:[%s7866_s28 + $0x38] sm:$0xff] }
  0x11   : > { %6579 = vmatpush3.bf16.msra.mxu0 %v7260_v1  ;;  %6580 = vmatprep.mubr.msk.bf16.mxu0 %vm542_vm0, %v520_v5  ;;  %v523_v13 = vpack.c.bf16 %v506_v12, %v505_v11 }
  0x14   : > { %6581 = vmatmul.mubr.msk.bf16.vlgmr.msra.gmra.mxu0 %vm542_vm0, %v521_v9 }
  0x15   : > { %6584 = vmatprep.mubr.msk.bf16.mxu0 %vm542_vm0, %v522_v10 }
  0x1c   : > { %6585 = vmatmul.mubr.msk.bf16.gmra.mxu0 %vm542_vm0, %v523_v13 }
  0xd4   : > { %v6582_v14 = vpop.f32.mrf.mxu0 }
  0xd5   : > { %v598_v18 = vadd.f32 %v6582_v14, %v6124_v15 }
  0xd6   : > { %v589_v16 = vpop.f32.mrf.mxu0 }
  0xd7   : > { %v590_v21 = vadd.f32 %v6124_v15, %v589_v16 }
  0xd8   : > { %v6583_v17 = vpop.f32.mrf.mxu0 }
  0xd9   : > { %v601_v19 = vadd.f32 %v6583_v17, %v6124_v15 }
  0xda   : > { %v592_v20 = vpop.f32.mrf.mxu0 }
  0xdb   : > { %v7883_v22 = vpack.c.bf16 %v601_v19, %v598_v18  ;;  %v593_v23 = vadd.f32 %v6124_v15, %v592_v20 }
  0xdc   : > { %v6586_v24 = vpop.f32.mrf.mxu0 }
  0xdd   : > { %v7885_v25 = vpack.c.bf16 %v593_v23, %v590_v21  ;;  %630 = vrot.lane.b32.xlu1 %v7883_v22, %s7755_s16  ;;  %v614_v28 = vadd.f32 %v6586_v24, %v6124_v15 }
  0xde   : > { %v605_v26 = vpop.f32.mrf.mxu0 }
  0xdf   : > { %6596 = vmatprep.mubr.msk.bf16.mxu1 %vm660_vm1, %v7885_v25  ;;  %v606_v33 = vadd.f32 %v6124_v15, %v605_v26 }
  0xe0   : > { %v6587_v27 = vpop.f32.mrf.mxu0 }
  0xe1   : > { %v617_v29 = vadd.f32 %v6587_v27, %v6124_v15  ;;  %628 = vrot.lane.b32.xlu1 %v7885_v25, %s7755_s16  ;;  %v8071_v27 = vld [vmem:[%s10378_s12] sm:$0xff] }
  0xe2   : > { %v608_v30 = vpop.f32.mrf.mxu0 }
  0xe3   : > { %v7893_v31 = vpack.c.bf16 %v617_v29, %v614_v28  ;;  %v609_v32 = vadd.f32 %v6124_v15, %v608_v30 }
  0xe5   : > { %634 = vrot.lane.b32.xlu0 %v7893_v31, %s7755_s16  ;;  %650 = vrot.lane.b32.xlu1 %v7893_v31, %s7756_s17  ;;  %v7899_v34 = vpack.c.bf16 %v609_v32, %v606_v33  ;;  %v8084_v32 = vld [vmem:[%s10378_s12 + $0x18] sm:$0xff] }
  0xe9   : > { %632 = vrot.lane.b32.xlu0 %v7899_v34, %s7755_s16  ;;  %648 = vrot.lane.b32.xlu1 %v7899_v34, %s7756_s17 }
  0xed   : > { %642 = vrot.lane.b32.xlu0 %v7893_v31, %s7757_s19  ;;  %646 = vrot.lane.b32.xlu1 %v7883_v22, %s7756_s17 }
  0xf1   : > { %640 = vrot.lane.b32.xlu0 %v7899_v34, %s7757_s19  ;;  %644 = vrot.lane.b32.xlu1 %v7885_v25, %s7756_s17 }
  0xf5   : > { %638 = vrot.lane.b32.xlu0 %v7883_v22, %s7757_s19 }
  0xf9   : > { %636 = vrot.lane.b32.xlu0 %v7885_v25, %s7757_s19 }
  0xfd   : > { %658 = vrot.lane.b32.xlu0 %v7893_v31, %s7758_s20 }
 0x101   : > { %656 = vrot.lane.b32.xlu0 %v7899_v34, %s7758_s20 }
 0x105   : > { %654 = vrot.lane.b32.xlu0 %v7883_v22, %s7758_s20 }
 0x109   : > { %652 = vrot.lane.b32.xlu0 %v7885_v25, %s7758_s20 }
 0x14f   : > { %v7925_v35 = vpop.permute.xlu1 %630 }
 0x153   : > { %v629_v36 = vpop.permute.xlu1 %628 }
 0x154   : > { %6612 = vmatprep.mubr.msk.bf16.mxu0 %vm660_vm1, %v629_v36 }
 0x157   : > { %v7928_v37 = vpop.permute.xlu0 %634  ;;  %v7942_v40 = vpop.permute.xlu1 %650 }
 0x158   : > { %756 = vrot.lane.b32.xlu1 %v7928_v37, %s7758_s20 }
 0x15b   : > { %v7932_v38 = vpop.permute.xlu0 %632  ;;  %v7951_v43 = vpop.permute.xlu1 %648 }
 0x15c   : > { %754 = vrot.lane.b32.xlu1 %v7932_v38, %s7758_s20 }
 0x15f   : > { %v7936_v39 = vpop.permute.xlu0 %642  ;;  %v7963_v45 = vpop.permute.xlu1 %646 }
 0x160   : > { %853 = vrot.lane.b32.xlu0 %v7936_v39, %s7758_s20  ;;  %752 = vrot.lane.b32.xlu1 %v7925_v35, %s7758_s20 }
 0x163   : > { %v7944_v41 = vpop.permute.xlu0 %640  ;;  %v7971_v49 = vpop.permute.xlu1 %644 }
 0x164   : > { %851 = vrot.lane.b32.xlu0 %v7944_v41, %s7758_s20  ;;  %750 = vrot.lane.b32.xlu1 %v629_v36, %s7758_s20 }
 0x167   : > { %v7949_v42 = vpop.permute.xlu0 %638 }
 0x168   : > { %849 = vrot.lane.b32.xlu0 %v7949_v42, %s7758_s20  ;;  %950 = vrot.lane.b32.xlu1 %v7942_v40, %s7758_s20 }
 0x16b   : > { %v7957_v44 = vpop.permute.xlu0 %636 }
 0x16c   : > { %847 = vrot.lane.b32.xlu0 %v7957_v44, %s7758_s20  ;;  %948 = vrot.lane.b32.xlu1 %v7951_v43, %s7758_s20 }
 0x16f   : > { %v659_v46 = vpop.permute.xlu0 %658 }
 0x170   : > { %1412 = vrot.lane.b32.xlu0 %v7883_v22, %s7759_s21  ;;  %7052 = vmatprep.subr.msk.bf16.mxu1 %vm660_vm1, %v659_v46  ;;  %v683_v47 = vsel %vm660_vm1, %v659_v46, 0 }
 0x171   : > { %946 = vrot.lane.b32.xlu1 %v7963_v45, %s7758_s20  ;;  %6589 = vmatpush3.bf16.xpose.msra.mxu1 %v683_v47  ;;  %v8112_v47 = vld [vmem:[%s10378_s12 + $0x20] sm:$0xff] }
 0x173   : > { %v657_v48 = vpop.permute.xlu0 %656 }
 0x174   : > { %1505 = vrot.lane.b32.xlu0 %v7928_v37, %s7759_s21  ;;  %7053 = vmatprep.subr.msk.bf16.mxu1 %vm660_vm1, %v657_v48  ;;  %v680_v50 = vsel %vm660_vm1, %v657_v48, 0  ;;  %v8117_v48 = vld [vmem:[%s10378_s12 + $0x38] sm:$0xff] }
 0x175   : > { %944 = vrot.lane.b32.xlu1 %v7971_v49, %s7758_s20 }
 0x177   : > { %v655_v51 = vpop.permute.xlu0 %654 }
 0x178   : > { %1499 = vrot.lane.b32.xlu0 %v629_v36, %s7759_s21  ;;  %v677_v52 = vsel %vm660_vm1, %v655_v51, 0  ;;  %v8094_v36 = vld [vmem:[%s10378_s12 + $0x30] sm:$0xff] }
 0x179   : > { %1416 = vrot.lane.b32.xlu1 %v7893_v31, %s7759_s21  ;;  %6591 = vmatpush3.bf16.xpose.msra.mxu1 %v680_v50 }
 0x17a   : > { %7054 = vmatprep.subr.msk.bf16.mxu1 %vm660_vm1, %v655_v51 }
 0x17b   : > { %v653_v53 = vpop.permute.xlu0 %652 }
 0x17c   : > { %1503 = vrot.lane.b32.xlu0 %v7932_v38, %s7759_s21  ;;  %v674_v54 = vsel %vm660_vm1, %v653_v53, 0 }
 0x17d   : > { %1414 = vrot.lane.b32.xlu1 %v7899_v34, %s7759_s21 }
 0x180   : > { %1592 = vrot.lane.b32.xlu0 %v7944_v41, %s7759_s21 }
 0x181   : > { %1410 = vrot.lane.b32.xlu1 %v7885_v25, %s7759_s21  ;;  %6593 = vmatpush3.bf16.xpose.msra.mxu1 %v677_v52  ;;  %v8066_v25 = vld [vmem:[%s10378_s12 + $0x10] sm:$0xff]  ;;  %v8124_v52 = vld [vmem:[%s10378_s12 + $0x28] sm:$0xff] }
 0x182   : > { %7055 = vmatprep.subr.msk.bf16.mxu1 %vm660_vm1, %v653_v53 }
 0x185   : > { %1501 = vrot.lane.b32.xlu1 %v7925_v35, %s7759_s21 }
 0x189   : > { %1594 = vrot.lane.b32.xlu1 %v7936_v39, %s7759_s21  ;;  %6595 = vmatpush3.bf16.xpose.msra.mxu1 %v674_v54 }
 0x18d   : > { %1683 = vrot.lane.b32.xlu1 %v7942_v40, %s7759_s21 }
 0x190   : > { %6597 = vmatmul.mubr.msk.bf16.vlgmr.msra.gmra.mxu1 %vm660_vm1, %v7883_v22 }
 0x191   : > { %1681 = vrot.lane.b32.xlu1 %v7951_v43, %s7759_s21  ;;  %6600 = vmatprep.mubr.msk.bf16.mxu1 %vm660_vm1, %v7899_v34  ;;  %v8089_v34 = vld [vmem:[%s10378_s12 + $0x8] sm:$0xff] }
 0x198   : > { %6601 = vmatmul.mubr.msk.bf16.gmra.mxu1 %vm660_vm1, %v7893_v31 }
 0x199   : > { %6628 = vmatprep.mubr.msk.bf16.mxu1 %vm660_vm1, %v7957_v44 }
 0x1ca   : > { %v757_v55 = vpop.permute.xlu1 %756 }
 0x1cb   : > { %7056 = vmatprep.subr.msk.bf16.mxu0 %vm660_vm1, %v757_v55  ;;  %v780_v56 = vsel %vm660_vm1, %v757_v55, 0 }
 0x1cc   : > { %6605 = vmatpush3.bf16.xpose.msra.mxu0 %v780_v56 }
 0x1ce   : > { %v755_v57 = vpop.permute.xlu1 %754 }
 0x1cf   : > { %7057 = vmatprep.subr.msk.bf16.mxu0 %vm660_vm1, %v755_v57  ;;  %v777_v60 = vsel %vm660_vm1, %v755_v57, 0 }
 0x1d2   : > { %v854_v58 = vpop.permute.xlu0 %853  ;;  %v753_v59 = vpop.permute.xlu1 %752 }
 0x1d3   : > { %7060 = vmatprep.subr.msk.bf16.mxu1 %vm660_vm1, %v854_v58  ;;  %v877_v61 = vsel %vm660_vm1, %v854_v58, 0  ;;  %v774_v2 = vsel %vm660_vm1, %v753_v59, 0 }
 0x1d4   : > { %6607 = vmatpush3.bf16.xpose.msra.mxu0 %v777_v60  ;;  %6621 = vmatpush3.bf16.xpose.msra.mxu1 %v877_v61 }
 0x1d5   : > { %7058 = vmatprep.subr.msk.bf16.mxu0 %vm660_vm1, %v753_v59 }
 0x1d6   : > { %v852_v62 = vpop.permute.xlu0 %851  ;;  %v751_v63 = vpop.permute.xlu1 %750 }
 0x1d7   : > { %7061 = vmatprep.subr.msk.bf16.mxu1 %vm660_vm1, %v852_v62  ;;  %v874_v3 = vsel %vm660_vm1, %v852_v62, 0  ;;  %v771_v7 = vsel %vm660_vm1, %v751_v63, 0 }
 0x1da   : > { %v850_v0 = vpop.permute.xlu0 %849  ;;  %v951_v1 = vpop.permute.xlu1 %950 }
 0x1db   : > { %v871_v8 = vsel %vm660_vm1, %v850_v0, 0  ;;  %v974_v14 = vsel %vm660_vm1, %v951_v1, 0 }
 0x1dc   : > { %6609 = vmatpush3.bf16.xpose.msra.mxu0 %v774_v2  ;;  %6623 = vmatpush3.bf16.xpose.msra.mxu1 %v874_v3 }
 0x1dd   : > { %7059 = vmatprep.subr.msk.bf16.mxu0 %vm660_vm1, %v751_v63  ;;  %7062 = vmatprep.subr.msk.bf16.mxu1 %vm660_vm1, %v850_v0 }
 0x1de   : > { %v949_v4 = vpop.permute.xlu1 %948  ;;  %v848_v5 = vpop.permute.xlu0 %847 }
 0x1df   : > { %v868_v13 = vsel %vm660_vm1, %v848_v5, 0  ;;  %v971_v18 = vsel %vm660_vm1, %v949_v4, 0 }
 0x1e2   : > { %v1413_v9 = vpop.permute.xlu0 %1412 }
 0x1e3   : > { %v947_v6 = vpop.permute.xlu1 %946 }
 0x1e4   : > { %6611 = vmatpush3.bf16.xpose.msra.mxu0 %v771_v7  ;;  %6625 = vmatpush3.bf16.xpose.msra.mxu1 %v871_v8  ;;  %v968_v22 = vsel %vm660_vm1, %v947_v6, 0 }
 0x1e5   : > { %7063 = vmatprep.subr.msk.bf16.mxu1 %vm660_vm1, %v848_v5  ;;  %7064 = vmatprep.subr.msk.bf16.mxu0 %vm660_vm1, %v951_v1 }
 0x1e6   : > { %v8026_v11 = vpop.permute.xlu0 %1505 }
 0x1e7   : > { %v945_v10 = vpop.permute.xlu1 %944 }
 0x1e8   : > { %v965_v24 = vsel %vm660_vm1, %v945_v10, 0 }
 0x1ea   : > { %v8035_v16 = vpop.permute.xlu0 %1499 }
 0x1eb   : > { %v1417_v12 = vpop.permute.xlu1 %1416  ;;  %6613 = vmatmul.mubr.msk.bf16.vlgmr.msra.gmra.mxu0 %vm660_vm1, %v7925_v35 }
 0x1ec   : > { %6616 = vmatprep.mubr.msk.bf16.mxu0 %vm660_vm1, %v7932_v38  ;;  %6627 = vmatpush3.bf16.xpose.msra.mxu1 %v868_v13 }
 0x1ed   : > { %6637 = vmatpush3.bf16.xpose.msra.mxu0 %v974_v14 }
 0x1ee   : > { %7065 = vmatprep.subr.msk.bf16.mxu0 %vm660_vm1, %v949_v4  ;;  %v8047_v19 = vpop.permute.xlu0 %1503 }
 0x1ef   : > { %v1415_v15 = vpop.permute.xlu1 %1414 }
 0x1f2   : > { %v1593_v23 = vpop.permute.xlu0 %1592 }
 0x1f3   : > { %v1411_v17 = vpop.permute.xlu1 %1410  ;;  %6617 = vmatmul.mubr.msk.bf16.gmra.mxu0 %vm660_vm1, %v7928_v37  ;;  %6629 = vmatmul.mubr.msk.bf16.vlgmr.msra.gmra.mxu1 %vm660_vm1, %v7949_v42 }
 0x1f4   : > { %6632 = vmatprep.mubr.msk.bf16.mxu1 %vm660_vm1, %v7944_v41  ;;  %6644 = vmatprep.mubr.msk.bf16.mxu0 %vm660_vm1, %v7971_v49 }
 0x1f5   : > { %6639 = vmatpush3.bf16.xpose.msra.mxu0 %v971_v18 }
 0x1f6   : > { %7066 = vmatprep.subr.msk.bf16.mxu0 %vm660_vm1, %v947_v6 }
 0x1f7   : > { %v8049_v20 = vpop.permute.xlu1 %1501 }
 0x1fb   : > { %v1595_v21 = vpop.permute.xlu1 %1594  ;;  %6633 = vmatmul.mubr.msk.bf16.gmra.mxu1 %vm660_vm1, %v7936_v39 }
 0x1fc   : > { %6684 = vmatprep.subr.bf16.mxu1 %v1595_v21 }
 0x1fd   : > { %6641 = vmatpush3.bf16.xpose.msra.mxu0 %v968_v22  ;;  %6685 = vmatpush3.bf16.msra.mxu1 %v1595_v21 }
 0x1fe   : > { %7067 = vmatprep.subr.msk.bf16.mxu0 %vm660_vm1, %v945_v10  ;;  %6686 = vmatprep.subr.bf16.mxu1 %v1593_v23 }
 0x201   : > { %6687 = vmatpush3.bf16.msra.mxu1 %v1593_v23 }
 0x205   : > { %6643 = vmatpush3.bf16.xpose.msra.mxu0 %v965_v24 }
 0x206   : > { %6652 = vmatprep.subr.bf16.mxu0 %v1417_v12 }
 0x20c   : > { %6645 = vmatmul.mubr.msk.bf16.vlgmr.msra.gmra.mxu0 %vm660_vm1, %v7963_v45 }
 0x20d   : > { %6648 = vmatprep.mubr.msk.bf16.mxu0 %vm660_vm1, %v7951_v43  ;;  %6653 = vmatpush3.bf16.msra.mxu0 %v1417_v12 }
 0x20e   : > { %6654 = vmatprep.subr.bf16.mxu0 %v1415_v15 }
 0x211   : > { %6655 = vmatpush3.bf16.msra.mxu0 %v1415_v15 }
 0x212   : > { %6656 = vmatprep.subr.bf16.mxu0 %v1413_v9 }
 0x214   : > { %6649 = vmatmul.mubr.msk.bf16.gmra.mxu0 %vm660_vm1, %v7942_v40 }
 0x215   : > { %6657 = vmatpush3.bf16.msra.mxu0 %v1413_v9 }
 0x216   : > { %6658 = vmatprep.subr.bf16.mxu0 %v1411_v17 }
 0x219   : > { %6659 = vmatpush3.bf16.msra.mxu0 %v1411_v17 }
 0x21a   : > { %6668 = vmatprep.subr.bf16.mxu0 %v8026_v11 }
 0x250   : > { %v6598_v26 = vpop.f32.mrf.mxu1 }
 0x251   : > { %v8074_v28 = vadd.f32 %v6598_v26, %v8066_v25 }
 0x252   : > { %v719_v29 = vpop.f32.mrf.mxu1 }
 0x253   : > { %v8077_v30 = vadd.f32 %v719_v29, %v8071_v27  ;;  %v1048_v31 = vsel %vm1041_vm2, %v8074_v28, -inf }
 0x254   : > { %1049 = vmax.xlane.f32.xlu0 %v1048_v31  ;;  %v6599_v33 = vpop.f32.mrf.mxu1 }
 0x255   : > { %v8097_v37 = vadd.f32 %v6599_v33, %v8084_v32  ;;  %v1042_v39 = vsel %vm1041_vm2, %v8077_v30, -inf }
 0x256   : > { %v722_v35 = vpop.f32.mrf.mxu1 }
 0x257   : > { %v8100_v38 = vadd.f32 %v722_v35, %v8089_v34  ;;  %v1051_v50 = vsel %vm1041_vm2, %v8097_v37, -inf }
 0x258   : > { %v6602_v40 = vpop.f32.mrf.mxu1  ;;  %1043 = vmax.xlane.f32.xlu0 %v1042_v39 }
 0x259   : > { %v8105_v41 = vadd.f32 %v6602_v40, %v8094_v36  ;;  %v1045_v43 = vsel %vm1041_vm2, %v8100_v38, -inf }
 0x25a   : > { %v735_v46 = vpop.f32.mrf.mxu1  ;;  %1046 = vmax.xlane.f32.xlu1 %v1045_v43 }
 0x25b   : > { %v8127_v53 = vadd.f32 %v735_v46, %v8112_v47  ;;  %v1060_v55 = vsel %vm1041_vm2, %v8105_v41, -inf }
 0x25c   : > { %v6603_v51 = vpop.f32.mrf.mxu1  ;;  %1052 = vmax.xlane.f32.xlu0 %v1051_v50 }
 0x25d   : > { %v8130_v54 = vadd.f32 %v6603_v51, %v8117_v48  ;;  %v1054_v59 = vsel %vm1041_vm2, %v8127_v53, -inf }
 0x25e   : > { %v738_v56 = vpop.f32.mrf.mxu1  ;;  %1061 = vmax.xlane.f32.xlu1 %v1060_v55 }
 0x25f   : > { %v8135_v57 = vadd.f32 %v738_v56, %v8124_v52  ;;  %v1063_v58 = vsel %vm1041_vm2, %v8130_v54, -inf }
 0x260   : > { %1064 = vmax.xlane.f32.xlu0 %v1063_v58 }
 0x261   : > { %v1057_v60 = vsel %vm1041_vm2, %v8135_v57, -inf }
 0x262   : > { %1055 = vmax.xlane.f32.xlu1 %v1054_v59 }
 0x264   : > { %1058 = vmax.xlane.f32.xlu0 %v1057_v60 }
 0x2ab   : > { %v6614_v61 = vpop.f32.mrf.mxu0 }
 0x2ac   : > { %v8144_v62 = vadd.f32 %v6614_v61, %v8066_v25 }
 0x2ad   : > { %v816_v63 = vpop.f32.mrf.mxu0 }
 0x2ae   : > { %v1072_v0 = vsel %vm1041_vm2, %v8144_v62, -inf  ;;  %v8157_v8 = vadd.f32 %v816_v63, %v8071_v27 }
 0x2af   : > { %v6615_v1 = vpop.f32.mrf.mxu0  ;;  %1073 = vmax.xlane.f32.xlu1 %v1072_v0 }
 0x2b0   : > { %v8149_v2 = vadd.f32 %v6615_v1, %v8084_v32  ;;  %v1066_v18 = vsel %vm1041_vm2, %v8157_v8, -inf }
 0x2b1   : > { %v819_v4 = vpop.f32.mrf.mxu0 }
 0x2b2   : > { %v1075_v3 = vsel %vm1041_vm2, %v8149_v2, -inf  ;;  %v8165_v15 = vadd.f32 %v819_v4, %v8089_v34 }
 0x2b3   : > { %v6630_v5 = vpop.f32.mrf.mxu1  ;;  %1076 = vmax.xlane.f32.xlu0 %v1075_v3  ;;  %v6618_v10 = vpop.f32.mrf.mxu0 }
 0x2b4   : > { %v8154_v6 = vadd.f32 %v6630_v5, %v8066_v25  ;;  %v8175_v24 = vadd.f32 %v6618_v10, %v8094_v36  ;;  %v1069_v31 = vsel %vm1041_vm2, %v8165_v15, -inf }
 0x2b5   : > { %v913_v7 = vpop.f32.mrf.mxu1  ;;  %v832_v22 = vpop.f32.mrf.mxu0 }
 0x2b6   : > { %v1096_v9 = vsel %vm1041_vm2, %v8154_v6, -inf  ;;  %v8168_v17 = vadd.f32 %v913_v7, %v8071_v27  ;;  %v1084_v43 = vsel %vm1041_vm2, %v8175_v24, -inf  ;;  %v8195_v51 = vadd.f32 %v832_v22, %v8112_v47 }
 0x2b7   : > { %v6631_v12 = vpop.f32.mrf.mxu1  ;;  %1097 = vmax.xlane.f32.xlu1 %v1096_v9  ;;  %v6619_v33 = vpop.f32.mrf.mxu0 }
 0x2b8   : > { %v8162_v13 = vadd.f32 %v6631_v12, %v8084_v32  ;;  %v1090_v29 = vsel %vm1041_vm2, %v8168_v17, -inf  ;;  %v8185_v39 = vadd.f32 %v6619_v33, %v8117_v48  ;;  %v1078_v63 = vsel %vm1041_vm2, %v8195_v51, -inf }
 0x2b9   : > { %v916_v14 = vpop.f32.mrf.mxu1  ;;  %v835_v59 = vpop.f32.mrf.mxu0 }
 0x2ba   : > { %v1099_v21 = vsel %vm1041_vm2, %v8162_v13, -inf  ;;  %v8178_v26 = vadd.f32 %v916_v14, %v8089_v34  ;;  %v1087_v58 = vsel %vm1041_vm2, %v8185_v39, -inf  ;;  %v8205_v60 = vadd.f32 %v835_v59, %v8124_v52 }
 0x2bb   : > { %v6634_v23 = vpop.f32.mrf.mxu1  ;;  %1067 = vmax.xlane.f32.xlu1 %v1066_v18  ;;  %1100 = vmax.xlane.f32.xlu0 %v1099_v21 }
 0x2bc   : > { %v8188_v40 = vadd.f32 %v6634_v23, %v8094_v36  ;;  %v1093_v46 = vsel %vm1041_vm2, %v8178_v26, -inf  ;;  %v1081_v10 = vsel %vm1041_vm2, %v8205_v60, -inf }
 0x2bd   : > { %v929_v35 = vpop.f32.mrf.mxu1 }
 0x2be   : > { %v1108_v56 = vsel %vm1041_vm2, %v8188_v40, -inf  ;;  %v8208_v61 = vadd.f32 %v929_v35, %v8112_v47 }
 0x2bf   : > { %1091 = vmax.xlane.f32.xlu1 %v1090_v29  ;;  %1070 = vmax.xlane.f32.xlu0 %v1069_v31  ;;  %v6635_v50 = vpop.f32.mrf.mxu1 }
 0x2c0   : > { %v8198_v55 = vadd.f32 %v6635_v50, %v8117_v48  ;;  %v1102_v9 = vsel %vm1041_vm2, %v8208_v61, -inf }
 0x2c1   : > { %v932_v1 = vpop.f32.mrf.mxu1 }
 0x2c2   : > { %v1111_v0 = vsel %vm1041_vm2, %v8198_v55, -inf  ;;  %v8215_v4 = vadd.f32 %v932_v1, %v8124_v52 }
 0x2c3   : > { %1085 = vmax.xlane.f32.xlu1 %v1084_v43  ;;  %1094 = vmax.xlane.f32.xlu0 %v1093_v46 }
 0x2c4   : > { %v1105_v22 = vsel %vm1041_vm2, %v8215_v4, -inf }
 0x2c7   : > { %1109 = vmax.xlane.f32.xlu1 %v1108_v56  ;;  %1088 = vmax.xlane.f32.xlu0 %v1087_v58 }
 0x2cb   : > { %1079 = vmax.xlane.f32.xlu1 %v1078_v63  ;;  %1112 = vmax.xlane.f32.xlu0 %v1111_v0 }
 0x2cc   : > { %v6646_v3 = vpop.f32.mrf.mxu0 }
 0x2cd   : > { %v8218_v5 = vadd.f32 %v6646_v3, %v8066_v25 }
 0x2ce   : > { %v1010_v7 = vpop.f32.mrf.mxu0 }
 0x2cf   : > { %1103 = vmax.xlane.f32.xlu1 %v1102_v9  ;;  %1082 = vmax.xlane.f32.xlu0 %v1081_v10  ;;  %v8225_v14 = vadd.f32 %v1010_v7, %v8071_v27  ;;  %v1120_v25 = vsel %vm1041_vm2, %v8218_v5, -inf }
 0x2d0   : > { %v6647_v12 = vpop.f32.mrf.mxu0 }
 0x2d1   : > { %v8228_v18 = vadd.f32 %v6647_v12, %v8084_v32  ;;  %v1114_v32 = vsel %vm1041_vm2, %v8225_v14, -inf  ;;  %v8273_v12 = vpop.permute.xlu1 %1683 }
 0x2d2   : > { %v1013_v21 = vpop.f32.mrf.mxu0 }
 0x2d3   : > { %1121 = vmax.xlane.f32.xlu1 %v1120_v25  ;;  %1106 = vmax.xlane.f32.xlu0 %v1105_v22  ;;  %v8235_v29 = vadd.f32 %v1013_v21, %v8089_v34  ;;  %v1123_v33 = vsel %vm1041_vm2, %v8228_v18, -inf }
 0x2d4   : > { %v6650_v23 = vpop.f32.mrf.mxu0 }
 0x2d5   : > { %v8238_v31 = vadd.f32 %v6650_v23, %v8094_v36  ;;  %v1117_v36 = vsel %vm1041_vm2, %v8235_v29, -inf }
 0x2d6   : > { %v1026_v27 = vpop.f32.mrf.mxu0 }
 0x2d7   : > { %1115 = vmax.xlane.f32.xlu1 %v1114_v32  ;;  %1124 = vmax.xlane.f32.xlu0 %v1123_v33  ;;  %v8245_v43 = vadd.f32 %v1026_v27, %v8112_v47  ;;  %v1132_v34 = vsel %vm1041_vm2, %v8238_v31, -inf }
 0x2d8   : > { %v6651_v35 = vpop.f32.mrf.mxu0 }
 0x2d9   : > { %v8248_v46 = vadd.f32 %v6651_v35, %v8117_v48  ;;  %v1126_v47 = vsel %vm1041_vm2, %v8245_v43, -inf }
 0x2da   : > { %v1029_v50 = vpop.f32.mrf.mxu0 }
 0x2db   : > { %1133 = vmax.xlane.f32.xlu1 %v1132_v34  ;;  %1118 = vmax.xlane.f32.xlu0 %v1117_v36  ;;  %v8255_v58 = vadd.f32 %v1029_v50, %v8124_v52  ;;  %v1135_v48 = vsel %vm1041_vm2, %v8248_v46, -inf }
 0x2dd   : > { %v1050_v56 = vpop.xlane.xlu0 %1049  ;;  %v1129_v3 = vsel %vm1041_vm2, %v8255_v58, -inf }
 0x2de   : > { %v1140_v59 = vsub.f32 %v8074_v28, %v1050_v56 }
 0x2df   : > { %1127 = vmax.xlane.f32.xlu1 %v1126_v47  ;;  %1136 = vmax.xlane.f32.xlu0 %v1135_v48 }
 0x2e0   : > { %v1174_v63 = vmul.f32 1.442695, %v1140_v59 }
 0x2e1   : > { %v1044_v0 = vpop.xlane.xlu0 %1043 }
 0x2e2   : > { %7291 = vpow2.f32 %v1174_v63  ;;  %v1138_v1 = vsub.f32 %v8077_v30, %v1044_v0  ;;  %v8277_v30 = vpop.permute.xlu1 %1681 }
 0x2e3   : > { %1130 = vmax.xlane.f32.xlu0 %v1129_v3 }
 0x2e4   : > { %v1170_v52 = vmul.f32 1.442695, %v1138_v1 }
 0x2e5   : > { %v1053_v21 = vpop.xlane.xlu0 %1052 }
 0x2e6   : > { %7293 = vpow2.f32 %v1170_v52  ;;  %v1141_v25 = vsub.f32 %v8097_v37, %v1053_v21  ;;  %v1047_v22 = vpop.xlane.xlu1 %1046 }
 0x2e7   : > { %v1139_v27 = vsub.f32 %v8100_v38, %v1047_v22 }
 0x2e8   : > { %v1176_v32 = vmul.f32 1.442695, %v1141_v25 }
 0x2e9   : > { %v1065_v23 = vpop.xlane.xlu0 %1064  ;;  %v1172_v33 = vmul.f32 1.442695, %v1139_v27 }
 0x2ea   : > { %7295 = vpow2.f32 %v1176_v32  ;;  %v1145_v35 = vsub.f32 %v8130_v54, %v1065_v23  ;;  %v1062_v50 = vpop.xlane.xlu1 %1061 }
 0x2eb   : > { %7297 = vpow2.f32 %v1172_v33  ;;  %v1144_v56 = vsub.f32 %v8105_v41, %v1062_v50 }
 0x2ed   : > { %v1059_v34 = vpop.xlane.xlu0 %1058  ;;  %v1182_v47 = vmul.f32 1.442695, %v1144_v56 }
 0x2ee   : > { %v1143_v36 = vsub.f32 %v8135_v57, %v1059_v34  ;;  %v1056_v59 = vpop.xlane.xlu1 %1055 }
 0x2ef   : > { %v8265_v28 = vpop.eup %7291 }
 0x2f0   : > { %v1240_v7 = vsel %vm1041_vm2, %v8265_v28, 0.0  ;;  %v1180_v37 = vmul.f32 1.442695, %v1143_v36 }
 0x2f1   : > { %1241 = vadd.xlane.f32.xlu1 %v1240_v7 }
 0x2f3   : > { %v8269_v9 = vpop.eup %7293 }
 0x2f4   : > { %v1234_v10 = vsel %vm1041_vm2, %v8269_v9, 0.0 }
 0x2f5   : > { %1235 = vadd.xlane.f32.xlu1 %v1234_v10 }
 0x2f7   : > { %v8286_v38 = vpop.eup %7295 }
 0x2f8   : > { %v1243_v54 = vsel %vm1041_vm2, %v8286_v38, 0.0  ;;  %v8291_v48 = vpop.eup %7297 }
 0x2f9   : > { %1590 = vrot.lane.b32.xlu0 %v7949_v42, %s7759_s21  ;;  %v1184_v42 = vmul.f32 1.442695, %v1145_v35  ;;  %v1237_v63 = vsel %vm1041_vm2, %v8291_v48, 0.0 }
 0x2fb   : > { %7299 = vpow2.f32 %v1184_v42 }
 0x2fc   : > { %7301 = vpow2.f32 %v1180_v37 }
 0x2fd   : > { %7303 = vpow2.f32 %v1182_v47 }
 0x306   : > { %1679 = vrot.lane.b32.xlu1 %v7963_v45, %s7759_s21  ;;  %v1142_v45 = vsub.f32 %v8127_v53, %v1056_v59 }
 0x308   : > { %v1178_v57 = vmul.f32 1.442695, %v1142_v45  ;;  %v8295_v0 = vpop.eup %7299 }
 0x309   : > { %v1255_v41 = vsel %vm1041_vm2, %v8295_v0, 0.0  ;;  %v8299_v1 = vpop.eup %7301 }
 0x30a   : > { %7305 = vpow2.f32 %v1178_v57  ;;  %v1249_v53 = vsel %vm1041_vm2, %v8299_v1, 0.0  ;;  %v8303_v3 = vpop.eup %7303 }
 0x30b   : > { %v1252_v52 = vsel %vm1041_vm2, %v8303_v3, 0.0 }
 0x317   : > { %v8307_v7 = vpop.eup %7305 }
 0x318   : > { %1244 = vadd.xlane.f32.xlu0 %v1243_v54  ;;  %v1246_v10 = vsel %vm1041_vm2, %v8307_v7, 0.0 }
 0x31c   : > { %1238 = vadd.xlane.f32.xlu0 %v1237_v63 }
 0x320   : > { %1256 = vadd.xlane.f32.xlu0 %v1255_v41 }
 0x324   : > { %1250 = vadd.xlane.f32.xlu0 %v1249_v53 }
 0x32a   : > { %1253 = vadd.xlane.f32.xlu1 %v1252_v52 }
 0x32e   : > { %1247 = vadd.xlane.f32.xlu1 %v1246_v10 }
 0x338   : > { %v1074_v21 = vpop.xlane.xlu1 %1073 }
 0x339   : > { %v1148_v25 = vsub.f32 %v8144_v62, %v1074_v21 }
 0x33b   : > { %v1190_v22 = vmul.f32 1.442695, %v1148_v25 }
 0x33c   : > { %v1077_v23 = vpop.xlane.xlu0 %1076 }
 0x33d   : > { %7307 = vpow2.f32 %v1190_v22  ;;  %v1149_v36 = vsub.f32 %v8149_v2, %v1077_v23 }
 0x33f   : > { %v1192_v47 = vmul.f32 1.442695, %v1149_v36 }
 0x340   : > { %v1098_v27 = vpop.xlane.xlu1 %1097 }
 0x341   : > { %v1156_v32 = vsub.f32 %v8154_v6, %v1098_v27 }
 0x343   : > { %v1206_v33 = vmul.f32 1.442695, %v1156_v32 }
 0x344   : > { %v1068_v35 = vpop.xlane.xlu1 %1067  ;;  %v1101_v34 = vpop.xlane.xlu0 %1100 }
 0x345   : > { %7309 = vpow2.f32 %v1206_v33  ;;  %v1146_v42 = vsub.f32 %v8157_v8, %v1068_v35  ;;  %v1157_v45 = vsub.f32 %v8162_v13, %v1101_v34 }
 0x347   : > { %v1186_v50 = vmul.f32 1.442695, %v1146_v42  ;;  %v1208_v41 = vmul.f32 1.442695, %v1157_v45 }
 0x348   : > { %v1092_v37 = vpop.xlane.xlu1 %1091  ;;  %v1071_v56 = vpop.xlane.xlu0 %1070 }
 0x349   : > { %7311 = vpow2.f32 %v1186_v50  ;;  %v1154_v62 = vsub.f32 %v8168_v17, %v1092_v37  ;;  %v1147_v63 = vsub.f32 %v8165_v15, %v1071_v56 }
 0x34a   : > { %v8316_v59 = vpop.eup %7307 }
 0x34b   : > { %v1202_v6 = vmul.f32 1.442695, %v1154_v62  ;;  %v1264_v54 = vsel %vm1041_vm2, %v8316_v59, 0.0  ;;  %v1188_v13 = vmul.f32 1.442695, %v1147_v63 }
 0x34c   : > { %v1086_v57 = vpop.xlane.xlu1 %1085  ;;  %1265 = vadd.xlane.f32.xlu0 %v1264_v54  ;;  %v1095_v8 = vpop.xlane.xlu0 %1094 }
 0x34d   : > { %7313 = vpow2.f32 %v1202_v6  ;;  %v1152_v2 = vsub.f32 %v8175_v24, %v1086_v57  ;;  %v1155_v21 = vsub.f32 %v8178_v26, %v1095_v8 }
 0x34e   : > { %7315 = vpow2.f32 %v1192_v47 }
 0x34f   : > { %v1198_v17 = vmul.f32 1.442695, %v1152_v2  ;;  %v1204_v27 = vmul.f32 1.442695, %v1155_v21 }
 0x350   : > { %v1110_v53 = vpop.xlane.xlu1 %1109  ;;  %v1089_v52 = vpop.xlane.xlu0 %1088 }
 0x351   : > { %7317 = vpow2.f32 %v1198_v17  ;;  %v1160_v32 = vsub.f32 %v8188_v40, %v1110_v53  ;;  %v1153_v33 = vsub.f32 %v8185_v39, %v1089_v52 }
 0x352   : > { %v8323_v10 = vpop.eup %7309  ;;  %7319 = vpow2.f32 %v1208_v41 }
 0x353   : > { %v1288_v25 = vsel %vm1041_vm2, %v8323_v10, 0.0  ;;  %7321 = vpow2.f32 %v1188_v13  ;;  %v1200_v40 = vmul.f32 1.442695, %v1153_v33 }
 0x354   : > { %v1080_v22 = vpop.xlane.xlu1 %1079  ;;  %1289 = vadd.xlane.f32.xlu1 %v1288_v25  ;;  %v1113_v24 = vpop.xlane.xlu0 %1112 }
 0x355   : > { %v1150_v23 = vsub.f32 %v8195_v51, %v1080_v22  ;;  %v1214_v51 = vmul.f32 1.442695, %v1160_v32  ;;  %v1161_v37 = vsub.f32 %v8198_v55, %v1113_v24 }
 0x356   : > { %v8329_v15 = vpop.eup %7311 }
 0x357   : > { %v1194_v35 = vmul.f32 1.442695, %v1150_v23  ;;  %v1258_v26 = vsel %vm1041_vm2, %v8329_v15, 0.0  ;;  %v1216_v54 = vmul.f32 1.442695, %v1161_v37 }
 0x358   : > { %v1104_v34 = vpop.xlane.xlu1 %1103  ;;  %1259 = vadd.xlane.f32.xlu0 %v1258_v26  ;;  %v1083_v42 = vpop.xlane.xlu0 %1082 }
 0x359   : > { %7323 = vpow2.f32 %v1194_v35  ;;  %v1158_v36 = vsub.f32 %v8208_v61, %v1104_v34  ;;  %v1151_v62 = vsub.f32 %v8205_v60, %v1083_v42 }
 0x35a   : > { %v8336_v50 = vpop.eup %7313  ;;  %7325 = vpow2.f32 %v1204_v27 }
 0x35b   : > { %v8339_v56 = vpop.eup %7315  ;;  %v1210_v39 = vmul.f32 1.442695, %v1158_v36  ;;  %v1282_v47 = vsel %vm1041_vm2, %v8336_v50, 0.0  ;;  %v1196_v57 = vmul.f32 1.442695, %v1151_v62 }
 0x35c   : > { %v1122_v45 = vpop.xlane.xlu1 %1121  ;;  %1283 = vadd.xlane.f32.xlu0 %v1282_v47  ;;  %v1107_v6 = vpop.xlane.xlu0 %1106  ;;  %v1267_v55 = vsel %vm1041_vm2, %v8339_v56, 0.0 }
 0x35d   : > { %7327 = vpow2.f32 %v1210_v39  ;;  %v1159_v8 = vsub.f32 %v8215_v4, %v1107_v6  ;;  %v1164_v17 = vsub.f32 %v8218_v5, %v1122_v45 }
 0x35e   : > { %v8344_v61 = vpop.eup %7317  ;;  %7329 = vpow2.f32 %v1214_v51 }
 0x35f   : > { %7331 = vpow2.f32 %v1200_v40  ;;  %v1276_v60 = vsel %vm1041_vm2, %v8344_v61, 0.0  ;;  %v8351_v2 = vpop.eup %7319  ;;  %v1212_v52 = vmul.f32 1.442695, %v1159_v8  ;;  %v1222_v24 = vmul.f32 1.442695, %v1164_v17 }
 0x360   : > { %v1116_v63 = vpop.xlane.xlu1 %1115  ;;  %1277 = vadd.xlane.f32.xlu1 %v1276_v60  ;;  %1268 = vadd.xlane.f32.xlu0 %v1267_v55  ;;  %v1125_v41 = vpop.xlane.xlu0 %1124  ;;  %7333 = vpow2.f32 %v1216_v54  ;;  %v1291_v13 = vsel %vm1041_vm2, %v8351_v2, 0.0 }
 0x361   : > { %v8354_v53 = vpop.eup %7321  ;;  %7335 = vpow2.f32 %v1196_v57  ;;  %v1162_v5 = vsub.f32 %v8225_v14, %v1116_v63  ;;  %v1165_v42 = vsub.f32 %v8228_v18, %v1125_v41 }
 0x362   : > { %v1261_v23 = vsel %vm1041_vm2, %v8354_v53, 0.0  ;;  %7337 = vpow2.f32 %v1212_v52 }
 0x363   : > { %v1218_v14 = vmul.f32 1.442695, %v1162_v5  ;;  %v1224_v18 = vmul.f32 1.442695, %v1165_v42 }
 0x364   : > { %v1134_v4 = vpop.xlane.xlu1 %1133  ;;  %1292 = vadd.xlane.f32.xlu0 %v1291_v13  ;;  %v1119_v21 = vpop.xlane.xlu0 %1118 }
 0x365   : > { %v1168_v25 = vsub.f32 %v8238_v31, %v1134_v4  ;;  %v1163_v6 = vsub.f32 %v8235_v29, %v1119_v21 }
 0x366   : > { %v8359_v22 = vpop.eup %7323 }
 0x367   : > { %v8363_v27 = vpop.eup %7325  ;;  %v1230_v32 = vmul.f32 1.442695, %v1168_v25  ;;  %v1270_v33 = vsel %vm1041_vm2, %v8359_v22, 0.0 }
 0x368   : > { %v1128_v35 = vpop.xlane.xlu1 %1127  ;;  %1271 = vadd.xlane.f32.xlu1 %v1270_v33  ;;  %1262 = vadd.xlane.f32.xlu0 %v1261_v23  ;;  %v1137_v26 = vpop.xlane.xlu0 %1136  ;;  %v1285_v36 = vsel %vm1041_vm2, %v8363_v27, 0.0 }
 0x369   : > { %7339 = vpow2.f32 %v1230_v32  ;;  %v1166_v31 = vsub.f32 %v8245_v43, %v1128_v35  ;;  %v1169_v60 = vsub.f32 %v8248_v46, %v1137_v26 }
 0x36a   : > { %v8369_v34 = vpop.eup %7327  ;;  %7341 = vpow2.f32 %v1222_v24 }
 0x36b   : > { %v8374_v51 = vpop.eup %7329  ;;  %v1226_v37 = vmul.f32 1.442695, %v1166_v31  ;;  %v1294_v40 = vsel %vm1041_vm2, %v8369_v34, 0.0  ;;  %v1232_v52 = vmul.f32 1.442695, %v1169_v60 }
 0x36c   : > { %v8378_v39 = vpop.eup %7331  ;;  %1295 = vadd.xlane.f32.xlu1 %v1294_v40  ;;  %1286 = vadd.xlane.f32.xlu0 %v1285_v36  ;;  %v1131_v43 = vpop.xlane.xlu0 %1130  ;;  %v1300_v47 = vsel %vm1041_vm2, %v8374_v51, 0.0 }
 0x36d   : > { %7343 = vpow2.f32 %v1226_v37  ;;  %v1167_v62 = vsub.f32 %v8255_v58, %v1131_v43  ;;  %v8383_v45 = vpop.eup %7333  ;;  %v1279_v55 = vsel %vm1041_vm2, %v8378_v39, 0.0  ;;  %v1220_v58 = vmul.f32 1.442695, %v1163_v6 }
 0x36e   : > { %7345 = vpow2.f32 %v1218_v14  ;;  %v8388_v57 = vpop.eup %7335  ;;  %v1303_v63 = vsel %vm1041_vm2, %v8383_v45, 0.0 }
 0x36f   : > { %v1228_v54 = vmul.f32 1.442695, %v1167_v62  ;;  %v1273_v29 = vsel %vm1041_vm2, %v8388_v57, 0.0  ;;  %v8395_v41 = vpop.eup %7337 }
 0x370   : > { %1301 = vadd.xlane.f32.xlu0 %v1300_v47  ;;  %1280 = vadd.xlane.f32.xlu1 %v1279_v55  ;;  %v1591_v8 = vpop.permute.xlu0 %1590  ;;  %v1297_v46 = vsel %vm1041_vm2, %v8395_v41, 0.0 }
 0x371   : > { %7347 = vpow2.f32 %v1228_v54  ;;  %6688 = vmatprep.subr.bf16.mxu1 %v1591_v8 }
 0x372   : > { %7349 = vpow2.f32 %v1224_v18  ;;  %6689 = vmatpush3.bf16.msra.mxu1 %v1591_v8 }
 0x373   : > { %7351 = vpow2.f32 %v1220_v58 }
 0x374   : > { %1304 = vadd.xlane.f32.xlu1 %v1303_v63  ;;  %1274 = vadd.xlane.f32.xlu0 %v1273_v29  ;;  %7353 = vpow2.f32 %v1232_v52 }
 0x376   : > { %v8397_v17 = vpop.eup %7339 }
 0x377   : > { %v1324_v13 = vsel %vm1041_vm2, %v8397_v17, 0.0  ;;  %v8403_v4 = vpop.eup %7341 }
 0x378   : > { %1325 = vadd.xlane.f32.xlu0 %v1324_v13  ;;  %1298 = vadd.xlane.f32.xlu1 %v1297_v46  ;;  %v1312_v24 = vsel %vm1041_vm2, %v8403_v4, 0.0 }
 0x37a   : > { %v8405_v21 = vpop.eup %7343  ;;  %v1242_v37 = vpop.xlane.xlu1 %1241 }
 0x37b   : > { %v1318_v25 = vsel %vm1041_vm2, %v8405_v21, 0.0  ;;  %v8411_v23 = vpop.eup %7345 }
 0x37c   : > { %1319 = vadd.xlane.f32.xlu0 %v1318_v25  ;;  %1313 = vadd.xlane.f32.xlu1 %v1312_v24  ;;  %v1306_v33 = vsel %vm1041_vm2, %v8411_v23, 0.0 }
 0x37e   : > { %v8413_v5 = vpop.eup %7347  ;;  %v1236_v40 = vpop.xlane.xlu1 %1235 }
 0x37f   : > { %v8415_v32 = vpop.eup %7349  ;;  %v1321_v35 = vsel %vm1041_vm2, %v8413_v5, 0.0 }
 0x380   : > { %1307 = vadd.xlane.f32.xlu1 %v1306_v33  ;;  %1322 = vadd.xlane.f32.xlu0 %v1321_v35  ;;  %v1315_v26 = vsel %vm1041_vm2, %v8415_v32, 0.0  ;;  %v8423_v31 = vpop.eup %7351 }
 0x381   : > { %v1309_v42 = vsel %vm1041_vm2, %v8423_v31, 0.0  ;;  %v8427_v36 = vpop.eup %7353 }
 0x382   : > { %v1327_v14 = vsel %vm1041_vm2, %v8427_v36, 0.0  ;;  %v8435_v47 = vpop.permute.xlu1 %1679 }
 0x384   : > { %1316 = vadd.xlane.f32.xlu1 %v1315_v26 }
 0x388   : > { %1310 = vadd.xlane.f32.xlu1 %v1309_v42 }
 0x38c   : > { %1328 = vadd.xlane.f32.xlu1 %v1327_v14 }
 0x396   : > { %1588 = vrot.lane.b32.xlu0 %v7957_v44, %s7759_s21 }
 0x39d   : > { %1677 = vrot.lane.b32.xlu1 %v7971_v49, %s7759_s21  ;;  %s7760_s21 = smov 8  }
 0x3a1   : > { %v1245_v43 = vpop.xlane.xlu0 %1244 }
 0x3a2   : > { %7355 = vrcp.f32 %v1245_v43 }
 0x3a3   : > { %7357 = vrcp.f32 %v1236_v40 }
 0x3a4   : > { %7359 = vrcp.f32 %v1242_v37 }
 0x3a5   : > { %v1239_v62 = vpop.xlane.xlu0 %1238 }
 0x3a6   : > { %7361 = vrcp.f32 %v1239_v62 }
 0x3a9   : > { %v1257_v18 = vpop.xlane.xlu0 %1256 }
 0x3ad   : > { %v1251_v58 = vpop.xlane.xlu0 %1250 }
 0x3af   : > { %v7356_v6 = vpop.eup %7355 }
 0x3b0   : > { %v7358_v54 = vpop.eup %7357  ;;  %v1365_v44 = vmul.f32 %v7356_v6, %v8286_v38 }
 0x3b1   : > { %v7360_v55 = vpop.eup %7359  ;;  %v1362_v49 = vmul.f32 %v7358_v54, %v8269_v9 }
 0x3b2   : > { %v1364_v29 = vmul.f32 %v7360_v55, %v8265_v28 }
 0x3b3   : > { %v7362_v8 = vpop.eup %7361  ;;  %v1254_v60 = vpop.xlane.xlu1 %1253 }
 0x3b4   : > { %v1363_v63 = vmul.f32 %v7362_v8, %v8291_v48  ;;  %7363 = vrcp.f32 %v1254_v60  ;;  %v1395_v46 = vpack.c.bf16 %v1365_v44, %v1364_v29 }
 0x3b5   : > { %7365 = vrcp.f32 %v1251_v58 }
 0x3b6   : > { %v1394_v52 = vpack.c.bf16 %v1363_v63, %v1362_v49  ;;  %7367 = vrcp.f32 %v1257_v18 }
 0x3b7   : > { %v1248_v13 = vpop.xlane.xlu1 %1247 }
 0x3b8   : > { %7369 = vrcp.f32 %v1248_v13  ;;  %6660 = vmatprep.mubr.msk.bf16.mxu0 %vm1041_vm2, %v1394_v52 }
 0x3b9   : > { %6661 = vmatmul.mubr.msk.bf16.vlgmr.msra.gmra.mxu0 %vm1041_vm2, %v1395_v46 }
 0x3ba   : > { %6669 = vmatpush3.bf16.msra.mxu0 %v8026_v11 }
 0x3bb   : > { %6670 = vmatprep.subr.bf16.mxu0 %v8047_v19 }
 0x3be   : > { %6671 = vmatpush3.bf16.msra.mxu0 %v8047_v19 }
 0x3bf   : > { %6672 = vmatprep.subr.bf16.mxu0 %v8049_v20 }
 0x3c1   : > { %v7364_v28 = vpop.eup %7363 }
 0x3c2   : > { %6673 = vmatpush3.bf16.msra.mxu0 %v8049_v20  ;;  %v7366_v9 = vpop.eup %7365  ;;  %v1368_v25 = vmul.f32 %v7364_v28, %v8303_v3 }
 0x3c3   : > { %6674 = vmatprep.subr.bf16.mxu0 %v8035_v16  ;;  %v7368_v38 = vpop.eup %7367  ;;  %v1367_v24 = vmul.f32 %v7366_v9, %v8299_v1 }
 0x3c4   : > { %v1369_v19 = vmul.f32 %v7368_v38, %v8295_v0 }
 0x3c5   : > { %v7370_v48 = vpop.eup %7369 }
 0x3c6   : > { %6675 = vmatpush3.bf16.msra.mxu0 %v8035_v16  ;;  %v1366_v11 = vmul.f32 %v7370_v48, %v8307_v7  ;;  %v1397_v35 = vpack.c.bf16 %v1369_v19, %v1368_v25 }
 0x3c7   : > { %6700 = vmatprep.subr.bf16.mxu0 %v8273_v12 }
 0x3c8   : > { %v1396_v33 = vpack.c.bf16 %v1367_v24, %v1366_v11 }
 0x3ca   : > { %6664 = vmatprep.mubr.msk.bf16.mxu0 %vm1041_vm2, %v1396_v33 }
 0x3cb   : > { %6665 = vmatmul.mubr.msk.bf16.gmra.mxu0 %vm1041_vm2, %v1397_v35 }
 0x3d5   : > { %v1266_v20 = vpop.xlane.xlu0 %1265 }
 0x3dd   : > { %v1290_v3 = vpop.xlane.xlu1 %1289 }
 0x3e1   : > { %v1260_v26 = vpop.xlane.xlu0 %1259 }
 0x3e5   : > { %v1284_v42 = vpop.xlane.xlu0 %1283 }
 0x3e9   : > { %v1269_v14 = vpop.xlane.xlu0 %1268  ;;  %v1278_v16 = vpop.xlane.xlu1 %1277 }
 0x3ea   : > { %7371 = vrcp.f32 %v1269_v14 }
 0x3eb   : > { %7373 = vrcp.f32 %v1260_v26 }
 0x3ec   : > { %7375 = vrcp.f32 %v1266_v20 }
 0x3ed   : > { %v1293_v37 = vpop.xlane.xlu0 %1292 }
 0x3f1   : > { %v1272_v1 = vpop.xlane.xlu1 %1271  ;;  %v1263_v7 = vpop.xlane.xlu0 %1262 }
 0x3f2   : > { %7377 = vrcp.f32 %v1263_v7 }
 0x3f3   : > { %7379 = vrcp.f32 %v1284_v42 }
 0x3f5   : > { %v1296_v0 = vpop.xlane.xlu1 %1295  ;;  %v1287_v40 = vpop.xlane.xlu0 %1286 }
 0x3f6   : > { %7381 = vrcp.f32 %v1287_v40 }
 0x3f7   : > { %7383 = vrcp.f32 %v1290_v3  ;;  %v7372_v18 = vpop.eup %7371 }
 0x3f8   : > { %7385 = vrcp.f32 %v1293_v37  ;;  %v7374_v55 = vpop.eup %7373  ;;  %v1373_v58 = vmul.f32 %v7372_v18, %v8339_v56 }
 0x3f9   : > { %v1281_v43 = vpop.xlane.xlu1 %1280  ;;  %v1302_v62 = vpop.xlane.xlu0 %1301  ;;  %v1370_v63 = vmul.f32 %v7374_v55, %v8329_v15 }
 0x3fa   : > { %7387 = vrcp.f32 %v1281_v43  ;;  %v7376_v8 = vpop.eup %7375 }
 0x3fb   : > { %7389 = vrcp.f32 %v1272_v1  ;;  %v1372_v13 = vmul.f32 %v7376_v8, %v8316_v59 }
 0x3fc   : > { %7391 = vrcp.f32 %v1278_v16 }
 0x3fd   : > { %v1305_v6 = vpop.xlane.xlu1 %1304  ;;  %v1275_v54 = vpop.xlane.xlu0 %1274  ;;  %v1399_v9 = vpack.c.bf16 %v1373_v58, %v1372_v13 }
 0x3fe   : > { %7393 = vrcp.f32 %v1275_v54 }
 0x3ff   : > { %v7378_v44 = vpop.eup %7377  ;;  %7395 = vrcp.f32 %v1296_v0 }
 0x400   : > { %v1371_v29 = vmul.f32 %v7378_v44, %v8354_v53  ;;  %v7380_v52 = vpop.eup %7379 }
 0x401   : > { %v1299_v60 = vpop.xlane.xlu1 %1298  ;;  %v8458_v49 = vpop.xlane.xlu0 %1325  ;;  %v1378_v48 = vmul.f32 %v7380_v52, %v8336_v50 }
 0x402   : > { %7397 = vrcp.f32 %v1299_v60  ;;  %v1398_v46 = vpack.c.bf16 %v1371_v29, %v1370_v63 }
 0x403   : > { %v7382_v28 = vpop.eup %7381  ;;  %7399 = vrcp.f32 %v1305_v6 }
 0x404   : > { %6676 = vmatprep.mubr.msk.bf16.mxu0 %vm1041_vm2, %v1398_v46  ;;  %v1379_v25 = vmul.f32 %v7382_v28, %v8363_v27  ;;  %7401 = vrcp.f32 %v1302_v62  ;;  %v7384_v15 = vpop.eup %7383 }
 0x405   : > { %v1314_v38 = vpop.xlane.xlu1 %1313  ;;  %v1320_v56 = vpop.xlane.xlu0 %1319  ;;  %6677 = vmatmul.mubr.msk.bf16.vlgmr.msra.gmra.mxu0 %vm1041_vm2, %v1399_v9  ;;  %v1380_v26 = vmul.f32 %v7384_v15, %v8323_v10 }
 0x406   : > { %6701 = vmatpush3.bf16.msra.mxu0 %v8273_v12  ;;  %v1402_v59 = vpack.c.bf16 %v1379_v25, %v1378_v48  ;;  %v7386_v53 = vpop.eup %7385  ;;  %7403 = vrcp.f32 %v1314_v38 }
 0x407   : > { %6702 = vmatprep.subr.bf16.mxu0 %v8277_v30  ;;  %v7388_v11 = vpop.eup %7387  ;;  %v1381_v50 = vmul.f32 %v7386_v53, %v8351_v2 }
 0x408   : > { %6692 = vmatprep.mubr.msk.bf16.mxu1 %vm1041_vm2, %v1402_v59  ;;  %v7390_v33 = vpop.eup %7389  ;;  %v1377_v12 = vmul.f32 %v7388_v11, %v8378_v39 }
 0x409   : > { %v1308_v24 = vpop.xlane.xlu1 %1307  ;;  %v1323_v19 = vpop.xlane.xlu0 %1322  ;;  %v1374_v14 = vmul.f32 %v7390_v33, %v8359_v22  ;;  %v1403_v37 = vpack.c.bf16 %v1381_v50, %v1380_v26 }
 0x40a   : > { %v7392_v35 = vpop.eup %7391  ;;  %6703 = vmatpush3.bf16.msra.mxu0 %v8277_v30  ;;  %7405 = vrcp.f32 %v1308_v24 }
 0x40b   : > { %v7394_v27 = vpop.eup %7393  ;;  %6704 = vmatprep.subr.bf16.mxu0 %v8435_v47  ;;  %v1376_v2 = vmul.f32 %v7392_v35, %v8344_v61  ;;  %v7261_v35 = vld [vmem:[%s10369_s3 + $0x8] sm:$0xff]  }
 0x40c   : > { %v7396_v20 = vpop.eup %7395  ;;  %v1375_v16 = vmul.f32 %v7394_v27, %v8388_v57 }
 0x40d   : > { %v1317_v42 = vpop.xlane.xlu1 %1316  ;;  %v1589_v3 = vpop.permute.xlu0 %1588  ;;  %v1401_v10 = vpack.c.bf16 %v1377_v12, %v1376_v2  ;;  %v1382_v1 = vmul.f32 %v7396_v20, %v8369_v34  ;;  %v7262_v2 = vld [vmem:[%s10369_s3] sm:$0xff]  }
 0x40e   : > { %6690 = vmatprep.subr.bf16.mxu1 %v1589_v3  ;;  %7407 = vrcp.f32 %v1317_v42  ;;  %6705 = vmatpush3.bf16.msra.mxu0 %v8435_v47  ;;  %v1400_v39 = vpack.c.bf16 %v1375_v16, %v1374_v14 }
 0x40f   : > { %v7398_v30 = vpop.eup %7397  ;;  %6691 = vmatpush3.bf16.msra.mxu1 %v1589_v3  ;;  %7409 = vrcp.f32 %v1323_v19 }
 0x410   : > { %v1383_v7 = vmul.f32 %v7398_v30, %v8395_v41  ;;  %v7400_v22 = vpop.eup %7399  ;;  %7411 = vrcp.f32 %v1320_v56  ;;  %6680 = vmatprep.mubr.msk.bf16.mxu0 %vm1041_vm2, %v1400_v39  ;;  %6716 = vmatprep.subr.bf16.mxu1 %v7261_v35 }
 0x411   : > { %v1311_v57 = vpop.xlane.xlu1 %1310  ;;  %6681 = vmatmul.mubr.msk.bf16.gmra.mxu0 %vm1041_vm2, %v1401_v10  ;;  %v7402_v47 = vpop.eup %7401  ;;  %v1385_v0 = vmul.f32 %v7400_v22, %v8383_v45 }
 0x412   : > { %7413 = vrcp.f32 %v1311_v57  ;;  %6693 = vmatmul.mubr.msk.bf16.vlgmr.msra.gmra.mxu1 %vm1041_vm2, %v1403_v37  ;;  %v1404_v61 = vpack.c.bf16 %v1383_v7, %v1382_v1  ;;  %v1384_v34 = vmul.f32 %v7402_v47, %v8374_v51 }
 0x413   : > { %v7404_v62 = vpop.eup %7403  ;;  %6717 = vmatpush3.bf16.msra.mxu1 %v7261_v35 }
 0x414   : > { %6696 = vmatprep.mubr.msk.bf16.mxu1 %vm1041_vm2, %v1404_v61  ;;  %v1405_v41 = vpack.c.bf16 %v1385_v0, %v1384_v34  ;;  %v1388_v60 = vmul.f32 %v7404_v62, %v8403_v4  ;;  %6718 = vmatprep.subr.bf16.mxu1 %v7262_v2 }
 0x415   : > { %v1329_v40 = vpop.xlane.xlu1 %1328 }
 0x416   : > { %7415 = vrcp.f32 %v1329_v40 }
 0x417   : > { %7417 = vrcp.f32 %v8458_v49  ;;  %v7406_v18 = vpop.eup %7405  ;;  %6719 = vmatpush3.bf16.msra.mxu1 %v7262_v2 }
 0x418   : > { %v1386_v44 = vmul.f32 %v7406_v18, %v8411_v23 }
 0x419   : > { %v1678_v43 = vpop.permute.xlu1 %1677 }
 0x41a   : > { %6697 = vmatmul.mubr.msk.bf16.gmra.mxu1 %vm1041_vm2, %v1405_v41  ;;  %6706 = vmatprep.subr.bf16.mxu0 %v1678_v43 }
 0x41b   : > { %6707 = vmatpush3.bf16.msra.mxu0 %v1678_v43  ;;  %v7408_v6 = vpop.eup %7407 }
 0x41c   : > { %v7410_v54 = vpop.eup %7409  ;;  %v1389_v45 = vmul.f32 %v7408_v6, %v8415_v32 }
 0x41d   : > { %v7412_v55 = vpop.eup %7411  ;;  %v1391_v58 = vmul.f32 %v7410_v54, %v8413_v5 }
 0x41e   : > { %v1390_v63 = vmul.f32 %v7412_v55, %v8405_v21  ;;  %v1407_v29 = vpack.c.bf16 %v1389_v45, %v1388_v60 }
 0x41f   : > { %v7414_v8 = vpop.eup %7413 }
 0x420   : > { %v1387_v51 = vmul.f32 %v7414_v8, %v8423_v31  ;;  %v1408_v13 = vpack.c.bf16 %v1391_v58, %v1390_v63 }
 0x422   : > { %v1406_v49 = vpack.c.bf16 %v1387_v51, %v1386_v44 }
 0x423   : > { %v7416_v52 = vpop.eup %7415 }
 0x424   : > { %6708 = vmatprep.mubr.msk.bf16.mxu0 %vm1041_vm2, %v1406_v49  ;;  %v7418_v46 = vpop.eup %7417  ;;  %v1393_v23 = vmul.f32 %v7416_v52, %v8427_v36 }
 0x425   : > { %6709 = vmatmul.mubr.msk.bf16.vlgmr.msra.gmra.mxu0 %vm1041_vm2, %v1407_v29  ;;  %v1392_v32 = vmul.f32 %v7418_v46, %v8397_v17 }
 0x426   : > { %6712 = vmatprep.mubr.msk.bf16.mxu0 %vm1041_vm2, %v1408_v13 }
 0x427   : > { %v1409_v5 = vpack.c.bf16 %v1393_v23, %v1392_v32 }
 0x42d   : > { %6713 = vmatmul.mubr.msk.bf16.gmra.mxu0 %vm1041_vm2, %v1409_v5 }
 0x479   : > { %v8501_v4 = vpop.f32.mrf.mxu0 }
 0x47b   : > { %v8503_v21 = vpop.f32.mrf.mxu0 }
 0x47d   : > { %v8505_v31 = vpop.f32.mrf.mxu0 }
 0x47f   : > { %v8507_v28 = vpop.f32.mrf.mxu0 }
 0x48b   : > { %v8509_v9 = vpop.f32.mrf.mxu0 }
 0x48d   : > { %v8511_v38 = vpop.f32.mrf.mxu0 }
 0x48f   : > { %v8513_v56 = vpop.f32.mrf.mxu0 }
 0x491   : > { %v8515_v36 = vpop.f32.mrf.mxu0 }
 0x4c5   : > { %v6678_v17 = vpop.f32.mrf.mxu0 }
 0x4c7   : > { %v1557_v48 = vpop.f32.mrf.mxu0 }
 0x4c9   : > { %v6679_v25 = vpop.f32.mrf.mxu0 }
 0x4ca   : > { %v7109_v15 = vpack.i.bf16 %v6679_v25, %v6678_v17 }
 0x4cb   : > { %v1560_v59 = vpop.f32.mrf.mxu0 }
 0x4cc   : > { %v7119_v53 = vpack.i.bf16 %v1560_v59, %v1557_v48  ;;  %7110 = vrot.lane.b32.xlu1 %v7109_v15, %s7760_s21 }
 0x4ce   : > { %7120 = vrot.lane.b32.xlu0 %v7119_v53, %s7760_s21 }
 0x4d1   : > { %v6682_v11 = vpop.f32.mrf.mxu0 }
 0x4d2   : > { %v6694_v24 = vpop.f32.mrf.mxu1 }
 0x4d3   : > { %v1573_v19 = vpop.f32.mrf.mxu0 }
 0x4d4   : > { %v1646_v33 = vpop.f32.mrf.mxu1 }
 0x4d5   : > { %v6683_v50 = vpop.f32.mrf.mxu0 }
 0x4d6   : > { %v6695_v27 = vpop.f32.mrf.mxu1  ;;  %v7129_v3 = vpack.i.bf16 %v6683_v50, %v6682_v11 }
 0x4d7   : > { %v7114_v12 = vpack.i.bf16 %v6695_v27, %v6694_v24  ;;  %v1576_v42 = vpop.f32.mrf.mxu0 }
 0x4d8   : > { %v1649_v20 = vpop.f32.mrf.mxu1  ;;  %v7134_v14 = vpack.i.bf16 %v1576_v42, %v1573_v19 }
 0x4d9   : > { %v7124_v26 = vpack.i.bf16 %v1649_v20, %v1646_v33  ;;  %7115 = vrot.lane.b32.xlu1 %v7114_v12, %s10385_s23 }
 0x4da   : > { %v6698_v16 = vpop.f32.mrf.mxu1 }
 0x4db   : > { %7125 = vrot.lane.b32.xlu0 %v7124_v26, %s10385_s23 }
 0x4dc   : > { %v1662_v30 = vpop.f32.mrf.mxu1 }
 0x4dd   : > { %7130 = vrot.lane.b32.xlu1 %v7129_v3, %s7760_s21 }
 0x4de   : > { %v6699_v10 = vpop.f32.mrf.mxu1 }
 0x4df   : > { %7135 = vrot.lane.b32.xlu0 %v7134_v14, %s7760_s21  ;;  %v7154_v0 = vpack.i.bf16 %v6699_v10, %v6698_v16 }
 0x4e0   : > { %v1665_v61 = vpop.f32.mrf.mxu1 }
 0x4e1   : > { %v7149_v34 = vpack.i.bf16 %v1665_v61, %v1662_v30 }
 0x4e5   : > { %v6710_v39 = vpop.f32.mrf.mxu0 }
 0x4e7   : > { %v1735_v37 = vpop.f32.mrf.mxu0 }
 0x4e9   : > { %v6711_v1 = vpop.f32.mrf.mxu0 }
 0x4ea   : > { %v7139_v7 = vpack.i.bf16 %v6711_v1, %v6710_v39 }
 0x4eb   : > { %v1738_v22 = vpop.f32.mrf.mxu0 }
 0x4ec   : > { %v7144_v57 = vpack.i.bf16 %v1738_v22, %v1735_v37  ;;  %7140 = vrot.lane.b32.xlu1 %v7139_v7, %s10383_s27 }
 0x4ed   : > { %v6714_v47 = vpop.f32.mrf.mxu0 }
 0x4ee   : > { %7145 = vrot.lane.b32.xlu0 %v7144_v57, %s10383_s27 }
 0x4ef   : > { %v1751_v40 = vpop.f32.mrf.mxu0 }
 0x4f0   : > { %7155 = vrot.lane.b32.xlu1 %v7154_v0, %s10385_s23 }
 0x4f1   : > { %v6715_v41 = vpop.f32.mrf.mxu0 }
 0x4f2   : > { %v7164_v43 = vpack.i.bf16 %v6715_v41, %v6714_v47  ;;  %7150 = vrot.lane.b32.xlu0 %v7149_v34, %s10385_s23 }
 0x4f3   : > { %v1754_v62 = vpop.f32.mrf.mxu0 }
 0x4f4   : > { %v7159_v18 = vpack.i.bf16 %v1754_v62, %v1751_v40  ;;  %7165 = vrot.lane.b32.xlu1 %v7164_v43, %s10383_s27 }
 0x4f6   : > { %7160 = vrot.lane.b32.xlu0 %v7159_v18, %s10383_s27 }
 0x53e   : > { %v7111_v6 = vpop.permute.xlu1 %7110 }
 0x53f   : > { %v7113_v44 = vunpack.i.h.bf16 %v7111_v6  ;;  %v7112_v51 = vunpack.i.l.bf16 %v7111_v6 }
 0x540   : > { %v7121_v54 = vpop.permute.xlu0 %7120 }
 0x541   : > { %v7123_v58 = vunpack.i.h.bf16 %v7121_v54  ;;  %v7122_v60 = vunpack.i.l.bf16 %v7121_v54  ;;  %v1865_v5 = vsel %vm660_vm1, %v8505_v31, %v7113_v44  ;;  %v1864_v17 = vsel %vm660_vm1, %v8501_v4, %v7112_v51  ;;  %v6163_v54 = vld [vmem:[%s10370_s4] ss:$0 sm:$0xff] }
 0x542   : > { %v7739_v51 = vld [vmem:[%s7866_s28] sm:$0xff] }
 0x543   : > { %v1863_v48 = vsel %vm660_vm1, %v8507_v28, %v7123_v58  ;;  %v1862_v25 = vsel %vm660_vm1, %v8503_v21, %v7122_v60 }
 0x54b   : > { %v7116_v55 = vpop.permute.xlu1 %7115 }
 0x54c   : > { %v7118_v63 = vunpack.i.h.bf16 %v7116_v55  ;;  %v7117_v29 = vunpack.i.l.bf16 %v7116_v55 }
 0x54d   : > { %v7126_v8 = vpop.permute.xlu0 %7125 }
 0x54e   : > { %v7128_v52 = vunpack.i.h.bf16 %v7126_v8  ;;  %v7127_v13 = vunpack.i.l.bf16 %v7126_v8  ;;  %v1874_v59 = vsel %vm1870_vm3, %v1865_v5, %v7118_v63  ;;  %v1873_v53 = vsel %vm1870_vm3, %v1864_v17, %v7117_v29  ;;  %v7740_v63 = vld [vmem:[%s7866_s28 + $0x10] sm:$0xff]  ;;  %v7742_v5 = vld [vmem:[%s7866_s28 + $0x18] sm:$0xff] }
 0x54f   : > { %v7131_v45 = vpop.permute.xlu1 %7130 }
 0x550   : > { %v1871_v19 = vsel %vm1870_vm3, %v1862_v25, %v7127_v13  ;;  %v1872_v31 = vsel %vm1870_vm3, %v1863_v48, %v7128_v52  ;;  %v7133_v28 = vunpack.i.h.bf16 %v7131_v45  ;;  %v7132_v27 = vunpack.i.l.bf16 %v7131_v45 }
 0x551   : > { %v7136_v49 = vpop.permute.xlu0 %7135 }
 0x552   : > { %v7138_v12 = vunpack.i.h.bf16 %v7136_v49  ;;  %v7137_v20 = vunpack.i.l.bf16 %v7136_v49  ;;  %v1869_v1 = vsel %vm660_vm1, %v8513_v56, %v7133_v28  ;;  %v1868_v7 = vsel %vm660_vm1, %v8509_v9, %v7132_v27  ;;  %v7745_v27 = vld [vmem:[%s7866_s28 + $0x28] sm:$0xff] }
 0x554   : > { %v1867_v22 = vsel %vm660_vm1, %v8515_v36, %v7138_v12  ;;  %v1866_v57 = vsel %vm660_vm1, %v8511_v38, %v7137_v20  ;;  %v7746_v20 = vld [vmem:[%s7866_s28 + $0x38] sm:$0xff] }
 0x55e   : > { %v7141_v46 = vpop.permute.xlu1 %7140 }
 0x55f   : > { %v7143_v23 = vunpack.i.h.bf16 %v7141_v46  ;;  %v7142_v32 = vunpack.i.l.bf16 %v7141_v46 }
 0x560   : > { %v7146_v15 = vpop.permute.xlu0 %7145 }
 0x561   : > { %v7148_v11 = vunpack.i.h.bf16 %v7146_v15  ;;  %v7147_v24 = vunpack.i.l.bf16 %v7146_v15  ;;  %v1882_v33 = vsel %vm1879_vm4, %v1873_v53, %v7142_v32  ;;  %v1883_v4 = vsel %vm1879_vm4, %v1874_v59, %v7143_v23  ;;  %v7741_v23 = vld [vmem:[%s7866_s28 + $0x8] sm:$0xff] }
 0x562   : > { %v7156_v35 = vpop.permute.xlu1 %7155  ;;  %v1893_v3 = vpack.c.bf16 %v1883_v4, %v1882_v33  ;;  %v7744_v4 = vld [vmem:[%s7866_s28 + $0x30] sm:$0xff] }
 0x563   : > { %v1880_v50 = vsel %vm1879_vm4, %v1871_v19, %v7147_v24  ;;  %v1881_v21 = vsel %vm1879_vm4, %v1872_v31, %v7148_v11  ;;  %v7158_v14 = vunpack.i.h.bf16 %v7156_v35  ;;  %v7157_v16 = vunpack.i.l.bf16 %v7156_v35  ;;  %v7743_v24 = vld [vmem:[%s7866_s28 + $0x20] sm:$0xff] }
 0x564   : > { %v7151_v26 = vpop.permute.xlu0 %7150  ;;  %v1892_v42 = vpack.c.bf16 %v1881_v21, %v1880_v50 }
 0x565   : > { %v7153_v2 = vunpack.i.h.bf16 %v7151_v26  ;;  %v7152_v30 = vunpack.i.l.bf16 %v7151_v26  ;;  %v1878_v47 = vsel %vm1870_vm3, %v1869_v1, %v7158_v14  ;;  %v1877_v0 = vsel %vm1870_vm3, %v1868_v7, %v7157_v16 }
 0x566   : > { %v7166_v39 = vpop.permute.xlu1 %7165  ;;  %6720 = vmatprep.mubr.msk.bf16.mxu1 %vm542_vm0, %v1892_v42 }
 0x567   : > { %v7168_v37 = vunpack.i.h.bf16 %v7166_v39  ;;  %v7167_v10 = vunpack.i.l.bf16 %v7166_v39  ;;  %6721 = vmatmul.mubr.msk.bf16.vlgmr.msra.gmra.mxu1 %vm542_vm0, %v1893_v3  ;;  %v1875_v41 = vsel %vm1870_vm3, %v1866_v57, %v7152_v30  ;;  %v1876_v56 = vsel %vm1870_vm3, %v1867_v22, %v7153_v2 }
 0x568   : > { %v7161_v61 = vpop.permute.xlu0 %7160 }
 0x569   : > { %v7163_v40 = vunpack.i.h.bf16 %v7161_v61  ;;  %v7162_v34 = vunpack.i.l.bf16 %v7161_v61  ;;  %v1886_v9 = vsel %vm1879_vm4, %v1877_v0, %v7167_v10  ;;  %v1887_v43 = vsel %vm1879_vm4, %v1878_v47, %v7168_v37 }
 0x56a   : > { %v1895_v18 = vpack.c.bf16 %v1887_v43, %v1886_v9 }
 0x56b   : > { %v1884_v36 = vsel %vm1879_vm4, %v1875_v41, %v7162_v34  ;;  %v1885_v38 = vsel %vm1879_vm4, %v1876_v56, %v7163_v40 }
 0x56c   : > { %v1894_v62 = vpack.c.bf16 %v1885_v38, %v1884_v36 }
 0x56e   : > { %6724 = vmatprep.mubr.msk.bf16.mxu1 %vm542_vm0, %v1894_v62 }
 0x56f   : > { %6725 = vmatmul.mubr.msk.bf16.gmra.mxu1 %vm542_vm0, %v1895_v18 }
 0x627   : > { %v6722_v6 = vpop.f32.mrf.mxu1 }
 0x628   : > { %v1970_v8 = vadd.f32 %v6722_v6, %v6163_v54 }
 0x629   : > { %v1961_v55 = vpop.f32.mrf.mxu1 }
 0x62a   : > { %v1962_v45 = vadd.f32 %v6163_v54, %v1961_v55  ;;  %v1994_v29 = vadd.f32 %v7740_v63, %v1970_v8 }
 0x62b   : > { %v6723_v44 = vpop.f32.mrf.mxu1 }
 0x62c   : > { %v1992_v58 = vadd.f32 %v7739_v51, %v1962_v45  ;;  %v1973_v60 = vadd.f32 %v6723_v44, %v6163_v54  ;;  %v2008_v53 = vsel %vm542_vm0, %v1994_v29, 0.0 }
 0x62d   : > { %v1964_v49 = vpop.f32.mrf.mxu1 }
 0x62e   : > { %v1965_v52 = vadd.f32 %v6163_v54, %v1964_v49  ;;  %v2002_v13 = vsel %vm542_vm0, %v1992_v58, 0.0  ;;  %v1995_v17 = vadd.f32 %v7742_v5, %v1973_v60  ;;  %v7263_v5 = vld [vmem:[%s10371_s5 + $0x8] sm:$0xff]  }
 0x62f   : > { %v6726_v46 = vpop.f32.mrf.mxu1  ;;  %2003 = vadd.xlane.f32.xlu0 %v2002_v13  ;;  %6728 = vmatprep.subr.bf16.mxu0 %v7263_v5 }
 0x630   : > { %v1993_v32 = vadd.f32 %v7741_v23, %v1965_v52  ;;  %v1986_v25 = vadd.f32 %v6726_v46, %v6163_v54  ;;  %v2011_v33 = vsel %vm542_vm0, %v1995_v17, 0.0  ;;  %6729 = vmatpush3.bf16.msra.mxu0 %v7263_v5  ;;  %v7265_v5 = vld [vmem:[%s10373_s7 + $0x38] sm:$0xff]  }
 0x631   : > { %v1977_v48 = vpop.f32.mrf.mxu1  ;;  %6740 = vmatprep.subr.bf16.mxu1 %v7265_v5 }
 0x632   : > { %v1978_v15 = vadd.f32 %v6163_v54, %v1977_v48  ;;  %v2005_v59 = vsel %vm542_vm0, %v1993_v32, 0.0  ;;  %v1998_v35 = vadd.f32 %v7744_v4, %v1986_v25  ;;  %6741 = vmatpush3.bf16.msra.mxu1 %v7265_v5 }
 0x633   : > { %v6727_v11 = vpop.f32.mrf.mxu1  ;;  %2006 = vadd.xlane.f32.xlu1 %v2005_v59  ;;  %2009 = vadd.xlane.f32.xlu0 %v2008_v53 }
 0x634   : > { %v1996_v19 = vadd.f32 %v7743_v24, %v1978_v15  ;;  %v1989_v28 = vadd.f32 %v6727_v11, %v6163_v54  ;;  %v2020_v42 = vsel %vm542_vm0, %v1998_v35, 0.0 }
 0x635   : > { %v1980_v31 = vpop.f32.mrf.mxu1 }
 0x636   : > { %v1981_v50 = vadd.f32 %v6163_v54, %v1980_v31  ;;  %v2014_v21 = vsel %vm542_vm0, %v1996_v19, 0.0  ;;  %v1999_v26 = vadd.f32 %v7746_v20, %v1989_v28 }
 0x637   : > { %2015 = vadd.xlane.f32.xlu1 %v2014_v21  ;;  %2012 = vadd.xlane.f32.xlu0 %v2011_v33 }
 0x638   : > { %v1997_v12 = vadd.f32 %v7745_v27, %v1981_v50  ;;  %v2023_v14 = vsel %vm542_vm0, %v1999_v26, 0.0 }
 0x63a   : > { %v2017_v3 = vsel %vm542_vm0, %v1997_v12, 0.0 }
 0x63b   : > { %2021 = vadd.xlane.f32.xlu1 %v2020_v42  ;;  %2018 = vadd.xlane.f32.xlu0 %v2017_v3 }
 0x63f   : > { %2024 = vadd.xlane.f32.xlu0 %v2023_v14 }
 0x6b8   : > { %v2004_v16 = vpop.xlane.xlu0 %2003 }
 0x6b9   : > { %v2027_v2 = vmul.f32 0.03125, %v2004_v16 }
 0x6bb   : > { %v8590_v30 = vsub.f32 %v1992_v58, %v2027_v2 }
 0x6bc   : > { %v2007_v39 = vpop.xlane.xlu1 %2006  ;;  %v2010_v37 = vpop.xlane.xlu0 %2009 }
 0x6bd   : > { %v2028_v10 = vmul.f32 0.03125, %v2007_v39  ;;  %v2029_v1 = vmul.f32 0.03125, %v2010_v37  ;;  %v2043_v7 = vmul.f32 %v8590_v30, %v8590_v30 }
 0x6bf   : > { %v8594_v22 = vsub.f32 %v1993_v32, %v2028_v10  ;;  %v8596_v57 = vsub.f32 %v1994_v29, %v2029_v1  ;;  %v2051_v61 = vsel %vm542_vm0, %v2043_v7, 0.0  ;;  %v6170_v10 = vld [vmem:[%s10375_s9] ss:$0 sm:$0xff] }
 0x6c0   : > { %v2016_v47 = vpop.xlane.xlu1 %2015  ;;  %2052 = vadd.xlane.f32.xlu1 %v2051_v61  ;;  %v2013_v0 = vpop.xlane.xlu0 %2012 }
 0x6c1   : > { %v2031_v40 = vmul.f32 0.03125, %v2016_v47  ;;  %v2030_v34 = vmul.f32 0.03125, %v2013_v0  ;;  %v2044_v41 = vmul.f32 %v8594_v22, %v8594_v22  ;;  %v2045_v56 = vmul.f32 %v8596_v57, %v8596_v57  ;;  %v6171_v0 = vld [vmem:[%s10376_s10] ss:$0 sm:$0xff] }
 0x6c3   : > { %v8603_v9 = vsub.f32 %v1996_v19, %v2031_v40  ;;  %v8605_v43 = vsub.f32 %v1995_v17, %v2030_v34  ;;  %v2054_v36 = vsel %vm542_vm0, %v2044_v41, 0.0  ;;  %v2057_v38 = vsel %vm542_vm0, %v2045_v56, 0.0  ;;  %v7264_v17 = vld [vmem:[%s10371_s5] sm:$0xff]  }
 0x6c4   : > { %v2022_v62 = vpop.xlane.xlu1 %2021  ;;  %2055 = vadd.xlane.f32.xlu0 %v2054_v36  ;;  %2058 = vadd.xlane.f32.xlu1 %v2057_v38  ;;  %v2019_v18 = vpop.xlane.xlu0 %2018 }
 0x6c5   : > { %v2033_v6 = vmul.f32 0.03125, %v2022_v62  ;;  %v2032_v54 = vmul.f32 0.03125, %v2019_v18  ;;  %v2047_v55 = vmul.f32 %v8603_v9, %v8603_v9  ;;  %v2046_v8 = vmul.f32 %v8605_v43, %v8605_v43  ;;  %6730 = vmatprep.subr.bf16.mxu0 %v7264_v17 }
 0x6c6   : > { %6731 = vmatpush3.bf16.msra.mxu0 %v7264_v17  ;;  %v7266_v17 = vld [vmem:[%s10373_s7 + $0x30] sm:$0xff]  }
 0x6c7   : > { %v8613_v45 = vsub.f32 %v1998_v35, %v2033_v6  ;;  %v8615_v44 = vsub.f32 %v1997_v12, %v2032_v54  ;;  %v2063_v51 = vsel %vm542_vm0, %v2047_v55, 0.0  ;;  %v2060_v58 = vsel %vm542_vm0, %v2046_v8, 0.0  ;;  %6742 = vmatprep.subr.bf16.mxu1 %v7266_v17 }
 0x6c8   : > { %2064 = vadd.xlane.f32.xlu1 %v2063_v51  ;;  %2061 = vadd.xlane.f32.xlu0 %v2060_v58  ;;  %v2025_v60 = vpop.xlane.xlu0 %2024 }
 0x6c9   : > { %v2034_v49 = vmul.f32 0.03125, %v2025_v60  ;;  %v2049_v63 = vmul.f32 %v8613_v45, %v8613_v45  ;;  %v2048_v29 = vmul.f32 %v8615_v44, %v8615_v44  ;;  %6743 = vmatpush3.bf16.msra.mxu1 %v7266_v17 }
 0x6cb   : > { %v8623_v52 = vsub.f32 %v1999_v26, %v2034_v49  ;;  %v2069_v13 = vsel %vm542_vm0, %v2049_v63, 0.0  ;;  %v2066_v46 = vsel %vm542_vm0, %v2048_v29, 0.0 }
 0x6cc   : > { %2070 = vadd.xlane.f32.xlu1 %v2069_v13  ;;  %2067 = vadd.xlane.f32.xlu0 %v2066_v46 }
 0x6cd   : > { %v2050_v23 = vmul.f32 %v8623_v52, %v8623_v52 }
 0x6cf   : > { %v2072_v32 = vsel %vm542_vm0, %v2050_v23, 0.0 }
 0x6d0   : > { %2073 = vadd.xlane.f32.xlu0 %v2072_v32 }
 0x749   : > { %v2053_v48 = vpop.xlane.xlu1 %2052 }
 0x74a   : > { %v2075_v25 = vmul.f32 0.03125, %v2053_v48  ;;  %v7267_v48 = vld [vmem:[%s10373_s7 + $0x28] sm:$0xff]  }
 0x74b   : > { %6744 = vmatprep.subr.bf16.mxu1 %v7267_v48 }
 0x74c   : > { %v2083_v15 = vadd.f32 1e-05, %v2075_v25  ;;  %6745 = vmatpush3.bf16.msra.mxu1 %v7267_v48  ;;  %v7268_v25 = vld [vmem:[%s10373_s7 + $0x20] sm:$0xff]  }
 0x74d   : > { %v2059_v59 = vpop.xlane.xlu1 %2058  ;;  %v2056_v53 = vpop.xlane.xlu0 %2055  ;;  %6746 = vmatprep.subr.bf16.mxu1 %v7268_v25 }
 0x74e   : > { %7419 = vrsqrt.f32 %v2083_v15  ;;  %v2077_v11 = vmul.f32 0.03125, %v2059_v59  ;;  %v2076_v24 = vmul.f32 0.03125, %v2056_v53  ;;  %v7269_v15 = vld [vmem:[%s10373_s7 + $0x18] sm:$0xff]   ;;  %v7270_v59 = vld [vmem:[%s10373_s7 + $0x10] sm:$0xff]   ;;  %v7271_v53 = vld [vmem:[%s10373_s7 + $0x8] sm:$0xff]  }
 0x750   : > { %v2085_v19 = vadd.f32 1e-05, %v2077_v11  ;;  %v2084_v31 = vadd.f32 1e-05, %v2076_v24  ;;  %6747 = vmatpush3.bf16.msra.mxu1 %v7268_v25  ;;  %v7272_v11 = vld [vmem:[%s10373_s7] sm:$0xff]  }
 0x751   : > { %v2065_v33 = vpop.xlane.xlu1 %2064  ;;  %v2062_v4 = vpop.xlane.xlu0 %2061  ;;  %6748 = vmatprep.subr.bf16.mxu1 %v7269_v15  ;;  %v6172_v24 = vld [vmem:[%s10372_s6] ss:$0 sm:$0xff] }
 0x752   : > { %7421 = vrsqrt.f32 %v2085_v19  ;;  %v2079_v35 = vmul.f32 0.03125, %v2065_v33  ;;  %v2078_v28 = vmul.f32 0.03125, %v2062_v4 }
 0x753   : > { %7423 = vrsqrt.f32 %v2084_v31 }
 0x754   : > { %v2087_v50 = vadd.f32 1e-05, %v2079_v35  ;;  %v2086_v21 = vadd.f32 1e-05, %v2078_v28  ;;  %6749 = vmatpush3.bf16.msra.mxu1 %v7269_v15 }
 0x755   : > { %v2071_v27 = vpop.xlane.xlu1 %2070  ;;  %v2068_v12 = vpop.xlane.xlu0 %2067  ;;  %6750 = vmatprep.subr.bf16.mxu1 %v7270_v59 }
 0x756   : > { %7425 = vrsqrt.f32 %v2087_v50  ;;  %v2081_v20 = vmul.f32 0.03125, %v2071_v27  ;;  %v2080_v26 = vmul.f32 0.03125, %v2068_v12 }
 0x757   : > { %7427 = vrsqrt.f32 %v2086_v21 }
 0x758   : > { %v2089_v42 = vadd.f32 1e-05, %v2081_v20  ;;  %v2088_v3 = vadd.f32 1e-05, %v2080_v26  ;;  %6751 = vmatpush3.bf16.msra.mxu1 %v7270_v59 }
 0x759   : > { %v2074_v14 = vpop.xlane.xlu0 %2073  ;;  %6752 = vmatprep.subr.bf16.mxu1 %v7271_v53 }
 0x75a   : > { %7429 = vrsqrt.f32 %v2089_v42  ;;  %v2082_v16 = vmul.f32 0.03125, %v2074_v14 }
 0x75b   : > { %v7420_v2 = vpop.eup %7419  ;;  %7431 = vrsqrt.f32 %v2088_v3 }
 0x75c   : > { %v2090_v39 = vadd.f32 1e-05, %v2082_v16  ;;  %v2099_v37 = vmul.f32 %v7420_v2, %v8590_v30  ;;  %6753 = vmatpush3.bf16.msra.mxu1 %v7271_v53 }
 0x75d   : > { %6754 = vmatprep.subr.bf16.mxu1 %v7272_v11 }
 0x75e   : > { %7433 = vrsqrt.f32 %v2090_v39  ;;  %v2113_v61 = vmul.f32 %v6170_v10, %v2099_v37 }
 0x75f   : > { %v7422_v1 = vpop.eup %7421 }
 0x760   : > { %v7424_v7 = vpop.eup %7423  ;;  %v2101_v47 = vmul.f32 %v7422_v1, %v8596_v57  ;;  %v8645_v30 = vadd.f32 %v6171_v0, %v2113_v61  ;;  %6755 = vmatpush3.bf16.msra.mxu1 %v7272_v11 }
 0x761   : > { %v2100_v40 = vmul.f32 %v7424_v7, %v8594_v22 }
 0x762   : > { %v2115_v36 = vmul.f32 %v6170_v10, %v2101_v47 }
 0x763   : > { %v7426_v34 = vpop.eup %7425  ;;  %v2114_v41 = vmul.f32 %v6170_v10, %v2100_v40 }
 0x764   : > { %v7428_v56 = vpop.eup %7427  ;;  %v2103_v18 = vmul.f32 %v7426_v34, %v8603_v9  ;;  %v8655_v8 = vadd.f32 %v6171_v0, %v2115_v36 }
 0x765   : > { %v2102_v38 = vmul.f32 %v7428_v56, %v8605_v43  ;;  %v8648_v62 = vadd.f32 %v6171_v0, %v2114_v41 }
 0x766   : > { %v2117_v58 = vmul.f32 %v6170_v10, %v2103_v18 }
 0x767   : > { %v7430_v6 = vpop.eup %7429  ;;  %v2116_v57 = vmul.f32 %v6170_v10, %v2102_v38  ;;  %v2139_v54 = vpack.c.bf16 %v8648_v62, %v8645_v30 }
 0x768   : > { %v7432_v55 = vpop.eup %7431  ;;  %v2105_v22 = vmul.f32 %v7430_v6, %v8613_v45  ;;  %v8664_v45 = vadd.f32 %v6171_v0, %v2117_v58 }
 0x769   : > { %6732 = vmatprep.mubr.msk.bf16.mxu0 %vm542_vm0, %v2139_v54  ;;  %v8657_v51 = vadd.f32 %v6171_v0, %v2116_v57  ;;  %v2104_v43 = vmul.f32 %v7432_v55, %v8615_v44 }
 0x76a   : > { %v2119_v29 = vmul.f32 %v6170_v10, %v2105_v22 }
 0x76b   : > { %v7434_v60 = vpop.eup %7433  ;;  %v2140_v9 = vpack.c.bf16 %v8657_v51, %v8655_v8  ;;  %v2118_v49 = vmul.f32 %v6170_v10, %v2104_v43 }
 0x76c   : > { %v2106_v63 = vmul.f32 %v7434_v60, %v8623_v52  ;;  %v8670_v44 = vadd.f32 %v6171_v0, %v2119_v29 }
 0x76d   : > { %6733 = vmatmul.mubr.msk.bf16.vlgmr.msra.gmra.mxu0 %vm542_vm0, %v2140_v9  ;;  %v8666_v13 = vadd.f32 %v6171_v0, %v2118_v49 }
 0x76e   : > { %v2120_v46 = vmul.f32 %v6170_v10, %v2106_v63 }
 0x76f   : > { %v2141_v23 = vpack.c.bf16 %v8666_v13, %v8664_v45 }
 0x770   : > { %v8672_v32 = vadd.f32 %v6171_v0, %v2120_v46 }
 0x771   : > { %6736 = vmatprep.mubr.msk.bf16.mxu0 %vm542_vm0, %v2141_v23 }
 0x772   : > { %v2142_v52 = vpack.c.bf16 %v8672_v32, %v8670_v44 }
 0x775   : > { %6737 = vmatmul.mubr.msk.bf16.gmra.mxu0 %vm542_vm0, %v2142_v52 }
 0x82d   : > { %v6734_v19 = vpop.f32.mrf.mxu0 }
 0x82e   : > { %v8705_v31 = vadd.f32 %v6734_v19, %v6172_v24 }
 0x82f   : > { %v2208_v33 = vpop.f32.mrf.mxu0 }
 0x830   : > { %v8708_v4 = vmul.f32 0.70710677, %v8705_v31  ;;  %v8710_v35 = vadd.f32 %v6172_v24, %v2208_v33 }
 0x831   : > { %v6735_v28 = vpop.f32.mrf.mxu0 }
 0x832   : > { %v2273_v50 = vand.u32 2147483647, %v8708_v4  ;;  %v8714_v21 = vmul.f32 0.70710677, %v8710_v35  ;;  %v8716_v27 = vadd.f32 %v6735_v28, %v6172_v24  ;;  %vm2257_vm5 = vcmp.ge.f32.partialorder %v8708_v4, 0.0 }
 0x833   : > { %v2211_v12 = vpop.f32.mrf.mxu0 }
 0x834   : > { %v2281_v20 = vmul.f32 0.3275911, %v2273_v50  ;;  %v2271_v26 = vand.u32 2147483647, %v8714_v21  ;;  %v8720_v42 = vmul.f32 0.70710677, %v8716_v27  ;;  %v8722_v3 = vadd.f32 %v6172_v24, %v2211_v12 }
 0x835   : > { %v6738_v14 = vpop.f32.mrf.mxu0  ;;  %v2385_v56 = vsub.f32 0.0, %v2273_v50  ;;  %vm2255_vm6 = vcmp.ge.f32.partialorder %v8714_v21, 0.0 }
 0x836   : > { %v2289_v16 = vadd.f32 1.0, %v2281_v20  ;;  %v2279_v2 = vmul.f32 0.3275911, %v2271_v26  ;;  %v2274_v39 = vand.u32 2147483647, %v8720_v42  ;;  %v8729_v0 = vadd.f32 %v6738_v14, %v6172_v24 }
 0x837   : > { %v8726_v37 = vmul.f32 0.70710677, %v8722_v3  ;;  %v2224_v10 = vpop.f32.mrf.mxu0  ;;  %v2383_v6 = vsub.f32 0.0, %v2271_v26  ;;  %v2393_v22 = vmul.f32 %v2385_v56, %v2273_v50  ;;  %vm2258_vm7 = vcmp.ge.f32.partialorder %v8720_v42, 0.0 }
 0x838   : > { %7435 = vrcp.f32 %v2289_v16  ;;  %v2287_v1 = vadd.f32 1.0, %v2279_v2  ;;  %v2282_v7 = vmul.f32 0.3275911, %v2274_v39  ;;  %v8731_v41 = vadd.f32 %v6172_v24, %v2224_v10 }
 0x839   : > { %v2272_v61 = vand.u32 2147483647, %v8726_v37  ;;  %v6739_v40 = vpop.f32.mrf.mxu0  ;;  %v8734_v36 = vmul.f32 0.70710677, %v8729_v0  ;;  %v2386_v60 = vsub.f32 0.0, %v2274_v39  ;;  %v2391_v63 = vmul.f32 %v2383_v6, %v2271_v26 }
 0x83a   : > { %7437 = vrcp.f32 %v2287_v1  ;;  %v2290_v47 = vadd.f32 1.0, %v2282_v7  ;;  %v8737_v18 = vmul.f32 0.70710677, %v8731_v41  ;;  %v8740_v54 = vadd.f32 %v6739_v40, %v6172_v24 }
 0x83b   : > { %v2280_v34 = vmul.f32 0.3275911, %v2272_v61  ;;  %v2277_v57 = vand.u32 2147483647, %v8734_v36  ;;  %v2227_v55 = vpop.f32.mrf.mxu0  ;;  %v2403_v17 = vmul.f32 1.442695, %v2393_v22  ;;  %v2394_v15 = vmul.f32 %v2386_v60, %v2274_v39 }
 0x83c   : > { %7439 = vrcp.f32 %v2290_v47  ;;  %v2275_v58 = vand.u32 2147483647, %v8737_v18  ;;  %v8744_v9 = vmul.f32 0.70710677, %v8740_v54  ;;  %v8746_v49 = vadd.f32 %v6172_v24, %v2227_v55 }
 0x83d   : > { %v2288_v38 = vadd.f32 1.0, %v2280_v34  ;;  %v2285_v43 = vmul.f32 0.3275911, %v2277_v57  ;;  %v2384_v59 = vsub.f32 0.0, %v2272_v61  ;;  %v2399_v11 = vmul.f32 1.442695, %v2391_v63 }
 0x83e   : > { %v2283_v46 = vmul.f32 0.3275911, %v2275_v58  ;;  %v2278_v23 = vand.u32 2147483647, %v8744_v9  ;;  %v8750_v52 = vmul.f32 0.70710677, %v8746_v49 }
 0x83f   : > { %7441 = vrcp.f32 %v2288_v38  ;;  %v2293_v29 = vadd.f32 1.0, %v2285_v43  ;;  %v2389_v28 = vsub.f32 0.0, %v2277_v57  ;;  %v2405_v16 = vmul.f32 1.442695, %v2394_v15 }
 0x840   : > { %v2291_v48 = vadd.f32 1.0, %v2283_v46  ;;  %v2286_v53 = vmul.f32 0.3275911, %v2278_v23  ;;  %v8757_v24 = vand.u32 2147483647, %v8750_v52  ;;  %v2392_v2 = vmul.f32 %v2384_v59, %v2272_v61 }
 0x841   : > { %7443 = vrcp.f32 %v2293_v29  ;;  %v2387_v1 = vsub.f32 0.0, %v2275_v58  ;;  %v7763_v47 = vmov -1.0   ;;  %v2397_v56 = vmul.f32 %v2389_v28, %v2277_v57 }
 0x842   : > { %7445 = vrcp.f32 %v2291_v48  ;;  %v2294_v50 = vadd.f32 1.0, %v2286_v53  ;;  %v2284_v20 = vmul.f32 0.3275911, %v8757_v24  ;;  %v8771_v40 = vsel %vm2257_vm5, 1.0, %v7763_v47 }
 0x843   : > { %7447 = vpow2.f32 %v2403_v17  ;;  %v2390_v55 = vsub.f32 0.0, %v2278_v23  ;;  %v8780_v43 = vsel %vm2255_vm6, 1.0, %v7763_v47  ;;  %v2401_v60 = vmul.f32 1.442695, %v2392_v2 }
 0x844   : > { %7449 = vrcp.f32 %v2294_v50  ;;  %v2292_v7 = vadd.f32 1.0, %v2284_v20  ;;  %v2395_v29 = vmul.f32 %v2387_v1, %v2275_v58  ;;  %v2411_v48 = vmul.f32 1.442695, %v2397_v56 }
 0x845   : > { %v8752_v5 = vpop.eup %7435  ;;  %7451 = vpow2.f32 %v2399_v11  ;;  %v2398_v59 = vmul.f32 %v2390_v55, %v2278_v23  ;;  %v2266_v42 = vsel %vm2258_vm7, 1.0, %v7763_v47  ;;  %vm2256_vm8 = vcmp.ge.f32.partialorder %v8726_v37, 0.0 }
 0x846   : > { %v2313_v25 = vmul.f32 1.0614054, %v8752_v5  ;;  %7453 = vrcp.f32 %v2292_v7  ;;  %vm2261_vm9 = vcmp.ge.f32.partialorder %v8734_v36, 0.0  ;;  %vm2259_vm10 = vcmp.ge.f32.partialorder %v8737_v18, 0.0 }
 0x847   : > { %v8759_v19 = vpop.eup %7437  ;;  %7455 = vpow2.f32 %v2405_v16  ;;  %vm2262_vm11 = vcmp.ge.f32.partialorder %v8744_v9, 0.0  ;;  %vm2260_vm12 = vcmp.ge.f32.partialorder %v8750_v52, 0.0  ;;  %v2245_v52 = vmul.f32 0.5, %v8729_v0 }
 0x848   : > { %v2321_v33 = vadd.f32 -1.4531521, %v2313_v25  ;;  %v2311_v12 = vmul.f32 1.0614054, %v8759_v19  ;;  %7457 = vpow2.f32 %v2401_v60  ;;  %v2270_v9 = vsel %vm2262_vm11, 1.0, %v7763_v47 }
 0x849   : > { %v8764_v26 = vpop.eup %7439  ;;  %7459 = vpow2.f32 %v2411_v48 }
 0x84a   : > { %v2329_v14 = vmul.f32 %v8752_v5, %v2321_v33  ;;  %v2319_v39 = vadd.f32 -1.4531521, %v2311_v12  ;;  %v2314_v10 = vmul.f32 1.0614054, %v8764_v26  ;;  %v2388_v33 = vsub.f32 0.0, %v8757_v24 }
 0x84b   : > { %v2407_v12 = vmul.f32 1.442695, %v2395_v29 }
 0x84c   : > { %v2337_v34 = vadd.f32 1.4214138, %v2329_v14  ;;  %v8773_v38 = vpop.eup %7441  ;;  %v2327_v6 = vmul.f32 %v8759_v19, %v2319_v39  ;;  %v2322_v61 = vadd.f32 -1.4531521, %v2314_v10  ;;  %v2413_v10 = vmul.f32 1.442695, %v2398_v59 }
 0x84d   : > { %v2312_v4 = vmul.f32 1.0614054, %v8773_v38  ;;  %7461 = vpow2.f32 %v2407_v12 }
 0x84e   : > { %v2345_v22 = vmul.f32 %v8752_v5, %v2337_v34  ;;  %v2335_v63 = vadd.f32 1.4214138, %v2327_v6  ;;  %v2330_v57 = vmul.f32 %v8764_v26, %v2322_v61  ;;  %v8786_v21 = vpop.eup %7443  ;;  %v2396_v6 = vmul.f32 %v2388_v33, %v8757_v24 }
 0x84f   : > { %v2320_v17 = vadd.f32 -1.4531521, %v2312_v4  ;;  %v2317_v50 = vmul.f32 1.0614054, %v8786_v21  ;;  %v8794_v23 = vpop.eup %7445  ;;  %7463 = vpow2.f32 %v2413_v10 }
 0x850   : > { %v2353_v46 = vadd.f32 -0.28449672, %v2345_v22  ;;  %v2343_v25 = vmul.f32 %v8759_v19, %v2335_v63  ;;  %v2338_v15 = vadd.f32 1.4214138, %v2330_v57  ;;  %v7448_v1 = vpop.eup %7447  ;;  %v2315_v56 = vmul.f32 1.0614054, %v8794_v23 }
 0x851   : > { %v2328_v11 = vmul.f32 %v8773_v38, %v2320_v17  ;;  %v2325_v39 = vadd.f32 -1.4531521, %v2317_v50  ;;  %v8801_v61 = vpop.eup %7449 }
 0x852   : > { %v2361_v53 = vmul.f32 %v8752_v5, %v2353_v46  ;;  %v2351_v28 = vadd.f32 -0.28449672, %v2343_v25  ;;  %v2346_v58 = vmul.f32 %v8764_v26, %v2338_v15  ;;  %v2323_v57 = vadd.f32 -1.4531521, %v2315_v56 }
 0x853   : > { %v2336_v14 = vadd.f32 1.4214138, %v2328_v11  ;;  %v2333_v4 = vmul.f32 %v8786_v21, %v2325_v39  ;;  %v2318_v29 = vmul.f32 1.0614054, %v8801_v61 }
 0x854   : > { %v2369_v20 = vadd.f32 0.2548296, %v2361_v53  ;;  %v2359_v16 = vmul.f32 %v8759_v19, %v2351_v28  ;;  %v2354_v2 = vadd.f32 -0.28449672, %v2346_v58  ;;  %v2331_v15 = vmul.f32 %v8794_v23, %v2323_v57 }
 0x855   : > { %v2344_v34 = vmul.f32 %v8773_v38, %v2336_v14  ;;  %v2341_v48 = vadd.f32 1.4214138, %v2333_v4  ;;  %v2326_v59 = vadd.f32 -1.4531521, %v2318_v29  ;;  %v2409_v53 = vmul.f32 1.442695, %v2396_v6 }
 0x856   : > { %v2377_v7 = vmul.f32 %v8752_v5, %v2369_v20  ;;  %v2367_v55 = vadd.f32 0.2548296, %v2359_v16  ;;  %v2362_v22 = vmul.f32 %v8764_v26, %v2354_v2  ;;  %v7452_v5 = vpop.eup %7451  ;;  %v2339_v20 = vadd.f32 1.4214138, %v2331_v15 }
 0x857   : > { %v2352_v63 = vadd.f32 -0.28449672, %v2344_v34  ;;  %v8807_v24 = vpop.eup %7453  ;;  %v2349_v28 = vmul.f32 %v8786_v21, %v2341_v48  ;;  %v2334_v14 = vmul.f32 %v8801_v61, %v2326_v59  ;;  %7465 = vpow2.f32 %v2409_v53 }
 0x858   : > { %v2417_v60 = vmul.f32 %v7448_v1, %v2377_v7  ;;  %v2375_v46 = vmul.f32 %v8759_v19, %v2367_v55  ;;  %v2370_v17 = vadd.f32 0.2548296, %v2362_v22  ;;  %v2316_v58 = vmul.f32 1.0614054, %v8807_v24  ;;  %v7456_v50 = vpop.eup %7455 }
 0x859   : > { %v2360_v25 = vmul.f32 %v8773_v38, %v2352_v63  ;;  %v2357_v39 = vadd.f32 -0.28449672, %v2349_v28  ;;  %v2342_v7 = vadd.f32 1.4214138, %v2334_v14  ;;  %v7458_v34 = vpop.eup %7457 }
 0x85a   : > { %v2415_v11 = vmul.f32 %v7452_v5, %v2375_v46  ;;  %v2378_v33 = vmul.f32 %v8764_v26, %v2370_v17  ;;  %v2425_v19 = vsub.f32 1.0, %v2417_v60  ;;  %v2324_v10 = vadd.f32 -1.4531521, %v2316_v58  ;;  %v7460_v57 = vpop.eup %7459 }
 0x85b   : > { %v2368_v12 = vadd.f32 0.2548296, %v2360_v25  ;;  %v2347_v26 = vmul.f32 %v8794_v23, %v2339_v20  ;;  %v2365_v6 = vmul.f32 %v8786_v21, %v2357_v39  ;;  %v2350_v63 = vmul.f32 %v8801_v61, %v2342_v7 }
 0x85c   : > { %v2423_v16 = vsub.f32 1.0, %v2415_v11  ;;  %v2418_v2 = vmul.f32 %v7456_v50, %v2378_v33  ;;  %v2332_v55 = vmul.f32 %v8807_v24, %v2324_v10  ;;  %v2433_v29 = vmul.f32 %v2425_v19, %v8771_v40  ;;  %v7462_v33 = vpop.eup %7461 }
 0x85d   : > { %v2376_v1 = vmul.f32 %v8773_v38, %v2368_v12  ;;  %v2355_v60 = vadd.f32 -0.28449672, %v2347_v26  ;;  %v2373_v5 = vadd.f32 0.2548296, %v2365_v6  ;;  %v2239_v17 = vmul.f32 0.5, %v8710_v35  ;;  %v7464_v20 = vpop.eup %7463 }
 0x85e   : > { %v2426_v56 = vsub.f32 1.0, %v2418_v2  ;;  %v2431_v22 = vmul.f32 %v2423_v16, %v8780_v43  ;;  %v2340_v46 = vadd.f32 1.4214138, %v2332_v55  ;;  %v2358_v15 = vadd.f32 -0.28449672, %v2350_v63 }
 0x85f   : > { %v2416_v4 = vmul.f32 %v7458_v34, %v2376_v1  ;;  %v2363_v25 = vmul.f32 %v8794_v23, %v2355_v60  ;;  %v2264_v43 = vsel %vm2256_vm8, 1.0, %v7763_v47  ;;  %v2381_v53 = vmul.f32 %v8786_v21, %v2373_v5 }
 0x860   : > { %v2434_v38 = vmul.f32 %v2426_v56, %v2266_v42  ;;  %v2348_v11 = vmul.f32 %v8807_v24, %v2340_v46  ;;  %v2439_v40 = vadd.f32 1.0, %v2431_v22  ;;  %v2366_v58 = vmul.f32 %v8801_v61, %v2358_v15 }
 0x861   : > { %v2424_v48 = vsub.f32 1.0, %v2416_v4  ;;  %v2371_v28 = vadd.f32 0.2548296, %v2363_v25  ;;  %v2441_v35 = vadd.f32 1.0, %v2433_v29  ;;  %v2242_v50 = vmul.f32 0.5, %v8716_v27 }
 0x862   : > { %v2442_v59 = vadd.f32 1.0, %v2434_v38  ;;  %v2240_v19 = vmul.f32 0.5, %v8722_v3  ;;  %v2356_v12 = vadd.f32 -0.28449672, %v2348_v11  ;;  %v2421_v37 = vmul.f32 %v7460_v57, %v2381_v53 }
 0x863   : > { %v2432_v42 = vmul.f32 %v2424_v48, %v2264_v43  ;;  %v2379_v16 = vmul.f32 %v8794_v23, %v2371_v28  ;;  %v2374_v21 = vadd.f32 0.2548296, %v2366_v58  ;;  %v2241_v2 = vmul.f32 0.5, %v8705_v31 }
 0x864   : > { %v2450_v39 = vmul.f32 %v2442_v59, %v2242_v50  ;;  %v2364_v10 = vmul.f32 %v8807_v24, %v2356_v12  ;;  %v2447_v1 = vmul.f32 %v2439_v40, %v2239_v17  ;;  %v2429_v23 = vsub.f32 1.0, %v2421_v37  ;;  %v7466_v4 = vpop.eup %7465 }
 0x865   : > { %v2440_v14 = vadd.f32 1.0, %v2432_v42  ;;  %v2419_v7 = vmul.f32 %v7462_v33, %v2379_v16  ;;  %v2382_v27 = vmul.f32 %v8801_v61, %v2374_v21  ;;  %v2449_v3 = vmul.f32 %v2441_v35, %v2241_v2 }
 0x866   : > { %v2372_v34 = vadd.f32 0.2548296, %v2364_v10  ;;  %v2269_v60 = vsel %vm2261_vm9, 1.0, %v7763_v47  ;;  %v2267_v61 = vsel %vm2259_vm10, 1.0, %v7763_v47  ;;  %v2268_v46 = vsel %vm2260_vm12, 1.0, %v7763_v47 }
 0x867   : > { %v2448_v26 = vmul.f32 %v2440_v14, %v2240_v19  ;;  %v2427_v56 = vsub.f32 1.0, %v2419_v7  ;;  %v2422_v6 = vmul.f32 %v7464_v20, %v2382_v27  ;;  %v2472_v55 = vpack.c.bf16 %v2450_v39, %v2449_v3 }
 0x868   : > { %v2380_v22 = vmul.f32 %v8807_v24, %v2372_v34  ;;  %v2437_v29 = vmul.f32 %v2429_v23, %v2269_v60  ;;  %v2246_v25 = vmul.f32 0.5, %v8740_v54  ;;  %v2243_v15 = vmul.f32 0.5, %v8731_v41  ;;  %v6179_v54 = vld [vmem:[%s10374_s8] ss:$0 sm:$0xff] }
 0x869   : > { %v2471_v31 = vpack.c.bf16 %v2448_v26, %v2447_v1  ;;  %v2430_v63 = vsub.f32 1.0, %v2422_v6  ;;  %v2435_v18 = vmul.f32 %v2427_v56, %v2267_v61  ;;  %v2244_v59 = vmul.f32 0.5, %v8746_v49 }
 0x86a   : > { %v2420_v57 = vmul.f32 %v7466_v4, %v2380_v22  ;;  %v2445_v48 = vadd.f32 1.0, %v2437_v29 }
 0x86b   : > { %6756 = vmatprep.mubr.bf16.mxu1 %v2471_v31  ;;  %v2438_v38 = vmul.f32 %v2430_v63, %v2270_v9  ;;  %v2443_v17 = vadd.f32 1.0, %v2435_v18 }
 0x86c   : > { %6757 = vmatmul.mubr.bf16.vlgmr.msra.gmra.mxu1 %v2472_v55  ;;  %v2428_v5 = vsub.f32 1.0, %v2420_v57  ;;  %v2453_v40 = vmul.f32 %v2445_v48, %v2245_v52 }
 0x86d   : > { %v2446_v24 = vadd.f32 1.0, %v2438_v38  ;;  %v2451_v11 = vmul.f32 %v2443_v17, %v2243_v15 }
 0x86e   : > { %v2436_v36 = vmul.f32 %v2428_v5, %v2268_v46 }
 0x86f   : > { %v2454_v53 = vmul.f32 %v2446_v24, %v2246_v25 }
 0x870   : > { %v2444_v43 = vadd.f32 1.0, %v2436_v36 }
 0x871   : > { %v2474_v28 = vpack.c.bf16 %v2454_v53, %v2453_v40 }
 0x872   : > { %v2452_v33 = vmul.f32 %v2444_v43, %v2244_v59 }
 0x874   : > { %v2473_v42 = vpack.c.bf16 %v2452_v33, %v2451_v11 }
 0x876   : > { %6760 = vmatprep.mubr.bf16.mxu1 %v2473_v42 }
 0x877   : > { %6761 = vmatmul.mubr.bf16.gmra.mxu1 %v2474_v28 }
 0x92c   : > { %v6758_v58 = vpop.f32.mrf.mxu1 }
 0x92d   : > { %v2573_v41 = vadd.f32 %v6758_v58, %v6179_v54 }
 0x92e   : > { %v2564_v35 = vpop.f32.mrf.mxu1 }
 0x92f   : > { %v2565_v50 = vadd.f32 %v6179_v54, %v2564_v35  ;;  %v2597_v12 = vadd.f32 %v2573_v41, %v8655_v8 }
 0x930   : > { %v6759_v49 = vpop.f32.mrf.mxu1 }
 0x931   : > { %v2595_v19 = vadd.f32 %v2565_v50, %v8645_v30  ;;  %v2576_v20 = vadd.f32 %v6759_v49, %v6179_v54  ;;  %v2613_v39 = vsel %vm542_vm0, %v2597_v12, 0.0 }
 0x932   : > { %v2567_v0 = vpop.f32.mrf.mxu1 }
 0x933   : > { %v2568_v14 = vadd.f32 %v6179_v54, %v2567_v0  ;;  %v2607_v37 = vsel %vm542_vm0, %v2595_v19, 0.0  ;;  %v2598_v21 = vadd.f32 %v2576_v20, %v8657_v51 }
 0x934   : > { %2608 = vadd.xlane.f32.xlu1 %v2607_v37 }
 0x935   : > { %v2596_v16 = vadd.f32 %v2568_v14, %v8648_v62  ;;  %v2616_v1 = vsel %vm542_vm0, %v2598_v21, 0.0 }
 0x937   : > { %v2610_v2 = vsel %vm542_vm0, %v2596_v16, 0.0  ;;  %v6762_v10 = vpop.f32.mrf.mxu1 }
 0x938   : > { %2611 = vadd.xlane.f32.xlu0 %v2610_v2  ;;  %2614 = vadd.xlane.f32.xlu1 %v2613_v39  ;;  %v2589_v8 = vadd.f32 %v6762_v10, %v6179_v54  ;;  %v2741_v39 = vld [vmem:[%s10377_s11 + $0x10] sm:$0xff]  ;;  %v2742_v10 = vld [vmem:[%s10377_s11 + $0x18] sm:$0xff] }
 0x939   : > { %v2580_v30 = vpop.f32.mrf.mxu1 }
 0x93a   : > { %v2581_v26 = vadd.f32 %v6179_v54, %v2580_v30  ;;  %v2601_v62 = vadd.f32 %v2589_v8, %v8670_v44  ;;  %v7273_v44 = vld [vmem:[%s10367_s1 + $0x18] sm:$0xff]   ;;  %v2755_v30 = vpack.c.bf16 %v2742_v10, %v2741_v39 }
 0x93b   : > { %v6763_v7 = vpop.f32.mrf.mxu1  ;;  %6764 = vmatprep.subr.bf16.mxu0 %v7273_v44 }
 0x93c   : > { %2617 = vadd.xlane.f32.xlu0 %v2616_v1  ;;  %v2599_v27 = vadd.f32 %v2581_v26, %v8664_v45  ;;  %v2592_v51 = vadd.f32 %v6763_v7, %v6179_v54  ;;  %v2625_v55 = vsel %vm542_vm0, %v2601_v62, 0.0  ;;  %6765 = vmatpush3.bf16.msra.mxu0 %v7273_v44  ;;  %v8936_v1 = vld [vmem:[%s10368_s2 + $0x1] ss:$0 sm:$0xff] }
 0x93d   : > { %v2583_v3 = vpop.f32.mrf.mxu1 }
 0x93e   : > { %v2584_v34 = vadd.f32 %v6179_v54, %v2583_v3  ;;  %v2619_v23 = vsel %vm542_vm0, %v2599_v27, 0.0  ;;  %v2602_v6 = vadd.f32 %v2592_v51, %v8672_v32 }
 0x93f   : > { %2620 = vadd.xlane.f32.xlu1 %v2619_v23 }
 0x940   : > { %v2600_v56 = vadd.f32 %v2584_v34, %v8666_v13  ;;  %v2628_v45 = vsel %vm542_vm0, %v2602_v6, 0.0  ;;  %v7274_v13 = vld [vmem:[%s10367_s1 + $0x10] sm:$0xff]  }
 0x941   : > { %6766 = vmatprep.subr.bf16.mxu0 %v7274_v13 }
 0x942   : > { %v2622_v31 = vsel %vm542_vm0, %v2600_v56, 0.0  ;;  %6767 = vmatpush3.bf16.msra.mxu0 %v7274_v13 }
 0x943   : > { %2623 = vadd.xlane.f32.xlu0 %v2622_v31  ;;  %2626 = vadd.xlane.f32.xlu1 %v2625_v55 }
 0x947   : > { %2629 = vadd.xlane.f32.xlu0 %v2628_v45 }
 0x9bd   : > { %v2609_v32 = vpop.xlane.xlu1 %2608 }
 0x9be   : > { %v2631_v22 = vmul.f32 0.03125, %v2609_v32 }
 0x9c0   : > { %v8877_v63 = vsub.f32 %v2595_v19, %v2631_v22 }
 0x9c1   : > { %v2615_v4 = vpop.xlane.xlu1 %2614  ;;  %v2612_v60 = vpop.xlane.xlu0 %2611 }
 0x9c2   : > { %v2633_v61 = vmul.f32 0.03125, %v2615_v4  ;;  %v2632_v9 = vmul.f32 0.03125, %v2612_v60  ;;  %v2647_v17 = vmul.f32 %v8877_v63, %v8877_v63 }
 0x9c4   : > { %v8879_v18 = vsub.f32 %v2597_v12, %v2633_v61  ;;  %v8883_v5 = vsub.f32 %v2596_v16, %v2632_v9  ;;  %v2655_v25 = vsel %vm542_vm0, %v2647_v17, 0.0  ;;  %v2739_v16 = vld [vmem:[%s10377_s11] sm:$0xff] }
 0x9c5   : > { %v2618_v57 = vpop.xlane.xlu0 %2617 }
 0x9c6   : > { %v2634_v29 = vmul.f32 0.03125, %v2618_v57  ;;  %v2649_v38 = vmul.f32 %v8879_v18, %v8879_v18  ;;  %v2648_v59 = vmul.f32 %v8883_v5, %v8883_v5 }
 0x9c8   : > { %v8885_v24 = vsub.f32 %v2598_v21, %v2634_v29  ;;  %v2661_v46 = vsel %vm542_vm0, %v2649_v38, 0.0  ;;  %v2621_v36 = vpop.xlane.xlu1 %2620  ;;  %v2658_v33 = vsel %vm542_vm0, %v2648_v59, 0.0  ;;  %v2740_v21 = vld [vmem:[%s10377_s11 + $0x8] sm:$0xff] }
 0x9c9   : > { %2662 = vadd.xlane.f32.xlu1 %v2661_v46  ;;  %v2635_v43 = vmul.f32 0.03125, %v2621_v36  ;;  %v2754_v2 = vpack.c.bf16 %v2740_v21, %v2739_v16 }
 0x9ca   : > { %v2650_v48 = vmul.f32 %v8885_v24, %v8885_v24 }
 0x9cb   : > { %v8897_v40 = vsub.f32 %v2599_v27, %v2635_v43  ;;  %6768 = vmatprep.mubr.msk.bf16.mxu0 %vm542_vm0, %v2754_v2  ;;  %v6190_v43 = vld [vmem:[%s10375_s9 + $0x1] ss:$0 sm:$0xff] }
 0x9cc   : > { %v2664_v15 = vsel %vm542_vm0, %v2650_v48, 0.0  ;;  %v2627_v52 = vpop.xlane.xlu1 %2626  ;;  %v2624_v53 = vpop.xlane.xlu0 %2623  ;;  %6769 = vmatmul.mubr.msk.bf16.vlgmr.msra.gmra.mxu0 %vm542_vm0, %v2755_v30 }
 0x9cd   : > { %2656 = vadd.xlane.f32.xlu1 %v2655_v25  ;;  %2665 = vadd.xlane.f32.xlu0 %v2664_v15  ;;  %v2637_v11 = vmul.f32 0.03125, %v2627_v52  ;;  %v2636_v28 = vmul.f32 0.03125, %v2624_v53  ;;  %v2651_v19 = vmul.f32 %v8897_v40, %v8897_v40 }
 0x9cf   : > { %v8899_v42 = vsub.f32 %v2601_v62, %v2637_v11  ;;  %v8903_v41 = vsub.f32 %v2600_v56, %v2636_v28  ;;  %v2667_v12 = vsel %vm542_vm0, %v2651_v19, 0.0 }
 0x9d0   : > { %v2630_v58 = vpop.xlane.xlu0 %2629 }
 0x9d1   : > { %2659 = vadd.xlane.f32.xlu0 %v2658_v33  ;;  %v2638_v54 = vmul.f32 0.03125, %v2630_v58  ;;  %v2653_v35 = vmul.f32 %v8899_v42, %v8899_v42  ;;  %v2652_v14 = vmul.f32 %v8903_v41, %v8903_v41 }
 0x9d3   : > { %v8905_v50 = vsub.f32 %v2602_v6, %v2638_v54  ;;  %v2673_v49 = vsel %vm542_vm0, %v2653_v35, 0.0  ;;  %v2670_v37 = vsel %vm542_vm0, %v2652_v14, 0.0 }
 0x9d4   : > { %2674 = vadd.xlane.f32.xlu1 %v2673_v49 }
 0x9d5   : > { %v2654_v0 = vmul.f32 %v8905_v50, %v8905_v50 }
 0x9d7   : > { %v2676_v20 = vsel %vm542_vm0, %v2654_v0, 0.0 }
 0x9d8   : > { %2668 = vadd.xlane.f32.xlu1 %v2667_v12  ;;  %2677 = vadd.xlane.f32.xlu0 %v2676_v20 }
 0x9dc   : > { %2671 = vadd.xlane.f32.xlu0 %v2670_v37 }
 0x9e9   : > { %2835 = vrot.lane.b32.xlu1 %v7273_v44, %s7758_s20 }
 0x9ed   : > { %2839 = vrot.lane.b32.xlu1 %v8936_v1, %s7758_s20 }
 0x9f2   : > { %2833 = vrot.lane.b32.xlu0 %v7274_v13, %s7758_s20 }
 0xa52   : > { %v2663_v8 = vpop.xlane.xlu1 %2662 }
 0xa53   : > { %v2681_v26 = vmul.f32 0.03125, %v2663_v8 }
 0xa55   : > { %v2689_v7 = vadd.f32 1e-05, %v2681_v26 }
 0xa56   : > { %v2657_v27 = vpop.xlane.xlu1 %2656  ;;  %v2666_v3 = vpop.xlane.xlu0 %2665 }
 0xa57   : > { %v2679_v62 = vmul.f32 0.03125, %v2657_v27  ;;  %v2682_v51 = vmul.f32 0.03125, %v2666_v3  ;;  %7467 = vrsqrt.f32 %v2689_v7 }
 0xa59   : > { %v2687_v34 = vadd.f32 1e-05, %v2679_v62  ;;  %v2690_v23 = vadd.f32 1e-05, %v2682_v51 }
 0xa5a   : > { %v2660_v56 = vpop.xlane.xlu0 %2659 }
 0xa5b   : > { %7469 = vrsqrt.f32 %v2687_v34  ;;  %v2680_v6 = vmul.f32 0.03125, %v2660_v56 }
 0xa5c   : > { %7471 = vrsqrt.f32 %v2690_v23 }
 0xa5d   : > { %v2688_v31 = vadd.f32 1e-05, %v2680_v6  ;;  %v2675_v55 = vpop.xlane.xlu1 %2674 }
 0xa5e   : > { %v2685_v45 = vmul.f32 0.03125, %v2675_v55 }
 0xa5f   : > { %7473 = vrsqrt.f32 %v2688_v31 }
 0xa60   : > { %v2693_v44 = vadd.f32 1e-05, %v2685_v45 }
 0xa61   : > { %v2669_v13 = vpop.xlane.xlu1 %2668  ;;  %v2678_v32 = vpop.xlane.xlu0 %2677 }
 0xa62   : > { %v2683_v22 = vmul.f32 0.03125, %v2669_v13  ;;  %v2686_v4 = vmul.f32 0.03125, %v2678_v32  ;;  %7475 = vrsqrt.f32 %v2693_v44 }
 0xa64   : > { %v2691_v60 = vadd.f32 1e-05, %v2683_v22  ;;  %v2694_v61 = vadd.f32 1e-05, %v2686_v4  ;;  %v7468_v9 = vpop.eup %7467 }
 0xa65   : > { %v2672_v57 = vpop.xlane.xlu0 %2671  ;;  %v2836_v29 = vpop.permute.xlu1 %2835  ;;  %v2705_v48 = vmul.f32 %v7468_v9, %v8879_v18 }
 0xa66   : > { %7477 = vrsqrt.f32 %v2691_v60  ;;  %v2684_v46 = vmul.f32 0.03125, %v2672_v57  ;;  %6772 = vmatprep.subr.bf16.mxu0 %v2836_v29 }
 0xa67   : > { %7479 = vrsqrt.f32 %v2694_v61  ;;  %6773 = vmatpush3.bf16.msra.mxu0 %v2836_v29  ;;  %v2719_v28 = vmul.f32 %v6190_v43, %v2705_v48 }
 0xa68   : > { %v7470_v38 = vpop.eup %7469  ;;  %v2692_v15 = vadd.f32 1e-05, %v2684_v46 }
 0xa69   : > { %v7472_v17 = vpop.eup %7471  ;;  %v2703_v36 = vmul.f32 %v7470_v38, %v8877_v63  ;;  %v2834_v59 = vpop.permute.xlu0 %2833  ;;  %v6191_v63 = vld [vmem:[%s10376_s10 + $0x1] ss:$0 sm:$0xff] }
 0xa6a   : > { %v2706_v25 = vmul.f32 %v7472_v17, %v8885_v24  ;;  %7481 = vrsqrt.f32 %v2692_v15  ;;  %6774 = vmatprep.subr.bf16.mxu0 %v2834_v59  ;;  %v8956_v35 = vadd.f32 %v6191_v63, %v2719_v28  ;;  %v2840_v4 = vpop.permute.xlu1 %2839 }
 0xa6b   : > { %6775 = vmatpush3.bf16.msra.mxu0 %v2834_v59  ;;  %v2717_v33 = vmul.f32 %v6190_v43, %v2703_v36 }
 0xa6c   : > { %v7474_v52 = vpop.eup %7473  ;;  %v2720_v53 = vmul.f32 %v6190_v43, %v2706_v25 }
 0xa6d   : > { %v2704_v11 = vmul.f32 %v7474_v52, %v8883_v5  ;;  %v8952_v58 = vadd.f32 %v6191_v63, %v2717_v33 }
 0xa6e   : > { %v8950_v24 = vadd.f32 %v6191_v63, %v2720_v53 }
 0xa6f   : > { %v2718_v18 = vmul.f32 %v6190_v43, %v2704_v11  ;;  %v7476_v5 = vpop.eup %7475 }
 0xa70   : > { %v8964_v19 = vpack.c.bf16 %v8950_v24, %v8956_v35  ;;  %v2709_v14 = vmul.f32 %v7476_v5, %v8899_v42 }
 0xa71   : > { %v8954_v54 = vadd.f32 %v6191_v63, %v2718_v18 }
 0xa72   : > { %v2723_v10 = vmul.f32 %v6190_v43, %v2709_v14 }
 0xa73   : > { %v8960_v49 = vpack.c.bf16 %v8954_v54, %v8952_v58  ;;  %v7478_v0 = vpop.eup %7477 }
 0xa74   : > { %v7480_v12 = vpop.eup %7479  ;;  %v2707_v20 = vmul.f32 %v7478_v0, %v8897_v40  ;;  %v8980_v27 = vadd.f32 %v6191_v63, %v2723_v10 }
 0xa75   : > { %6776 = vmatprep.mubr.msk.bf16.mxu0 %vm542_vm0, %v8960_v49  ;;  %v2710_v37 = vmul.f32 %v7480_v12, %v8905_v50 }
 0xa76   : > { %6777 = vmatmul.mubr.msk.bf16.vlgmr.msra.gmra.mxu0 %vm542_vm0, %v8964_v19  ;;  %v2721_v39 = vmul.f32 %v6190_v43, %v2707_v20 }
 0xa77   : > { %v7482_v16 = vpop.eup %7481  ;;  %v2724_v21 = vmul.f32 %v6190_v43, %v2710_v37 }
 0xa78   : > { %v2708_v2 = vmul.f32 %v7482_v16, %v8903_v41  ;;  %v8976_v26 = vadd.f32 %v6191_v63, %v2721_v39 }
 0xa79   : > { %v8974_v8 = vadd.f32 %v6191_v63, %v2724_v21 }
 0xa7a   : > { %v2722_v30 = vmul.f32 %v6190_v43, %v2708_v2 }
 0xa7b   : > { %v8988_v42 = vpack.c.bf16 %v8974_v8, %v8980_v27 }
 0xa7c   : > { %v8978_v7 = vadd.f32 %v6191_v63, %v2722_v30 }
 0xa7e   : > { %v8984_v40 = vpack.c.bf16 %v8978_v7, %v8976_v26 }
 0xa80   : > { %6780 = vmatprep.mubr.msk.bf16.mxu0 %vm542_vm0, %v8984_v40 }
 0xa81   : > { %6781 = vmatmul.mubr.msk.bf16.gmra.mxu0 %vm542_vm0, %v8988_v42 }
 0xa8c   : > { %v6770_v41 = vpop.f32.mrf.mxu0 }
 0xa8d   : > { %v2823_v3 = vadd.f32 %v6770_v41, %v8936_v1 }
 0xa8e   : > { %v2814_v50 = vpop.f32.mrf.mxu0 }
 0xa8f   : > { %v2815_v51 = vadd.f32 %v8936_v1, %v2814_v50 }
 0xa90   : > { %v6771_v62 = vpop.f32.mrf.mxu0 }
 0xa91   : > { %v2826_v34 = vadd.f32 %v6771_v62, %v8936_v1 }
 0xa92   : > { %v2817_v23 = vpop.f32.mrf.mxu0 }
 0xa93   : > { %v2920_v56 = vpack.c.bf16 %v2826_v34, %v2823_v3  ;;  %v2818_v6 = vadd.f32 %v8936_v1, %v2817_v23 }
 0xa95   : > { %v2919_v31 = vpack.c.bf16 %v2818_v6, %v2815_v51 }
 0xa97   : > { %6792 = vmatprep.mubr.msk.bf16.mxu0 %vm660_vm1, %v2919_v31 }
 0xb36   : > { %v6778_v55 = vpop.f32.mrf.mxu0 }
 0xb37   : > { %v2897_v36 = vadd.f32 %v6778_v55, %v2840_v4 }
 0xb38   : > { %v2888_v45 = vpop.f32.mrf.mxu0 }
 0xb39   : > { %v2889_v15 = vadd.f32 %v2888_v45, %v2840_v4 }
 0xb3a   : > { %v6779_v44 = vpop.f32.mrf.mxu0 }
 0xb3b   : > { %v2900_v29 = vadd.f32 %v6779_v44, %v2840_v4 }
 0xb3c   : > { %v2891_v13 = vpop.f32.mrf.mxu0 }
 0xb3d   : > { %v2892_v1 = vadd.f32 %v2891_v13, %v2840_v4  ;;  %v2922_v59 = vpack.c.bf16 %v2900_v29, %v2897_v36 }
 0xb3f   : > { %v2921_v43 = vpack.c.bf16 %v2892_v1, %v2889_v15  ;;  %v2977_v53 = vsel %vm660_vm1, %v2922_v59, 0 }
 0xb41   : > { %v6782_v32 = vpop.f32.mrf.mxu0  ;;  %v2974_v11 = vsel %vm660_vm1, %v2921_v43, 0 }
 0xb42   : > { %v2913_v61 = vadd.f32 %v6782_v32, %v2840_v4 }
 0xb43   : > { %v2904_v22 = vpop.f32.mrf.mxu0 }
 0xb44   : > { %v2905_v38 = vadd.f32 %v2904_v22, %v2840_v4 }
 0xb45   : > { %v6783_v60 = vpop.f32.mrf.mxu0 }
 0xb46   : > { %v2916_v9 = vadd.f32 %v6783_v60, %v2840_v4 }
 0xb47   : > { %v2907_v57 = vpop.f32.mrf.mxu0 }
 0xb48   : > { %v2924_v46 = vpack.c.bf16 %v2916_v9, %v2913_v61  ;;  %v2908_v17 = vadd.f32 %v2907_v57, %v2840_v4  ;;  %v9096_v61 = vld [vmem:[%s10379_s13 + $0x10] sm:$0xff]  ;;  %v9101_v57 = vld [vmem:[%s10379_s13] sm:$0xff] }
 0xb4a   : > { %v2923_v48 = vpack.c.bf16 %v2908_v17, %v2905_v38  ;;  %2949 = vrot.lane.b32.xlu1 %v2924_v46, %s7755_s16  ;;  %7068 = vmatprep.subr.msk.bf16.mxu0 %vm660_vm1, %v2924_v46  ;;  %v2983_v25 = vsel %vm660_vm1, %v2924_v46, 0 }
 0xb4b   : > { %6785 = vmatpush3.bf16.xpose.msra.mxu0 %v2983_v25 }
 0xb4c   : > { %2947 = vrot.lane.b32.xlu0 %v2923_v48, %s7755_s16  ;;  %7069 = vmatprep.subr.msk.bf16.mxu0 %vm660_vm1, %v2923_v48  ;;  %v2980_v52 = vsel %vm660_vm1, %v2923_v48, 0 }
 0xb4e   : > { %2945 = vrot.lane.b32.xlu1 %v2922_v59, %s7755_s16 }
 0xb50   : > { %2943 = vrot.lane.b32.xlu0 %v2921_v43, %s7755_s16 }
 0xb52   : > { %2957 = vrot.lane.b32.xlu1 %v2924_v46, %s7757_s19 }
 0xb53   : > { %6787 = vmatpush3.bf16.xpose.msra.mxu0 %v2980_v52 }
 0xb54   : > { %7070 = vmatprep.subr.msk.bf16.mxu0 %vm660_vm1, %v2922_v59  ;;  %2927 = vrot.lane.b32.xlu0 %v2919_v31, %s7755_s16 }
 0xb56   : > { %2965 = vrot.lane.b32.xlu1 %v2924_v46, %s7756_s17 }
 0xb58   : > { %2929 = vrot.lane.b32.xlu0 %v2920_v56, %s7755_s16 }
 0xb5a   : > { %2955 = vrot.lane.b32.xlu1 %v2923_v48, %s7757_s19 }
 0xb5b   : > { %6789 = vmatpush3.bf16.xpose.msra.mxu0 %v2977_v53 }
 0xb5c   : > { %2963 = vrot.lane.b32.xlu0 %v2923_v48, %s7756_s17  ;;  %7071 = vmatprep.subr.msk.bf16.mxu0 %vm660_vm1, %v2921_v43 }
 0xb5e   : > { %2953 = vrot.lane.b32.xlu1 %v2922_v59, %s7757_s19 }
 0xb60   : > { %2961 = vrot.lane.b32.xlu0 %v2922_v59, %s7756_s17 }
 0xb62   : > { %2951 = vrot.lane.b32.xlu1 %v2921_v43, %s7757_s19 }
 0xb63   : > { %6791 = vmatpush3.bf16.xpose.msra.mxu0 %v2974_v11 }
 0xb64   : > { %2959 = vrot.lane.b32.xlu0 %v2921_v43, %s7756_s17 }
 0xb66   : > { %2931 = vrot.lane.b32.xlu1 %v2919_v31, %s7757_s19 }
 0xb68   : > { %2933 = vrot.lane.b32.xlu0 %v2920_v56, %s7757_s19 }
 0xb6a   : > { %2935 = vrot.lane.b32.xlu1 %v2919_v31, %s7756_s17  ;;  %6793 = vmatmul.mubr.msk.bf16.vlgmr.msra.gmra.mxu0 %vm660_vm1, %v2920_v56 }
 0xb6c   : > { %2937 = vrot.lane.b32.xlu0 %v2920_v56, %s7756_s17 }
 0xb6e   : > { %3421 = vrot.lane.b32.xlu1 %v2922_v59, %s7758_s20 }
 0xb70   : > { %3425 = vrot.lane.b32.xlu0 %v2924_v46, %s7758_s20  ;;  %v9109_v46 = vld [vmem:[%s10379_s13 + $0x18] sm:$0xff] }
 0xb72   : > { %3419 = vrot.lane.b32.xlu1 %v2921_v43, %s7758_s20 }
 0xb74   : > { %3423 = vrot.lane.b32.xlu0 %v2923_v48, %s7758_s20  ;;  %v9119_v48 = vld [vmem:[%s10379_s13 + $0x8] sm:$0xff] }
 0xbbc   : > { %v2950_v33 = vpop.permute.xlu1 %2949 }
 0xbbd   : > { %7072 = vmatprep.subr.msk.bf16.mxu1 %vm660_vm1, %v2950_v33  ;;  %3492 = vrot.lane.b32.xlu1 %v2950_v33, %s7758_s20  ;;  %v3050_v28 = vsel %vm660_vm1, %v2950_v33, 0 }
 0xbbe   : > { %6797 = vmatpush3.bf16.xpose.msra.mxu1 %v3050_v28  ;;  %v2948_v63 = vpop.permute.xlu0 %2947 }
 0xbbf   : > { %7073 = vmatprep.subr.msk.bf16.mxu1 %vm660_vm1, %v2948_v63  ;;  %v3047_v12 = vsel %vm660_vm1, %v2948_v63, 0 }
 0xbc0   : > { %v2946_v18 = vpop.permute.xlu1 %2945 }
 0xbc1   : > { %3488 = vrot.lane.b32.xlu0 %v2946_v18, %s7758_s20  ;;  %v3044_v2 = vsel %vm660_vm1, %v2946_v18, 0 }
 0xbc2   : > { %v2944_v5 = vpop.permute.xlu0 %2943 }
 0xbc3   : > { %v3041_v3 = vsel %vm660_vm1, %v2944_v5, 0 }
 0xbc4   : > { %v2958_v0 = vpop.permute.xlu1 %2957 }
 0xbc5   : > { %3559 = vrot.lane.b32.xlu1 %v2958_v0, %s7758_s20  ;;  %3486 = vrot.lane.b32.xlu0 %v2944_v5, %s7758_s20  ;;  %v3117_v20 = vsel %vm660_vm1, %v2958_v0, 0 }
 0xbc6   : > { %7076 = vmatprep.subr.msk.bf16.mxu0 %vm660_vm1, %v2958_v0  ;;  %6799 = vmatpush3.bf16.xpose.msra.mxu1 %v3047_v12  ;;  %v2928_v14 = vpop.permute.xlu0 %2927 }
 0xbc7   : > { %6809 = vmatpush3.bf16.xpose.msra.mxu0 %v3117_v20  ;;  %7074 = vmatprep.subr.msk.bf16.mxu1 %vm660_vm1, %v2946_v18 }
 0xbc8   : > { %6804 = vmatprep.mubr.msk.bf16.mxu1 %vm660_vm1, %v2928_v14  ;;  %v9042_v37 = vpop.permute.xlu1 %2965 }
 0xbc9   : > { %3490 = vrot.lane.b32.xlu1 %v2948_v63, %s7758_s20  ;;  %v3184_v6 = vsel %vm660_vm1, %v9042_v37, 0 }
 0xbca   : > { %v2930_v16 = vpop.permute.xlu0 %2929 }
 0xbcc   : > { %v9045_v21 = vpop.permute.xlu1 %2955 }
 0xbcd   : > { %7077 = vmatprep.subr.msk.bf16.mxu0 %vm660_vm1, %v9045_v21  ;;  %v3114_v39 = vsel %vm660_vm1, %v9045_v21, 0 }
 0xbce   : > { %6801 = vmatpush3.bf16.xpose.msra.mxu1 %v3044_v2  ;;  %v9052_v10 = vpop.permute.xlu0 %2963 }
 0xbcf   : > { %6811 = vmatpush3.bf16.xpose.msra.mxu0 %v3114_v39  ;;  %7075 = vmatprep.subr.msk.bf16.mxu1 %vm660_vm1, %v2944_v5  ;;  %v3181_v44 = vsel %vm660_vm1, %v9052_v10, 0 }
 0xbd0   : > { %v9055_v30 = vpop.permute.xlu1 %2953 }
 0xbd1   : > { %7078 = vmatprep.subr.msk.bf16.mxu0 %vm660_vm1, %v9055_v30  ;;  %v3111_v51 = vsel %vm660_vm1, %v9055_v30, 0 }
 0xbd2   : > { %v9059_v41 = vpop.permute.xlu0 %2961 }
 0xbd3   : > { %v3178_v22 = vsel %vm660_vm1, %v9059_v41, 0 }
 0xbd4   : > { %v9061_v50 = vpop.permute.xlu1 %2951 }
 0xbd5   : > { %v3108_v55 = vsel %vm660_vm1, %v9061_v50, 0 }
 0xbd6   : > { %6803 = vmatpush3.bf16.xpose.msra.mxu1 %v3041_v3  ;;  %v9064_v62 = vpop.permute.xlu0 %2959 }
 0xbd7   : > { %6813 = vmatpush3.bf16.xpose.msra.mxu0 %v3111_v51  ;;  %7080 = vmatprep.subr.msk.bf16.mxu1 %vm660_vm1, %v9042_v37  ;;  %v3175_v60 = vsel %vm660_vm1, %v9064_v62, 0 }
 0xbd8   : > { %7079 = vmatprep.subr.msk.bf16.mxu0 %vm660_vm1, %v9061_v50  ;;  %v2932_v34 = vpop.permute.xlu1 %2931 }
 0xbd9   : > { %6816 = vmatprep.mubr.msk.bf16.mxu0 %vm660_vm1, %v2932_v34 }
 0xbda   : > { %v2934_v23 = vpop.permute.xlu0 %2933 }
 0xbdc   : > { %v2936_v56 = vpop.permute.xlu1 %2935 }
 0xbdd   : > { %6805 = vmatmul.mubr.msk.bf16.vlgmr.msra.gmra.mxu1 %vm660_vm1, %v2930_v16 }
 0xbde   : > { %6821 = vmatpush3.bf16.xpose.msra.mxu1 %v3184_v6  ;;  %6828 = vmatprep.mubr.msk.bf16.mxu1 %vm660_vm1, %v2936_v56  ;;  %v2938_v31 = vpop.permute.xlu0 %2937 }
 0xbdf   : > { %6815 = vmatpush3.bf16.xpose.msra.mxu0 %v3108_v55  ;;  %7081 = vmatprep.subr.msk.bf16.mxu1 %vm660_vm1, %v9052_v10 }
 0xbe0   : > { %v3422_v32 = vpop.permute.xlu1 %3421 }
 0xbe2   : > { %v3426_v45 = vpop.permute.xlu0 %3425 }
 0xbe3   : > { %6832 = vmatprep.subr.bf16.mxu0 %v3426_v45 }
 0xbe4   : > { %v3420_v4 = vpop.permute.xlu1 %3419 }
 0xbe6   : > { %6817 = vmatmul.mubr.msk.bf16.vlgmr.msra.gmra.mxu0 %vm660_vm1, %v2934_v23  ;;  %6823 = vmatpush3.bf16.xpose.msra.mxu1 %v3181_v44  ;;  %v3424_v13 = vpop.permute.xlu0 %3423 }
 0xbe7   : > { %6833 = vmatpush3.bf16.msra.mxu0 %v3426_v45  ;;  %7082 = vmatprep.subr.msk.bf16.mxu1 %vm660_vm1, %v9059_v41 }
 0xbe8   : > { %6834 = vmatprep.subr.bf16.mxu0 %v3424_v13 }
 0xbeb   : > { %6835 = vmatpush3.bf16.msra.mxu0 %v3424_v13 }
 0xbec   : > { %6836 = vmatprep.subr.bf16.mxu0 %v3422_v32 }
 0xbee   : > { %6825 = vmatpush3.bf16.xpose.msra.mxu1 %v3178_v22 }
 0xbef   : > { %6837 = vmatpush3.bf16.msra.mxu0 %v3422_v32  ;;  %7083 = vmatprep.subr.msk.bf16.mxu1 %vm660_vm1, %v9064_v62 }
 0xbf0   : > { %6838 = vmatprep.subr.bf16.mxu0 %v3420_v4 }
 0xbf3   : > { %6839 = vmatpush3.bf16.msra.mxu0 %v3420_v4 }
 0xbf6   : > { %6827 = vmatpush3.bf16.xpose.msra.mxu1 %v3175_v60 }
 0xbfd   : > { %6829 = vmatmul.mubr.msk.bf16.vlgmr.msra.gmra.mxu1 %vm660_vm1, %v2938_v31 }
 0xc2a   : > { %v6794_v9 = vpop.f32.mrf.mxu0 }
 0xc2b   : > { %v9104_v29 = vadd.f32 %v6794_v9, %v9096_v61 }
 0xc2c   : > { %v3019_v38 = vpop.f32.mrf.mxu0 }
 0xc2d   : > { %v9112_v17 = vadd.f32 %v3019_v38, %v9101_v57  ;;  %v3241_v36 = vsel %vm1041_vm2, %v9104_v29, -inf }
 0xc2e   : > { %3242 = vmax.xlane.f32.xlu0 %v3241_v36  ;;  %v6795_v1 = vpop.f32.mrf.mxu0 }
 0xc2f   : > { %v9122_v25 = vadd.f32 %v6795_v1, %v9109_v46  ;;  %v3493_v15 = vpop.permute.xlu1 %3492  ;;  %v3235_v59 = vsel %vm1041_vm2, %v9112_v17, -inf }
 0xc30   : > { %v3022_v43 = vpop.f32.mrf.mxu0  ;;  %6844 = vmatprep.subr.bf16.mxu1 %v3493_v15  ;;  %3236 = vmax.xlane.f32.xlu1 %v3235_v59 }
 0xc31   : > { %v9127_v52 = vadd.f32 %v3022_v43, %v9119_v48  ;;  %6845 = vmatpush3.bf16.msra.mxu1 %v3493_v15  ;;  %v3244_v11 = vsel %vm1041_vm2, %v9122_v25, -inf }
 0xc33   : > { %v3238_v53 = vsel %vm1041_vm2, %v9127_v52, -inf  ;;  %v3489_v28 = vpop.permute.xlu0 %3488 }
 0xc34   : > { %3239 = vmax.xlane.f32.xlu0 %v3238_v53  ;;  %3245 = vmax.xlane.f32.xlu1 %v3244_v11 }
 0xc37   : > { %v9133_v33 = vpop.permute.xlu1 %3559  ;;  %v3487_v18 = vpop.permute.xlu0 %3486 }
 0xc38   : > { %6856 = vmatprep.subr.bf16.mxu0 %v9133_v33 }
 0xc3b   : > { %v3491_v63 = vpop.permute.xlu1 %3490 }
 0xc3c   : > { %6846 = vmatprep.subr.bf16.mxu1 %v3491_v63 }
 0xc3d   : > { %6847 = vmatpush3.bf16.msra.mxu1 %v3491_v63 }
 0xc3e   : > { %6848 = vmatprep.subr.bf16.mxu1 %v3489_v28 }
 0xc41   : > { %6849 = vmatpush3.bf16.msra.mxu1 %v3489_v28 }
 0xc42   : > { %6850 = vmatprep.subr.bf16.mxu1 %v3487_v18 }
 0xc45   : > { %6851 = vmatpush3.bf16.msra.mxu1 %v3487_v18 }
 0xc9d   : > { %v6806_v5 = vpop.f32.mrf.mxu1 }
 0xc9e   : > { %v9137_v0 = vadd.f32 %v6806_v5, %v9096_v61 }
 0xc9f   : > { %v3086_v12 = vpop.f32.mrf.mxu1 }
 0xca0   : > { %v3253_v20 = vsel %vm1041_vm2, %v9137_v0, -inf  ;;  %v9150_v34 = vadd.f32 %v3086_v12, %v9101_v57 }
 0xca1   : > { %v6807_v14 = vpop.f32.mrf.mxu1  ;;  %3254 = vmax.xlane.f32.xlu0 %v3253_v20 }
 0xca2   : > { %v9142_v16 = vadd.f32 %v6807_v14, %v9109_v46  ;;  %v3247_v45 = vsel %vm1041_vm2, %v9150_v34, -inf }
 0xca3   : > { %v3089_v56 = vpop.f32.mrf.mxu1 }
 0xca4   : > { %v3256_v2 = vsel %vm1041_vm2, %v9142_v16, -inf  ;;  %v9158_v55 = vadd.f32 %v3089_v56, %v9119_v48 }
 0xca5   : > { %3257 = vmax.xlane.f32.xlu1 %v3256_v2 }
 0xca6   : > { %v6818_v39 = vpop.f32.mrf.mxu0  ;;  %v3250_v13 = vsel %vm1041_vm2, %v9158_v55, -inf }
 0xca7   : > { %v9147_v3 = vadd.f32 %v6818_v39, %v9096_v61 }
 0xca8   : > { %v3153_v51 = vpop.f32.mrf.mxu0 }
 0xca9   : > { %v3265_v23 = vsel %vm1041_vm2, %v9147_v3, -inf  ;;  %v9171_v22 = vadd.f32 %v3153_v51, %v9101_v57 }
 0xcaa   : > { %v6819_v6 = vpop.f32.mrf.mxu0  ;;  %3266 = vmax.xlane.f32.xlu0 %v3265_v23 }
 0xcab   : > { %v9155_v31 = vadd.f32 %v6819_v6, %v9109_v46  ;;  %v3259_v36 = vsel %vm1041_vm2, %v9171_v22, -inf }
 0xcac   : > { %v3156_v4 = vpop.f32.mrf.mxu0 }
 0xcad   : > { %v3268_v44 = vsel %vm1041_vm2, %v9155_v31, -inf  ;;  %v9174_v9 = vadd.f32 %v3156_v4, %v9119_v48 }
 0xcae   : > { %3248 = vmax.xlane.f32.xlu0 %v3247_v45  ;;  %3269 = vmax.xlane.f32.xlu1 %v3268_v44 }
 0xcaf   : > { %v3262_v59 = vsel %vm1041_vm2, %v9174_v9, -inf }
 0xcb2   : > { %3251 = vmax.xlane.f32.xlu1 %v3250_v13 }
 0xcb7   : > { %v3243_v11 = vpop.xlane.xlu0 %3242 }
 0xcb8   : > { %v3285_v63 = vsub.f32 %v9104_v29, %v3243_v11 }
 0xcba   : > { %v3303_v12 = vmul.f32 1.442695, %v3285_v63 }
 0xcbc   : > { %7483 = vpow2.f32 %v3303_v12 }
 0xcbd   : > { %v6830_v32 = vpop.f32.mrf.mxu1  ;;  %v3240_v5 = vpop.xlane.xlu0 %3239 }
 0xcbe   : > { %v9177_v38 = vadd.f32 %v6830_v32, %v9096_v61  ;;  %v3284_v14 = vsub.f32 %v9127_v52, %v3240_v5 }
 0xcbf   : > { %v3220_v60 = vpop.f32.mrf.mxu1 }
 0xcc0   : > { %v3277_v15 = vsel %vm1041_vm2, %v9177_v38, -inf }
 0xcc1   : > { %v6831_v1 = vpop.f32.mrf.mxu1 }
 0xcc3   : > { %3557 = vrot.lane.b32.xlu1 %v9045_v21, %s7758_s20  ;;  %v9182_v21 = vadd.f32 %v3220_v60, %v9101_v57  ;;  %v3223_v43 = vpop.f32.mrf.mxu1 }
 0xcc4   : > { %3626 = vrot.lane.b32.xlu0 %v9042_v37, %s7758_s20  ;;  %v9185_v37 = vadd.f32 %v6831_v1, %v9109_v46  ;;  %v9192_v61 = vadd.f32 %v3223_v43, %v9119_v48  ;;  %v3237_v48 = vpop.xlane.xlu1 %3236 }
 0xcc5   : > { %v3271_v53 = vsel %vm1041_vm2, %v9182_v21, -inf  ;;  %v3283_v20 = vsub.f32 %v9112_v17, %v3237_v48 }
 0xcc6   : > { %v3280_v57 = vsel %vm1041_vm2, %v9185_v37, -inf  ;;  %v3274_v46 = vsel %vm1041_vm2, %v9192_v61, -inf }
 0xcc7   : > { %v3299_v2 = vmul.f32 1.442695, %v3283_v20 }
 0xcc8   : > { %v3246_v28 = vpop.xlane.xlu1 %3245 }
 0xcc9   : > { %v3286_v18 = vsub.f32 %v9122_v25, %v3246_v28 }
 0xce3   : > { %3260 = vmax.xlane.f32.xlu0 %v3259_v36 }
 0xce7   : > { %3278 = vmax.xlane.f32.xlu0 %v3277_v15  ;;  %3263 = vmax.xlane.f32.xlu1 %v3262_v59 }
 0xceb   : > { %3272 = vmax.xlane.f32.xlu0 %v3271_v53  ;;  %3281 = vmax.xlane.f32.xlu1 %v3280_v57 }
 0xcef   : > { %3275 = vmax.xlane.f32.xlu1 %v3274_v46 }
 0xd00   : > { %3555 = vrot.lane.b32.xlu1 %v9055_v30, %s7758_s20  ;;  %v3305_v30 = vmul.f32 1.442695, %v3286_v18 }
 0xd01   : > { %3624 = vrot.lane.b32.xlu0 %v9052_v10, %s7758_s20  ;;  %v3301_v10 = vmul.f32 1.442695, %v3284_v14 }
 0xd02   : > { %7485 = vpow2.f32 %v3305_v30 }
 0xd03   : > { %7487 = vpow2.f32 %v3299_v2 }
 0xd04   : > { %7489 = vpow2.f32 %v3301_v10 }
 0xd05   : > { %3622 = vrot.lane.b32.xlu0 %v9059_v41, %s7758_s20  ;;  %v9210_v41 = vpop.eup %7483 }
 0xd06   : > { %v3337_v25 = vsel %vm1041_vm2, %v9210_v41, 0.0 }
 0xd0f   : > { %v9212_v39 = vpop.eup %7485 }
 0xd10   : > { %v9214_v29 = vpop.eup %7487  ;;  %v3340_v17 = vsel %vm1041_vm2, %v9212_v39, 0.0 }
 0xd11   : > { %v9220_v52 = vpop.eup %7489  ;;  %v3331_v51 = vsel %vm1041_vm2, %v9214_v29, 0.0 }
 0xd12   : > { %v3334_v23 = vsel %vm1041_vm2, %v9220_v52, 0.0 }
 0xd24   : > { %3338 = vadd.xlane.f32.xlu0 %v3337_v25  ;;  %3341 = vadd.xlane.f32.xlu1 %v3340_v17 }
 0xd28   : > { %3332 = vadd.xlane.f32.xlu0 %v3331_v51  ;;  %3335 = vadd.xlane.f32.xlu1 %v3334_v23 }
 0xd2a   : > { %v3255_v56 = vpop.xlane.xlu0 %3254 }
 0xd2b   : > { %v3289_v6 = vsub.f32 %v9137_v0, %v3255_v56 }
 0xd2d   : > { %v3311_v45 = vmul.f32 1.442695, %v3289_v6 }
 0xd2e   : > { %v3258_v53 = vpop.xlane.xlu1 %3257 }
 0xd2f   : > { %7491 = vpow2.f32 %v3311_v45  ;;  %v3290_v48 = vsub.f32 %v9142_v16, %v3258_v53 }
 0xd31   : > { %v3313_v18 = vmul.f32 1.442695, %v3290_v48 }
 0xd33   : > { %v3267_v44 = vpop.xlane.xlu0 %3266 }
 0xd34   : > { %v3293_v13 = vsub.f32 %v9147_v3, %v3267_v44 }
 0xd36   : > { %v3319_v32 = vmul.f32 1.442695, %v3293_v13 }
 0xd37   : > { %v3249_v4 = vpop.xlane.xlu0 %3248  ;;  %v3270_v57 = vpop.xlane.xlu1 %3269 }
 0xd38   : > { %7493 = vpow2.f32 %v3319_v32  ;;  %v3287_v60 = vsub.f32 %v9150_v34, %v3249_v4  ;;  %v3294_v5 = vsub.f32 %v9155_v31, %v3270_v57 }
 0xd3a   : > { %v3307_v36 = vmul.f32 1.442695, %v3287_v60  ;;  %v3321_v2 = vmul.f32 1.442695, %v3294_v5 }
 0xd3b   : > { %v9229_v1 = vpop.permute.xlu0 %3626  ;;  %v3252_v46 = vpop.xlane.xlu1 %3251 }
 0xd3c   : > { %v9231_v15 = vpop.eup %7491  ;;  %7495 = vpow2.f32 %v3307_v36  ;;  %6868 = vmatprep.subr.bf16.mxu1 %v9229_v1  ;;  %v3288_v10 = vsub.f32 %v9158_v55, %v3252_v46 }
 0xd3d   : > { %v3349_v0 = vsel %vm1041_vm2, %v9231_v15, 0.0 }
 0xd3e   : > { %3350 = vadd.xlane.f32.xlu0 %v3349_v0 }
 0xd3f   : > { %v9245_v11 = vpop.permute.xlu1 %3557 }
 0xd45   : > { %v9236_v59 = vpop.eup %7493 }
 0xd46   : > { %v3361_v3 = vsel %vm1041_vm2, %v9236_v59, 0.0 }
 0xd47   : > { %3362 = vadd.xlane.f32.xlu0 %v3361_v3 }
 0xd49   : > { %v9240_v43 = vpop.eup %7495 }
 0xd4a   : > { %v3343_v34 = vsel %vm1041_vm2, %v9240_v43, 0.0 }
 0xd4b   : > { %3344 = vadd.xlane.f32.xlu0 %v3343_v34 }
 0xd6c   : > { %v3261_v28 = vpop.xlane.xlu0 %3260 }
 0xd6d   : > { %v3291_v63 = vsub.f32 %v9171_v22, %v3261_v28  ;;  %v3309_v22 = vmul.f32 1.442695, %v3288_v10 }
 0xd6f   : > { %v3315_v12 = vmul.f32 1.442695, %v3291_v63 }
 0xd70   : > { %v3279_v20 = vpop.xlane.xlu0 %3278  ;;  %v3264_v14 = vpop.xlane.xlu1 %3263 }
 0xd71   : > { %7497 = vpow2.f32 %v3315_v12  ;;  %v3297_v30 = vsub.f32 %v9177_v38, %v3279_v20  ;;  %v3292_v31 = vsub.f32 %v9174_v9, %v3264_v14 }
 0xd72   : > { %7499 = vpow2.f32 %v3313_v18 }
 0xd73   : > { %v3327_v25 = vmul.f32 1.442695, %v3297_v30  ;;  %v3317_v38 = vmul.f32 1.442695, %v3292_v31 }
 0xd74   : > { %v3273_v16 = vpop.xlane.xlu0 %3272  ;;  %v3282_v17 = vpop.xlane.xlu1 %3281 }
 0xd75   : > { %7501 = vpow2.f32 %v3327_v25  ;;  %v3295_v51 = vsub.f32 %v9182_v21, %v3273_v16  ;;  %v3298_v45 = vsub.f32 %v9185_v37, %v3282_v17 }
 0xd76   : > { %7503 = vpow2.f32 %v3321_v2 }
 0xd77   : > { %v3323_v23 = vmul.f32 1.442695, %v3295_v51  ;;  %v3329_v13 = vmul.f32 1.442695, %v3298_v45 }
 0xd78   : > { %v3276_v56 = vpop.xlane.xlu1 %3275  ;;  %v9293_v18 = vpop.permute.xlu0 %3624 }
 0xd79   : > { %7505 = vpow2.f32 %v3323_v23  ;;  %v3296_v6 = vsub.f32 %v9192_v61, %v3276_v56 }
 0xd7a   : > { %7507 = vpow2.f32 %v3309_v22 }
 0xd7b   : > { %v3325_v55 = vmul.f32 1.442695, %v3296_v6 }
 0xd7c   : > { %v9297_v5 = vpop.permute.xlu0 %3622  ;;  %v3556_v12 = vpop.permute.xlu1 %3555 }
 0xd7d   : > { %7509 = vpow2.f32 %v3325_v55 }
 0xd7e   : > { %v9255_v44 = vpop.eup %7497  ;;  %7511 = vpow2.f32 %v3317_v38 }
 0xd7f   : > { %v3355_v21 = vsel %vm1041_vm2, %v9255_v44, 0.0  ;;  %v9259_v32 = vpop.eup %7499  ;;  %7513 = vpow2.f32 %v3329_v13 }
 0xd80   : > { %3356 = vadd.xlane.f32.xlu1 %v3355_v21  ;;  %v3352_v37 = vsel %vm1041_vm2, %v9259_v32, 0.0 }
 0xd82   : > { %v9261_v9 = vpop.eup %7501 }
 0xd83   : > { %v3373_v61 = vsel %vm1041_vm2, %v9261_v9, 0.0  ;;  %v9267_v4 = vpop.eup %7503 }
 0xd84   : > { %3374 = vadd.xlane.f32.xlu0 %v3373_v61  ;;  %3353 = vadd.xlane.f32.xlu1 %v3352_v37  ;;  %v3364_v0 = vsel %vm1041_vm2, %v9267_v4, 0.0 }
 0xd86   : > { %v9269_v60 = vpop.eup %7505 }
 0xd87   : > { %v3367_v36 = vsel %vm1041_vm2, %v9269_v60, 0.0  ;;  %v9275_v3 = vpop.eup %7507 }
 0xd88   : > { %3368 = vadd.xlane.f32.xlu0 %v3367_v36  ;;  %3365 = vadd.xlane.f32.xlu1 %v3364_v0  ;;  %v3346_v53 = vsel %vm1041_vm2, %v9275_v3, 0.0 }
 0xd8a   : > { %v9277_v34 = vpop.eup %7509 }
 0xd8b   : > { %v3370_v57 = vsel %vm1041_vm2, %v9277_v34, 0.0  ;;  %v9283_v46 = vpop.eup %7511 }
 0xd8c   : > { %3347 = vadd.xlane.f32.xlu1 %v3346_v53  ;;  %3371 = vadd.xlane.f32.xlu0 %v3370_v57  ;;  %v3358_v48 = vsel %vm1041_vm2, %v9283_v46, 0.0  ;;  %v9287_v28 = vpop.eup %7513 }
 0xd8d   : > { %v3376_v63 = vsel %vm1041_vm2, %v9287_v28, 0.0 }
 0xd90   : > { %3359 = vadd.xlane.f32.xlu1 %v3358_v48 }
 0xd94   : > { %3377 = vadd.xlane.f32.xlu1 %v3376_v63 }
 0xda2   : > { %3620 = vrot.lane.b32.xlu0 %v9064_v62, %s7758_s20 }
 0xda5   : > { %3553 = vrot.lane.b32.xlu1 %v9061_v50, %s7758_s20 }
 0xdad   : > { %v3339_v20 = vpop.xlane.xlu0 %3338  ;;  %v3342_v14 = vpop.xlane.xlu1 %3341 }
 0xdae   : > { %7515 = vrcp.f32 %v3339_v20 }
 0xdaf   : > { %7517 = vrcp.f32 %v3342_v14 }
 0xdb1   : > { %v3333_v30 = vpop.xlane.xlu0 %3332  ;;  %v3336_v2 = vpop.xlane.xlu1 %3335 }
 0xdb2   : > { %7519 = vrcp.f32 %v3333_v30 }
 0xdb3   : > { %7521 = vrcp.f32 %v3336_v2 }
 0xdbb   : > { %v7516_v10 = vpop.eup %7515 }
 0xdbc   : > { %v7518_v25 = vpop.eup %7517  ;;  %v3397_v51 = vmul.f32 %v7516_v10, %v9210_v41 }
 0xdbd   : > { %v3398_v50 = vmul.f32 %v7518_v25, %v9212_v39 }
 0xdbf   : > { %v7520_v16 = vpop.eup %7519  ;;  %v3412_v23 = vpack.c.bf16 %v3398_v50, %v3397_v51 }
 0xdc0   : > { %v7522_v62 = vpop.eup %7521  ;;  %v3395_v17 = vmul.f32 %v7520_v16, %v9214_v29 }
 0xdc1   : > { %v3396_v22 = vmul.f32 %v7522_v62, %v9220_v52 }
 0xdc3   : > { %v3411_v31 = vpack.c.bf16 %v3396_v22, %v3395_v17 }
 0xdc5   : > { %6840 = vmatprep.mubr.msk.bf16.mxu0 %vm1041_vm2, %v3411_v31 }
 0xdc6   : > { %6841 = vmatmul.mubr.msk.bf16.vlgmr.msra.gmra.mxu0 %vm1041_vm2, %v3412_v23 }
 0xdc7   : > { %6857 = vmatpush3.bf16.msra.mxu0 %v9133_v33  ;;  %v3351_v29 = vpop.xlane.xlu0 %3350 }
 0xdc8   : > { %6858 = vmatprep.subr.bf16.mxu0 %v9245_v11  ;;  %7523 = vrcp.f32 %v3351_v29 }
 0xdcb   : > { %6859 = vmatpush3.bf16.msra.mxu0 %v9245_v11 }
 0xdcc   : > { %6860 = vmatprep.subr.bf16.mxu0 %v3556_v12 }
 0xdcf   : > { %6861 = vmatpush3.bf16.msra.mxu0 %v3556_v12 }
 0xdd0   : > { %v3363_v41 = vpop.xlane.xlu0 %3362 }
 0xdd4   : > { %v3345_v56 = vpop.xlane.xlu0 %3344 }
 0xdd5   : > { %7525 = vrcp.f32 %v3345_v56  ;;  %v7524_v21 = vpop.eup %7523 }
 0xdd6   : > { %v3401_v10 = vmul.f32 %v7524_v21, %v9231_v15 }
 0xde2   : > { %v7526_v61 = vpop.eup %7525 }
 0xde3   : > { %v3399_v20 = vmul.f32 %v7526_v61, %v9240_v43 }
 0xe09   : > { %v3357_v39 = vpop.xlane.xlu1 %3356 }
 0xe0d   : > { %v3375_v6 = vpop.xlane.xlu0 %3374  ;;  %v3354_v52 = vpop.xlane.xlu1 %3353 }
 0xe0e   : > { %7527 = vrcp.f32 %v3354_v52  ;;  %v7277_v52 = vld [vmem:[%s10369_s3 + $0x18] sm:$0xff]  }
 0xe11   : > { %v3369_v38 = vpop.xlane.xlu0 %3368  ;;  %v3366_v45 = vpop.xlane.xlu1 %3365 }
 0xe12   : > { %7529 = vrcp.f32 %v3369_v38 }
 0xe13   : > { %7531 = vrcp.f32 %v3366_v45 }
 0xe15   : > { %v3372_v33 = vpop.xlane.xlu0 %3371  ;;  %v3348_v55 = vpop.xlane.xlu1 %3347 }
 0xe16   : > { %7533 = vrcp.f32 %v3372_v33  ;;  %v7278_v33 = vld [vmem:[%s10369_s3 + $0x10] sm:$0xff]  }
 0xe17   : > { %7535 = vrcp.f32 %v3348_v55 }
 0xe18   : > { %7537 = vrcp.f32 %v3357_v39 }
 0xe19   : > { %7539 = vrcp.f32 %v3363_v41  ;;  %v3360_v11 = vpop.xlane.xlu1 %3359 }
 0xe1a   : > { %7541 = vrcp.f32 %v3360_v11 }
 0xe1b   : > { %v7528_v37 = vpop.eup %7527 }
 0xe1c   : > { %v3402_v63 = vmul.f32 %v7528_v37, %v9259_v32  ;;  %v9366_v37 = vld [vmem:[%s10368_s2 + $0x2] ss:$0 sm:$0xff] }
 0xe1d   : > { %v3378_v13 = vpop.xlane.xlu1 %3377 }
 0xe1e   : > { %7543 = vrcp.f32 %v3378_v13  ;;  %v3414_v51 = vpack.c.bf16 %v3402_v63, %v3401_v10 }
 0xe1f   : > { %v7530_v36 = vpop.eup %7529  ;;  %7545 = vrcp.f32 %v3375_v6 }
 0xe20   : > { %v7532_v53 = vpop.eup %7531  ;;  %v3407_v62 = vmul.f32 %v7530_v36, %v9269_v60  ;;  %v7275_v60 = vld [vmem:[%s10367_s1 + $0x28] sm:$0xff]  }
 0xe21   : > { %v3554_v0 = vpop.permute.xlu1 %3553  ;;  %v3406_v17 = vmul.f32 %v7532_v53, %v9267_v4  ;;  %v3621_v4 = vpop.permute.xlu0 %3620 }
 0xe22   : > { %6862 = vmatprep.subr.bf16.mxu0 %v3554_v0 }
 0xe23   : > { %v7534_v57 = vpop.eup %7533  ;;  %6863 = vmatpush3.bf16.msra.mxu0 %v3554_v0 }
 0xe24   : > { %v7536_v48 = vpop.eup %7535  ;;  %v3408_v30 = vmul.f32 %v7534_v57, %v9277_v34  ;;  %6880 = vmatprep.subr.bf16.mxu0 %v7277_v52 }
 0xe25   : > { %v7538_v12 = vpop.eup %7537  ;;  %v3400_v14 = vmul.f32 %v7536_v48, %v9275_v3 }
 0xe26   : > { %v7540_v2 = vpop.eup %7539  ;;  %v3403_v32 = vmul.f32 %v7538_v12, %v9255_v44  ;;  %v3417_v43 = vpack.c.bf16 %v3408_v30, %v3407_v62 }
 0xe27   : > { %v7542_v25 = vpop.eup %7541  ;;  %v3413_v16 = vpack.c.bf16 %v3400_v14, %v3399_v20  ;;  %v3405_v3 = vmul.f32 %v7540_v2, %v9236_v59 }
 0xe28   : > { %v3404_v50 = vmul.f32 %v7542_v25, %v9283_v46 }
 0xe29   : > { %6852 = vmatprep.mubr.msk.bf16.mxu1 %vm1041_vm2, %v3413_v16  ;;  %v3416_v15 = vpack.c.bf16 %v3406_v17, %v3405_v3 }
 0xe2a   : > { %6853 = vmatmul.mubr.msk.bf16.vlgmr.msra.gmra.mxu1 %vm1041_vm2, %v3414_v51  ;;  %v3415_v34 = vpack.c.bf16 %v3404_v50, %v3403_v32 }
 0xe2b   : > { %6869 = vmatpush3.bf16.msra.mxu1 %v9229_v1  ;;  %6876 = vmatprep.mubr.msk.bf16.mxu1 %vm1041_vm2, %v3417_v43  ;;  %v7544_v44 = vpop.eup %7543 }
 0xe2c   : > { %6870 = vmatprep.subr.bf16.mxu1 %v9293_v18  ;;  %6864 = vmatprep.mubr.msk.bf16.mxu0 %vm1041_vm2, %v3415_v34  ;;  %v7546_v59 = vpop.eup %7545  ;;  %v3410_v1 = vmul.f32 %v7544_v44, %v9287_v28 }
 0xe2d   : > { %6865 = vmatmul.mubr.msk.bf16.vlgmr.msra.gmra.mxu0 %vm1041_vm2, %v3416_v15  ;;  %v3409_v46 = vmul.f32 %v7546_v59, %v9261_v9 }
 0xe2e   : > { %6881 = vmatpush3.bf16.msra.mxu0 %v7277_v52 }
 0xe2f   : > { %6871 = vmatpush3.bf16.msra.mxu1 %v9293_v18  ;;  %v3418_v22 = vpack.c.bf16 %v3410_v1, %v3409_v46  ;;  %v7276_v18 = vld [vmem:[%s10367_s1 + $0x20] sm:$0xff]   ;;  %6882 = vmatprep.subr.bf16.mxu0 %v7278_v33 }
 0xe30   : > { %6872 = vmatprep.subr.bf16.mxu1 %v9297_v5 }
 0xe32   : > { %6883 = vmatpush3.bf16.msra.mxu0 %v7278_v33  ;;  %v6227_v33 = vld [vmem:[%s10370_s4 + $0x1] ss:$0 sm:$0xff] }
 0xe33   : > { %6873 = vmatpush3.bf16.msra.mxu1 %v9297_v5 }
 0xe34   : > { %6874 = vmatprep.subr.bf16.mxu1 %v3621_v4 }
 0xe37   : > { %6875 = vmatpush3.bf16.msra.mxu1 %v3621_v4 }
 0xe38   : > { %6888 = vmatprep.subr.bf16.mxu1 %v7275_v60 }
 0xe3a   : > { %6877 = vmatmul.mubr.msk.bf16.vlgmr.msra.gmra.mxu1 %vm1041_vm2, %v3418_v22 }
 0xe3b   : > { %6889 = vmatpush3.bf16.msra.mxu1 %v7275_v60  ;;  %6892 = vmatprep.mubr.msk.bf16.mxu1 %vm542_vm0, %v8960_v49 }
 0xe3c   : > { %6890 = vmatprep.subr.bf16.mxu1 %v7276_v18 }
 0xe3f   : > { %6891 = vmatpush3.bf16.msra.mxu1 %v7276_v18 }
 0xe42   : > { %6893 = vmatmul.mubr.msk.bf16.vlgmr.msra.gmra.mxu1 %vm542_vm0, %v8964_v19 }
 0xe43   : > { %6896 = vmatprep.mubr.msk.bf16.mxu1 %vm542_vm0, %v8984_v40 }
 0xe4a   : > { %6897 = vmatmul.mubr.msk.bf16.gmra.mxu1 %vm542_vm0, %v8988_v42 }
 0xe86   : > { %v9345_v9 = vpop.f32.mrf.mxu0 }
 0xe88   : > { %v9347_v28 = vpop.f32.mrf.mxu0 }
 0xe8a   : > { %v9349_v5 = vpop.f32.mrf.mxu0 }
 0xe8c   : > { %v9351_v23 = vpop.f32.mrf.mxu0 }
 0xeea   : > { %v6854_v31 = vpop.f32.mrf.mxu1 }
 0xeec   : > { %v3538_v49 = vpop.f32.mrf.mxu1 }
 0xeed   : > { %v6866_v29 = vpop.f32.mrf.mxu0 }
 0xeee   : > { %v6855_v41 = vpop.f32.mrf.mxu1 }
 0xeef   : > { %v7169_v56 = vpack.i.bf16 %v6855_v41, %v6854_v31  ;;  %v3605_v19 = vpop.f32.mrf.mxu0 }
 0xef0   : > { %v3541_v39 = vpop.f32.mrf.mxu1 }
 0xef1   : > { %v7179_v6 = vpack.i.bf16 %v3541_v39, %v3538_v49  ;;  %7170 = vrot.lane.b32.xlu0 %v7169_v56, %s7760_s21  ;;  %v6867_v40 = vpop.f32.mrf.mxu0 }
 0xef2   : > { %v7174_v42 = vpack.i.bf16 %v6867_v40, %v6866_v29 }
 0xef3   : > { %7180 = vrot.lane.b32.xlu1 %v7179_v6, %s7760_s21  ;;  %v3608_v38 = vpop.f32.mrf.mxu0 }
 0xef4   : > { %v7184_v45 = vpack.i.bf16 %v3608_v38, %v3605_v19 }
 0xef5   : > { %7175 = vrot.lane.b32.xlu0 %v7174_v42, %s10387_s25 }
 0xef7   : > { %7185 = vrot.lane.b32.xlu1 %v7184_v45, %s10387_s25 }
 0xefa   : > { %v6878_v55 = vpop.f32.mrf.mxu1 }
 0xefc   : > { %v3672_v11 = vpop.f32.mrf.mxu1 }
 0xefe   : > { %v6879_v13 = vpop.f32.mrf.mxu1 }
 0xeff   : > { %v7194_v21 = vpack.i.bf16 %v6879_v13, %v6878_v55 }
 0xf00   : > { %v3675_v61 = vpop.f32.mrf.mxu1 }
 0xf01   : > { %v7189_v36 = vpack.i.bf16 %v3675_v61, %v3672_v11  ;;  %7195 = vrot.lane.b32.xlu0 %v7194_v21, %s10388_s30 }
 0xf02   : > { %v6894_v0 = vpop.f32.mrf.mxu1 }
 0xf03   : > { %v3905_v53 = vadd.f32 %v6894_v0, %v9366_v37  ;;  %7190 = vrot.lane.b32.xlu1 %v7189_v36, %s10388_s30 }
 0xf04   : > { %v3896_v57 = vpop.f32.mrf.mxu1 }
 0xf05   : > { %3929 = vrot.lane.b32.xlu0 %v7276_v18, %s7758_s20  ;;  %v3897_v20 = vadd.f32 %v9366_v37, %v3896_v57 }
 0xf06   : > { %v6895_v48 = vpop.f32.mrf.mxu1 }
 0xf07   : > { %v3908_v63 = vadd.f32 %v6895_v48, %v9366_v37  ;;  %3931 = vrot.lane.b32.xlu1 %v7275_v60, %s7758_s20 }
 0xf08   : > { %v3899_v12 = vpop.f32.mrf.mxu1 }
 0xf09   : > { %v9375_v14 = vpack.c.bf16 %v3908_v63, %v3905_v53  ;;  %v3900_v30 = vadd.f32 %v9366_v37, %v3899_v12 }
 0xf0a   : > { %v6898_v53 = vpop.f32.mrf.mxu1 }
 0xf0b   : > { %v9378_v2 = vpack.c.bf16 %v3900_v30, %v3897_v20  ;;  %3935 = vrot.lane.b32.xlu1 %v9366_v37, %s7758_s20 }
 0xf0c   : > { %v3912_v12 = vpop.f32.mrf.mxu1 }
 0xf0d   : > { %6912 = vmatprep.mubr.msk.bf16.mxu1 %vm660_vm1, %v9378_v2 }
 0xf63   : > { %v7171_v10 = vpop.permute.xlu0 %7170 }
 0xf64   : > { %v7173_v17 = vunpack.i.h.bf16 %v7171_v10  ;;  %v7172_v51 = vunpack.i.l.bf16 %v7171_v10 }
 0xf65   : > { %v7181_v25 = vpop.permute.xlu1 %7180 }
 0xf66   : > { %v7183_v32 = vunpack.i.h.bf16 %v7181_v25  ;;  %v7182_v50 = vunpack.i.l.bf16 %v7181_v25  ;;  %v3738_v1 = vsel %vm660_vm1, %v9349_v5, %v7173_v17  ;;  %v3737_v60 = vsel %vm660_vm1, %v9345_v9, %v7172_v51  ;;  %v6899_v51 = vpop.f32.mrf.mxu1 }
 0xf67   : > { %v7176_v16 = vpop.permute.xlu0 %7175 }
 0xf68   : > { %v7178_v43 = vunpack.i.h.bf16 %v7176_v16  ;;  %v7177_v3 = vunpack.i.l.bf16 %v7176_v16  ;;  %v3736_v46 = vsel %vm660_vm1, %v9351_v23, %v7183_v32  ;;  %v3735_v22 = vsel %vm660_vm1, %v9347_v28, %v7182_v50 }
 0xf69   : > { %v7186_v62 = vpop.permute.xlu1 %7185 }
 0xf6a   : > { %v7188_v34 = vunpack.i.h.bf16 %v7186_v62  ;;  %v7187_v15 = vunpack.i.l.bf16 %v7186_v62  ;;  %v3742_v31 = vsel %vm1870_vm3, %v3738_v1, %v7178_v43  ;;  %v3741_v49 = vsel %vm1870_vm3, %v3737_v60, %v7177_v3  ;;  %v3915_v43 = vpop.f32.mrf.mxu1 }
 0xf6b   : > { %v3916_v3 = vadd.f32 %v9366_v37, %v3915_v43 }
 0xf6c   : > { %v3739_v56 = vsel %vm1870_vm3, %v3735_v22, %v7187_v15  ;;  %v3740_v5 = vsel %vm1870_vm3, %v3736_v46, %v7188_v34  ;;  %v3913_v34 = vadd.f32 %v9366_v37, %v3912_v12 }
 0xf73   : > { %v7196_v44 = vpop.permute.xlu0 %7195 }
 0xf74   : > { %v7198_v59 = vunpack.i.h.bf16 %v7196_v44  ;;  %v7197_v4 = vunpack.i.l.bf16 %v7196_v44  ;;  %v3924_v44 = vadd.f32 %v6899_v51, %v9366_v37 }
 0xf75   : > { %v7191_v18 = vpop.permute.xlu1 %7190 }
 0xf76   : > { %v7193_v29 = vunpack.i.h.bf16 %v7191_v18  ;;  %v7192_v41 = vunpack.i.l.bf16 %v7191_v18  ;;  %v3745_v19 = vsel %vm1879_vm4, %v3741_v49, %v7197_v4  ;;  %v3746_v9 = vsel %vm1879_vm4, %v3742_v31, %v7198_v59 }
 0xf77   : > { %v3753_v6 = vpack.c.bf16 %v3746_v9, %v3745_v19  ;;  %v3930_v42 = vpop.permute.xlu0 %3929  ;;  %v3995_v59 = vpack.c.bf16 %v3916_v3, %v3913_v34  ;;  %v3921_v4 = vadd.f32 %v6898_v53, %v9366_v37  ;;  %v9551_v34 = vld [vmem:[%s10380_s14 + $0x28] sm:$0xff] }
 0xf78   : > { %v3743_v23 = vsel %vm1879_vm4, %v3739_v56, %v7192_v41  ;;  %v3744_v39 = vsel %vm1879_vm4, %v3740_v5, %v7193_v29 }
 0xf79   : > { %v3752_v28 = vpack.c.bf16 %v3744_v39, %v3743_v23  ;;  %v3932_v40 = vpop.permute.xlu1 %3931  ;;  %v3996_v1 = vpack.c.bf16 %v3924_v44, %v3921_v4 }
 0xf7a   : > { %6900 = vmatprep.subr.bf16.mxu0 %v3932_v40 }
 0xf7b   : > { %6884 = vmatprep.mubr.msk.bf16.mxu0 %vm542_vm0, %v3752_v28 }
 0xf7c   : > { %6885 = vmatmul.mubr.msk.bf16.vlgmr.msra.gmra.mxu0 %vm542_vm0, %v3753_v6 }
 0xf7d   : > { %6901 = vmatpush3.bf16.msra.mxu0 %v3932_v40  ;;  %v3936_v48 = vpop.permute.xlu1 %3935 }
 0xf7e   : > { %6902 = vmatprep.subr.bf16.mxu0 %v3930_v42 }
 0xf81   : > { %6903 = vmatpush3.bf16.msra.mxu0 %v3930_v42 }
0x103c   : > { %v6886_v52 = vpop.f32.mrf.mxu0 }
0x103d   : > { %v3823_v61 = vadd.f32 %v6886_v52, %v6227_v33 }
0x103e   : > { %v3814_v38 = vpop.f32.mrf.mxu0 }
0x103f   : > { %v3815_v13 = vadd.f32 %v6227_v33, %v3814_v38 }
0x1040   : > { %v6887_v45 = vpop.f32.mrf.mxu0 }
0x1041   : > { %v3826_v55 = vadd.f32 %v6887_v45, %v6227_v33 }
0x1042   : > { %v3817_v11 = vpop.f32.mrf.mxu0 }
0x1043   : > { %v3818_v21 = vadd.f32 %v6227_v33, %v3817_v11  ;;  %v3928_v0 = vpack.c.bf16 %v3826_v55, %v3823_v61  ;;  %v9493_v11 = vld [vmem:[%s10380_s14 + $0x10] sm:$0xff] }
0x1045   : > { %v3927_v36 = vpack.c.bf16 %v3818_v21, %v3815_v13  ;;  %v9498_v21 = vld [vmem:[%s10380_s14] sm:$0xff] }
0x1047   : > { %6904 = vmatprep.mubr.msk.bf16.mxu0 %vm542_vm0, %v3927_v36 }
0x1048   : > { %6905 = vmatmul.mubr.msk.bf16.vlgmr.msra.gmra.mxu0 %vm542_vm0, %v3928_v0 }
0x1108   : > { %v6906_v57 = vpop.f32.mrf.mxu0 }
0x1109   : > { %v3987_v30 = vadd.f32 %v6906_v57, %v3936_v48  ;;  %v9511_v57 = vld [vmem:[%s10380_s14 + $0x18] sm:$0xff] }
0x110a   : > { %v3978_v63 = vpop.f32.mrf.mxu0 }
0x110b   : > { %v3979_v16 = vadd.f32 %v3978_v63, %v3936_v48  ;;  %v9516_v63 = vld [vmem:[%s10380_s14 + $0x8] sm:$0xff] }
0x110c   : > { %v6907_v20 = vpop.f32.mrf.mxu0 }
0x110d   : > { %v3990_v10 = vadd.f32 %v6907_v20, %v3936_v48  ;;  %v9521_v20 = vld [vmem:[%s10380_s14 + $0x30] sm:$0xff] }
0x110e   : > { %v3981_v25 = vpop.f32.mrf.mxu0 }
0x110f   : > { %v3998_v62 = vpack.c.bf16 %v3990_v10, %v3987_v30  ;;  %v3982_v17 = vadd.f32 %v3981_v25, %v3936_v48 }
0x1111   : > { %v3997_v32 = vpack.c.bf16 %v3982_v17, %v3979_v16  ;;  %4031 = vrot.lane.b32.xlu0 %v3998_v62, %s7755_s16  ;;  %7084 = vmatprep.subr.msk.bf16.mxu1 %vm660_vm1, %v3998_v62  ;;  %v4057_v50 = vsel %vm660_vm1, %v3998_v62, 0 }
0x1112   : > { %6909 = vmatpush3.bf16.xpose.msra.mxu1 %v4057_v50  ;;  %v9544_v50 = vld [vmem:[%s10380_s14 + $0x38] sm:$0xff] }
0x1113   : > { %4029 = vrot.lane.b32.xlu1 %v3997_v32, %s7755_s16  ;;  %7085 = vmatprep.subr.msk.bf16.mxu1 %vm660_vm1, %v3997_v32  ;;  %v4054_v15 = vsel %vm660_vm1, %v3997_v32, 0 }
0x1115   : > { %4003 = vrot.lane.b32.xlu0 %v9378_v2, %s7755_s16 }
0x1117   : > { %4035 = vrot.lane.b32.xlu1 %v3998_v62, %s7757_s19 }
0x1119   : > { %4005 = vrot.lane.b32.xlu0 %v9375_v14, %s7755_s16 }
0x111a   : > { %6911 = vmatpush3.bf16.xpose.msra.mxu1 %v4054_v15 }
0x111b   : > { %4039 = vrot.lane.b32.xlu1 %v3998_v62, %s7756_s17 }
0x111d   : > { %4007 = vrot.lane.b32.xlu0 %v3995_v59, %s7755_s16 }
0x111f   : > { %4033 = vrot.lane.b32.xlu1 %v3997_v32, %s7757_s19 }
0x1121   : > { %4009 = vrot.lane.b32.xlu0 %v3996_v1, %s7755_s16  ;;  %6913 = vmatmul.mubr.msk.bf16.vlgmr.msra.gmra.mxu1 %vm660_vm1, %v9375_v14 }
0x1122   : > { %6916 = vmatprep.mubr.msk.bf16.mxu1 %vm660_vm1, %v3995_v59 }
0x1123   : > { %4037 = vrot.lane.b32.xlu1 %v3997_v32, %s7756_s17 }
0x1125   : > { %4011 = vrot.lane.b32.xlu0 %v9378_v2, %s7757_s19 }
0x1127   : > { %4013 = vrot.lane.b32.xlu1 %v9375_v14, %s7757_s19 }
0x1129   : > { %4019 = vrot.lane.b32.xlu0 %v9378_v2, %s7756_s17  ;;  %6917 = vmatmul.mubr.msk.bf16.gmra.mxu1 %vm660_vm1, %v3996_v1 }
0x112b   : > { %4021 = vrot.lane.b32.xlu1 %v9375_v14, %s7756_s17 }
0x112d   : > { %4015 = vrot.lane.b32.xlu0 %v3995_v59, %s7757_s19 }
0x112f   : > { %4017 = vrot.lane.b32.xlu1 %v3996_v1, %s7757_s19 }
0x1131   : > { %4023 = vrot.lane.b32.xlu0 %v3995_v59, %s7756_s17 }
0x1133   : > { %4025 = vrot.lane.b32.xlu1 %v3996_v1, %s7756_s17 }
0x1137   : > { %4743 = vrot.lane.b32.xlu1 %v3998_v62, %s7758_s20 }
0x113b   : > { %4741 = vrot.lane.b32.xlu1 %v3997_v32, %s7758_s20  ;;  %v9539_v32 = vld [vmem:[%s10380_s14 + $0x20] sm:$0xff] }
0x1183   : > { %v4032_v37 = vpop.permute.xlu0 %4031 }
0x1184   : > { %7086 = vmatprep.subr.msk.bf16.mxu0 %vm660_vm1, %v4032_v37  ;;  %4826 = vrot.lane.b32.xlu0 %v4032_v37, %s7758_s20  ;;  %v4140_v2 = vsel %vm660_vm1, %v4032_v37, 0 }
0x1185   : > { %6921 = vmatpush3.bf16.xpose.msra.mxu0 %v4140_v2  ;;  %v9448_v14 = vpop.permute.xlu1 %4029 }
0x1186   : > { %7087 = vmatprep.subr.msk.bf16.mxu0 %vm660_vm1, %v9448_v14  ;;  %v4137_v31 = vsel %vm660_vm1, %v9448_v14, 0 }
0x1187   : > { %v4004_v60 = vpop.permute.xlu0 %4003 }
0x1188   : > { %6924 = vmatprep.mubr.msk.bf16.mxu0 %vm660_vm1, %v4004_v60 }
0x1189   : > { %v9453_v46 = vpop.permute.xlu1 %4035 }
0x118a   : > { %7088 = vmatprep.subr.msk.bf16.mxu1 %vm660_vm1, %v9453_v46  ;;  %v4223_v22 = vsel %vm660_vm1, %v9453_v46, 0 }
0x118b   : > { %v4006_v18 = vpop.permute.xlu0 %4005  ;;  %6933 = vmatpush3.bf16.xpose.msra.mxu1 %v4223_v22 }
0x118d   : > { %6923 = vmatpush3.bf16.xpose.msra.mxu0 %v4137_v31  ;;  %v9461_v49 = vpop.permute.xlu1 %4039 }
0x118e   : > { %7090 = vmatprep.subr.msk.bf16.mxu0 %vm660_vm1, %v9461_v49  ;;  %v4306_v19 = vsel %vm660_vm1, %v9461_v49, 0 }
0x118f   : > { %v4008_v29 = vpop.permute.xlu0 %4007 }
0x1191   : > { %v9465_v41 = vpop.permute.xlu1 %4033 }
0x1192   : > { %7089 = vmatprep.subr.msk.bf16.mxu1 %vm660_vm1, %v9465_v41  ;;  %v4220_v56 = vsel %vm660_vm1, %v9465_v41, 0 }
0x1193   : > { %v4010_v5 = vpop.permute.xlu0 %4009  ;;  %6935 = vmatpush3.bf16.xpose.msra.mxu1 %v4220_v56 }
0x1194   : > { %6925 = vmatmul.mubr.msk.bf16.vlgmr.msra.gmra.mxu0 %vm660_vm1, %v4006_v18 }
0x1195   : > { %6928 = vmatprep.mubr.msk.bf16.mxu0 %vm660_vm1, %v4008_v29  ;;  %6945 = vmatpush3.bf16.xpose.msra.mxu0 %v4306_v19  ;;  %v9475_v9 = vpop.permute.xlu1 %4037 }
0x1196   : > { %7091 = vmatprep.subr.msk.bf16.mxu0 %vm660_vm1, %v9475_v9  ;;  %v4303_v6 = vsel %vm660_vm1, %v9475_v9, 0 }
0x1197   : > { %v4012_v23 = vpop.permute.xlu0 %4011 }
0x1198   : > { %6936 = vmatprep.mubr.msk.bf16.mxu1 %vm660_vm1, %v4012_v23 }
0x1199   : > { %v4014_v39 = vpop.permute.xlu1 %4013 }
0x119a   : > { %6937 = vmatmul.mubr.msk.bf16.vlgmr.msra.gmra.mxu1 %vm660_vm1, %v4014_v39 }
0x119b   : > { %v4020_v28 = vpop.permute.xlu0 %4019 }
0x119c   : > { %6929 = vmatmul.mubr.msk.bf16.gmra.mxu0 %vm660_vm1, %v4010_v5 }
0x119d   : > { %6947 = vmatpush3.bf16.xpose.msra.mxu0 %v4303_v6  ;;  %6948 = vmatprep.mubr.msk.bf16.mxu0 %vm660_vm1, %v4020_v28  ;;  %v4022_v40 = vpop.permute.xlu1 %4021 }
0x119f   : > { %v4016_v42 = vpop.permute.xlu0 %4015 }
0x11a0   : > { %6940 = vmatprep.mubr.msk.bf16.mxu1 %vm660_vm1, %v4016_v42 }
0x11a1   : > { %v4018_v52 = vpop.permute.xlu1 %4017 }
0x11a2   : > { %6941 = vmatmul.mubr.msk.bf16.gmra.mxu1 %vm660_vm1, %v4018_v52 }
0x11a3   : > { %v4024_v38 = vpop.permute.xlu0 %4023 }
0x11a4   : > { %6949 = vmatmul.mubr.msk.bf16.vlgmr.msra.gmra.mxu0 %vm660_vm1, %v4022_v40 }
0x11a5   : > { %6952 = vmatprep.mubr.msk.bf16.mxu0 %vm660_vm1, %v4024_v38  ;;  %v4026_v45 = vpop.permute.xlu1 %4025 }
0x11a9   : > { %v4744_v33 = vpop.permute.xlu1 %4743 }
0x11aa   : > { %6956 = vmatprep.subr.bf16.mxu1 %v4744_v33 }
0x11ab   : > { %6957 = vmatpush3.bf16.msra.mxu1 %v4744_v33 }
0x11ac   : > { %6953 = vmatmul.mubr.msk.bf16.gmra.mxu0 %vm660_vm1, %v4026_v45 }
0x11ad   : > { %v4742_v55 = vpop.permute.xlu1 %4741 }
0x11ae   : > { %6958 = vmatprep.subr.bf16.mxu1 %v4742_v55 }
0x11af   : > { %6959 = vmatpush3.bf16.msra.mxu1 %v4742_v55 }
0x11e1   : > { %v6914_v13 = vpop.f32.mrf.mxu1 }
0x11e2   : > { %v9501_v61 = vadd.f32 %v6914_v13, %v9493_v11 }
0x11e3   : > { %v4093_v36 = vpop.f32.mrf.mxu1 }
0x11e4   : > { %v9504_v0 = vadd.f32 %v4093_v36, %v9498_v21  ;;  %v4379_v53 = vsel %vm542_vm0, %v9501_v61, -inf }
0x11e5   : > { %4380 = vmax.xlane.f32.xlu0 %v4379_v53  ;;  %v6915_v48 = vpop.f32.mrf.mxu1 }
0x11e6   : > { %v9524_v30 = vadd.f32 %v6915_v48, %v9511_v57  ;;  %v4373_v25 = vsel %vm542_vm0, %v9504_v0, -inf }
0x11e7   : > { %v4096_v12 = vpop.f32.mrf.mxu1 }
0x11e8   : > { %v9527_v10 = vadd.f32 %v4096_v12, %v9516_v63  ;;  %v4382_v43 = vsel %vm542_vm0, %v9524_v30, -inf }
0x11e9   : > { %v6918_v16 = vpop.f32.mrf.mxu1  ;;  %4374 = vmax.xlane.f32.xlu0 %v4373_v25 }
0x11ea   : > { %v9532_v62 = vadd.f32 %v6918_v16, %v9521_v20  ;;  %v4376_v17 = vsel %vm542_vm0, %v9527_v10, -inf }
0x11eb   : > { %v4109_v51 = vpop.f32.mrf.mxu1  ;;  %4377 = vmax.xlane.f32.xlu1 %v4376_v17 }
0x11ec   : > { %v9554_v15 = vadd.f32 %v4109_v51, %v9539_v32  ;;  %v4391_v59 = vsel %vm542_vm0, %v9532_v62, -inf }
0x11ed   : > { %v6919_v3 = vpop.f32.mrf.mxu1  ;;  %4383 = vmax.xlane.f32.xlu0 %v4382_v43 }
0x11ee   : > { %v9557_v44 = vadd.f32 %v6919_v3, %v9544_v50  ;;  %v4385_v2 = vsel %vm542_vm0, %v9554_v15, -inf }
0x11ef   : > { %v4112_v4 = vpop.f32.mrf.mxu1  ;;  %4392 = vmax.xlane.f32.xlu1 %v4391_v59 }
0x11f0   : > { %v9562_v1 = vadd.f32 %v4112_v4, %v9551_v34  ;;  %v4394_v37 = vsel %vm542_vm0, %v9557_v44, -inf }
0x11f1   : > { %4395 = vmax.xlane.f32.xlu0 %v4394_v37 }
0x11f2   : > { %v4388_v60 = vsel %vm542_vm0, %v9562_v1, -inf }
0x11f3   : > { %4386 = vmax.xlane.f32.xlu1 %v4385_v2 }
0x11f5   : > { %4389 = vmax.xlane.f32.xlu0 %v4388_v60 }
0x11f6   : > { %v4827_v22 = vpop.permute.xlu0 %4826 }
0x11f7   : > { %6968 = vmatprep.subr.bf16.mxu0 %v4827_v22 }
0x11f8   : > { %6969 = vmatpush3.bf16.msra.mxu0 %v4827_v22 }
0x1254   : > { %v6926_v18 = vpop.f32.mrf.mxu0 }
0x1255   : > { %v9571_v31 = vadd.f32 %v6926_v18, %v9493_v11 }
0x1256   : > { %v4176_v29 = vpop.f32.mrf.mxu0 }
0x1257   : > { %v4403_v56 = vsel %vm542_vm0, %v9571_v31, -inf  ;;  %v9584_v52 = vadd.f32 %v4176_v29, %v9498_v21 }
0x1258   : > { %v6927_v5 = vpop.f32.mrf.mxu0  ;;  %4404 = vmax.xlane.f32.xlu1 %v4403_v56 }
0x1259   : > { %v9576_v19 = vadd.f32 %v6927_v5, %v9511_v57  ;;  %v4397_v12 = vsel %vm542_vm0, %v9584_v52, -inf }
0x125a   : > { %v4179_v23 = vpop.f32.mrf.mxu0  ;;  %v6938_v39 = vpop.f32.mrf.mxu1 }
0x125b   : > { %v9579_v28 = vadd.f32 %v6938_v39, %v9493_v11  ;;  %v4406_v6 = vsel %vm542_vm0, %v9576_v19, -inf  ;;  %v9592_v53 = vadd.f32 %v4179_v23, %v9516_v63 }
0x125c   : > { %v6930_v40 = vpop.f32.mrf.mxu0  ;;  %v4259_v42 = vpop.f32.mrf.mxu1  ;;  %4407 = vmax.xlane.f32.xlu0 %v4406_v6 }
0x125d   : > { %v4427_v38 = vsel %vm542_vm0, %v9579_v28, -inf  ;;  %v9595_v48 = vadd.f32 %v4259_v42, %v9498_v21  ;;  %v9602_v51 = vadd.f32 %v6930_v40, %v9521_v20  ;;  %v4400_v59 = vsel %vm542_vm0, %v9592_v53, -inf }
0x125e   : > { %v4192_v45 = vpop.f32.mrf.mxu0  ;;  %v6939_v33 = vpop.f32.mrf.mxu1  ;;  %4428 = vmax.xlane.f32.xlu1 %v4427_v38 }
0x125f   : > { %v9589_v55 = vadd.f32 %v6939_v33, %v9511_v57  ;;  %v4421_v3 = vsel %vm542_vm0, %v9595_v48, -inf  ;;  %v4415_v22 = vsel %vm542_vm0, %v9602_v51, -inf  ;;  %v9622_v5 = vadd.f32 %v4192_v45, %v9539_v32 }
0x1260   : > { %v6931_v13 = vpop.f32.mrf.mxu0  ;;  %v4262_v36 = vpop.f32.mrf.mxu1 }
0x1261   : > { %v4430_v25 = vsel %vm542_vm0, %v9589_v55, -inf  ;;  %v9605_v43 = vadd.f32 %v4262_v36, %v9516_v63  ;;  %v9612_v2 = vadd.f32 %v6931_v13, %v9544_v50  ;;  %v4409_v45 = vsel %vm542_vm0, %v9622_v5, -inf }
0x1262   : > { %v4195_v16 = vpop.f32.mrf.mxu0  ;;  %v6942_v17 = vpop.f32.mrf.mxu1  ;;  %4398 = vmax.xlane.f32.xlu1 %v4397_v12  ;;  %4431 = vmax.xlane.f32.xlu0 %v4430_v25 }
0x1263   : > { %v9615_v60 = vadd.f32 %v6942_v17, %v9521_v20  ;;  %v4424_v18 = vsel %vm542_vm0, %v9605_v43, -inf  ;;  %v4418_v6 = vsel %vm542_vm0, %v9612_v2, -inf  ;;  %v9632_v42 = vadd.f32 %v4195_v16, %v9551_v34 }
0x1264   : > { %v4275_v4 = vpop.f32.mrf.mxu1  ;;  %v6950_v37 = vpop.f32.mrf.mxu0 }
0x1265   : > { %v4439_v39 = vsel %vm542_vm0, %v9615_v60, -inf  ;;  %v9635_v38 = vadd.f32 %v4275_v4, %v9539_v32  ;;  %v9642_v12 = vadd.f32 %v6950_v37, %v9493_v11  ;;  %v4412_v17 = vsel %vm542_vm0, %v9632_v42, -inf }
0x1266   : > { %4422 = vmax.xlane.f32.xlu1 %v4421_v3  ;;  %4401 = vmax.xlane.f32.xlu0 %v4400_v59  ;;  %v6943_v29 = vpop.f32.mrf.mxu1  ;;  %v4342_v56 = vpop.f32.mrf.mxu0 }
0x1267   : > { %v9625_v23 = vadd.f32 %v6943_v29, %v9544_v50  ;;  %v4433_v16 = vsel %vm542_vm0, %v9635_v38, -inf  ;;  %v9652_v59 = vadd.f32 %v4342_v56, %v9498_v21  ;;  %v4451_v11 = vsel %vm542_vm0, %v9642_v12, -inf }
0x1268   : > { %v6951_v40 = vpop.f32.mrf.mxu0  ;;  %v4278_v13 = vpop.f32.mrf.mxu1 }
0x1269   : > { %v4442_v33 = vsel %vm542_vm0, %v9625_v23, -inf  ;;  %v9645_v25 = vadd.f32 %v4278_v13, %v9551_v34  ;;  %v9655_v4 = vadd.f32 %v6951_v40, %v9511_v57  ;;  %v4445_v21 = vsel %vm542_vm0, %v9652_v59, -inf }
0x126a   : > { %4416 = vmax.xlane.f32.xlu1 %v4415_v22  ;;  %4425 = vmax.xlane.f32.xlu0 %v4424_v18  ;;  %v4345_v36 = vpop.f32.mrf.mxu0 }
0x126b   : > { %v4436_v37 = vsel %vm542_vm0, %v9645_v25, -inf  ;;  %v9662_v18 = vadd.f32 %v4345_v36, %v9516_v63  ;;  %v4454_v57 = vsel %vm542_vm0, %v9655_v4, -inf }
0x126c   : > { %v6954_v3 = vpop.f32.mrf.mxu0 }
0x126d   : > { %v9665_v29 = vadd.f32 %v6954_v3, %v9521_v20  ;;  %v4448_v20 = vsel %vm542_vm0, %v9662_v18, -inf }
0x126e   : > { %4440 = vmax.xlane.f32.xlu1 %v4439_v39  ;;  %4419 = vmax.xlane.f32.xlu0 %v4418_v6  ;;  %v4358_v22 = vpop.f32.mrf.mxu0  ;;  %v4381_v13 = vpop.xlane.xlu0 %4380 }
0x126f   : > { %v9672_v39 = vadd.f32 %v4358_v22, %v9539_v32  ;;  %v4463_v63 = vsel %vm542_vm0, %v9665_v29, -inf }
0x1270   : > { %v6955_v56 = vpop.f32.mrf.mxu0 }
0x1271   : > { %v9675_v6 = vadd.f32 %v6955_v56, %v9544_v50 }
0x1272   : > { %4410 = vmax.xlane.f32.xlu1 %v4409_v45  ;;  %4443 = vmax.xlane.f32.xlu0 %v4442_v33  ;;  %v4361_v40 = vpop.f32.mrf.mxu0  ;;  %v4457_v33 = vsel %vm542_vm0, %v9672_v39, -inf }
0x1273   : > { %v9682_v45 = vadd.f32 %v4361_v40, %v9551_v34  ;;  %v4466_v32 = vsel %vm542_vm0, %v9675_v6, -inf  ;;  %v4375_v34 = vpop.xlane.xlu0 %4374 }
0x1274   : > { %v4378_v36 = vpop.xlane.xlu1 %4377  ;;  %v4469_v22 = vsub.f32 %v9504_v0, %v4375_v34 }
0x1275   : > { %v4460_v50 = vsel %vm542_vm0, %v9682_v45, -inf }
0x1276   : > { %4434 = vmax.xlane.f32.xlu1 %v4433_v16  ;;  %4413 = vmax.xlane.f32.xlu0 %v4412_v17  ;;  %v4471_v17 = vsub.f32 %v9501_v61, %v4381_v13 }
0x1277   : > { %v4384_v16 = vpop.xlane.xlu0 %4383 }
0x1278   : > { %v4472_v3 = vsub.f32 %v9524_v30, %v4384_v16 }
0x127a   : > { %4452 = vmax.xlane.f32.xlu1 %v4451_v11  ;;  %4437 = vmax.xlane.f32.xlu0 %v4436_v37  ;;  %v4393_v11 = vpop.xlane.xlu1 %4392  ;;  %v4505_v37 = vmul.f32 1.442695, %v4471_v17 }
0x127b   : > { %v4475_v56 = vsub.f32 %v9532_v62, %v4393_v11 }
0x127c   : > { %7547 = vpow2.f32 %v4505_v37 }
0x127d   : > { %v4513_v30 = vmul.f32 1.442695, %v4475_v56 }
0x127e   : > { %4446 = vmax.xlane.f32.xlu1 %v4445_v21  ;;  %4455 = vmax.xlane.f32.xlu0 %v4454_v57  ;;  %v4396_v21 = vpop.xlane.xlu0 %4395  ;;  %v4507_v57 = vmul.f32 1.442695, %v4472_v3 }
0x1280   : > { %7549 = vpow2.f32 %v4507_v57 }
0x1282   : > { %4464 = vmax.xlane.f32.xlu1 %v4463_v63  ;;  %4449 = vmax.xlane.f32.xlu0 %v4448_v20  ;;  %v4387_v20 = vpop.xlane.xlu1 %4386  ;;  %v4390_v61 = vpop.xlane.xlu0 %4389 }
0x1283   : > { %v4473_v40 = vsub.f32 %v9554_v15, %v4387_v20 }
0x1286   : > { %4458 = vmax.xlane.f32.xlu1 %v4457_v33  ;;  %4467 = vmax.xlane.f32.xlu0 %v4466_v32  ;;  %v4474_v33 = vsub.f32 %v9562_v1, %v4390_v61 }
0x1288   : > { %v4511_v32 = vmul.f32 1.442695, %v4474_v33 }
0x1289   : > { %v9704_v62 = vpop.eup %7547 }
0x128a   : > { %4461 = vmax.xlane.f32.xlu0 %v4460_v50  ;;  %v4571_v13 = vsel %vm542_vm0, %v9704_v62, 0.0 }
0x128d   : > { %v9706_v50 = vpop.eup %7549 }
0x128e   : > { %v4574_v15 = vsel %vm542_vm0, %v9706_v50, 0.0 }
0x1297   : > { %4909 = vrot.lane.b32.xlu1 %v9453_v46, %s7758_s20  ;;  %v4470_v46 = vsub.f32 %v9527_v10, %v4378_v36  ;;  %v4509_v10 = vmul.f32 1.442695, %v4473_v40 }
0x1299   : > { %v4503_v63 = vmul.f32 1.442695, %v4470_v46 }
0x129b   : > { %4992 = vrot.lane.b32.xlu1 %v9461_v49, %s7758_s20  ;;  %v4501_v49 = vmul.f32 1.442695, %v4469_v22 }
0x129d   : > { %7551 = vpow2.f32 %v4501_v49 }
0x129e   : > { %7553 = vpow2.f32 %v4503_v63 }
0x129f   : > { %7555 = vpow2.f32 %v4513_v30 }
0x12a0   : > { %4824 = vrot.lane.b32.xlu0 %v9448_v14, %s7758_s20  ;;  %v4476_v14 = vsub.f32 %v9557_v44, %v4396_v21 }
0x12a2   : > { %v4515_v0 = vmul.f32 1.442695, %v4476_v14 }
0x12a4   : > { %7557 = vpow2.f32 %v4515_v0 }
0x12a5   : > { %7559 = vpow2.f32 %v4509_v10 }
0x12a6   : > { %7561 = vpow2.f32 %v4511_v32 }
0x12aa   : > { %v9708_v44 = vpop.eup %7551 }
0x12ab   : > { %v9714_v34 = vpop.eup %7553  ;;  %v4565_v36 = vsel %vm542_vm0, %v9708_v44, 0.0 }
0x12ac   : > { %v9716_v1 = vpop.eup %7555  ;;  %v4568_v16 = vsel %vm542_vm0, %v9714_v34, 0.0 }
0x12ad   : > { %v4583_v11 = vsel %vm542_vm0, %v9716_v1, 0.0 }
0x12b1   : > { %v9722_v17 = vpop.eup %7557 }
0x12b2   : > { %v9724_v3 = vpop.eup %7559  ;;  %v4586_v37 = vsel %vm542_vm0, %v9722_v17, 0.0 }
0x12b3   : > { %v9730_v22 = vpop.eup %7561  ;;  %v4577_v21 = vsel %vm542_vm0, %v9724_v3, 0.0 }
0x12b4   : > { %v4580_v46 = vsel %vm542_vm0, %v9730_v22, 0.0 }
0x12bf   : > { %4572 = vadd.xlane.f32.xlu1 %v4571_v13  ;;  %4575 = vadd.xlane.f32.xlu0 %v4574_v15 }
0x12c3   : > { %4566 = vadd.xlane.f32.xlu1 %v4565_v36  ;;  %4569 = vadd.xlane.f32.xlu0 %v4568_v16 }
0x12c7   : > { %4584 = vadd.xlane.f32.xlu1 %v4583_v11  ;;  %4587 = vadd.xlane.f32.xlu0 %v4586_v37 }
0x12cb   : > { %4578 = vadd.xlane.f32.xlu1 %v4577_v21  ;;  %4581 = vadd.xlane.f32.xlu0 %v4580_v46 }
0x12e1   : > { %v4405_v57 = vpop.xlane.xlu1 %4404 }
0x12e2   : > { %v4479_v49 = vsub.f32 %v9571_v31, %v4405_v57 }
0x12e4   : > { %v4521_v56 = vmul.f32 1.442695, %v4479_v49 }
0x12e5   : > { %v4408_v63 = vpop.xlane.xlu0 %4407 }
0x12e6   : > { %7563 = vpow2.f32 %v4521_v56  ;;  %v4480_v14 = vsub.f32 %v9576_v19, %v4408_v63 }
0x12e7   : > { %v4429_v20 = vpop.xlane.xlu1 %4428 }
0x12e8   : > { %v4523_v61 = vmul.f32 1.442695, %v4480_v14  ;;  %v4487_v30 = vsub.f32 %v9579_v28, %v4429_v20 }
0x12ea   : > { %7565 = vpow2.f32 %v4523_v61  ;;  %v4537_v40 = vmul.f32 1.442695, %v4487_v30 }
0x12eb   : > { %v4399_v0 = vpop.xlane.xlu1 %4398  ;;  %v4432_v33 = vpop.xlane.xlu0 %4431 }
0x12ec   : > { %7567 = vpow2.f32 %v4537_v40  ;;  %v4477_v10 = vsub.f32 %v9584_v52, %v4399_v0  ;;  %v4488_v32 = vsub.f32 %v9589_v55, %v4432_v33 }
0x12ee   : > { %v4517_v13 = vmul.f32 1.442695, %v4477_v10  ;;  %v4539_v31 = vmul.f32 1.442695, %v4488_v32 }
0x12ef   : > { %v4423_v15 = vpop.xlane.xlu1 %4422  ;;  %v4402_v36 = vpop.xlane.xlu0 %4401 }
0x12f0   : > { %7569 = vpow2.f32 %v4517_v13  ;;  %v4485_v19 = vsub.f32 %v9595_v48, %v4423_v15  ;;  %v4478_v16 = vsub.f32 %v9592_v53, %v4402_v36 }
0x12f1   : > { %7571 = vpow2.f32 %v4539_v31 }
0x12f2   : > { %v4533_v28 = vmul.f32 1.442695, %v4485_v19  ;;  %v4519_v11 = vmul.f32 1.442695, %v4478_v16 }
0x12f3   : > { %v9743_v37 = vpop.eup %7563  ;;  %v4417_v21 = vpop.xlane.xlu1 %4416 }
0x12f4   : > { %v4426_v46 = vpop.xlane.xlu0 %4425  ;;  %7573 = vpow2.f32 %v4533_v28  ;;  %v4483_v52 = vsub.f32 %v9602_v51, %v4417_v21  ;;  %v4595_v57 = vsel %vm542_vm0, %v9743_v37, 0.0 }
0x12f5   : > { %v4486_v55 = vsub.f32 %v9605_v43, %v4426_v46  ;;  %7575 = vpow2.f32 %v4519_v11  ;;  %4596 = vadd.xlane.f32.xlu1 %v4595_v57 }
0x12f6   : > { %v4529_v48 = vmul.f32 1.442695, %v4483_v52 }
0x12f7   : > { %v4535_v49 = vmul.f32 1.442695, %v4486_v55  ;;  %v9749_v53 = vpop.eup %7565  ;;  %v4441_v56 = vpop.xlane.xlu1 %4440 }
0x12f8   : > { %v4420_v63 = vpop.xlane.xlu0 %4419  ;;  %7577 = vpow2.f32 %v4529_v48  ;;  %v4491_v14 = vsub.f32 %v9615_v60, %v4441_v56  ;;  %v4598_v20 = vsel %vm542_vm0, %v9749_v53, 0.0 }
0x12f9   : > { %v9754_v51 = vpop.eup %7567  ;;  %7579 = vpow2.f32 %v4535_v49  ;;  %4599 = vadd.xlane.f32.xlu0 %v4598_v20  ;;  %v4484_v60 = vsub.f32 %v9612_v2, %v4420_v63 }
0x12fa   : > { %v4545_v43 = vmul.f32 1.442695, %v4491_v14  ;;  %v4619_v61 = vsel %vm542_vm0, %v9754_v51, 0.0 }
0x12fb   : > { %v4411_v30 = vpop.xlane.xlu1 %4410  ;;  %4620 = vadd.xlane.f32.xlu1 %v4619_v61  ;;  %v4531_v16 = vmul.f32 1.442695, %v4484_v60 }
0x12fc   : > { %v4444_v40 = vpop.xlane.xlu0 %4443  ;;  %7581 = vpow2.f32 %v4545_v43  ;;  %v4481_v0 = vsub.f32 %v9622_v5, %v4411_v30 }
0x12fd   : > { %v9759_v33 = vpop.eup %7569  ;;  %v4492_v2 = vsub.f32 %v9625_v23, %v4444_v40 }
0x12fe   : > { %v9762_v10 = vpop.eup %7571  ;;  %v4525_v32 = vmul.f32 1.442695, %v4481_v0  ;;  %v4589_v13 = vsel %vm542_vm0, %v9759_v33, 0.0 }
0x12ff   : > { %v4435_v31 = vpop.xlane.xlu1 %4434  ;;  %4590 = vadd.xlane.f32.xlu1 %v4589_v13  ;;  %v4622_v15 = vsel %vm542_vm0, %v9762_v10, 0.0  ;;  %v4547_v23 = vmul.f32 1.442695, %v4492_v2 }
0x1300   : > { %v4414_v36 = vpop.xlane.xlu0 %4413  ;;  %7583 = vpow2.f32 %v4525_v32  ;;  %v4489_v19 = vsub.f32 %v9635_v38, %v4435_v31  ;;  %4623 = vadd.xlane.f32.xlu0 %v4622_v15 }
0x1301   : > { %v9769_v5 = vpop.eup %7573  ;;  %v4482_v49 = vsub.f32 %v9632_v42, %v4414_v36 }
0x1302   : > { %v9772_v28 = vpop.eup %7575  ;;  %v4541_v11 = vmul.f32 1.442695, %v4489_v19  ;;  %v4613_v21 = vsel %vm542_vm0, %v9769_v5, 0.0 }
0x1303   : > { %v4453_v46 = vpop.xlane.xlu1 %4452  ;;  %4614 = vadd.xlane.f32.xlu1 %v4613_v21  ;;  %v4592_v52 = vsel %vm542_vm0, %v9772_v28, 0.0  ;;  %v4527_v30 = vmul.f32 1.442695, %v4482_v49 }
0x1304   : > { %v4438_v55 = vpop.xlane.xlu0 %4437  ;;  %7585 = vpow2.f32 %v4541_v11  ;;  %v4495_v38 = vsub.f32 %v9642_v12, %v4453_v46  ;;  %4593 = vadd.xlane.f32.xlu0 %v4592_v52 }
0x1305   : > { %v9779_v57 = vpop.eup %7577  ;;  %7587 = vpow2.f32 %v4531_v16  ;;  %v4490_v42 = vsub.f32 %v9645_v25, %v4438_v55 }
0x1306   : > { %v9781_v48 = vpop.eup %7579  ;;  %v4553_v56 = vmul.f32 1.442695, %v4495_v38  ;;  %v4607_v63 = vsel %vm542_vm0, %v9779_v57, 0.0 }
0x1307   : > { %v4447_v14 = vpop.xlane.xlu1 %4446  ;;  %4608 = vadd.xlane.f32.xlu1 %v4607_v63  ;;  %v4616_v20 = vsel %vm542_vm0, %v9781_v48, 0.0  ;;  %v4543_v15 = vmul.f32 1.442695, %v4490_v42 }
0x1308   : > { %v4456_v43 = vpop.xlane.xlu0 %4455  ;;  %7589 = vpow2.f32 %v4553_v56  ;;  %v4493_v12 = vsub.f32 %v9652_v59, %v4447_v14  ;;  %4617 = vadd.xlane.f32.xlu0 %v4616_v20 }
0x1309   : > { %v9789_v61 = vpop.eup %7581  ;;  %7591 = vpow2.f32 %v4547_v23  ;;  %v4496_v59 = vsub.f32 %v9655_v4, %v4456_v43 }
0x130a   : > { %v4549_v40 = vmul.f32 1.442695, %v4493_v12  ;;  %v4631_v0 = vsel %vm542_vm0, %v9789_v61, 0.0 }
0x130b   : > { %v4465_v60 = vpop.xlane.xlu1 %4464  ;;  %4632 = vadd.xlane.f32.xlu1 %v4631_v0  ;;  %v4555_v21 = vmul.f32 1.442695, %v4496_v59 }
0x130c   : > { %v4450_v32 = vpop.xlane.xlu0 %4449  ;;  %7593 = vpow2.f32 %v4549_v40  ;;  %v4499_v13 = vsub.f32 %v9665_v29, %v4465_v60 }
0x130d   : > { %v9795_v31 = vpop.eup %7583  ;;  %7595 = vpow2.f32 %v4527_v30  ;;  %v4494_v4 = vsub.f32 %v9662_v18, %v4450_v32 }
0x130e   : > { %v4561_v36 = vmul.f32 1.442695, %v4499_v13  ;;  %v4601_v25 = vsel %vm542_vm0, %v9795_v31, 0.0 }
0x130f   : > { %v4459_v19 = vpop.xlane.xlu1 %4458  ;;  %4602 = vadd.xlane.f32.xlu1 %v4601_v25  ;;  %v4551_v56 = vmul.f32 1.442695, %v4494_v4 }
0x1310   : > { %v4468_v16 = vpop.xlane.xlu0 %4467  ;;  %7597 = vpow2.f32 %v4561_v36  ;;  %v4497_v2 = vsub.f32 %v9672_v39, %v4459_v19 }
0x1311   : > { %v9801_v11 = vpop.eup %7585  ;;  %7599 = vpow2.f32 %v4543_v15  ;;  %v4500_v63 = vsub.f32 %v9675_v6, %v4468_v16 }
0x1312   : > { %v9803_v29 = vpop.eup %7587  ;;  %v4557_v46 = vmul.f32 1.442695, %v4497_v2  ;;  %v4625_v52 = vsel %vm542_vm0, %v9801_v11, 0.0 }
0x1313   : > { %v9808_v55 = vpop.permute.xlu1 %4909  ;;  %4626 = vadd.xlane.f32.xlu0 %v4625_v52  ;;  %v4610_v49 = vsel %vm542_vm0, %v9803_v29, 0.0  ;;  %v4563_v30 = vmul.f32 1.442695, %v4500_v63 }
0x1314   : > { %v4462_v38 = vpop.xlane.xlu0 %4461  ;;  %7601 = vpow2.f32 %v4557_v46  ;;  %6980 = vmatprep.subr.bf16.mxu1 %v9808_v55 }
0x1315   : > { %v4498_v23 = vsub.f32 %v9682_v45, %v4462_v38  ;;  %v9812_v39 = vpop.eup %7589  ;;  %7603 = vpow2.f32 %v4555_v21 }
0x1316   : > { %v9816_v18 = vpop.eup %7591  ;;  %v4643_v20 = vsel %vm542_vm0, %v9812_v39, 0.0 }
0x1317   : > { %v4559_v14 = vmul.f32 1.442695, %v4498_v23  ;;  %4644 = vadd.xlane.f32.xlu1 %v4643_v20  ;;  %4611 = vadd.xlane.f32.xlu0 %v4610_v49  ;;  %v9823_v12 = vpop.permute.xlu1 %4992  ;;  %v4634_v42 = vsel %vm542_vm0, %v9816_v18, 0.0 }
0x1318   : > { %v4825_v45 = vpop.permute.xlu0 %4824 }
0x1319   : > { %7605 = vpow2.f32 %v4559_v14  ;;  %6970 = vmatprep.subr.bf16.mxu0 %v4825_v45  ;;  %v9821_v43 = vpop.eup %7593 }
0x131a   : > { %6971 = vmatpush3.bf16.msra.mxu0 %v4825_v45  ;;  %7607 = vpow2.f32 %v4551_v56  ;;  %v4637_v6 = vsel %vm542_vm0, %v9821_v43, 0.0  ;;  %v9830_v40 = vpop.eup %7595 }
0x131b   : > { %6992 = vmatprep.subr.bf16.mxu0 %v9823_v12  ;;  %4638 = vadd.xlane.f32.xlu1 %v4637_v6  ;;  %7609 = vpow2.f32 %v4563_v30  ;;  %v4604_v32 = vsel %vm542_vm0, %v9830_v40, 0.0 }
0x131c   : > { %4635 = vadd.xlane.f32.xlu0 %v4634_v42 }
0x131d   : > { %v9832_v0 = vpop.eup %7597 }
0x131e   : > { %v4655_v60 = vsel %vm542_vm0, %v9832_v0, 0.0  ;;  %v9838_v13 = vpop.eup %7599 }
0x131f   : > { %4656 = vadd.xlane.f32.xlu1 %v4655_v60  ;;  %v4628_v25 = vsel %vm542_vm0, %v9838_v13, 0.0 }
0x1320   : > { %4605 = vadd.xlane.f32.xlu0 %v4604_v32 }
0x1321   : > { %v9840_v59 = vpop.eup %7601 }
0x1322   : > { %v9842_v15 = vpop.eup %7603  ;;  %v4649_v36 = vsel %vm542_vm0, %v9840_v59, 0.0 }
0x1323   : > { %4650 = vadd.xlane.f32.xlu1 %v4649_v36  ;;  %v4646_v16 = vsel %vm542_vm0, %v9842_v15, 0.0 }
0x1324   : > { %4629 = vadd.xlane.f32.xlu0 %v4628_v25 }
0x1326   : > { %v9848_v19 = vpop.eup %7605 }
0x1327   : > { %v4652_v2 = vsel %vm542_vm0, %v9848_v19, 0.0  ;;  %v9854_v21 = vpop.eup %7607 }
0x1328   : > { %4647 = vadd.xlane.f32.xlu0 %v4646_v16  ;;  %4653 = vadd.xlane.f32.xlu1 %v4652_v2  ;;  %v4640_v4 = vsel %vm542_vm0, %v9854_v21, 0.0  ;;  %v9858_v46 = vpop.eup %7609 }
0x1329   : > { %v4658_v52 = vsel %vm542_vm0, %v9858_v46, 0.0 }
0x132c   : > { %4641 = vadd.xlane.f32.xlu0 %v4640_v4 }
0x1330   : > { %4659 = vadd.xlane.f32.xlu0 %v4658_v52 }
0x1339   : > { %4990 = vrot.lane.b32.xlu1 %v9475_v9, %s7758_s20 }
0x1346   : > { %4907 = vrot.lane.b32.xlu0 %v9465_v41, %s7758_s20 }
0x1348   : > { %v4573_v38 = vpop.xlane.xlu1 %4572  ;;  %v4576_v23 = vpop.xlane.xlu0 %4575 }
0x1349   : > { %7611 = vrcp.f32 %v4573_v38 }
0x134a   : > { %7613 = vrcp.f32 %v4576_v23 }
0x134c   : > { %v4567_v49 = vpop.xlane.xlu1 %4566  ;;  %v4570_v56 = vpop.xlane.xlu0 %4569 }
0x134d   : > { %7615 = vrcp.f32 %v4567_v49 }
0x134e   : > { %7617 = vrcp.f32 %v4570_v56 }
0x1350   : > { %v4585_v63 = vpop.xlane.xlu1 %4584  ;;  %v4588_v14 = vpop.xlane.xlu0 %4587 }
0x1351   : > { %7619 = vrcp.f32 %v4585_v63 }
0x1352   : > { %7621 = vrcp.f32 %v4588_v14 }
0x1354   : > { %v4579_v20 = vpop.xlane.xlu1 %4578  ;;  %v4582_v45 = vpop.xlane.xlu0 %4581 }
0x1355   : > { %7623 = vrcp.f32 %v4579_v20 }
0x1356   : > { %7625 = vrcp.f32 %v4582_v45  ;;  %v7612_v9 = vpop.eup %7611 }
0x1357   : > { %v7614_v30 = vpop.eup %7613  ;;  %v4695_v42 = vmul.f32 %v7612_v9, %v9704_v62 }
0x1358   : > { %v4696_v60 = vmul.f32 %v7614_v30, %v9706_v50 }
0x135a   : > { %v7616_v6 = vpop.eup %7615  ;;  %v4726_v2 = vpack.c.bf16 %v4696_v60, %v4695_v42 }
0x135b   : > { %v7618_v41 = vpop.eup %7617  ;;  %v4693_v32 = vmul.f32 %v7616_v6, %v9708_v44 }
0x135c   : > { %v4694_v36 = vmul.f32 %v7618_v41, %v9714_v34 }
0x135e   : > { %v4725_v25 = vpack.c.bf16 %v4694_v36, %v4693_v32  ;;  %v7620_v16 = vpop.eup %7619 }
0x135f   : > { %v7622_v4 = vpop.eup %7621  ;;  %v4699_v50 = vmul.f32 %v7620_v16, %v9716_v1 }
0x1360   : > { %6960 = vmatprep.mubr.msk.bf16.mxu1 %vm542_vm0, %v4725_v25  ;;  %v4700_v44 = vmul.f32 %v7622_v4, %v9722_v17 }
0x1361   : > { %6961 = vmatmul.mubr.msk.bf16.vlgmr.msra.gmra.mxu1 %vm542_vm0, %v4726_v2 }
0x1362   : > { %v7624_v52 = vpop.eup %7623  ;;  %6981 = vmatpush3.bf16.msra.mxu1 %v9808_v55  ;;  %v4728_v49 = vpack.c.bf16 %v4700_v44, %v4699_v50 }
0x1363   : > { %v7626_v38 = vpop.eup %7625  ;;  %v4697_v62 = vmul.f32 %v7624_v52, %v9724_v3 }
0x1364   : > { %v4698_v34 = vmul.f32 %v7626_v38, %v9730_v22 }
0x1366   : > { %v4727_v23 = vpack.c.bf16 %v4698_v34, %v4697_v62 }
0x1368   : > { %6964 = vmatprep.mubr.msk.bf16.mxu1 %vm542_vm0, %v4727_v23 }
0x1369   : > { %6965 = vmatmul.mubr.msk.bf16.gmra.mxu1 %vm542_vm0, %v4728_v49 }
0x137e   : > { %v4597_v56 = vpop.xlane.xlu1 %4596 }
0x1382   : > { %v4600_v14 = vpop.xlane.xlu0 %4599 }
0x1383   : > { %7627 = vrcp.f32 %v4600_v14 }
0x1384   : > { %v4621_v63 = vpop.xlane.xlu1 %4620 }
0x1388   : > { %v4591_v20 = vpop.xlane.xlu1 %4590 }
0x1389   : > { %v4624_v55 = vpop.xlane.xlu0 %4623  ;;  %7629 = vrcp.f32 %v4591_v20 }
0x138a   : > { %7631 = vrcp.f32 %v4597_v56 }
0x138c   : > { %v4615_v3 = vpop.xlane.xlu1 %4614 }
0x138d   : > { %v4594_v1 = vpop.xlane.xlu0 %4593 }
0x138e   : > { %7633 = vrcp.f32 %v4594_v1 }
0x138f   : > { %7635 = vrcp.f32 %v4615_v3 }
0x1390   : > { %v4609_v17 = vpop.xlane.xlu1 %4608  ;;  %v7628_v9 = vpop.eup %7627 }
0x1391   : > { %v4618_v22 = vpop.xlane.xlu0 %4617  ;;  %v4704_v42 = vmul.f32 %v7628_v9, %v9749_v53 }
0x1392   : > { %7637 = vrcp.f32 %v4618_v22 }
0x1393   : > { %7639 = vrcp.f32 %v4621_v63 }
0x1394   : > { %v4633_v45 = vpop.xlane.xlu1 %4632 }
0x1396   : > { %v7630_v30 = vpop.eup %7629 }
0x1397   : > { %v7632_v6 = vpop.eup %7631  ;;  %v4701_v36 = vmul.f32 %v7630_v30, %v9759_v33 }
0x1398   : > { %v4603_v60 = vpop.xlane.xlu1 %4602  ;;  %v4703_v2 = vmul.f32 %v7632_v6, %v9743_v37 }
0x139a   : > { %v4730_v38 = vpack.c.bf16 %v4704_v42, %v4703_v2 }
0x139b   : > { %v7634_v41 = vpop.eup %7633 }
0x139c   : > { %v4627_v32 = vpop.xlane.xlu0 %4626  ;;  %v4702_v25 = vmul.f32 %v7634_v41, %v9772_v28  ;;  %v7636_v16 = vpop.eup %7635 }
0x139d   : > { %v4709_v44 = vmul.f32 %v7636_v16, %v9769_v5 }
0x139e   : > { %v4729_v4 = vpack.c.bf16 %v4702_v25, %v4701_v36 }
0x139f   : > { %v7638_v52 = vpop.eup %7637 }
0x13a0   : > { %6972 = vmatprep.mubr.msk.bf16.mxu0 %vm542_vm0, %v4729_v4  ;;  %v4645_v62 = vpop.xlane.xlu1 %4644  ;;  %v4612_v50 = vpop.xlane.xlu0 %4611  ;;  %v4710_v53 = vmul.f32 %v7638_v52, %v9781_v48 }
0x13a1   : > { %6973 = vmatmul.mubr.msk.bf16.vlgmr.msra.gmra.mxu0 %vm542_vm0, %v4730_v38  ;;  %7641 = vrcp.f32 %v4612_v50  ;;  %v7640_v56 = vpop.eup %7639 }
0x13a2   : > { %6993 = vmatpush3.bf16.msra.mxu0 %v9823_v12  ;;  %v4733_v33 = vpack.c.bf16 %v4710_v53, %v4709_v44  ;;  %7643 = vrcp.f32 %v4603_v60 }
0x13a3   : > { %7645 = vrcp.f32 %v4609_v17 }
0x13a4   : > { %6984 = vmatprep.mubr.msk.bf16.mxu1 %vm542_vm0, %v4733_v33  ;;  %v4639_v28 = vpop.xlane.xlu1 %4638 }
0x13a5   : > { %v4636_v37 = vpop.xlane.xlu0 %4635 }
0x13a8   : > { %v4657_v34 = vpop.xlane.xlu1 %4656 }
0x13a9   : > { %v4606_v23 = vpop.xlane.xlu0 %4605 }
0x13aa   : > { %7647 = vrcp.f32 %v4606_v23 }
0x13ab   : > { %7649 = vrcp.f32 %v4624_v55 }
0x13ac   : > { %7651 = vrcp.f32 %v4633_v45  ;;  %v4651_v5 = vpop.xlane.xlu1 %4650 }
0x13ad   : > { %v4630_v48 = vpop.xlane.xlu0 %4629  ;;  %7653 = vrcp.f32 %v4627_v32 }
0x13ae   : > { %7655 = vrcp.f32 %v4630_v48  ;;  %v7642_v63 = vpop.eup %7641 }
0x13af   : > { %7657 = vrcp.f32 %v4645_v62  ;;  %v7644_v3 = vpop.eup %7643  ;;  %v4708_v17 = vmul.f32 %v7642_v63, %v9803_v29 }
0x13b0   : > { %7659 = vrcp.f32 %v4639_v28  ;;  %v7646_v55 = vpop.eup %7645  ;;  %v4705_v9 = vmul.f32 %v7644_v3, %v9795_v31 }
0x13b1   : > { %v4654_v12 = vpop.xlane.xlu1 %4653  ;;  %v4648_v49 = vpop.xlane.xlu0 %4647  ;;  %7661 = vrcp.f32 %v4636_v37  ;;  %v4707_v41 = vmul.f32 %v7646_v55, %v9779_v57 }
0x13b2   : > { %7663 = vrcp.f32 %v4648_v49 }
0x13b3   : > { %7665 = vrcp.f32 %v4654_v12  ;;  %v4732_v25 = vpack.c.bf16 %v4708_v17, %v4707_v41 }
0x13b4   : > { %7667 = vrcp.f32 %v4651_v5 }
0x13b5   : > { %v4991_v14 = vpop.permute.xlu1 %4990  ;;  %v4642_v20 = vpop.xlane.xlu0 %4641 }
0x13b6   : > { %7669 = vrcp.f32 %v4642_v20  ;;  %6994 = vmatprep.subr.bf16.mxu0 %v4991_v14 }
0x13b7   : > { %6995 = vmatpush3.bf16.msra.mxu0 %v4991_v14  ;;  %v7648_v1 = vpop.eup %7647 }
0x13b8   : > { %v7650_v22 = vpop.eup %7649  ;;  %v4706_v30 = vmul.f32 %v7648_v1, %v9830_v40  ;;  %v4711_v40 = vmul.f32 %v7640_v56, %v9754_v51 }
0x13b9   : > { %v4660_v45 = vpop.xlane.xlu0 %4659  ;;  %v7652_v6 = vpop.eup %7651  ;;  %v4712_v36 = vmul.f32 %v7650_v22, %v9762_v10 }
0x13ba   : > { %v7654_v42 = vpop.eup %7653  ;;  %7671 = vrcp.f32 %v4660_v45  ;;  %v4731_v60 = vpack.c.bf16 %v4706_v30, %v4705_v9  ;;  %v7279_v30 = vld [vmem:[%s10369_s3 + $0x28] sm:$0xff]  }
0x13bb   : > { %v7656_v32 = vpop.eup %7655  ;;  %7673 = vrcp.f32 %v4657_v34  ;;  %v4713_v4 = vmul.f32 %v7654_v42, %v9801_v11  ;;  %v4734_v10 = vpack.c.bf16 %v4712_v36, %v4711_v40  ;;  %v4715_v34 = vmul.f32 %v7652_v6, %v9789_v61 }
0x13bc   : > { %v7658_v16 = vpop.eup %7657  ;;  %6976 = vmatprep.mubr.msk.bf16.mxu0 %vm542_vm0, %v4731_v60  ;;  %v4714_v2 = vmul.f32 %v7656_v32, %v9838_v13 }
0x13bd   : > { %v4908_v29 = vpop.permute.xlu0 %4907  ;;  %v7660_v31 = vpop.eup %7659  ;;  %6977 = vmatmul.mubr.msk.bf16.gmra.mxu0 %vm542_vm0, %v4732_v25  ;;  %v4719_v28 = vmul.f32 %v7658_v16, %v9812_v39  ;;  %v7280_v25 = vld [vmem:[%s10369_s3 + $0x20] sm:$0xff]  }
0x13be   : > { %6982 = vmatprep.subr.bf16.mxu1 %v4908_v29  ;;  %v7662_v57 = vpop.eup %7661  ;;  %v4735_v62 = vpack.c.bf16 %v4714_v2, %v4713_v4  ;;  %v4717_v51 = vmul.f32 %v7660_v31, %v9821_v43 }
0x13bf   : > { %6983 = vmatpush3.bf16.msra.mxu1 %v4908_v29  ;;  %v7664_v52 = vpop.eup %7663  ;;  %v4716_v33 = vmul.f32 %v7662_v57, %v9816_v18 }
0x13c0   : > { %v7666_v38 = vpop.eup %7665  ;;  %v4720_v13 = vmul.f32 %v7664_v52, %v9842_v15  ;;  %7004 = vmatprep.subr.bf16.mxu1 %v7279_v30 }
0x13c1   : > { %v7668_v50 = vpop.eup %7667  ;;  %v4722_v11 = vmul.f32 %v7666_v38, %v9848_v19  ;;  %v4736_v15 = vpack.c.bf16 %v4716_v33, %v4715_v34 }
0x13c2   : > { %6985 = vmatmul.mubr.msk.bf16.vlgmr.msra.gmra.mxu1 %vm542_vm0, %v4734_v10  ;;  %v4721_v23 = vmul.f32 %v7668_v50, %v9840_v59  ;;  %v4738_v5 = vpack.c.bf16 %v4720_v13, %v4719_v28 }
0x13c3   : > { %v7670_v44 = vpop.eup %7669  ;;  %6988 = vmatprep.mubr.msk.bf16.mxu1 %vm542_vm0, %v4735_v62  ;;  %7005 = vmatpush3.bf16.msra.mxu1 %v7279_v30 }
0x13c4   : > { %v4718_v53 = vmul.f32 %v7670_v44, %v9854_v21  ;;  %v4739_v12 = vpack.c.bf16 %v4722_v11, %v4721_v23  ;;  %7006 = vmatprep.subr.bf16.mxu1 %v7280_v25 }
0x13c6   : > { %v4737_v37 = vpack.c.bf16 %v4718_v53, %v4717_v51 }
0x13c7   : > { %v7672_v48 = vpop.eup %7671  ;;  %7007 = vmatpush3.bf16.msra.mxu1 %v7280_v25 }
0x13c8   : > { %6996 = vmatprep.mubr.msk.bf16.mxu0 %vm542_vm0, %v4737_v37  ;;  %v7674_v43 = vpop.eup %7673  ;;  %v4724_v39 = vmul.f32 %v7672_v48, %v9858_v46 }
0x13c9   : > { %6997 = vmatmul.mubr.msk.bf16.vlgmr.msra.gmra.mxu0 %vm542_vm0, %v4738_v5  ;;  %v4723_v18 = vmul.f32 %v7674_v43, %v9832_v0 }
0x13ca   : > { %6989 = vmatmul.mubr.msk.bf16.gmra.mxu1 %vm542_vm0, %v4736_v15  ;;  %7000 = vmatprep.mubr.msk.bf16.mxu0 %vm542_vm0, %v4739_v12 }
0x13cb   : > { %v4740_v61 = vpack.c.bf16 %v4724_v39, %v4723_v18 }
0x13d1   : > { %7001 = vmatmul.mubr.msk.bf16.gmra.mxu0 %vm542_vm0, %v4740_v61 }
0x1421   : > { %v9916_v19 = vpop.f32.mrf.mxu1 }
0x1423   : > { %v9918_v63 = vpop.f32.mrf.mxu1 }
0x1425   : > { %v9922_v46 = vpop.f32.mrf.mxu1 }
0x1427   : > { %v9924_v0 = vpop.f32.mrf.mxu1 }
0x1429   : > { %v9926_v3 = vpop.f32.mrf.mxu1 }
0x142b   : > { %v9928_v55 = vpop.f32.mrf.mxu1 }
0x142d   : > { %v9930_v1 = vpop.f32.mrf.mxu1 }
0x142f   : > { %v9932_v22 = vpop.f32.mrf.mxu1 }
0x1461   : > { %v6974_v59 = vpop.f32.mrf.mxu0 }
0x1463   : > { %v4876_v21 = vpop.f32.mrf.mxu0 }
0x1465   : > { %v6975_v49 = vpop.f32.mrf.mxu0 }
0x1466   : > { %v7199_v56 = vpack.i.bf16 %v6975_v49, %v6974_v59 }
0x1467   : > { %v4879_v14 = vpop.f32.mrf.mxu0 }
0x1468   : > { %v7209_v20 = vpack.i.bf16 %v4879_v14, %v4876_v21  ;;  %7200 = vrot.lane.b32.xlu1 %v7199_v56, %s7760_s21 }
0x146a   : > { %7210 = vrot.lane.b32.xlu0 %v7209_v20, %s7760_s21 }
0x147d   : > { %v6978_v17 = vpop.f32.mrf.mxu0 }
0x147f   : > { %v4892_v45 = vpop.f32.mrf.mxu0 }
0x1481   : > { %v6979_v6 = vpop.f32.mrf.mxu0 }
0x1482   : > { %v6986_v9 = vpop.f32.mrf.mxu1  ;;  %v7219_v31 = vpack.i.bf16 %v6979_v6, %v6978_v17 }
0x1483   : > { %v4895_v60 = vpop.f32.mrf.mxu0 }
0x1484   : > { %v4959_v41 = vpop.f32.mrf.mxu1  ;;  %v7224_v4 = vpack.i.bf16 %v4895_v60, %v4892_v45 }
0x1486   : > { %v6987_v42 = vpop.f32.mrf.mxu1 }
0x1487   : > { %v7204_v32 = vpack.i.bf16 %v6987_v42, %v6986_v9 }
0x1488   : > { %v4962_v36 = vpop.f32.mrf.mxu1 }
0x1489   : > { %v7214_v16 = vpack.i.bf16 %v4962_v36, %v4959_v41  ;;  %v6998_v29 = vpop.f32.mrf.mxu0  ;;  %7205 = vrot.lane.b32.xlu1 %v7204_v32, %s10387_s25 }
0x148a   : > { %v6990_v2 = vpop.f32.mrf.mxu1 }
0x148b   : > { %v5042_v40 = vpop.f32.mrf.mxu0  ;;  %7215 = vrot.lane.b32.xlu0 %v7214_v16, %s10387_s25 }
0x148c   : > { %v4975_v57 = vpop.f32.mrf.mxu1 }
0x148d   : > { %v6999_v52 = vpop.f32.mrf.mxu0  ;;  %7220 = vrot.lane.b32.xlu1 %v7219_v31, %s7760_s21 }
0x148e   : > { %v7229_v10 = vpack.i.bf16 %v6999_v52, %v6998_v29  ;;  %v6991_v38 = vpop.f32.mrf.mxu1 }
0x148f   : > { %v5045_v62 = vpop.f32.mrf.mxu0  ;;  %7225 = vrot.lane.b32.xlu0 %v7224_v4, %s7760_s21  ;;  %v7244_v51 = vpack.i.bf16 %v6991_v38, %v6990_v2 }
0x1490   : > { %v7234_v50 = vpack.i.bf16 %v5045_v62, %v5042_v40  ;;  %v4978_v13 = vpop.f32.mrf.mxu1 }
0x1491   : > { %v7002_v44 = vpop.f32.mrf.mxu0  ;;  %7230 = vrot.lane.b32.xlu1 %v7229_v10, %s10388_s30  ;;  %v7239_v33 = vpack.i.bf16 %v4978_v13, %v4975_v57 }
0x1493   : > { %v5058_v53 = vpop.f32.mrf.mxu0  ;;  %7235 = vrot.lane.b32.xlu0 %v7234_v50, %s10388_s30 }
0x1495   : > { %v7003_v11 = vpop.f32.mrf.mxu0  ;;  %7245 = vrot.lane.b32.xlu1 %v7244_v51, %s10387_s25 }
0x1496   : > { %v7254_v28 = vpack.i.bf16 %v7003_v11, %v7002_v44 }
0x1497   : > { %v5061_v37 = vpop.f32.mrf.mxu0  ;;  %7240 = vrot.lane.b32.xlu0 %v7239_v33, %s10387_s25 }
0x1498   : > { %v7249_v34 = vpack.i.bf16 %v5061_v37, %v5058_v53 }
0x1499   : > { %7255 = vrot.lane.b32.xlu1 %v7254_v28, %s10388_s30 }
0x149b   : > { %7250 = vrot.lane.b32.xlu0 %v7249_v34, %s10388_s30 }
0x14da   : > { %v7201_v23 = vpop.permute.xlu1 %7200 }
0x14db   : > { %v7203_v43 = vunpack.i.h.bf16 %v7201_v23  ;;  %v7202_v39 = vunpack.i.l.bf16 %v7201_v23 }
0x14dc   : > { %v7211_v5 = vpop.permute.xlu0 %7210 }
0x14dd   : > { %v7213_v18 = vunpack.i.h.bf16 %v7211_v5  ;;  %v7212_v61 = vunpack.i.l.bf16 %v7211_v5  ;;  %v5172_v9 = vsel %vm660_vm1, %v9922_v46, %v7203_v43  ;;  %v5171_v30 = vsel %vm660_vm1, %v9916_v19, %v7202_v39 }
0x14df   : > { %v5170_v6 = vsel %vm660_vm1, %v9924_v0, %v7213_v18  ;;  %v5169_v41 = vsel %vm660_vm1, %v9918_v63, %v7212_v61 }
0x14fb   : > { %v7206_v48 = vpop.permute.xlu1 %7205 }
0x14fc   : > { %v7208_v21 = vunpack.i.h.bf16 %v7206_v48  ;;  %v7207_v49 = vunpack.i.l.bf16 %v7206_v48 }
0x14fd   : > { %v7216_v15 = vpop.permute.xlu0 %7215 }
0x14fe   : > { %v7218_v56 = vunpack.i.h.bf16 %v7216_v15  ;;  %v7217_v14 = vunpack.i.l.bf16 %v7216_v15  ;;  %v5180_v60 = vsel %vm1870_vm3, %v5172_v9, %v7208_v21  ;;  %v5179_v32 = vsel %vm1870_vm3, %v5171_v30, %v7207_v49  ;;  %v6283_v21 = vld [vmem:[%s10370_s4 + $0x2] ss:$0 sm:$0xff] }
0x14ff   : > { %v7221_v12 = vpop.permute.xlu1 %7220 }
0x1500   : > { %v5177_v16 = vsel %vm1870_vm3, %v5169_v41, %v7217_v14  ;;  %v5178_v46 = vsel %vm1870_vm3, %v5170_v6, %v7218_v56  ;;  %v7223_v0 = vunpack.i.h.bf16 %v7221_v12  ;;  %v7222_v40 = vunpack.i.l.bf16 %v7221_v12 }
0x1501   : > { %v7226_v59 = vpop.permute.xlu0 %7225 }
0x1502   : > { %v7228_v57 = vunpack.i.h.bf16 %v7226_v59  ;;  %v7227_v4 = vunpack.i.l.bf16 %v7226_v59  ;;  %v5176_v11 = vsel %vm660_vm1, %v9930_v1, %v7223_v0  ;;  %v5175_v28 = vsel %vm660_vm1, %v9926_v3, %v7222_v40 }
0x1503   : > { %v7231_v20 = vpop.permute.xlu1 %7230 }
0x1504   : > { %v7233_v17 = vunpack.i.h.bf16 %v7231_v20  ;;  %v7232_v45 = vunpack.i.l.bf16 %v7231_v20  ;;  %v5174_v37 = vsel %vm660_vm1, %v9932_v22, %v7228_v57  ;;  %v5173_v34 = vsel %vm660_vm1, %v9928_v55, %v7227_v4 }
0x1505   : > { %v7236_v42 = vpop.permute.xlu0 %7235 }
0x1506   : > { %v7238_v36 = vunpack.i.h.bf16 %v7236_v42  ;;  %v7237_v25 = vunpack.i.l.bf16 %v7236_v42  ;;  %v5187_v29 = vsel %vm1879_vm4, %v5179_v32, %v7232_v45  ;;  %v5188_v19 = vsel %vm1879_vm4, %v5180_v60, %v7233_v17 }
0x1507   : > { %v7246_v2 = vpop.permute.xlu1 %7245  ;;  %v5199_v38 = vpack.c.bf16 %v5188_v19, %v5187_v29 }
0x1508   : > { %v5185_v31 = vsel %vm1879_vm4, %v5177_v16, %v7237_v25  ;;  %v5186_v63 = vsel %vm1879_vm4, %v5178_v46, %v7238_v36  ;;  %v7248_v62 = vunpack.i.h.bf16 %v7246_v2  ;;  %v7247_v50 = vunpack.i.l.bf16 %v7246_v2 }
0x1509   : > { %v5198_v52 = vpack.c.bf16 %v5186_v63, %v5185_v31  ;;  %v7241_v10 = vpop.permute.xlu0 %7240 }
0x150a   : > { %v7243_v44 = vunpack.i.h.bf16 %v7241_v10  ;;  %v7242_v13 = vunpack.i.l.bf16 %v7241_v10  ;;  %v5184_v5 = vsel %vm1870_vm3, %v5176_v11, %v7248_v62  ;;  %v5183_v48 = vsel %vm1870_vm3, %v5175_v28, %v7247_v50 }
0x150b   : > { %v7256_v51 = vpop.permute.xlu1 %7255  ;;  %7008 = vmatprep.mubr.msk.bf16.mxu1 %vm542_vm0, %v5198_v52 }
0x150c   : > { %v7258_v53 = vunpack.i.h.bf16 %v7256_v51  ;;  %v7257_v33 = vunpack.i.l.bf16 %v7256_v51  ;;  %7009 = vmatmul.mubr.msk.bf16.vlgmr.msra.gmra.mxu1 %vm542_vm0, %v5199_v38  ;;  %v5181_v43 = vsel %vm1870_vm3, %v5173_v34, %v7242_v13  ;;  %v5182_v1 = vsel %vm1870_vm3, %v5174_v37, %v7243_v44 }
0x150d   : > { %v7251_v23 = vpop.permute.xlu0 %7250 }
0x150e   : > { %v7253_v15 = vunpack.i.h.bf16 %v7251_v23  ;;  %v7252_v12 = vunpack.i.l.bf16 %v7251_v23  ;;  %v5191_v39 = vsel %vm1879_vm4, %v5183_v48, %v7257_v33  ;;  %v5192_v3 = vsel %vm1879_vm4, %v5184_v5, %v7258_v53 }
0x150f   : > { %v5201_v61 = vpack.c.bf16 %v5192_v3, %v5191_v39 }
0x1510   : > { %v5189_v22 = vsel %vm1879_vm4, %v5181_v43, %v7252_v12  ;;  %v5190_v18 = vsel %vm1879_vm4, %v5182_v1, %v7253_v15 }
0x1511   : > { %v5200_v55 = vpack.c.bf16 %v5190_v18, %v5189_v22 }
0x1513   : > { %7012 = vmatprep.mubr.msk.bf16.mxu1 %vm542_vm0, %v5200_v55 }
0x1514   : > { %7013 = vmatmul.mubr.msk.bf16.gmra.mxu1 %vm542_vm0, %v5201_v61 }
0x15cc   : > { %v7010_v59 = vpop.f32.mrf.mxu1 }
0x15cd   : > { %v5277_v56 = vadd.f32 %v7010_v59, %v6283_v21 }
0x15ce   : > { %v5268_v49 = vpop.f32.mrf.mxu1 }
0x15cf   : > { %v5269_v14 = vadd.f32 %v6283_v21, %v5268_v49  ;;  %v5301_v30 = vadd.f32 %v5277_v56, %v8956_v35 }
0x15d0   : > { %v7011_v20 = vpop.f32.mrf.mxu1 }
0x15d1   : > { %v5299_v17 = vadd.f32 %v5269_v14, %v8952_v58  ;;  %v5280_v45 = vadd.f32 %v7011_v20, %v6283_v21  ;;  %v5317_v58 = vsel %vm542_vm0, %v5301_v30, 0.0 }
0x15d2   : > { %v5271_v9 = vpop.f32.mrf.mxu1 }
0x15d3   : > { %v5272_v6 = vadd.f32 %v6283_v21, %v5271_v9  ;;  %v5311_v41 = vsel %vm542_vm0, %v5299_v17, 0.0  ;;  %v5302_v32 = vadd.f32 %v5280_v45, %v8950_v24 }
0x15d4   : > { %v7014_v42 = vpop.f32.mrf.mxu1  ;;  %5312 = vadd.xlane.f32.xlu0 %v5311_v41  ;;  %v7282_v41 = vld [vmem:[%s10371_s5 + $0x10] sm:$0xff]  }
0x15d5   : > { %v5300_v60 = vadd.f32 %v5272_v6, %v8954_v54  ;;  %v5293_v25 = vadd.f32 %v7014_v42, %v6283_v21  ;;  %v5320_v2 = vsel %vm542_vm0, %v5302_v32, 0.0  ;;  %v7281_v6 = vld [vmem:[%s10371_s5 + $0x18] sm:$0xff]  }
0x15d6   : > { %v5284_v36 = vpop.f32.mrf.mxu1  ;;  %7016 = vmatprep.subr.bf16.mxu0 %v7281_v6 }
0x15d7   : > { %v5285_v16 = vadd.f32 %v6283_v21, %v5284_v36  ;;  %v5314_v46 = vsel %vm542_vm0, %v5300_v60, 0.0  ;;  %v5305_v0 = vadd.f32 %v5293_v25, %v8980_v27  ;;  %7017 = vmatpush3.bf16.msra.mxu0 %v7281_v6 }
0x15d8   : > { %v7015_v29 = vpop.f32.mrf.mxu1  ;;  %5315 = vadd.xlane.f32.xlu1 %v5314_v46  ;;  %5318 = vadd.xlane.f32.xlu0 %v5317_v58 }
0x15d9   : > { %v5303_v35 = vadd.f32 %v5285_v16, %v8976_v26  ;;  %v5296_v54 = vadd.f32 %v7015_v29, %v6283_v21  ;;  %v5329_v57 = vsel %vm542_vm0, %v5305_v0, 0.0  ;;  %7018 = vmatprep.subr.bf16.mxu0 %v7282_v41 }
0x15da   : > { %v5287_v19 = vpop.f32.mrf.mxu1 }
0x15db   : > { %v5288_v31 = vadd.f32 %v6283_v21, %v5287_v19  ;;  %v5323_v24 = vsel %vm542_vm0, %v5303_v35, 0.0  ;;  %v5306_v40 = vadd.f32 %v5296_v54, %v8974_v8  ;;  %7019 = vmatpush3.bf16.msra.mxu0 %v7282_v41  ;;  %v7283_v41 = vld [vmem:[%s10373_s7 + $0x78] sm:$0xff]  }
0x15dc   : > { %5324 = vadd.xlane.f32.xlu1 %v5323_v24  ;;  %5321 = vadd.xlane.f32.xlu0 %v5320_v2 }
0x15dd   : > { %v5304_v63 = vadd.f32 %v5288_v31, %v8978_v7  ;;  %v5332_v26 = vsel %vm542_vm0, %v5306_v40, 0.0  ;;  %7028 = vmatprep.subr.bf16.mxu1 %v7283_v41 }
0x15de   : > { %7029 = vmatpush3.bf16.msra.mxu1 %v7283_v41 }
0x15df   : > { %v5326_v4 = vsel %vm542_vm0, %v5304_v63, 0.0 }
0x15e0   : > { %5330 = vadd.xlane.f32.xlu1 %v5329_v57  ;;  %5327 = vadd.xlane.f32.xlu0 %v5326_v4 }
0x15e4   : > { %5333 = vadd.xlane.f32.xlu0 %v5332_v26 }
0x165d   : > { %v5313_v27 = vpop.xlane.xlu0 %5312 }
0x165e   : > { %v5335_v52 = vmul.f32 0.03125, %v5313_v27 }
0x1660   : > { %v10005_v10 = vsub.f32 %v5299_v17, %v5335_v52 }
0x1661   : > { %v5316_v38 = vpop.xlane.xlu1 %5315  ;;  %v5319_v62 = vpop.xlane.xlu0 %5318 }
0x1662   : > { %v5336_v50 = vmul.f32 0.03125, %v5316_v38  ;;  %v5337_v44 = vmul.f32 0.03125, %v5319_v62  ;;  %v5351_v8 = vmul.f32 %v10005_v10, %v10005_v10 }
0x1664   : > { %v10009_v7 = vsub.f32 %v5300_v60, %v5336_v50  ;;  %v10011_v13 = vsub.f32 %v5301_v30, %v5337_v44  ;;  %v5359_v51 = vsel %vm542_vm0, %v5351_v8, 0.0  ;;  %v6292_v44 = vld [vmem:[%s10375_s9 + $0x2] ss:$0 sm:$0xff] }
0x1665   : > { %v5325_v53 = vpop.xlane.xlu1 %5324  ;;  %5360 = vadd.xlane.f32.xlu1 %v5359_v51  ;;  %v5322_v33 = vpop.xlane.xlu0 %5321 }
0x1666   : > { %v5339_v11 = vmul.f32 0.03125, %v5325_v53  ;;  %v5338_v28 = vmul.f32 0.03125, %v5322_v33  ;;  %v5352_v37 = vmul.f32 %v10009_v7, %v10009_v7  ;;  %v5353_v34 = vmul.f32 %v10011_v13, %v10011_v13  ;;  %v6293_v33 = vld [vmem:[%s10376_s10 + $0x2] ss:$0 sm:$0xff] }
0x1668   : > { %v10018_v23 = vsub.f32 %v5303_v35, %v5339_v11  ;;  %v10020_v5 = vsub.f32 %v5302_v32, %v5338_v28  ;;  %v5362_v48 = vsel %vm542_vm0, %v5352_v37, 0.0  ;;  %v5365_v15 = vsel %vm542_vm0, %v5353_v34, 0.0 }
0x1669   : > { %v5331_v12 = vpop.xlane.xlu1 %5330  ;;  %5363 = vadd.xlane.f32.xlu0 %v5362_v48  ;;  %5366 = vadd.xlane.f32.xlu1 %v5365_v15  ;;  %v5328_v43 = vpop.xlane.xlu0 %5327 }
0x166a   : > { %v5341_v1 = vmul.f32 0.03125, %v5331_v12  ;;  %v5340_v39 = vmul.f32 0.03125, %v5328_v43  ;;  %v5355_v3 = vmul.f32 %v10018_v23, %v10018_v23  ;;  %v5354_v22 = vmul.f32 %v10020_v5, %v10020_v5 }
0x166c   : > { %v10028_v18 = vsub.f32 %v5305_v0, %v5341_v1  ;;  %v10030_v55 = vsub.f32 %v5304_v63, %v5340_v39  ;;  %v5371_v61 = vsel %vm542_vm0, %v5355_v3, 0.0  ;;  %v5368_v59 = vsel %vm542_vm0, %v5354_v22, 0.0 }
0x166d   : > { %5372 = vadd.xlane.f32.xlu1 %v5371_v61  ;;  %5369 = vadd.xlane.f32.xlu0 %v5368_v59  ;;  %v5334_v21 = vpop.xlane.xlu0 %5333 }
0x166e   : > { %v5342_v49 = vmul.f32 0.03125, %v5334_v21  ;;  %v5357_v56 = vmul.f32 %v10028_v18, %v10028_v18  ;;  %v5356_v14 = vmul.f32 %v10030_v55, %v10030_v55 }
0x1670   : > { %v10038_v20 = vsub.f32 %v5306_v40, %v5342_v49  ;;  %v5377_v17 = vsel %vm542_vm0, %v5357_v56, 0.0  ;;  %v5374_v45 = vsel %vm542_vm0, %v5356_v14, 0.0 }
0x1671   : > { %5378 = vadd.xlane.f32.xlu1 %v5377_v17  ;;  %5375 = vadd.xlane.f32.xlu0 %v5374_v45 }
0x1672   : > { %v5358_v9 = vmul.f32 %v10038_v20, %v10038_v20 }
0x1674   : > { %v5380_v30 = vsel %vm542_vm0, %v5358_v9, 0.0 }
0x1675   : > { %5381 = vadd.xlane.f32.xlu0 %v5380_v30 }
0x16ee   : > { %v5361_v42 = vpop.xlane.xlu1 %5360 }
0x16ef   : > { %v5383_v60 = vmul.f32 0.03125, %v5361_v42  ;;  %v7284_v42 = vld [vmem:[%s10373_s7 + $0x70] sm:$0xff]  }
0x16f0   : > { %7030 = vmatprep.subr.bf16.mxu1 %v7284_v42 }
0x16f1   : > { %v5391_v32 = vadd.f32 1e-05, %v5383_v60  ;;  %7031 = vmatpush3.bf16.msra.mxu1 %v7284_v42  ;;  %v7285_v60 = vld [vmem:[%s10373_s7 + $0x68] sm:$0xff]  }
0x16f2   : > { %v5367_v36 = vpop.xlane.xlu1 %5366  ;;  %v5364_v25 = vpop.xlane.xlu0 %5363  ;;  %7032 = vmatprep.subr.bf16.mxu1 %v7285_v60 }
0x16f3   : > { %7675 = vrsqrt.f32 %v5391_v32  ;;  %v5385_v16 = vmul.f32 0.03125, %v5367_v36  ;;  %v5384_v46 = vmul.f32 0.03125, %v5364_v25  ;;  %v7286_v32 = vld [vmem:[%s10373_s7 + $0x60] sm:$0xff]   ;;  %v7287_v36 = vld [vmem:[%s10373_s7 + $0x58] sm:$0xff]   ;;  %v7288_v25 = vld [vmem:[%s10373_s7 + $0x50] sm:$0xff]  }
0x16f5   : > { %v5393_v58 = vadd.f32 1e-05, %v5385_v16  ;;  %v5392_v29 = vadd.f32 1e-05, %v5384_v46  ;;  %7033 = vmatpush3.bf16.msra.mxu1 %v7285_v60  ;;  %v7289_v16 = vld [vmem:[%s10373_s7 + $0x48] sm:$0xff]   ;;  %v7290_v46 = vld [vmem:[%s10373_s7 + $0x40] sm:$0xff]  }
0x16f6   : > { %v5373_v35 = vpop.xlane.xlu1 %5372  ;;  %v5370_v19 = vpop.xlane.xlu0 %5369  ;;  %7034 = vmatprep.subr.bf16.mxu1 %v7286_v32 }
0x16f7   : > { %7677 = vrsqrt.f32 %v5393_v58  ;;  %v5387_v2 = vmul.f32 0.03125, %v5373_v35  ;;  %v5386_v0 = vmul.f32 0.03125, %v5370_v19  ;;  %v6299_v58 = vld [vmem:[%s10372_s6 + $0x1] ss:$0 sm:$0xff] }
0x16f8   : > { %7679 = vrsqrt.f32 %v5392_v29 }
0x16f9   : > { %v5395_v54 = vadd.f32 1e-05, %v5387_v2  ;;  %v5394_v31 = vadd.f32 1e-05, %v5386_v0  ;;  %7035 = vmatpush3.bf16.msra.mxu1 %v7286_v32 }
0x16fa   : > { %v5379_v24 = vpop.xlane.xlu1 %5378  ;;  %v5376_v63 = vpop.xlane.xlu0 %5375  ;;  %7036 = vmatprep.subr.bf16.mxu1 %v7287_v36 }
0x16fb   : > { %7681 = vrsqrt.f32 %v5395_v54  ;;  %v5389_v40 = vmul.f32 0.03125, %v5379_v24  ;;  %v5388_v57 = vmul.f32 0.03125, %v5376_v63 }
0x16fc   : > { %7683 = vrsqrt.f32 %v5394_v31 }
0x16fd   : > { %v5397_v4 = vadd.f32 1e-05, %v5389_v40  ;;  %v5396_v26 = vadd.f32 1e-05, %v5388_v57  ;;  %7037 = vmatpush3.bf16.msra.mxu1 %v7287_v36 }
0x16fe   : > { %v5382_v27 = vpop.xlane.xlu0 %5381  ;;  %7038 = vmatprep.subr.bf16.mxu1 %v7288_v25 }
0x16ff   : > { %7685 = vrsqrt.f32 %v5397_v4  ;;  %v5390_v52 = vmul.f32 0.03125, %v5382_v27 }
0x1700   : > { %v7676_v38 = vpop.eup %7675  ;;  %7687 = vrsqrt.f32 %v5396_v26 }
0x1701   : > { %v5398_v62 = vadd.f32 1e-05, %v5390_v52  ;;  %v5407_v50 = vmul.f32 %v7676_v38, %v10005_v10  ;;  %7039 = vmatpush3.bf16.msra.mxu1 %v7288_v25 }
0x1702   : > { %7040 = vmatprep.subr.bf16.mxu1 %v7289_v16 }
0x1703   : > { %7689 = vrsqrt.f32 %v5398_v62  ;;  %v5421_v53 = vmul.f32 %v6292_v44, %v5407_v50 }
0x1704   : > { %v7678_v8 = vpop.eup %7677 }
0x1705   : > { %v7680_v51 = vpop.eup %7679  ;;  %v5409_v11 = vmul.f32 %v7678_v8, %v10011_v13  ;;  %v10060_v10 = vadd.f32 %v6293_v33, %v5421_v53  ;;  %7041 = vmatpush3.bf16.msra.mxu1 %v7289_v16 }
0x1706   : > { %v5408_v28 = vmul.f32 %v7680_v51, %v10009_v7  ;;  %7042 = vmatprep.subr.bf16.mxu1 %v7290_v46 }
0x1707   : > { %v5423_v15 = vmul.f32 %v6292_v44, %v5409_v11 }
0x1708   : > { %v7682_v37 = vpop.eup %7681  ;;  %v5422_v34 = vmul.f32 %v6292_v44, %v5408_v28 }
0x1709   : > { %v7684_v48 = vpop.eup %7683  ;;  %v5411_v1 = vmul.f32 %v7682_v37, %v10018_v23  ;;  %v10069_v61 = vadd.f32 %v6293_v33, %v5423_v15  ;;  %7043 = vmatpush3.bf16.msra.mxu1 %v7290_v46 }
0x170a   : > { %v5410_v12 = vmul.f32 %v7684_v48, %v10020_v5  ;;  %v10063_v43 = vadd.f32 %v6293_v33, %v5422_v34 }
0x170b   : > { %v5425_v21 = vmul.f32 %v6292_v44, %v5411_v1 }
0x170c   : > { %v7686_v39 = vpop.eup %7685  ;;  %v5424_v3 = vmul.f32 %v6292_v44, %v5410_v12  ;;  %v5448_v22 = vpack.c.bf16 %v10063_v43, %v10060_v10 }
0x170d   : > { %v7688_v13 = vpop.eup %7687  ;;  %v5413_v7 = vmul.f32 %v7686_v39, %v10028_v18  ;;  %v10079_v18 = vadd.f32 %v6293_v33, %v5425_v21 }
0x170e   : > { %v10071_v59 = vadd.f32 %v6293_v33, %v5424_v3  ;;  %7020 = vmatprep.mubr.msk.bf16.mxu0 %vm542_vm0, %v5448_v22  ;;  %v5412_v5 = vmul.f32 %v7688_v13, %v10030_v55 }
0x170f   : > { %v5427_v17 = vmul.f32 %v6292_v44, %v5413_v7 }
0x1710   : > { %v7690_v49 = vpop.eup %7689  ;;  %v5449_v23 = vpack.c.bf16 %v10071_v59, %v10069_v61  ;;  %v5426_v56 = vmul.f32 %v6292_v44, %v5412_v5 }
0x1711   : > { %v5414_v14 = vmul.f32 %v7690_v49, %v10038_v20  ;;  %v10085_v55 = vadd.f32 %v6293_v33, %v5427_v17 }
0x1712   : > { %7021 = vmatmul.mubr.msk.bf16.vlgmr.msra.gmra.mxu0 %vm542_vm0, %v5449_v23  ;;  %v10081_v45 = vadd.f32 %v6293_v33, %v5426_v56 }
0x1713   : > { %v5428_v9 = vmul.f32 %v6292_v44, %v5414_v14 }
0x1714   : > { %v5450_v30 = vpack.c.bf16 %v10081_v45, %v10079_v18 }
0x1715   : > { %v10087_v6 = vadd.f32 %v6293_v33, %v5428_v9 }
0x1716   : > { %7024 = vmatprep.mubr.msk.bf16.mxu0 %vm542_vm0, %v5450_v30 }
0x1717   : > { %v5451_v20 = vpack.c.bf16 %v10087_v6, %v10085_v55 }
0x171a   : > { %7025 = vmatmul.mubr.msk.bf16.gmra.mxu0 %vm542_vm0, %v5451_v20 }
0x17d2   : > { %v7022_v29 = vpop.f32.mrf.mxu0 }
0x17d3   : > { %v10120_v35 = vadd.f32 %v7022_v29, %v6299_v58 }
0x17d4   : > { %v5518_v19 = vpop.f32.mrf.mxu0 }
0x17d5   : > { %v10123_v2 = vmul.f32 0.70710677, %v10120_v35  ;;  %v10125_v0 = vadd.f32 %v6299_v58, %v5518_v19 }
0x17d6   : > { %v7023_v54 = vpop.f32.mrf.mxu0 }
0x17d7   : > { %v5583_v31 = vand.u32 2147483647, %v10123_v2  ;;  %v10129_v24 = vmul.f32 0.70710677, %v10125_v0  ;;  %v10131_v63 = vadd.f32 %v7023_v54, %v6299_v58  ;;  %vm5567_vm13 = vcmp.ge.f32.partialorder %v10123_v2, 0.0 }
0x17d8   : > { %v5521_v40 = vpop.f32.mrf.mxu0 }
0x17d9   : > { %v5591_v57 = vmul.f32 0.3275911, %v5583_v31  ;;  %v5581_v4 = vand.u32 2147483647, %v10129_v24  ;;  %v10135_v26 = vmul.f32 0.70710677, %v10131_v63  ;;  %v10137_v27 = vadd.f32 %v6299_v58, %v5521_v40 }
0x17da   : > { %v7026_v52 = vpop.f32.mrf.mxu0  ;;  %v5695_v15 = vsub.f32 0.0, %v5583_v31  ;;  %vm5565_vm14 = vcmp.ge.f32.partialorder %v10129_v24, 0.0 }
0x17db   : > { %v5599_v38 = vadd.f32 1.0, %v5591_v57  ;;  %v5589_v62 = vmul.f32 0.3275911, %v5581_v4  ;;  %v5584_v50 = vand.u32 2147483647, %v10135_v26  ;;  %v10144_v28 = vadd.f32 %v7026_v52, %v6299_v58 }
0x17dc   : > { %v10141_v44 = vmul.f32 0.70710677, %v10137_v27  ;;  %v5534_v8 = vpop.f32.mrf.mxu0  ;;  %v5693_v3 = vsub.f32 0.0, %v5581_v4  ;;  %v5703_v5 = vmul.f32 %v5695_v15, %v5583_v31  ;;  %vm5568_vm15 = vcmp.ge.f32.partialorder %v10135_v26, 0.0 }
0x17dd   : > { %7691 = vrcp.f32 %v5599_v38  ;;  %v5597_v51 = vadd.f32 1.0, %v5589_v62  ;;  %v5592_v53 = vmul.f32 0.3275911, %v5584_v50  ;;  %v10146_v48 = vadd.f32 %v6299_v58, %v5534_v8 }
0x17de   : > { %v5582_v33 = vand.u32 2147483647, %v10141_v44  ;;  %v7027_v37 = vpop.f32.mrf.mxu0  ;;  %v10149_v12 = vmul.f32 0.70710677, %v10144_v28  ;;  %v5696_v23 = vsub.f32 0.0, %v5584_v50  ;;  %v5701_v17 = vmul.f32 %v5693_v3, %v5581_v4 }
0x17df   : > { %7693 = vrcp.f32 %v5597_v51  ;;  %v5600_v11 = vadd.f32 1.0, %v5592_v53  ;;  %v10152_v39 = vmul.f32 0.70710677, %v10146_v48  ;;  %v10155_v13 = vadd.f32 %v7027_v37, %v6299_v58 }
0x17e0   : > { %v5590_v34 = vmul.f32 0.3275911, %v5582_v33  ;;  %v5587_v22 = vand.u32 2147483647, %v10149_v12  ;;  %v5537_v7 = vpop.f32.mrf.mxu0  ;;  %v5713_v60 = vmul.f32 1.442695, %v5703_v5  ;;  %v5704_v25 = vmul.f32 %v5696_v23, %v5584_v50 }
0x17e1   : > { %7695 = vrcp.f32 %v5600_v11  ;;  %v5585_v49 = vand.u32 2147483647, %v10152_v39  ;;  %v10159_v56 = vmul.f32 0.70710677, %v10155_v13  ;;  %v10161_v14 = vadd.f32 %v6299_v58, %v5537_v7 }
0x17e2   : > { %v5598_v1 = vadd.f32 1.0, %v5590_v34  ;;  %v5595_v21 = vmul.f32 0.3275911, %v5587_v22  ;;  %v5694_v16 = vsub.f32 0.0, %v5582_v33  ;;  %v5709_v58 = vmul.f32 1.442695, %v5701_v17 }
0x17e3   : > { %v5593_v30 = vmul.f32 0.3275911, %v5585_v49  ;;  %v5588_v20 = vand.u32 2147483647, %v10159_v56  ;;  %v10165_v41 = vmul.f32 0.70710677, %v10161_v14 }
0x17e4   : > { %7697 = vrcp.f32 %v5598_v1  ;;  %v5603_v9 = vadd.f32 1.0, %v5595_v21  ;;  %v5699_v31 = vsub.f32 0.0, %v5587_v22  ;;  %v5715_v62 = vmul.f32 1.442695, %v5704_v25 }
0x17e5   : > { %v5601_v32 = vadd.f32 1.0, %v5593_v30  ;;  %v5596_v46 = vmul.f32 0.3275911, %v5588_v20  ;;  %v10172_v29 = vand.u32 2147483647, %v10165_v41  ;;  %v5702_v50 = vmul.f32 %v5694_v16, %v5582_v33 }
0x17e6   : > { %7699 = vrcp.f32 %v5603_v9  ;;  %v5697_v53 = vsub.f32 0.0, %v5585_v49  ;;  %v10186_v37 = vsel %vm5567_vm13, 1.0, %v7763_v47  ;;  %v5707_v15 = vmul.f32 %v5699_v31, %v5587_v22 }
0x17e7   : > { %7701 = vrcp.f32 %v5601_v32  ;;  %v5604_v40 = vadd.f32 1.0, %v5596_v46  ;;  %v5594_v4 = vmul.f32 0.3275911, %v10172_v29  ;;  %v5700_v33 = vsub.f32 0.0, %v5588_v20 }
0x17e8   : > { %7703 = vpow2.f32 %v5713_v60  ;;  %v10195_v21 = vsel %vm5565_vm14, 1.0, %v7763_v47  ;;  %v5711_v23 = vmul.f32 1.442695, %v5702_v50  ;;  %v5705_v9 = vmul.f32 %v5697_v53, %v5585_v49 }
0x17e9   : > { %7705 = vrcp.f32 %v5604_v40  ;;  %v5602_v11 = vadd.f32 1.0, %v5594_v4  ;;  %v5721_v32 = vmul.f32 1.442695, %v5707_v15  ;;  %v5708_v16 = vmul.f32 %v5700_v33, %v5588_v20 }
0x17ea   : > { %v10167_v42 = vpop.eup %7691  ;;  %7707 = vpow2.f32 %v5709_v58  ;;  %v5576_v26 = vsel %vm5568_vm15, 1.0, %v7763_v47  ;;  %vm5566_vm1 = vcmp.ge.f32.partialorder %v10141_v44, 0.0  ;;  %vm5571_vm2 = vcmp.ge.f32.partialorder %v10149_v12, 0.0 }
0x17eb   : > { %v5623_v36 = vmul.f32 1.0614054, %v10167_v42  ;;  %7709 = vrcp.f32 %v5602_v11  ;;  %vm5569_vm3 = vcmp.ge.f32.partialorder %v10152_v39, 0.0  ;;  %vm5572_vm4 = vcmp.ge.f32.partialorder %v10159_v56, 0.0 }
0x17ec   : > { %v10174_v19 = vpop.eup %7693  ;;  %7711 = vpow2.f32 %v5715_v62  ;;  %v5580_v56 = vsel %vm5572_vm4, 1.0, %v7763_v47  ;;  %vm5570_vm5 = vcmp.ge.f32.partialorder %v10165_v41, 0.0  ;;  %v5555_v41 = vmul.f32 0.5, %v10144_v28 }
0x17ed   : > { %v5631_v54 = vadd.f32 -1.4531521, %v5623_v36  ;;  %v5621_v57 = vmul.f32 1.0614054, %v10174_v19  ;;  %7713 = vpow2.f32 %v5711_v23 }
0x17ee   : > { %v10179_v52 = vpop.eup %7695  ;;  %7715 = vpow2.f32 %v5721_v32 }
0x17ef   : > { %v5639_v38 = vmul.f32 %v10167_v42, %v5631_v54  ;;  %v5629_v8 = vadd.f32 -1.4531521, %v5621_v57  ;;  %v5624_v51 = vmul.f32 1.0614054, %v10179_v52  ;;  %v5698_v54 = vsub.f32 0.0, %v10172_v29 }
0x17f0   : > { %v5717_v57 = vmul.f32 1.442695, %v5705_v9 }
0x17f1   : > { %v5647_v34 = vadd.f32 1.4214138, %v5639_v38  ;;  %v10188_v1 = vpop.eup %7697  ;;  %v5637_v3 = vmul.f32 %v10174_v19, %v5629_v8  ;;  %v5632_v7 = vadd.f32 -1.4531521, %v5624_v51  ;;  %v5723_v51 = vmul.f32 1.442695, %v5708_v16 }
0x17f2   : > { %v5622_v2 = vmul.f32 1.0614054, %v10188_v1  ;;  %7717 = vpow2.f32 %v5717_v57 }
0x17f3   : > { %v5655_v5 = vmul.f32 %v10167_v42, %v5647_v34  ;;  %v5645_v17 = vadd.f32 1.4214138, %v5637_v3  ;;  %v5640_v22 = vmul.f32 %v10179_v52, %v5632_v7  ;;  %v10201_v24 = vpop.eup %7699  ;;  %v5706_v3 = vmul.f32 %v5698_v54, %v10172_v29 }
0x17f4   : > { %v5630_v60 = vadd.f32 -1.4531521, %v5622_v2  ;;  %v5627_v40 = vmul.f32 1.0614054, %v10201_v24  ;;  %v10209_v20 = vpop.eup %7701  ;;  %7719 = vpow2.f32 %v5723_v51 }
0x17f5   : > { %v5663_v30 = vadd.f32 -0.28449672, %v5655_v5  ;;  %v5653_v36 = vmul.f32 %v10174_v19, %v5645_v17  ;;  %v5648_v25 = vadd.f32 1.4214138, %v5640_v22  ;;  %v7704_v53 = vpop.eup %7703  ;;  %v5625_v15 = vmul.f32 1.0614054, %v10209_v20 }
0x17f6   : > { %v5638_v58 = vmul.f32 %v10188_v1, %v5630_v60  ;;  %v5635_v8 = vadd.f32 -1.4531521, %v5627_v40  ;;  %v10216_v7 = vpop.eup %7705 }
0x17f7   : > { %v5671_v46 = vmul.f32 %v10167_v42, %v5663_v30  ;;  %v5661_v31 = vadd.f32 -0.28449672, %v5653_v36  ;;  %v5656_v49 = vmul.f32 %v10179_v52, %v5648_v25  ;;  %v5633_v22 = vadd.f32 -1.4531521, %v5625_v15 }
0x17f8   : > { %v5646_v38 = vadd.f32 1.4214138, %v5638_v58  ;;  %v5643_v2 = vmul.f32 %v10201_v24, %v5635_v8  ;;  %v5628_v9 = vmul.f32 1.0614054, %v10216_v7 }
0x17f9   : > { %v5679_v4 = vadd.f32 0.2548296, %v5671_v46  ;;  %v5669_v62 = vmul.f32 %v10174_v19, %v5661_v31  ;;  %v5664_v50 = vadd.f32 -0.28449672, %v5656_v49  ;;  %v5641_v25 = vmul.f32 %v10209_v20, %v5633_v22 }
0x17fa   : > { %v5654_v34 = vmul.f32 %v10188_v1, %v5646_v38  ;;  %v5651_v32 = vadd.f32 1.4214138, %v5643_v2  ;;  %v5636_v16 = vadd.f32 -1.4531521, %v5628_v9  ;;  %v5719_v46 = vmul.f32 1.442695, %v5706_v3 }
0x17fb   : > { %v5687_v11 = vmul.f32 %v10167_v42, %v5679_v4  ;;  %v5677_v33 = vadd.f32 0.2548296, %v5669_v62  ;;  %v5672_v5 = vmul.f32 %v10179_v52, %v5664_v50  ;;  %v7708_v42 = vpop.eup %7707  ;;  %v5649_v4 = vadd.f32 1.4214138, %v5641_v25 }
0x17fc   : > { %v5662_v17 = vadd.f32 -0.28449672, %v5654_v34  ;;  %v10222_v29 = vpop.eup %7709  ;;  %v5659_v31 = vmul.f32 %v10201_v24, %v5651_v32  ;;  %v5644_v38 = vmul.f32 %v10216_v7, %v5636_v16  ;;  %7721 = vpow2.f32 %v5719_v46 }
0x17fd   : > { %v5727_v23 = vmul.f32 %v7704_v53, %v5687_v11  ;;  %v5685_v30 = vmul.f32 %v10174_v19, %v5677_v33  ;;  %v5680_v60 = vadd.f32 0.2548296, %v5672_v5  ;;  %v5626_v49 = vmul.f32 1.0614054, %v10222_v29  ;;  %v7712_v40 = vpop.eup %7711 }
0x17fe   : > { %v5670_v36 = vmul.f32 %v10188_v1, %v5662_v17  ;;  %v5667_v8 = vadd.f32 -0.28449672, %v5659_v31  ;;  %v5652_v11 = vadd.f32 1.4214138, %v5644_v38  ;;  %v7714_v34 = vpop.eup %7713 }
0x17ff   : > { %v5725_v58 = vmul.f32 %v7708_v42, %v5685_v30  ;;  %v5688_v54 = vmul.f32 %v10179_v52, %v5680_v60  ;;  %v5735_v19 = vsub.f32 1.0, %v5727_v23  ;;  %v5634_v51 = vadd.f32 -1.4531521, %v5626_v49  ;;  %v7716_v22 = vpop.eup %7715 }
0x1800   : > { %v5678_v57 = vadd.f32 0.2548296, %v5670_v36  ;;  %v5657_v52 = vmul.f32 %v10209_v20, %v5649_v4  ;;  %v5675_v3 = vmul.f32 %v10201_v24, %v5667_v8  ;;  %v5660_v17 = vmul.f32 %v10216_v7, %v5652_v11 }
0x1801   : > { %v5733_v62 = vsub.f32 1.0, %v5725_v58  ;;  %v5728_v50 = vmul.f32 %v7712_v40, %v5688_v54  ;;  %v5642_v33 = vmul.f32 %v10222_v29, %v5634_v51  ;;  %v5743_v9 = vmul.f32 %v5735_v19, %v10186_v37  ;;  %v7718_v54 = vpop.eup %7717 }
0x1802   : > { %v5686_v53 = vmul.f32 %v10188_v1, %v5678_v57  ;;  %v5665_v23 = vadd.f32 -0.28449672, %v5657_v52  ;;  %v5683_v42 = vadd.f32 0.2548296, %v5675_v3  ;;  %v5549_v60 = vmul.f32 0.5, %v10125_v0  ;;  %v7720_v4 = vpop.eup %7719 }
0x1803   : > { %v5736_v15 = vsub.f32 1.0, %v5728_v50  ;;  %v5741_v5 = vmul.f32 %v5733_v62, %v10195_v21  ;;  %v5650_v30 = vadd.f32 1.4214138, %v5642_v33  ;;  %v5668_v25 = vadd.f32 -0.28449672, %v5660_v17 }
0x1804   : > { %v5726_v2 = vmul.f32 %v7714_v34, %v5686_v53  ;;  %v5673_v36 = vmul.f32 %v10209_v20, %v5665_v23  ;;  %v5574_v21 = vsel %vm5566_vm1, 1.0, %v7763_v47  ;;  %v5691_v46 = vmul.f32 %v10201_v24, %v5683_v42 }
0x1805   : > { %v5744_v1 = vmul.f32 %v5736_v15, %v5576_v26  ;;  %v5658_v58 = vmul.f32 %v10222_v29, %v5650_v30  ;;  %v5749_v37 = vadd.f32 1.0, %v5741_v5  ;;  %v5676_v49 = vmul.f32 %v10216_v7, %v5668_v25 }
0x1806   : > { %v5734_v32 = vsub.f32 1.0, %v5726_v2  ;;  %v5681_v31 = vadd.f32 0.2548296, %v5673_v36  ;;  %v5751_v0 = vadd.f32 1.0, %v5743_v9  ;;  %v5552_v40 = vmul.f32 0.5, %v10131_v63 }
0x1807   : > { %v5752_v16 = vadd.f32 1.0, %v5744_v1  ;;  %v5550_v19 = vmul.f32 0.5, %v10137_v27  ;;  %v5666_v57 = vadd.f32 -0.28449672, %v5658_v58  ;;  %v5731_v44 = vmul.f32 %v7716_v22, %v5691_v46 }
0x1808   : > { %v5742_v26 = vmul.f32 %v5734_v32, %v5574_v21  ;;  %v5689_v62 = vmul.f32 %v10209_v20, %v5681_v31  ;;  %v5684_v24 = vadd.f32 0.2548296, %v5676_v49  ;;  %v5551_v50 = vmul.f32 0.5, %v10120_v35 }
0x1809   : > { %v5760_v8 = vmul.f32 %v5752_v16, %v5552_v40  ;;  %v5674_v51 = vmul.f32 %v10222_v29, %v5666_v57  ;;  %v5757_v53 = vmul.f32 %v5749_v37, %v5549_v60  ;;  %v5739_v20 = vsub.f32 1.0, %v5731_v44  ;;  %v7722_v2 = vpop.eup %7721 }
0x180a   : > { %v5750_v38 = vadd.f32 1.0, %v5742_v26  ;;  %v5729_v11 = vmul.f32 %v7718_v54, %v5689_v62  ;;  %v5692_v63 = vmul.f32 %v10216_v7, %v5684_v24  ;;  %v5759_v27 = vmul.f32 %v5751_v0, %v5551_v50 }
0x180b   : > { %v5682_v34 = vadd.f32 0.2548296, %v5674_v51  ;;  %v5579_v23 = vsel %vm5571_vm2, 1.0, %v7763_v47  ;;  %v5577_v7 = vsel %vm5569_vm3, 1.0, %v7763_v47  ;;  %v5578_v30 = vsel %vm5570_vm5, 1.0, %v7763_v47 }
0x180c   : > { %v5758_v52 = vmul.f32 %v5750_v38, %v5550_v19  ;;  %v5737_v15 = vsub.f32 1.0, %v5729_v11  ;;  %v5732_v3 = vmul.f32 %v7720_v4, %v5692_v63  ;;  %v5783_v33 = vpack.c.bf16 %v5760_v8, %v5759_v27  ;;  %v6323_v47 = vld [vmem:[%s10374_s8 + $0x1] ss:$0 sm:$0xff] }
0x180d   : > { %v5690_v5 = vmul.f32 %v10222_v29, %v5682_v34  ;;  %v5747_v9 = vmul.f32 %v5739_v20, %v5579_v23  ;;  %v5556_v36 = vmul.f32 0.5, %v10155_v13  ;;  %v5553_v25 = vmul.f32 0.5, %v10146_v48 }
0x180e   : > { %v5782_v35 = vpack.c.bf16 %v5758_v52, %v5757_v53  ;;  %v5740_v17 = vsub.f32 1.0, %v5732_v3  ;;  %v5745_v39 = vmul.f32 %v5737_v15, %v5577_v7  ;;  %v5554_v16 = vmul.f32 0.5, %v10161_v14 }
0x180f   : > { %v5730_v22 = vmul.f32 %v7722_v2, %v5690_v5  ;;  %v5755_v32 = vadd.f32 1.0, %v5747_v9 }
0x1810   : > { %7044 = vmatprep.mubr.bf16.mxu1 %v5782_v35  ;;  %v5748_v1 = vmul.f32 %v5740_v17, %v5580_v56  ;;  %v5753_v60 = vadd.f32 1.0, %v5745_v39 }
0x1811   : > { %7045 = vmatmul.mubr.bf16.vlgmr.msra.gmra.mxu1 %v5783_v33  ;;  %v5738_v42 = vsub.f32 1.0, %v5730_v22  ;;  %v5763_v37 = vmul.f32 %v5755_v32, %v5555_v41 }
0x1812   : > { %v5756_v29 = vadd.f32 1.0, %v5748_v1  ;;  %v5761_v58 = vmul.f32 %v5753_v60, %v5553_v25 }
0x1813   : > { %v5746_v12 = vmul.f32 %v5738_v42, %v5578_v30 }
0x1814   : > { %v5764_v46 = vmul.f32 %v5756_v29, %v5556_v36 }
0x1815   : > { %v5754_v21 = vadd.f32 1.0, %v5746_v12 }
0x1816   : > { %v5785_v31 = vpack.c.bf16 %v5764_v46, %v5763_v37 }
0x1817   : > { %v5762_v54 = vmul.f32 %v5754_v21, %v5554_v16 }
0x1819   : > { %v5784_v26 = vpack.c.bf16 %v5762_v54, %v5761_v58 }
0x181b   : > { %7048 = vmatprep.mubr.bf16.mxu1 %v5784_v26 }
0x181c   : > { %7049 = vmatmul.mubr.bf16.gmra.mxu1 %v5785_v31 }
0x18d1   : > { %v7046_v13 = vpop.f32.mrf.mxu1 }
0x18d2   : > { %v5885_v49 = vadd.f32 %v7046_v13, %v6323_v47 }
0x18d3   : > { %v5876_v48 = vpop.f32.mrf.mxu1 }
0x18d4   : > { %v5909_v14 = vadd.f32 %v5885_v49, %v10069_v61  ;;  %v5877_v0 = vadd.f32 %v6323_v47, %v5876_v48 }
0x18d5   : > { %v7047_v40 = vpop.f32.mrf.mxu1 }
0x18d6   : > { %v5907_v28 = vadd.f32 %v5877_v0, %v10060_v10  ;;  %v5888_v19 = vadd.f32 %v7047_v40, %v6323_v47  ;;  %v5925_v57 = vsel %vm542_vm0, %v5909_v14, 0.0 }
0x18d7   : > { %5926 = vadd.xlane.f32.xlu1 %v5925_v57  ;;  %v5879_v4 = vpop.f32.mrf.mxu1 }
0x18d8   : > { %v5910_v38 = vadd.f32 %v5888_v19, %v10071_v59  ;;  %v5880_v44 = vadd.f32 %v6323_v47, %v5879_v4  ;;  %v5919_v50 = vsel %vm542_vm0, %v5907_v28, 0.0 }
0x18da   : > { %v5908_v62 = vadd.f32 %v5880_v44, %v10063_v43  ;;  %v5928_v24 = vsel %vm542_vm0, %v5910_v38, 0.0 }
0x18db   : > { %5929 = vadd.xlane.f32.xlu0 %v5928_v24  ;;  %5920 = vadd.xlane.f32.xlu1 %v5919_v50 }
0x18dc   : > { %v7050_v61 = vpop.f32.mrf.mxu1  ;;  %v5922_v8 = vsel %vm542_vm0, %v5908_v62, 0.0 }
0x18dd   : > { %v5901_v51 = vadd.f32 %v7050_v61, %v6323_v47 }
0x18de   : > { %v5892_v10 = vpop.f32.mrf.mxu1 }
0x18df   : > { %5923 = vadd.xlane.f32.xlu0 %v5922_v8  ;;  %v5893_v53 = vadd.f32 %v6323_v47, %v5892_v10  ;;  %v5913_v63 = vadd.f32 %v5901_v51, %v10085_v55 }
0x18e0   : > { %v7051_v52 = vpop.f32.mrf.mxu1 }
0x18e1   : > { %v5911_v11 = vadd.f32 %v5893_v53, %v10079_v18  ;;  %v5904_v43 = vadd.f32 %v7051_v52, %v6323_v47  ;;  %v5937_v35 = vsel %vm542_vm0, %v5913_v63, 0.0 }
0x18e2   : > { %v5895_v59 = vpop.f32.mrf.mxu1 }
0x18e3   : > { %v5896_v27 = vadd.f32 %v6323_v47, %v5895_v59  ;;  %v5931_v34 = vsel %vm542_vm0, %v5911_v11, 0.0  ;;  %v5914_v15 = vadd.f32 %v5904_v43, %v10087_v6 }
0x18e4   : > { %5932 = vadd.xlane.f32.xlu1 %v5931_v34 }
0x18e5   : > { %v5912_v20 = vadd.f32 %v5896_v27, %v10081_v45  ;;  %v5940_v18 = vsel %vm542_vm0, %v5914_v15, 0.0 }
0x18e7   : > { %v5934_v3 = vsel %vm542_vm0, %v5912_v20, 0.0 }
0x18e8   : > { %5935 = vadd.xlane.f32.xlu0 %v5934_v3  ;;  %5938 = vadd.xlane.f32.xlu1 %v5937_v35 }
0x18ec   : > { %5941 = vadd.xlane.f32.xlu0 %v5940_v18 }
0x1960   : > { %v5927_v33 = vpop.xlane.xlu1 %5926 }
0x1961   : > { %v5945_v55 = vmul.f32 0.03125, %v5927_v33 }
0x1963   : > { %v10286_v5 = vsub.f32 %v5909_v14, %v5945_v55 }
0x1964   : > { %v5921_v2 = vpop.xlane.xlu1 %5920  ;;  %v5930_v23 = vpop.xlane.xlu0 %5929 }
0x1965   : > { %v5943_v7 = vmul.f32 0.03125, %v5921_v2  ;;  %v5946_v17 = vmul.f32 0.03125, %v5930_v23  ;;  %v5961_v45 = vmul.f32 %v10286_v5, %v10286_v5 }
0x1967   : > { %v10290_v6 = vsub.f32 %v5907_v28, %v5943_v7  ;;  %v10292_v39 = vsub.f32 %v5910_v38, %v5946_v17  ;;  %v5973_v56 = vsel %vm542_vm0, %v5961_v45, 0.0 }
0x1968   : > { %5974 = vadd.xlane.f32.xlu1 %v5973_v56  ;;  %v5924_v22 = vpop.xlane.xlu0 %5923 }
0x1969   : > { %v5944_v9 = vmul.f32 0.03125, %v5924_v22  ;;  %v5959_v1 = vmul.f32 %v10290_v6, %v10290_v6  ;;  %v5962_v42 = vmul.f32 %v10292_v39, %v10292_v39 }
0x196b   : > { %v10299_v29 = vsub.f32 %v5908_v62, %v5944_v9  ;;  %v5967_v30 = vsel %vm542_vm0, %v5959_v1, 0.0  ;;  %v5976_v60 = vsel %vm542_vm0, %v5962_v42, 0.0 }
0x196c   : > { %5968 = vadd.xlane.f32.xlu1 %v5967_v30  ;;  %5977 = vadd.xlane.f32.xlu0 %v5976_v60 }
0x196d   : > { %v5960_v12 = vmul.f32 %v10299_v29, %v10299_v29  ;;  %v5933_v32 = vpop.xlane.xlu1 %5932 }
0x196e   : > { %v5947_v25 = vmul.f32 0.03125, %v5933_v32 }
0x196f   : > { %v5970_v36 = vsel %vm542_vm0, %v5960_v12, 0.0 }
0x1970   : > { %5971 = vadd.xlane.f32.xlu0 %v5970_v36  ;;  %v10306_v16 = vsub.f32 %v5911_v11, %v5947_v25 }
0x1971   : > { %v5939_v21 = vpop.xlane.xlu1 %5938  ;;  %v5936_v41 = vpop.xlane.xlu0 %5935 }
0x1972   : > { %v5949_v46 = vmul.f32 0.03125, %v5939_v21  ;;  %v5948_v58 = vmul.f32 0.03125, %v5936_v41  ;;  %v5963_v54 = vmul.f32 %v10306_v16, %v10306_v16 }
0x1974   : > { %v10310_v37 = vsub.f32 %v5913_v63, %v5949_v46  ;;  %v10312_v26 = vsub.f32 %v5912_v20, %v5948_v58  ;;  %v5979_v31 = vsel %vm542_vm0, %v5963_v54, 0.0  ;;  %v6334_v63 = vld [vmem:[%s10375_s9 + $0x3] ss:$0 sm:$0xff] }
0x1975   : > { %5980 = vadd.xlane.f32.xlu1 %v5979_v31  ;;  %v5942_v47 = vpop.xlane.xlu0 %5941 }
0x1976   : > { %v5950_v13 = vmul.f32 0.03125, %v5942_v47  ;;  %v5965_v49 = vmul.f32 %v10310_v37, %v10310_v37  ;;  %v5964_v48 = vmul.f32 %v10312_v26, %v10312_v26 }
0x1978   : > { %v10319_v14 = vsub.f32 %v5914_v15, %v5950_v13  ;;  %v5985_v0 = vsel %vm542_vm0, %v5965_v49, 0.0  ;;  %v5982_v40 = vsel %vm542_vm0, %v5964_v48, 0.0  ;;  %v6335_v15 = vld [vmem:[%s10376_s10 + $0x3] ss:$0 sm:$0xff] }
0x1979   : > { %5986 = vadd.xlane.f32.xlu1 %v5985_v0  ;;  %5983 = vadd.xlane.f32.xlu0 %v5982_v40 }
0x197a   : > { %v5966_v28 = vmul.f32 %v10319_v14, %v10319_v14 }
0x197c   : > { %v5988_v19 = vsel %vm542_vm0, %v5966_v28, 0.0 }
0x197d   : > { %5989 = vadd.xlane.f32.xlu0 %v5988_v19 }
0x19f1   : > { %v5975_v57 = vpop.xlane.xlu1 %5974 }
0x19f2   : > { %v5993_v4 = vmul.f32 0.03125, %v5975_v57 }
0x19f4   : > { %v6001_v38 = vadd.f32 1e-05, %v5993_v4 }
0x19f5   : > { %v5969_v44 = vpop.xlane.xlu1 %5968  ;;  %v5978_v62 = vpop.xlane.xlu0 %5977 }
0x19f6   : > { %7723 = vrsqrt.f32 %v6001_v38  ;;  %v5991_v24 = vmul.f32 0.03125, %v5969_v44  ;;  %v5994_v50 = vmul.f32 0.03125, %v5978_v62 }
0x19f8   : > { %v5999_v61 = vadd.f32 1e-05, %v5991_v24  ;;  %v6002_v8 = vadd.f32 1e-05, %v5994_v50 }
0x19f9   : > { %v5972_v10 = vpop.xlane.xlu0 %5971 }
0x19fa   : > { %7725 = vrsqrt.f32 %v5999_v61  ;;  %v5992_v51 = vmul.f32 0.03125, %v5972_v10 }
0x19fb   : > { %7727 = vrsqrt.f32 %v6002_v8 }
0x19fc   : > { %v6000_v53 = vadd.f32 1e-05, %v5992_v51 }
0x19fe   : > { %7729 = vrsqrt.f32 %v6000_v53  ;;  %v5981_v52 = vpop.xlane.xlu1 %5980 }
0x19ff   : > { %v5995_v11 = vmul.f32 0.03125, %v5981_v52 }
0x1a01   : > { %v6003_v43 = vadd.f32 1e-05, %v5995_v11 }
0x1a02   : > { %v5987_v34 = vpop.xlane.xlu1 %5986  ;;  %v5984_v20 = vpop.xlane.xlu0 %5983 }
0x1a03   : > { %v7724_v59 = vpop.eup %7723  ;;  %7731 = vrsqrt.f32 %v6003_v43  ;;  %v5997_v3 = vmul.f32 0.03125, %v5987_v34  ;;  %v5996_v35 = vmul.f32 0.03125, %v5984_v20 }
0x1a04   : > { %v6017_v27 = vmul.f32 %v7724_v59, %v10286_v5 }
0x1a05   : > { %v6005_v55 = vadd.f32 1e-05, %v5997_v3  ;;  %v6004_v5 = vadd.f32 1e-05, %v5996_v35 }
0x1a06   : > { %v6031_v18 = vmul.f32 %v6334_v63, %v6017_v27  ;;  %v5990_v17 = vpop.xlane.xlu0 %5989 }
0x1a07   : > { %v7726_v33 = vpop.eup %7725  ;;  %7733 = vrsqrt.f32 %v6005_v55  ;;  %v5998_v56 = vmul.f32 0.03125, %v5990_v17 }
0x1a08   : > { %v7728_v2 = vpop.eup %7727  ;;  %v6045_v23 = vadd.f32 %v6335_v15, %v6031_v18  ;;  %v6015_v7 = vmul.f32 %v7726_v33, %v10290_v6  ;;  %7735 = vrsqrt.f32 %v6004_v5 }
0x1a09   : > { %v6018_v45 = vmul.f32 %v7728_v2, %v10292_v39  ;;  %v6006_v42 = vadd.f32 1e-05, %v5998_v56 }
0x1a0a   : > { %6053 = vst.msk [vmem:[%s10338_s24 + $0x10] sm:$0xff] %vm542_vm0, %v6045_v23  ;;  %v6029_v22 = vmul.f32 %v6334_v63, %v6015_v7 }
0x1a0b   : > { %v7730_v9 = vpop.eup %7729  ;;  %v6032_v1 = vmul.f32 %v6334_v63, %v6018_v45  ;;  %7737 = vrsqrt.f32 %v6006_v42 }
0x1a0c   : > { %v6043_v30 = vadd.f32 %v6335_v15, %v6029_v22  ;;  %v6016_v60 = vmul.f32 %v7730_v9, %v10299_v29 }
0x1a0d   : > { %v6046_v12 = vadd.f32 %v6335_v15, %v6032_v1 }
0x1a0e   : > { %6051 = vst.msk [vmem:[%s10338_s24] sm:$0xff] %vm542_vm0, %v6043_v30  ;;  %v6030_v6 = vmul.f32 %v6334_v63, %v6016_v60 }
0x1a0f   : > { %6054 = vst.msk [vmem:[%s10338_s24 + $0x18] sm:$0xff] %vm542_vm0, %v6046_v12 }
0x1a10   : > { %v6044_v39 = vadd.f32 %v6335_v15, %v6030_v6  ;;  %v7732_v32 = vpop.eup %7731 }
0x1a11   : > { %v6019_v36 = vmul.f32 %v7732_v32, %v10306_v16 }
0x1a12   : > { %6052 = vst.msk [vmem:[%s10338_s24 + $0x8] sm:$0xff] %vm542_vm0, %v6044_v39 }
0x1a13   : > { %v6033_v25 = vmul.f32 %v6334_v63, %v6019_v36 }
0x1a14   : > { %v7734_v21 = vpop.eup %7733 }
0x1a15   : > { %v7736_v29 = vpop.eup %7735  ;;  %v6047_v41 = vadd.f32 %v6335_v15, %v6033_v25  ;;  %v6021_v46 = vmul.f32 %v7734_v21, %v10310_v37 }
0x1a16   : > { %v6020_v58 = vmul.f32 %v7736_v29, %v10312_v26 }
0x1a17   : > { %6055 = vst.msk [vmem:[%s10338_s24 + $0x20] sm:$0xff] %vm542_vm0, %v6047_v41  ;;  %v6035_v54 = vmul.f32 %v6334_v63, %v6021_v46 }
0x1a18   : > { %v7738_v31 = vpop.eup %7737  ;;  %v6034_v47 = vmul.f32 %v6334_v63, %v6020_v58 }
0x1a19   : > { %v6049_v13 = vadd.f32 %v6335_v15, %v6035_v54  ;;  %v6022_v49 = vmul.f32 %v7738_v31, %v10319_v14 }
0x1a1a   : > { %v6048_v48 = vadd.f32 %v6335_v15, %v6034_v47 }
0x1a1b   : > { %6057 = vst.msk [vmem:[%s10338_s24 + $0x30] sm:$0xff] %vm542_vm0, %v6049_v13  ;;  %v6036_v16 = vmul.f32 %v6334_v63, %v6022_v49 }
0x1a1c   : > { %6056 = vst.msk [vmem:[%s10338_s24 + $0x28] sm:$0xff] %vm542_vm0, %v6048_v48 }
0x1a1d   : > { %v6050_v0 = vadd.f32 %v6335_v15, %v6036_v16 }
0x1a1f   : > { %6058 = vst.msk [vmem:[%s10338_s24 + $0x38] sm:$0xff] %vm542_vm0, %v6050_v0 }
0x1a20 PF: > { %s25_s18 = sadd.s32 1, %s7753_s18  }
0x1a21   : > { %p22_p4 = scmp.ge.s32.totalorder %s25_s18, 4  }
0x1a23   :  { %24 = sbr.rel (!%p22_p4) target bundleno = 1 (0x1), region = 128 }

</bundles_post_ra>
